<compile_context>
chip_gen: v7x
topology: tpu7x:2x2x1
jax: 0.10.0
libtpu: 0.0.40
codegen_flags: <defaults>
</compile_context>

<pallas_src>
import jax
import jax.numpy as jnp
import numpy as np
from jax import lax
from jax.experimental import pallas as pl
from jax.experimental.pallas import tpu as pltpu


def make_inception_a_kernel(H, W, Cin, B1, B2, B3N1, B3N3, B4N1, B4N3):
    HP, WP = H + 2, W + 2
    Cpad = max(B3N1, B4N1, B4N3)
    Ctot = B1 + B2 + B3N3 + B4N3

    def kernel(x_ref,                                     # (1, H, W, Cin) input tile
               w1_ref, b1_ref,                            # branch1 1x1 (folded)
               wA_ref, bA_ref,                            # fused 1x1 for branches 2/3/4
               w3b_ref, b3b_ref,                          # branch3 3x3 (im2col layout)
               w4b_ref, b4b_ref,                          # branch4 3x3 (first)
               w4c_ref, b4c_ref,                          # branch4 3x3 (second)
               o_ref,                                     # (1, H, W, Ctot) fused output
               xpad_ref, padt_ref, patch_ref):            # VMEM scratches
        f32, bf16 = jnp.float32, jnp.bfloat16

        def mm(a_bf16, w_ref):
            # bf16 x bf16 -> f32 accumulate on the MXU.
            return jnp.dot(a_bf16, w_ref[...], preferred_element_type=f32)

        def bias_relu(acc, b_ref):
            return jnp.maximum(acc + b_ref[...], 0.0)

        # ---- zero only the 1-pixel halo strips of the padded scratches.
        # Interiors are fully overwritten below.  Done every grid step so it
        # remains correct when the "parallel" axis is sharded across cores.
        xpad_ref[0:1, :, :] = jnp.zeros((1, WP, Cin), f32)
        xpad_ref[HP - 1:HP, :, :] = jnp.zeros((1, WP, Cin), f32)
        xpad_ref[:, 0:1, :] = jnp.zeros((HP, 1, Cin), f32)
        xpad_ref[:, WP - 1:WP, :] = jnp.zeros((HP, 1, Cin), f32)
        padt_ref[0:1, :, :] = jnp.zeros((1, WP, Cpad), bf16)
        padt_ref[HP - 1:HP, :, :] = jnp.zeros((1, WP, Cpad), bf16)
        padt_ref[:, 0:1, :] = jnp.zeros((HP, 1, Cpad), bf16)
        padt_ref[:, WP - 1:WP, :] = jnp.zeros((HP, 1, Cpad), bf16)

        x = x_ref[0]                                      # (H, W, Cin) f32
        xpad_ref[1:H + 1, 1:W + 1, :] = x
        xf = x.reshape(H * W, Cin).astype(bf16)

        # ---- fused 1x1 convs for branches 2, 3, 4 (one MXU pass) ----------
        tA = bias_relu(mm(xf, wA_ref), bA_ref)            # (H*W, B2+B3N1+B4N1) f32
        y2 = tA[:, 0:B2]
        t3 = tA[:, B2:B2 + B3N1]
        t4 = tA[:, B2 + B3N1:B2 + B3N1 + B4N1]

        # ---- branch 1: 3x3 avgpool (count_include_pad=True) + 1x1 ---------
        col = (xpad_ref[0:H, :, :] + xpad_ref[1:H + 1, :, :] +
               xpad_ref[2:H + 2, :, :])                   # (H, W+2, Cin)
        pool = (col[:, 0:W, :] + col[:, 1:W + 1, :] +
                col[:, 2:W + 2, :]) * (1.0 / 9.0)         # (H, W, Cin)
        y1 = bias_relu(mm(pool.reshape(H * W, Cin).astype(bf16), w1_ref), b1_ref)

        # ---- 3x3 stride-1 pad-1 conv via im2col + a single matmul ---------
        def conv3x3(t, cin, w_ref, b_ref):
            # t: (H*W, cin) f32 post-ReLU activation.
            padt_ref[1:H + 1, 1:W + 1, 0:cin] = t.reshape(H, W, cin).astype(bf16)
            for dh in range(3):
                for dw in range(3):
                    tap = dh * 3 + dw
                    patch_ref[:, :, tap * cin:(tap + 1) * cin] = \
                        padt_ref[dh:dh + H, dw:dw + W, 0:cin]
            patch = patch_ref[:, :, 0:9 * cin].reshape(H * W, 9 * cin)
            return bias_relu(mm(patch, w_ref), b_ref)

        # ---- branch 3: 1x1 -> 3x3 ----
        y3 = conv3x3(t3, B3N1, w3b_ref, b3b_ref)

        # ---- branch 4: 1x1 -> 3x3 -> 3x3 ----
        t4b = conv3x3(t4, B4N1, w4b_ref, b4b_ref)
        y4 = conv3x3(t4b, B4N3, w4c_ref, b4c_ref)

        # ---- single fused NHWC output; branches at static channel offsets -
        o_ref[0, :, :, 0:B1] = y1.reshape(H, W, B1)
        o_ref[0, :, :, B1:B1 + B2] = y2.reshape(H, W, B2)
        o_ref[0, :, :, B1 + B2:B1 + B2 + B3N3] = y3.reshape(H, W, B3N3)
        o_ref[0, :, :, B1 + B2 + B3N3:Ctot] = y4.reshape(H, W, B4N3)

    return kernel


def prepare_params(raw_params, eps=1e-5):
    """Fold eval-mode BatchNorm into each conv; cast weights to bf16.

    raw_params: 7 stages, each (w, gamma, beta, mean, var) with 1x1 weights
    shaped (Cin, Cout) and 3x3 weights shaped (3, 3, Cin, Cout) [HWIO].
    Returns per-stage (weight_bf16_scale_folded, bias_f32).
    """
    def fold(w, gamma, beta, mean, var):
        scale = gamma / jnp.sqrt(var + eps)
        bias = beta - mean * scale
        return (w * scale).astype(jnp.bfloat16), bias.astype(jnp.float32)
    return tuple(fold(*p) for p in raw_params)


def inception_a_forward(x_nchw, prepared, out_layout="NCHW"):
    (w1, b1), (w2, b2), (w3a, b3a), (w3b, b3b), \
        (w4a, b4a), (w4b, b4b), (w4c, b4c) = prepared
    N, Cin, H, W = x_nchw.shape
    B1, B2 = w1.shape[1], w2.shape[1]
    B3N1, B3N3 = w3a.shape[1], w3b.shape[3]
    B4N1, B4N3 = w4a.shape[1], w4b.shape[3]
    Ctot = B1 + B2 + B3N3 + B4N3
    Cpad = max(B3N1, B4N1, B4N3)

    # Fuse the three 1x1 convs that consume x into one weight/bias.
    wA = jnp.concatenate([w2, w3a, w4a], axis=1)                   # (Cin, B2+B3N1+B4N1)
    bA = jnp.concatenate([b2, b3a, b4a], axis=0).reshape(1, -1)

    # 3x3 weights -> im2col layout (9*Cin, Cout), tap-major (dh, dw, cin).
    w3b_m = w3b.reshape(9 * B3N1, B3N3)
    w4b_m = w4b.reshape(9 * B4N1, B4N3)
    w4c_m = w4c.reshape(9 * B4N3, B4N3)

    b1r = b1.reshape(1, B1)
    b3br = b3b.reshape(1, B3N3)
    b4br = b4b.reshape(1, B4N3)
    b4cr = b4c.reshape(1, B4N3)

    x_nhwc = jnp.transpose(x_nchw, (0, 2, 3, 1))   # drop if model is already NHWC

    kernel = make_inception_a_kernel(H, W, Cin, B1, B2, B3N1, B3N3, B4N1, B4N3)

    consts = [w1, b1r, wA, bA, w3b_m, b3br, w4b_m, b4br, w4c_m, b4cr]

    def const_spec(p):
        nd = p.ndim
        return pl.BlockSpec(p.shape, lambda n, nd=nd: (0,) * nd)

    out = pl.pallas_call(
        kernel,
        out_shape=jax.ShapeDtypeStruct((N, H, W, Ctot), jnp.float32),
        grid=(N,),
        in_specs=[pl.BlockSpec((1, H, W, Cin), lambda n: (n, 0, 0, 0))]
                 + [const_spec(p) for p in consts],
        out_specs=pl.BlockSpec((1, H, W, Ctot), lambda n: (n, 0, 0, 0)),
        scratch_shapes=[
            pltpu.VMEM((H + 2, W + 2, Cin), jnp.float32),    # padded x (avgpool)
            pltpu.VMEM((H + 2, W + 2, Cpad), jnp.bfloat16),  # padded intermediates
            pltpu.VMEM((H, W, 9 * Cpad), jnp.bfloat16),      # im2col patch buffer
        ],
        compiler_params=pltpu.CompilerParams(dimension_semantics=("parallel",)),
    )(x_nhwc, *consts)

    if out_layout == "NHWC":
        return out
    return jnp.transpose(out, (0, 3, 1, 2))                  # back to NCHW


def reference_forward(x_nchw, prepared):
    """Pure-JAX reference using the same prepared (folded, bf16) params and
    the same bf16-operand / f32-accumulate precision regime."""
    (w1, b1), (w2, b2), (w3a, b3a), (w3b, b3b), \
        (w4a, b4a), (w4b, b4b), (w4c, b4c) = prepared
    x = jnp.transpose(x_nchw, (0, 2, 3, 1)).astype(jnp.float32)

    def br(y, b):
        return jnp.maximum(y + b, 0.0)

    def c1(z, w):
        return jnp.einsum("nhwc,cd->nhwd", z.astype(jnp.bfloat16), w,
                          preferred_element_type=jnp.float32)

    def c3(z, w):
        return lax.conv_general_dilated(
            z.astype(jnp.bfloat16), w, (1, 1), "SAME",
            dimension_numbers=("NHWC", "HWIO", "NHWC"),
            preferred_element_type=jnp.float32)

    pool = lax.reduce_window(x, 0.0, lax.add, (1, 3, 3, 1), (1, 1, 1, 1), "SAME") / 9.0
    o1 = br(c1(pool, w1), b1)
    o2 = br(c1(x, w2), b2)
    o3 = br(c3(br(c1(x, w3a), b3a), w3b), b3b)
    t = br(c3(br(c1(x, w4a), b4a), w4b), b4b)
    o4 = br(c3(t, w4c), b4c)
    out = jnp.concatenate([o1, o2, o3, o4], axis=-1)
    return jnp.transpose(out, (0, 3, 1, 2))


def conv_bn_raw(key, w_shape, cout):
    kw, kg, kb, km, kv = jax.random.split(key, 5)
    w = jax.random.normal(kw, w_shape, jnp.float32) * 0.2
    gamma = jax.random.uniform(kg, (cout,), jnp.float32, minval=0.5, maxval=1.5)
    beta = jax.random.normal(kb, (cout,), jnp.float32) * 0.1
    mean = jax.random.normal(km, (cout,), jnp.float32) * 0.1
    var = jax.random.uniform(kv, (cout,), jnp.float32, minval=0.5, maxval=1.5)
    return w, gamma, beta, mean, var


if __name__ == "__main__":
    # Small shapes consistent with the module: x is NCHW.
    N, Cin, H, W = 2, 4, 16, 16
    b1, b2, b3_n1, b3_n3, b4_n1, b4_n3 = 8, 6, 4, 8, 4, 8

    key = jax.random.PRNGKey(0)
    keys = jax.random.split(key, 8)
    x = jax.random.normal(keys[0], (N, Cin, H, W), jnp.float32)

    # weights: 1x1 convs as (Cin, Cout); 3x3 convs as (3, 3, Cin, Cout) (HWIO)
    raw_params = (
        conv_bn_raw(keys[1], (Cin, b1), b1),                 # branch1 1x1
        conv_bn_raw(keys[2], (Cin, b2), b2),                 # branch2 1x1
        conv_bn_raw(keys[3], (Cin, b3_n1), b3_n1),           # branch3 1x1
        conv_bn_raw(keys[4], (3, 3, b3_n1, b3_n3), b3_n3),   # branch3 3x3
        conv_bn_raw(keys[5], (Cin, b4_n1), b4_n1),           # branch4 1x1
        conv_bn_raw(keys[6], (3, 3, b4_n1, b4_n3), b4_n3),   # branch4 3x3
        conv_bn_raw(keys[7], (3, 3, b4_n3, b4_n3), b4_n3),   # branch4 3x3
    )
    prepared = prepare_params(raw_params)

    out = inception_a_forward(x, prepared)
    out = jax.block_until_ready(out)

    ref = reference_forward(x, prepared)
    assert out.shape == (N, b1 + b2 + b3_n3 + b4_n3, H, W)
    np.testing.assert_allclose(np.asarray(out), np.asarray(ref), atol=1e-2, rtol=1e-2)
    print("KERNEL_OK")
</pallas_src>

<mosaic_0001>
module attributes {stable_mosaic.version = 11 : i64} {
  func.func @kernel(%arg0: i32, %arg1: memref<1x16x16x4xf32, #tpu.memory_space<vmem>>, %arg2: memref<4x8xbf16, #tpu.memory_space<vmem>>, %arg3: memref<1x8xf32, #tpu.memory_space<vmem>>, %arg4: memref<4x14xbf16, #tpu.memory_space<vmem>>, %arg5: memref<1x14xf32, #tpu.memory_space<vmem>>, %arg6: memref<36x8xbf16, #tpu.memory_space<vmem>>, %arg7: memref<1x8xf32, #tpu.memory_space<vmem>>, %arg8: memref<36x8xbf16, #tpu.memory_space<vmem>>, %arg9: memref<1x8xf32, #tpu.memory_space<vmem>>, %arg10: memref<72x8xbf16, #tpu.memory_space<vmem>>, %arg11: memref<1x8xf32, #tpu.memory_space<vmem>>, %arg12: memref<1x16x16x30xf32, #tpu.memory_space<vmem>>, %arg13: memref<18x18x4xf32, #tpu.memory_space<vmem>>, %arg14: memref<18x18x8xbf16, #tpu.memory_space<vmem>>, %arg15: memref<16x16x72xbf16, #tpu.memory_space<vmem>>) attributes {dimension_semantics = [#tpu.dimension_semantics<parallel>], iteration_bounds = array<i64: 2>, scalar_prefetch = 0 : i64, scratch_operands = 3 : i64, tpu.core_type = #tpu.core_type<tc>, window_params = [{transform_indices = @transform_0, window_bounds = array<i64: 1, 16, 16, 4>}, {pipeline_mode = #tpu.pipeline_mode<synchronous>, transform_indices = @transform_1, window_bounds = array<i64: 4, 8>}, {pipeline_mode = #tpu.pipeline_mode<synchronous>, transform_indices = @transform_2, window_bounds = array<i64: 1, 8>}, {pipeline_mode = #tpu.pipeline_mode<synchronous>, transform_indices = @transform_3, window_bounds = array<i64: 4, 14>}, {pipeline_mode = #tpu.pipeline_mode<synchronous>, transform_indices = @transform_4, window_bounds = array<i64: 1, 14>}, {pipeline_mode = #tpu.pipeline_mode<synchronous>, transform_indices = @transform_5, window_bounds = array<i64: 36, 8>}, {pipeline_mode = #tpu.pipeline_mode<synchronous>, transform_indices = @transform_6, window_bounds = array<i64: 1, 8>}, {pipeline_mode = #tpu.pipeline_mode<synchronous>, transform_indices = @transform_7, window_bounds = array<i64: 36, 8>}, {pipeline_mode = #tpu.pipeline_mode<synchronous>, transform_indices = @transform_8, window_bounds = array<i64: 1, 8>}, {pipeline_mode = #tpu.pipeline_mode<synchronous>, transform_indices = @transform_9, window_bounds = array<i64: 72, 8>}, {pipeline_mode = #tpu.pipeline_mode<synchronous>, transform_indices = @transform_10, window_bounds = array<i64: 1, 8>}, {transform_indices = @transform_11, window_bounds = array<i64: 1, 16, 16, 30>}]} {
    %cst = arith.constant 0.000000e+00 : f32
    %0 = vector.broadcast %cst : f32 to vector<1x18x4xf32>
    %c0 = arith.constant 0 : index
    %c0_0 = arith.constant 0 : index
    %c0_1 = arith.constant 0 : index
    %1 = vector.load %arg13[%c0, %c0_0, %c0_1] : memref<18x18x4xf32, #tpu.memory_space<vmem>>, vector<1x18x4xf32>
    tpu.vector_store %arg13[%c0, %c0_0, %c0_1], %0 {strides = array<i32>} : memref<18x18x4xf32, #tpu.memory_space<vmem>>, vector<1x18x4xf32>,
    %cst_2 = arith.constant 0.000000e+00 : f32
    %2 = vector.broadcast %cst_2 : f32 to vector<1x18x4xf32>
    %c17 = arith.constant 17 : index
    %c0_3 = arith.constant 0 : index
    %c0_4 = arith.constant 0 : index
    %3 = vector.load %arg13[%c17, %c0_3, %c0_4] : memref<18x18x4xf32, #tpu.memory_space<vmem>>, vector<1x18x4xf32>
    tpu.vector_store %arg13[%c17, %c0_3, %c0_4], %2 {strides = array<i32>} : memref<18x18x4xf32, #tpu.memory_space<vmem>>, vector<1x18x4xf32>,
    %cst_5 = arith.constant 0.000000e+00 : f32
    %4 = vector.broadcast %cst_5 : f32 to vector<18x1x4xf32>
    %c0_6 = arith.constant 0 : index
    %c0_7 = arith.constant 0 : index
    %c0_8 = arith.constant 0 : index
    %5 = vector.load %arg13[%c0_6, %c0_7, %c0_8] : memref<18x18x4xf32, #tpu.memory_space<vmem>>, vector<18x1x4xf32>
    tpu.vector_store %arg13[%c0_6, %c0_7, %c0_8], %4 {strides = array<i32>} : memref<18x18x4xf32, #tpu.memory_space<vmem>>, vector<18x1x4xf32>,
    %cst_9 = arith.constant 0.000000e+00 : f32
    %6 = vector.broadcast %cst_9 : f32 to vector<18x1x4xf32>
    %c0_10 = arith.constant 0 : index
    %c17_11 = arith.constant 17 : index
    %c0_12 = arith.constant 0 : index
    %7 = vector.load %arg13[%c0_10, %c17_11, %c0_12] : memref<18x18x4xf32, #tpu.memory_space<vmem>>, vector<18x1x4xf32>
    tpu.vector_store %arg13[%c0_10, %c17_11, %c0_12], %6 {strides = array<i32>} : memref<18x18x4xf32, #tpu.memory_space<vmem>>, vector<18x1x4xf32>,
    %cst_13 = arith.constant 0.000000e+00 : bf16
    %8 = vector.broadcast %cst_13 : bf16 to vector<1x18x8xbf16>
    %c0_14 = arith.constant 0 : index
    %c0_15 = arith.constant 0 : index
    %c0_16 = arith.constant 0 : index
    %9 = vector.load %arg14[%c0_14, %c0_15, %c0_16] : memref<18x18x8xbf16, #tpu.memory_space<vmem>>, vector<1x18x8xbf16>
    tpu.vector_store %arg14[%c0_14, %c0_15, %c0_16], %8 {strides = array<i32>} : memref<18x18x8xbf16, #tpu.memory_space<vmem>>, vector<1x18x8xbf16>,
    %cst_17 = arith.constant 0.000000e+00 : bf16
    %10 = vector.broadcast %cst_17 : bf16 to vector<1x18x8xbf16>
    %c17_18 = arith.constant 17 : index
    %c0_19 = arith.constant 0 : index
    %c0_20 = arith.constant 0 : index
    %11 = vector.load %arg14[%c17_18, %c0_19, %c0_20] : memref<18x18x8xbf16, #tpu.memory_space<vmem>>, vector<1x18x8xbf16>
    tpu.vector_store %arg14[%c17_18, %c0_19, %c0_20], %10 {strides = array<i32>} : memref<18x18x8xbf16, #tpu.memory_space<vmem>>, vector<1x18x8xbf16>,
    %cst_21 = arith.constant 0.000000e+00 : bf16
    %12 = vector.broadcast %cst_21 : bf16 to vector<18x1x8xbf16>
    %c0_22 = arith.constant 0 : index
    %c0_23 = arith.constant 0 : index
    %c0_24 = arith.constant 0 : index
    %13 = vector.load %arg14[%c0_22, %c0_23, %c0_24] : memref<18x18x8xbf16, #tpu.memory_space<vmem>>, vector<18x1x8xbf16>
    tpu.vector_store %arg14[%c0_22, %c0_23, %c0_24], %12 {strides = array<i32>} : memref<18x18x8xbf16, #tpu.memory_space<vmem>>, vector<18x1x8xbf16>,
    %cst_25 = arith.constant 0.000000e+00 : bf16
    %14 = vector.broadcast %cst_25 : bf16 to vector<18x1x8xbf16>
    %c0_26 = arith.constant 0 : index
    %c17_27 = arith.constant 17 : index
    %c0_28 = arith.constant 0 : index
    %15 = vector.load %arg14[%c0_26, %c17_27, %c0_28] : memref<18x18x8xbf16, #tpu.memory_space<vmem>>, vector<18x1x8xbf16>
    tpu.vector_store %arg14[%c0_26, %c17_27, %c0_28], %14 {strides = array<i32>} : memref<18x18x8xbf16, #tpu.memory_space<vmem>>, vector<18x1x8xbf16>,
    %c0_29 = arith.constant 0 : index
    %c0_30 = arith.constant 0 : index
    %c0_31 = arith.constant 0 : index
    %c0_32 = arith.constant 0 : index
    %16 = vector.load %arg1[%c0_29, %c0_30, %c0_31, %c0_32] : memref<1x16x16x4xf32, #tpu.memory_space<vmem>>, vector<1x16x16x4xf32>
    %17 = vector.shape_cast %16 : vector<1x16x16x4xf32> to vector<16x16x4xf32>
    %c1 = arith.constant 1 : index
    %c1_33 = arith.constant 1 : index
    %c0_34 = arith.constant 0 : index
    %18 = vector.load %arg13[%c1, %c1_33, %c0_34] : memref<18x18x4xf32, #tpu.memory_space<vmem>>, vector<16x16x4xf32>
    tpu.vector_store %arg13[%c1, %c1_33, %c0_34], %17 {strides = array<i32>} : memref<18x18x4xf32, #tpu.memory_space<vmem>>, vector<16x16x4xf32>,
    %19 = vector.shape_cast %17 : vector<16x16x4xf32> to vector<256x4xf32>
    %20 = arith.truncf %19 : vector<256x4xf32> to vector<256x4xbf16>
    %c0_35 = arith.constant 0 : index
    %c0_36 = arith.constant 0 : index
    %21 = vector.load %arg4[%c0_35, %c0_36] : memref<4x14xbf16, #tpu.memory_space<vmem>>, vector<4x14xbf16>
    %cst_37 = arith.constant dense<0.000000e+00> : vector<256x14xf32>
    %22 = tpu.matmul %20, %21, %cst_37 {dimension_numbers = #tpu.dot_dimension_numbers<[1], [0], [0], [1], [0, 0, 1, 1], [], []>} : vector<256x4xbf16>, vector<4x14xbf16>, vector<256x14xf32> -> vector<256x14xf32>
    %c0_38 = arith.constant 0 : index
    %c0_39 = arith.constant 0 : index
    %23 = vector.load %arg5[%c0_38, %c0_39] : memref<1x14xf32, #tpu.memory_space<vmem>>, vector<1x14xf32>
    %24 = vector.broadcast %23 : vector<1x14xf32> to vector<256x14xf32>
    %25 = arith.addf %22, %24 : vector<256x14xf32>
    %cst_40 = arith.constant 0.000000e+00 : f32
    %26 = vector.broadcast %cst_40 : f32 to vector<256x14xf32>
    %27 = arith.maximumf %25, %26 : vector<256x14xf32>
    %28 = vector.extract_strided_slice %27 {offsets = [0, 0], sizes = [256, 6], strides = [1, 1]} : vector<256x14xf32> to vector<256x6xf32>
    %29 = vector.extract_strided_slice %27 {offsets = [0, 6], sizes = [256, 4], strides = [1, 1]} : vector<256x14xf32> to vector<256x4xf32>
    %30 = vector.extract_strided_slice %27 {offsets = [0, 10], sizes = [256, 4], strides = [1, 1]} : vector<256x14xf32> to vector<256x4xf32>
    %c0_41 = arith.constant 0 : index
    %c0_42 = arith.constant 0 : index
    %c0_43 = arith.constant 0 : index
    %31 = vector.load %arg13[%c0_41, %c0_42, %c0_43] : memref<18x18x4xf32, #tpu.memory_space<vmem>>, vector<16x18x4xf32>
    %c1_44 = arith.constant 1 : index
    %c0_45 = arith.constant 0 : index
    %c0_46 = arith.constant 0 : index
    %32 = vector.load %arg13[%c1_44, %c0_45, %c0_46] : memref<18x18x4xf32, #tpu.memory_space<vmem>>, vector<16x18x4xf32>
    %33 = arith.addf %31, %32 : vector<16x18x4xf32>
    %c2 = arith.constant 2 : index
    %c0_47 = arith.constant 0 : index
    %c0_48 = arith.constant 0 : index
    %34 = vector.load %arg13[%c2, %c0_47, %c0_48] : memref<18x18x4xf32, #tpu.memory_space<vmem>>, vector<16x18x4xf32>
    %35 = arith.addf %33, %34 : vector<16x18x4xf32>
    %36 = vector.extract_strided_slice %35 {offsets = [0, 0, 0], sizes = [16, 16, 4], strides = [1, 1, 1]} : vector<16x18x4xf32> to vector<16x16x4xf32>
    %37 = vector.extract_strided_slice %35 {offsets = [0, 1, 0], sizes = [16, 16, 4], strides = [1, 1, 1]} : vector<16x18x4xf32> to vector<16x16x4xf32>
    %38 = arith.addf %36, %37 : vector<16x16x4xf32>
    %39 = vector.extract_strided_slice %35 {offsets = [0, 2, 0], sizes = [16, 16, 4], strides = [1, 1, 1]} : vector<16x18x4xf32> to vector<16x16x4xf32>
    %40 = arith.addf %38, %39 : vector<16x16x4xf32>
    %cst_49 = arith.constant 0.111111112 : f32
    %41 = vector.broadcast %cst_49 : f32 to vector<16x16x4xf32>
    %42 = arith.mulf %40, %41 : vector<16x16x4xf32>
    %43 = vector.shape_cast %42 : vector<16x16x4xf32> to vector<256x4xf32>
    %44 = arith.truncf %43 : vector<256x4xf32> to vector<256x4xbf16>
    %c0_50 = arith.constant 0 : index
    %c0_51 = arith.constant 0 : index
    %45 = vector.load %arg2[%c0_50, %c0_51] : memref<4x8xbf16, #tpu.memory_space<vmem>>, vector<4x8xbf16>
    %cst_52 = arith.constant dense<0.000000e+00> : vector<256x8xf32>
    %46 = tpu.matmul %44, %45, %cst_52 {dimension_numbers = #tpu.dot_dimension_numbers<[1], [0], [0], [1], [0, 0, 1, 1], [], []>} : vector<256x4xbf16>, vector<4x8xbf16>, vector<256x8xf32> -> vector<256x8xf32>
    %c0_53 = arith.constant 0 : index
    %c0_54 = arith.constant 0 : index
    %47 = vector.load %arg3[%c0_53, %c0_54] : memref<1x8xf32, #tpu.memory_space<vmem>>, vector<1x8xf32>
    %48 = vector.broadcast %47 : vector<1x8xf32> to vector<256x8xf32>
    %49 = arith.addf %46, %48 : vector<256x8xf32>
    %cst_55 = arith.constant 0.000000e+00 : f32
    %50 = vector.broadcast %cst_55 : f32 to vector<256x8xf32>
    %51 = arith.maximumf %49, %50 : vector<256x8xf32>
    %52 = vector.shape_cast %29 : vector<256x4xf32> to vector<16x16x4xf32>
    %53 = arith.truncf %52 : vector<16x16x4xf32> to vector<16x16x4xbf16>
    %c1_56 = arith.constant 1 : index
    %c1_57 = arith.constant 1 : index
    %c0_58 = arith.constant 0 : index
    %54 = vector.load %arg14[%c1_56, %c1_57, %c0_58] : memref<18x18x8xbf16, #tpu.memory_space<vmem>>, vector<16x16x4xbf16>
    tpu.vector_store %arg14[%c1_56, %c1_57, %c0_58], %53 {strides = array<i32>} : memref<18x18x8xbf16, #tpu.memory_space<vmem>>, vector<16x16x4xbf16>,
    %c0_59 = arith.constant 0 : index
    %c0_60 = arith.constant 0 : index
    %c0_61 = arith.constant 0 : index
    %55 = vector.load %arg14[%c0_59, %c0_60, %c0_61] : memref<18x18x8xbf16, #tpu.memory_space<vmem>>, vector<16x16x4xbf16>
    %c0_62 = arith.constant 0 : index
    %c0_63 = arith.constant 0 : index
    %c0_64 = arith.constant 0 : index
    %56 = vector.load %arg15[%c0_62, %c0_63, %c0_64] : memref<16x16x72xbf16, #tpu.memory_space<vmem>>, vector<16x16x4xbf16>
    tpu.vector_store %arg15[%c0_62, %c0_63, %c0_64], %55 {strides = array<i32>} : memref<16x16x72xbf16, #tpu.memory_space<vmem>>, vector<16x16x4xbf16>,
    %c0_65 = arith.constant 0 : index
    %c1_66 = arith.constant 1 : index
    %c0_67 = arith.constant 0 : index
    %57 = vector.load %arg14[%c0_65, %c1_66, %c0_67] : memref<18x18x8xbf16, #tpu.memory_space<vmem>>, vector<16x16x4xbf16>
    %c0_68 = arith.constant 0 : index
    %c0_69 = arith.constant 0 : index
    %c4 = arith.constant 4 : index
    %58 = vector.load %arg15[%c0_68, %c0_69, %c4] : memref<16x16x72xbf16, #tpu.memory_space<vmem>>, vector<16x16x4xbf16>
    tpu.vector_store %arg15[%c0_68, %c0_69, %c4], %57 {strides = array<i32>} : memref<16x16x72xbf16, #tpu.memory_space<vmem>>, vector<16x16x4xbf16>,
    %c0_70 = arith.constant 0 : index
    %c2_71 = arith.constant 2 : index
    %c0_72 = arith.constant 0 : index
    %59 = vector.load %arg14[%c0_70, %c2_71, %c0_72] : memref<18x18x8xbf16, #tpu.memory_space<vmem>>, vector<16x16x4xbf16>
    %c0_73 = arith.constant 0 : index
    %c0_74 = arith.constant 0 : index
    %c8 = arith.constant 8 : index
    %60 = vector.load %arg15[%c0_73, %c0_74, %c8] : memref<16x16x72xbf16, #tpu.memory_space<vmem>>, vector<16x16x4xbf16>
    tpu.vector_store %arg15[%c0_73, %c0_74, %c8], %59 {strides = array<i32>} : memref<16x16x72xbf16, #tpu.memory_space<vmem>>, vector<16x16x4xbf16>,
    %c1_75 = arith.constant 1 : index
    %c0_76 = arith.constant 0 : index
    %c0_77 = arith.constant 0 : index
    %61 = vector.load %arg14[%c1_75, %c0_76, %c0_77] : memref<18x18x8xbf16, #tpu.memory_space<vmem>>, vector<16x16x4xbf16>
    %c0_78 = arith.constant 0 : index
    %c0_79 = arith.constant 0 : index
    %c12 = arith.constant 12 : index
    %62 = vector.load %arg15[%c0_78, %c0_79, %c12] : memref<16x16x72xbf16, #tpu.memory_space<vmem>>, vector<16x16x4xbf16>
    tpu.vector_store %arg15[%c0_78, %c0_79, %c12], %61 {strides = array<i32>} : memref<16x16x72xbf16, #tpu.memory_space<vmem>>, vector<16x16x4xbf16>,
    %c1_80 = arith.constant 1 : index
    %c1_81 = arith.constant 1 : index
    %c0_82 = arith.constant 0 : index
    %63 = vector.load %arg14[%c1_80, %c1_81, %c0_82] : memref<18x18x8xbf16, #tpu.memory_space<vmem>>, vector<16x16x4xbf16>
    %c0_83 = arith.constant 0 : index
    %c0_84 = arith.constant 0 : index
    %c16 = arith.constant 16 : index
    %64 = vector.load %arg15[%c0_83, %c0_84, %c16] : memref<16x16x72xbf16, #tpu.memory_space<vmem>>, vector<16x16x4xbf16>
    tpu.vector_store %arg15[%c0_83, %c0_84, %c16], %63 {strides = array<i32>} : memref<16x16x72xbf16, #tpu.memory_space<vmem>>, vector<16x16x4xbf16>,
    %c1_85 = arith.constant 1 : index
    %c2_86 = arith.constant 2 : index
    %c0_87 = arith.constant 0 : index
    %65 = vector.load %arg14[%c1_85, %c2_86, %c0_87] : memref<18x18x8xbf16, #tpu.memory_space<vmem>>, vector<16x16x4xbf16>
    %c0_88 = arith.constant 0 : index
    %c0_89 = arith.constant 0 : index
    %c20 = arith.constant 20 : index
    %66 = vector.load %arg15[%c0_88, %c0_89, %c20] : memref<16x16x72xbf16, #tpu.memory_space<vmem>>, vector<16x16x4xbf16>
    tpu.vector_store %arg15[%c0_88, %c0_89, %c20], %65 {strides = array<i32>} : memref<16x16x72xbf16, #tpu.memory_space<vmem>>, vector<16x16x4xbf16>,
    %c2_90 = arith.constant 2 : index
    %c0_91 = arith.constant 0 : index
    %c0_92 = arith.constant 0 : index
    %67 = vector.load %arg14[%c2_90, %c0_91, %c0_92] : memref<18x18x8xbf16, #tpu.memory_space<vmem>>, vector<16x16x4xbf16>
    %c0_93 = arith.constant 0 : index
    %c0_94 = arith.constant 0 : index
    %c24 = arith.constant 24 : index
    %68 = vector.load %arg15[%c0_93, %c0_94, %c24] : memref<16x16x72xbf16, #tpu.memory_space<vmem>>, vector<16x16x4xbf16>
    tpu.vector_store %arg15[%c0_93, %c0_94, %c24], %67 {strides = array<i32>} : memref<16x16x72xbf16, #tpu.memory_space<vmem>>, vector<16x16x4xbf16>,
    %c2_95 = arith.constant 2 : index
    %c1_96 = arith.constant 1 : index
    %c0_97 = arith.constant 0 : index
    %69 = vector.load %arg14[%c2_95, %c1_96, %c0_97] : memref<18x18x8xbf16, #tpu.memory_space<vmem>>, vector<16x16x4xbf16>
    %c0_98 = arith.constant 0 : index
    %c0_99 = arith.constant 0 : index
    %c28 = arith.constant 28 : index
    %70 = vector.load %arg15[%c0_98, %c0_99, %c28] : memref<16x16x72xbf16, #tpu.memory_space<vmem>>, vector<16x16x4xbf16>
    tpu.vector_store %arg15[%c0_98, %c0_99, %c28], %69 {strides = array<i32>} : memref<16x16x72xbf16, #tpu.memory_space<vmem>>, vector<16x16x4xbf16>,
    %c2_100 = arith.constant 2 : index
    %c2_101 = arith.constant 2 : index
    %c0_102 = arith.constant 0 : index
    %71 = vector.load %arg14[%c2_100, %c2_101, %c0_102] : memref<18x18x8xbf16, #tpu.memory_space<vmem>>, vector<16x16x4xbf16>
    %c0_103 = arith.constant 0 : index
    %c0_104 = arith.constant 0 : index
    %c32 = arith.constant 32 : index
    %72 = vector.load %arg15[%c0_103, %c0_104, %c32] : memref<16x16x72xbf16, #tpu.memory_space<vmem>>, vector<16x16x4xbf16>
    tpu.vector_store %arg15[%c0_103, %c0_104, %c32], %71 {strides = array<i32>} : memref<16x16x72xbf16, #tpu.memory_space<vmem>>, vector<16x16x4xbf16>,
    %c0_105 = arith.constant 0 : index
    %c0_106 = arith.constant 0 : index
    %c0_107 = arith.constant 0 : index
    %73 = vector.load %arg15[%c0_105, %c0_106, %c0_107] : memref<16x16x72xbf16, #tpu.memory_space<vmem>>, vector<16x16x36xbf16>
    %74 = vector.shape_cast %73 : vector<16x16x36xbf16> to vector<256x36xbf16>
    %c0_108 = arith.constant 0 : index
    %c0_109 = arith.constant 0 : index
    %75 = vector.load %arg6[%c0_108, %c0_109] : memref<36x8xbf16, #tpu.memory_space<vmem>>, vector<36x8xbf16>
    %cst_110 = arith.constant dense<0.000000e+00> : vector<256x8xf32>
    %76 = tpu.matmul %74, %75, %cst_110 {dimension_numbers = #tpu.dot_dimension_numbers<[1], [0], [0], [1], [0, 0, 1, 1], [], []>} : vector<256x36xbf16>, vector<36x8xbf16>, vector<256x8xf32> -> vector<256x8xf32>
    %c0_111 = arith.constant 0 : index
    %c0_112 = arith.constant 0 : index
    %77 = vector.load %arg7[%c0_111, %c0_112] : memref<1x8xf32, #tpu.memory_space<vmem>>, vector<1x8xf32>
    %78 = vector.broadcast %77 : vector<1x8xf32> to vector<256x8xf32>
    %79 = arith.addf %76, %78 : vector<256x8xf32>
    %cst_113 = arith.constant 0.000000e+00 : f32
    %80 = vector.broadcast %cst_113 : f32 to vector<256x8xf32>
    %81 = arith.maximumf %79, %80 : vector<256x8xf32>
    %82 = vector.shape_cast %30 : vector<256x4xf32> to vector<16x16x4xf32>
    %83 = arith.truncf %82 : vector<16x16x4xf32> to vector<16x16x4xbf16>
    %c1_114 = arith.constant 1 : index
    %c1_115 = arith.constant 1 : index
    %c0_116 = arith.constant 0 : index
    %84 = vector.load %arg14[%c1_114, %c1_115, %c0_116] : memref<18x18x8xbf16, #tpu.memory_space<vmem>>, vector<16x16x4xbf16>
    tpu.vector_store %arg14[%c1_114, %c1_115, %c0_116], %83 {strides = array<i32>} : memref<18x18x8xbf16, #tpu.memory_space<vmem>>, vector<16x16x4xbf16>,
    %c0_117 = arith.constant 0 : index
    %c0_118 = arith.constant 0 : index
    %c0_119 = arith.constant 0 : index
    %85 = vector.load %arg14[%c0_117, %c0_118, %c0_119] : memref<18x18x8xbf16, #tpu.memory_space<vmem>>, vector<16x16x4xbf16>
    %c0_120 = arith.constant 0 : index
    %c0_121 = arith.constant 0 : index
    %c0_122 = arith.constant 0 : index
    %86 = vector.load %arg15[%c0_120, %c0_121, %c0_122] : memref<16x16x72xbf16, #tpu.memory_space<vmem>>, vector<16x16x4xbf16>
    tpu.vector_store %arg15[%c0_120, %c0_121, %c0_122], %85 {strides = array<i32>} : memref<16x16x72xbf16, #tpu.memory_space<vmem>>, vector<16x16x4xbf16>,
    %c0_123 = arith.constant 0 : index
    %c1_124 = arith.constant 1 : index
    %c0_125 = arith.constant 0 : index
    %87 = vector.load %arg14[%c0_123, %c1_124, %c0_125] : memref<18x18x8xbf16, #tpu.memory_space<vmem>>, vector<16x16x4xbf16>
    %c0_126 = arith.constant 0 : index
    %c0_127 = arith.constant 0 : index
    %c4_128 = arith.constant 4 : index
    %88 = vector.load %arg15[%c0_126, %c0_127, %c4_128] : memref<16x16x72xbf16, #tpu.memory_space<vmem>>, vector<16x16x4xbf16>
    tpu.vector_store %arg15[%c0_126, %c0_127, %c4_128], %87 {strides = array<i32>} : memref<16x16x72xbf16, #tpu.memory_space<vmem>>, vector<16x16x4xbf16>,
    %c0_129 = arith.constant 0 : index
    %c2_130 = arith.constant 2 : index
    %c0_131 = arith.constant 0 : index
    %89 = vector.load %arg14[%c0_129, %c2_130, %c0_131] : memref<18x18x8xbf16, #tpu.memory_space<vmem>>, vector<16x16x4xbf16>
    %c0_132 = arith.constant 0 : index
    %c0_133 = arith.constant 0 : index
    %c8_134 = arith.constant 8 : index
    %90 = vector.load %arg15[%c0_132, %c0_133, %c8_134] : memref<16x16x72xbf16, #tpu.memory_space<vmem>>, vector<16x16x4xbf16>
    tpu.vector_store %arg15[%c0_132, %c0_133, %c8_134], %89 {strides = array<i32>} : memref<16x16x72xbf16, #tpu.memory_space<vmem>>, vector<16x16x4xbf16>,
    %c1_135 = arith.constant 1 : index
    %c0_136 = arith.constant 0 : index
    %c0_137 = arith.constant 0 : index
    %91 = vector.load %arg14[%c1_135, %c0_136, %c0_137] : memref<18x18x8xbf16, #tpu.memory_space<vmem>>, vector<16x16x4xbf16>
    %c0_138 = arith.constant 0 : index
    %c0_139 = arith.constant 0 : index
    %c12_140 = arith.constant 12 : index
    %92 = vector.load %arg15[%c0_138, %c0_139, %c12_140] : memref<16x16x72xbf16, #tpu.memory_space<vmem>>, vector<16x16x4xbf16>
    tpu.vector_store %arg15[%c0_138, %c0_139, %c12_140], %91 {strides = array<i32>} : memref<16x16x72xbf16, #tpu.memory_space<vmem>>, vector<16x16x4xbf16>,
    %c1_141 = arith.constant 1 : index
    %c1_142 = arith.constant 1 : index
    %c0_143 = arith.constant 0 : index
    %93 = vector.load %arg14[%c1_141, %c1_142, %c0_143] : memref<18x18x8xbf16, #tpu.memory_space<vmem>>, vector<16x16x4xbf16>
    %c0_144 = arith.constant 0 : index
    %c0_145 = arith.constant 0 : index
    %c16_146 = arith.constant 16 : index
    %94 = vector.load %arg15[%c0_144, %c0_145, %c16_146] : memref<16x16x72xbf16, #tpu.memory_space<vmem>>, vector<16x16x4xbf16>
    tpu.vector_store %arg15[%c0_144, %c0_145, %c16_146], %93 {strides = array<i32>} : memref<16x16x72xbf16, #tpu.memory_space<vmem>>, vector<16x16x4xbf16>,
    %c1_147 = arith.constant 1 : index
    %c2_148 = arith.constant 2 : index
    %c0_149 = arith.constant 0 : index
    %95 = vector.load %arg14[%c1_147, %c2_148, %c0_149] : memref<18x18x8xbf16, #tpu.memory_space<vmem>>, vector<16x16x4xbf16>
    %c0_150 = arith.constant 0 : index
    %c0_151 = arith.constant 0 : index
    %c20_152 = arith.constant 20 : index
    %96 = vector.load %arg15[%c0_150, %c0_151, %c20_152] : memref<16x16x72xbf16, #tpu.memory_space<vmem>>, vector<16x16x4xbf16>
    tpu.vector_store %arg15[%c0_150, %c0_151, %c20_152], %95 {strides = array<i32>} : memref<16x16x72xbf16, #tpu.memory_space<vmem>>, vector<16x16x4xbf16>,
    %c2_153 = arith.constant 2 : index
    %c0_154 = arith.constant 0 : index
    %c0_155 = arith.constant 0 : index
    %97 = vector.load %arg14[%c2_153, %c0_154, %c0_155] : memref<18x18x8xbf16, #tpu.memory_space<vmem>>, vector<16x16x4xbf16>
    %c0_156 = arith.constant 0 : index
    %c0_157 = arith.constant 0 : index
    %c24_158 = arith.constant 24 : index
    %98 = vector.load %arg15[%c0_156, %c0_157, %c24_158] : memref<16x16x72xbf16, #tpu.memory_space<vmem>>, vector<16x16x4xbf16>
    tpu.vector_store %arg15[%c0_156, %c0_157, %c24_158], %97 {strides = array<i32>} : memref<16x16x72xbf16, #tpu.memory_space<vmem>>, vector<16x16x4xbf16>,
    %c2_159 = arith.constant 2 : index
    %c1_160 = arith.constant 1 : index
    %c0_161 = arith.constant 0 : index
    %99 = vector.load %arg14[%c2_159, %c1_160, %c0_161] : memref<18x18x8xbf16, #tpu.memory_space<vmem>>, vector<16x16x4xbf16>
    %c0_162 = arith.constant 0 : index
    %c0_163 = arith.constant 0 : index
    %c28_164 = arith.constant 28 : index
    %100 = vector.load %arg15[%c0_162, %c0_163, %c28_164] : memref<16x16x72xbf16, #tpu.memory_space<vmem>>, vector<16x16x4xbf16>
    tpu.vector_store %arg15[%c0_162, %c0_163, %c28_164], %99 {strides = array<i32>} : memref<16x16x72xbf16, #tpu.memory_space<vmem>>, vector<16x16x4xbf16>,
    %c2_165 = arith.constant 2 : index
    %c2_166 = arith.constant 2 : index
    %c0_167 = arith.constant 0 : index
    %101 = vector.load %arg14[%c2_165, %c2_166, %c0_167] : memref<18x18x8xbf16, #tpu.memory_space<vmem>>, vector<16x16x4xbf16>
    %c0_168 = arith.constant 0 : index
    %c0_169 = arith.constant 0 : index
    %c32_170 = arith.constant 32 : index
    %102 = vector.load %arg15[%c0_168, %c0_169, %c32_170] : memref<16x16x72xbf16, #tpu.memory_space<vmem>>, vector<16x16x4xbf16>
    tpu.vector_store %arg15[%c0_168, %c0_169, %c32_170], %101 {strides = array<i32>} : memref<16x16x72xbf16, #tpu.memory_space<vmem>>, vector<16x16x4xbf16>,
    %c0_171 = arith.constant 0 : index
    %c0_172 = arith.constant 0 : index
    %c0_173 = arith.constant 0 : index
    %103 = vector.load %arg15[%c0_171, %c0_172, %c0_173] : memref<16x16x72xbf16, #tpu.memory_space<vmem>>, vector<16x16x36xbf16>
    %104 = vector.shape_cast %103 : vector<16x16x36xbf16> to vector<256x36xbf16>
    %c0_174 = arith.constant 0 : index
    %c0_175 = arith.constant 0 : index
    %105 = vector.load %arg8[%c0_174, %c0_175] : memref<36x8xbf16, #tpu.memory_space<vmem>>, vector<36x8xbf16>
    %cst_176 = arith.constant dense<0.000000e+00> : vector<256x8xf32>
    %106 = tpu.matmul %104, %105, %cst_176 {dimension_numbers = #tpu.dot_dimension_numbers<[1], [0], [0], [1], [0, 0, 1, 1], [], []>} : vector<256x36xbf16>, vector<36x8xbf16>, vector<256x8xf32> -> vector<256x8xf32>
    %c0_177 = arith.constant 0 : index
    %c0_178 = arith.constant 0 : index
    %107 = vector.load %arg9[%c0_177, %c0_178] : memref<1x8xf32, #tpu.memory_space<vmem>>, vector<1x8xf32>
    %108 = vector.broadcast %107 : vector<1x8xf32> to vector<256x8xf32>
    %109 = arith.addf %106, %108 : vector<256x8xf32>
    %cst_179 = arith.constant 0.000000e+00 : f32
    %110 = vector.broadcast %cst_179 : f32 to vector<256x8xf32>
    %111 = arith.maximumf %109, %110 : vector<256x8xf32>
    %112 = vector.shape_cast %111 : vector<256x8xf32> to vector<16x16x8xf32>
    %113 = arith.truncf %112 : vector<16x16x8xf32> to vector<16x16x8xbf16>
    %c1_180 = arith.constant 1 : index
    %c1_181 = arith.constant 1 : index
    %c0_182 = arith.constant 0 : index
    %114 = vector.load %arg14[%c1_180, %c1_181, %c0_182] : memref<18x18x8xbf16, #tpu.memory_space<vmem>>, vector<16x16x8xbf16>
    tpu.vector_store %arg14[%c1_180, %c1_181, %c0_182], %113 {strides = array<i32>} : memref<18x18x8xbf16, #tpu.memory_space<vmem>>, vector<16x16x8xbf16>,
    %c0_183 = arith.constant 0 : index
    %c0_184 = arith.constant 0 : index
    %c0_185 = arith.constant 0 : index
    %115 = vector.load %arg14[%c0_183, %c0_184, %c0_185] : memref<18x18x8xbf16, #tpu.memory_space<vmem>>, vector<16x16x8xbf16>
    %c0_186 = arith.constant 0 : index
    %c0_187 = arith.constant 0 : index
    %c0_188 = arith.constant 0 : index
    %116 = vector.load %arg15[%c0_186, %c0_187, %c0_188] : memref<16x16x72xbf16, #tpu.memory_space<vmem>>, vector<16x16x8xbf16>
    tpu.vector_store %arg15[%c0_186, %c0_187, %c0_188], %115 {strides = array<i32>} : memref<16x16x72xbf16, #tpu.memory_space<vmem>>, vector<16x16x8xbf16>,
    %c0_189 = arith.constant 0 : index
    %c1_190 = arith.constant 1 : index
    %c0_191 = arith.constant 0 : index
    %117 = vector.load %arg14[%c0_189, %c1_190, %c0_191] : memref<18x18x8xbf16, #tpu.memory_space<vmem>>, vector<16x16x8xbf16>
    %c0_192 = arith.constant 0 : index
    %c0_193 = arith.constant 0 : index
    %c8_194 = arith.constant 8 : index
    %118 = vector.load %arg15[%c0_192, %c0_193, %c8_194] : memref<16x16x72xbf16, #tpu.memory_space<vmem>>, vector<16x16x8xbf16>
    tpu.vector_store %arg15[%c0_192, %c0_193, %c8_194], %117 {strides = array<i32>} : memref<16x16x72xbf16, #tpu.memory_space<vmem>>, vector<16x16x8xbf16>,
    %c0_195 = arith.constant 0 : index
    %c2_196 = arith.constant 2 : index
    %c0_197 = arith.constant 0 : index
    %119 = vector.load %arg14[%c0_195, %c2_196, %c0_197] : memref<18x18x8xbf16, #tpu.memory_space<vmem>>, vector<16x16x8xbf16>
    %c0_198 = arith.constant 0 : index
    %c0_199 = arith.constant 0 : index
    %c16_200 = arith.constant 16 : index
    %120 = vector.load %arg15[%c0_198, %c0_199, %c16_200] : memref<16x16x72xbf16, #tpu.memory_space<vmem>>, vector<16x16x8xbf16>
    tpu.vector_store %arg15[%c0_198, %c0_199, %c16_200], %119 {strides = array<i32>} : memref<16x16x72xbf16, #tpu.memory_space<vmem>>, vector<16x16x8xbf16>,
    %c1_201 = arith.constant 1 : index
    %c0_202 = arith.constant 0 : index
    %c0_203 = arith.constant 0 : index
    %121 = vector.load %arg14[%c1_201, %c0_202, %c0_203] : memref<18x18x8xbf16, #tpu.memory_space<vmem>>, vector<16x16x8xbf16>
    %c0_204 = arith.constant 0 : index
    %c0_205 = arith.constant 0 : index
    %c24_206 = arith.constant 24 : index
    %122 = vector.load %arg15[%c0_204, %c0_205, %c24_206] : memref<16x16x72xbf16, #tpu.memory_space<vmem>>, vector<16x16x8xbf16>
    tpu.vector_store %arg15[%c0_204, %c0_205, %c24_206], %121 {strides = array<i32>} : memref<16x16x72xbf16, #tpu.memory_space<vmem>>, vector<16x16x8xbf16>,
    %c1_207 = arith.constant 1 : index
    %c1_208 = arith.constant 1 : index
    %c0_209 = arith.constant 0 : index
    %123 = vector.load %arg14[%c1_207, %c1_208, %c0_209] : memref<18x18x8xbf16, #tpu.memory_space<vmem>>, vector<16x16x8xbf16>
    %c0_210 = arith.constant 0 : index
    %c0_211 = arith.constant 0 : index
    %c32_212 = arith.constant 32 : index
    %124 = vector.load %arg15[%c0_210, %c0_211, %c32_212] : memref<16x16x72xbf16, #tpu.memory_space<vmem>>, vector<16x16x8xbf16>
    tpu.vector_store %arg15[%c0_210, %c0_211, %c32_212], %123 {strides = array<i32>} : memref<16x16x72xbf16, #tpu.memory_space<vmem>>, vector<16x16x8xbf16>,
    %c1_213 = arith.constant 1 : index
    %c2_214 = arith.constant 2 : index
    %c0_215 = arith.constant 0 : index
    %125 = vector.load %arg14[%c1_213, %c2_214, %c0_215] : memref<18x18x8xbf16, #tpu.memory_space<vmem>>, vector<16x16x8xbf16>
    %c0_216 = arith.constant 0 : index
    %c0_217 = arith.constant 0 : index
    %c40 = arith.constant 40 : index
    %126 = vector.load %arg15[%c0_216, %c0_217, %c40] : memref<16x16x72xbf16, #tpu.memory_space<vmem>>, vector<16x16x8xbf16>
    tpu.vector_store %arg15[%c0_216, %c0_217, %c40], %125 {strides = array<i32>} : memref<16x16x72xbf16, #tpu.memory_space<vmem>>, vector<16x16x8xbf16>,
    %c2_218 = arith.constant 2 : index
    %c0_219 = arith.constant 0 : index
    %c0_220 = arith.constant 0 : index
    %127 = vector.load %arg14[%c2_218, %c0_219, %c0_220] : memref<18x18x8xbf16, #tpu.memory_space<vmem>>, vector<16x16x8xbf16>
    %c0_221 = arith.constant 0 : index
    %c0_222 = arith.constant 0 : index
    %c48 = arith.constant 48 : index
    %128 = vector.load %arg15[%c0_221, %c0_222, %c48] : memref<16x16x72xbf16, #tpu.memory_space<vmem>>, vector<16x16x8xbf16>
    tpu.vector_store %arg15[%c0_221, %c0_222, %c48], %127 {strides = array<i32>} : memref<16x16x72xbf16, #tpu.memory_space<vmem>>, vector<16x16x8xbf16>,
    %c2_223 = arith.constant 2 : index
    %c1_224 = arith.constant 1 : index
    %c0_225 = arith.constant 0 : index
    %129 = vector.load %arg14[%c2_223, %c1_224, %c0_225] : memref<18x18x8xbf16, #tpu.memory_space<vmem>>, vector<16x16x8xbf16>
    %c0_226 = arith.constant 0 : index
    %c0_227 = arith.constant 0 : index
    %c56 = arith.constant 56 : index
    %130 = vector.load %arg15[%c0_226, %c0_227, %c56] : memref<16x16x72xbf16, #tpu.memory_space<vmem>>, vector<16x16x8xbf16>
    tpu.vector_store %arg15[%c0_226, %c0_227, %c56], %129 {strides = array<i32>} : memref<16x16x72xbf16, #tpu.memory_space<vmem>>, vector<16x16x8xbf16>,
    %c2_228 = arith.constant 2 : index
    %c2_229 = arith.constant 2 : index
    %c0_230 = arith.constant 0 : index
    %131 = vector.load %arg14[%c2_228, %c2_229, %c0_230] : memref<18x18x8xbf16, #tpu.memory_space<vmem>>, vector<16x16x8xbf16>
    %c0_231 = arith.constant 0 : index
    %c0_232 = arith.constant 0 : index
    %c64 = arith.constant 64 : index
    %132 = vector.load %arg15[%c0_231, %c0_232, %c64] : memref<16x16x72xbf16, #tpu.memory_space<vmem>>, vector<16x16x8xbf16>
    tpu.vector_store %arg15[%c0_231, %c0_232, %c64], %131 {strides = array<i32>} : memref<16x16x72xbf16, #tpu.memory_space<vmem>>, vector<16x16x8xbf16>,
    %c0_233 = arith.constant 0 : index
    %c0_234 = arith.constant 0 : index
    %c0_235 = arith.constant 0 : index
    %133 = vector.load %arg15[%c0_233, %c0_234, %c0_235] : memref<16x16x72xbf16, #tpu.memory_space<vmem>>, vector<16x16x72xbf16>
    %134 = vector.shape_cast %133 : vector<16x16x72xbf16> to vector<256x72xbf16>
    %c0_236 = arith.constant 0 : index
    %c0_237 = arith.constant 0 : index
    %135 = vector.load %arg10[%c0_236, %c0_237] : memref<72x8xbf16, #tpu.memory_space<vmem>>, vector<72x8xbf16>
    %cst_238 = arith.constant dense<0.000000e+00> : vector<256x8xf32>
    %136 = tpu.matmul %134, %135, %cst_238 {dimension_numbers = #tpu.dot_dimension_numbers<[1], [0], [0], [1], [0, 0, 1, 1], [], []>} : vector<256x72xbf16>, vector<72x8xbf16>, vector<256x8xf32> -> vector<256x8xf32>
    %c0_239 = arith.constant 0 : index
    %c0_240 = arith.constant 0 : index
    %137 = vector.load %arg11[%c0_239, %c0_240] : memref<1x8xf32, #tpu.memory_space<vmem>>, vector<1x8xf32>
    %138 = vector.broadcast %137 : vector<1x8xf32> to vector<256x8xf32>
    %139 = arith.addf %136, %138 : vector<256x8xf32>
    %cst_241 = arith.constant 0.000000e+00 : f32
    %140 = vector.broadcast %cst_241 : f32 to vector<256x8xf32>
    %141 = arith.maximumf %139, %140 : vector<256x8xf32>
    %142 = vector.shape_cast %51 : vector<256x8xf32> to vector<16x16x8xf32>
    %c0_242 = arith.constant 0 : index
    %c0_243 = arith.constant 0 : index
    %c0_244 = arith.constant 0 : index
    %c0_245 = arith.constant 0 : index
    %143 = vector.load %arg12[%c0_242, %c0_243, %c0_244, %c0_245] : memref<1x16x16x30xf32, #tpu.memory_space<vmem>>, vector<1x16x16x8xf32>
    %144 = vector.shape_cast %143 : vector<1x16x16x8xf32> to vector<16x16x8xf32>
    %145 = vector.shape_cast %142 : vector<16x16x8xf32> to vector<1x16x16x8xf32>
    tpu.vector_store %arg12[%c0_242, %c0_243, %c0_244, %c0_245], %145 {strides = array<i32>} : memref<1x16x16x30xf32, #tpu.memory_space<vmem>>, vector<1x16x16x8xf32>,
    %146 = vector.shape_cast %28 : vector<256x6xf32> to vector<16x16x6xf32>
    %c0_246 = arith.constant 0 : index
    %c0_247 = arith.constant 0 : index
    %c0_248 = arith.constant 0 : index
    %c8_249 = arith.constant 8 : index
    %147 = vector.load %arg12[%c0_246, %c0_247, %c0_248, %c8_249] : memref<1x16x16x30xf32, #tpu.memory_space<vmem>>, vector<1x16x16x6xf32>
    %148 = vector.shape_cast %147 : vector<1x16x16x6xf32> to vector<16x16x6xf32>
    %149 = vector.shape_cast %146 : vector<16x16x6xf32> to vector<1x16x16x6xf32>
    tpu.vector_store %arg12[%c0_246, %c0_247, %c0_248, %c8_249], %149 {strides = array<i32>} : memref<1x16x16x30xf32, #tpu.memory_space<vmem>>, vector<1x16x16x6xf32>,
    %150 = vector.shape_cast %81 : vector<256x8xf32> to vector<16x16x8xf32>
    %c0_250 = arith.constant 0 : index
    %c0_251 = arith.constant 0 : index
    %c0_252 = arith.constant 0 : index
    %c14 = arith.constant 14 : index
    %151 = vector.load %arg12[%c0_250, %c0_251, %c0_252, %c14] : memref<1x16x16x30xf32, #tpu.memory_space<vmem>>, vector<1x16x16x8xf32>
    %152 = vector.shape_cast %151 : vector<1x16x16x8xf32> to vector<16x16x8xf32>
    %153 = vector.shape_cast %150 : vector<16x16x8xf32> to vector<1x16x16x8xf32>
    tpu.vector_store %arg12[%c0_250, %c0_251, %c0_252, %c14], %153 {strides = array<i32>} : memref<1x16x16x30xf32, #tpu.memory_space<vmem>>, vector<1x16x16x8xf32>,
    %154 = vector.shape_cast %141 : vector<256x8xf32> to vector<16x16x8xf32>
    %c0_253 = arith.constant 0 : index
    %c0_254 = arith.constant 0 : index
    %c0_255 = arith.constant 0 : index
    %c22 = arith.constant 22 : index
    %155 = vector.load %arg12[%c0_253, %c0_254, %c0_255, %c22] : memref<1x16x16x30xf32, #tpu.memory_space<vmem>>, vector<1x16x16x8xf32>
    %156 = vector.shape_cast %155 : vector<1x16x16x8xf32> to vector<16x16x8xf32>
    %157 = vector.shape_cast %154 : vector<16x16x8xf32> to vector<1x16x16x8xf32>
    tpu.vector_store %arg12[%c0_253, %c0_254, %c0_255, %c22], %157 {strides = array<i32>} : memref<1x16x16x30xf32, #tpu.memory_space<vmem>>, vector<1x16x16x8xf32>,
    return
  }
  func.func @transform_0(%arg0: i32) -> (i32, i32, i32, i32) {
    %c0_i32 = arith.constant 0 : i32
    %c0_i32_0 = arith.constant 0 : i32
    %c0_i32_1 = arith.constant 0 : i32
    %c0_i32_2 = arith.constant 0 : i32
    return %arg0, %c0_i32, %c0_i32_0, %c0_i32_1 : i32, i32, i32, i32
  }
  func.func @transform_1(%arg0: i32) -> (i32, i32) {
    %c0_i32 = arith.constant 0 : i32
    %c0_i32_0 = arith.constant 0 : i32
    %c0_i32_1 = arith.constant 0 : i32
    return %c0_i32, %c0_i32_0 : i32, i32
  }
  func.func @transform_2(%arg0: i32) -> (i32, i32) {
    %c0_i32 = arith.constant 0 : i32
    %c0_i32_0 = arith.constant 0 : i32
    %c0_i32_1 = arith.constant 0 : i32
    return %c0_i32, %c0_i32_0 : i32, i32
  }
  func.func @transform_3(%arg0: i32) -> (i32, i32) {
    %c0_i32 = arith.constant 0 : i32
    %c0_i32_0 = arith.constant 0 : i32
    %c0_i32_1 = arith.constant 0 : i32
    return %c0_i32, %c0_i32_0 : i32, i32
  }
  func.func @transform_4(%arg0: i32) -> (i32, i32) {
    %c0_i32 = arith.constant 0 : i32
    %c0_i32_0 = arith.constant 0 : i32
    %c0_i32_1 = arith.constant 0 : i32
    return %c0_i32, %c0_i32_0 : i32, i32
  }
  func.func @transform_5(%arg0: i32) -> (i32, i32) {
    %c0_i32 = arith.constant 0 : i32
    %c0_i32_0 = arith.constant 0 : i32
    %c0_i32_1 = arith.constant 0 : i32
    return %c0_i32, %c0_i32_0 : i32, i32
  }
  func.func @transform_6(%arg0: i32) -> (i32, i32) {
    %c0_i32 = arith.constant 0 : i32
    %c0_i32_0 = arith.constant 0 : i32
    %c0_i32_1 = arith.constant 0 : i32
    return %c0_i32, %c0_i32_0 : i32, i32
  }
  func.func @transform_7(%arg0: i32) -> (i32, i32) {
    %c0_i32 = arith.constant 0 : i32
    %c0_i32_0 = arith.constant 0 : i32
    %c0_i32_1 = arith.constant 0 : i32
    return %c0_i32, %c0_i32_0 : i32, i32
  }
  func.func @transform_8(%arg0: i32) -> (i32, i32) {
    %c0_i32 = arith.constant 0 : i32
    %c0_i32_0 = arith.constant 0 : i32
    %c0_i32_1 = arith.constant 0 : i32
    return %c0_i32, %c0_i32_0 : i32, i32
  }
  func.func @transform_9(%arg0: i32) -> (i32, i32) {
    %c0_i32 = arith.constant 0 : i32
    %c0_i32_0 = arith.constant 0 : i32
    %c0_i32_1 = arith.constant 0 : i32
    return %c0_i32, %c0_i32_0 : i32, i32
  }
  func.func @transform_10(%arg0: i32) -> (i32, i32) {
    %c0_i32 = arith.constant 0 : i32
    %c0_i32_0 = arith.constant 0 : i32
    %c0_i32_1 = arith.constant 0 : i32
    return %c0_i32, %c0_i32_0 : i32, i32
  }
  func.func @transform_11(%arg0: i32) -> (i32, i32, i32, i32) {
    %c0_i32 = arith.constant 0 : i32
    %c0_i32_0 = arith.constant 0 : i32
    %c0_i32_1 = arith.constant 0 : i32
    %c0_i32_2 = arith.constant 0 : i32
    return %arg0, %c0_i32, %c0_i32_0, %c0_i32_1 : i32, i32, i32, i32
  }
}

</mosaic_0001>

<bundles_post_ra>
// kernel: tpu_custom_call.1
= control target key start
LH: loop header
LB: loop body
LE: loop exit
PB: predicated region body
PF: predicated region fallthrough
CT: control target
= control target key end

     0   :  { %16 = vsyncpa [#allocation6], 0  ;;  %s19381_s0 = inlined_call_operand.vmem [shape: f32[2,16,16,4], index: 0, kind: input, shape index: {}]   ;;  %s19382_s1 = inlined_call_operand.vmem [shape: bf16[4,8], index: 1, kind: input, shape index: {}]   ;;  %s19383_s2 = inlined_call_operand.vmem [shape: f32[1,8], index: 2, kind: input, shape index: {}]   ;;  %s19384_s3 = inlined_call_operand.vmem [shape: bf16[4,14], index: 3, kind: input, shape index: {}]   ;;  %s19385_s4 = inlined_call_operand.vmem [shape: f32[1,14], index: 4, kind: input, shape index: {}]   ;;  %s19386_s5 = inlined_call_operand.vmem [shape: bf16[36,8], index: 5, kind: input, shape index: {}]   ;;  %s19387_s6 = inlined_call_operand.vmem [shape: f32[1,8], index: 6, kind: input, shape index: {}]   ;;  %s19388_s7 = inlined_call_operand.vmem [shape: bf16[36,8], index: 7, kind: input, shape index: {}]   ;;  %s19389_s8 = inlined_call_operand.vmem [shape: f32[1,8], index: 8, kind: input, shape index: {}]   ;;  %s19390_s9 = inlined_call_operand.vmem [shape: bf16[72,8], index: 9, kind: input, shape index: {}]   ;;  %s19391_s10 = inlined_call_operand.vmem [shape: f32[1,8], index: 10, kind: input, shape index: {}]   ;;  %s19392_s11 = inlined_call_operand.hbm [shape: f32[2,16,16,30], index: 11, kind: output, shape index: {}]  }
   0x1   :  { %18 = vsyncpa [#allocation6 + $0x1], 0  ;;  %s14823_s17 = smov 0   ;;  %s14825_s18 = smov 0  }
   0x2   :  { %s14827_s19 = smov 0   ;;  %s14829_s20 = smov 0  }
   0x3 LB: > { %s14844_s21 = sadd.s32 4294967295, %s14741_s20   ;;  %s12644_s22 = sadd.s32 4294967294, %s14741_s20   ;;  %s14741_s20 = sphi %s14829_s20, %s20129_s20   ;;  %s14737_s19 = sphi %s14827_s19, %s20128_s19   ;;  %s14733_s18 = sphi %s14825_s18, %s20127_s18   ;;  %s14729_s17 = sphi %s14823_s17, %s20126_s17  }
   0x4   : > { %s14848_s23 = sadd.s32 1, %s14741_s20   ;;  %s267_s24 = sadd.s32 1, %s14737_s19 }
   0x5   : > { %s264_s25 = ssub.s32 %s14741_s20, %s14848_s23  ;;  %p277_p0 = scmp.ne.s32.totalorder %s14737_s19, %s14733_s18 }
   0x6   : > { %p265_p1 = scmp.eq.s32.totalorder %s264_s25, 0  ;;  %p278_p2 = scmp.eq.s32.totalorder %s14844_s21, 1 }
   0x7   : > { %p283_p3 = scmp.ne.s32.totalorder %s14733_s18, %s14729_s17  ;;  %p284_p4 = scmp.eq.s32.totalorder %s12644_s22, 1 }
   0x8   : > { %s14859_s26 = scalar_select %p265_p1, %s14737_s19, %s267_s24  }
   0x9   : > { %p14861_p5 = por %p278_p2, %p277_p0  ;;  %p14865_p6 = por %p284_p4, %p283_p3 }
   0xa   : > { %p12647_p7 = scmp.ge.s32.totalorder %s14741_s20, 1  ;;  %p340_p8 = scmp.lt.s32.totalorder %s14741_s20, 3 }
   0xc   : > { %p341_p9 = pnand %p12647_p7, %p340_p8 }
   0xe   : > { %344 = sbr.rel (%p341_p9) target bundleno = 1979 (0x7bb), region = 64 }
  0x15   : > { %v635_v0 = vld [vmem:[%s19384_s3] sm:$0x3]  ;;  %vm19457_vm0 = vcmask 1041408   ;;  %p380_p10 = scmp.lt.s32.totalorder %s14844_s21, 1  ;;  %vm19450_vm1 = vcmask 60416   ;;  %vm435_vm2 = vcmask 57344  }
  0x16   : > { %13883 = vmatprep.subr.msk.bf16.mxu0 %vm19457_vm0, %v635_v0  ;;  %13884 = vmatprep.subr.msk.bf16.mxu1 %vm19457_vm0, %v635_v0  ;;  %v693_v1 = vsel %vm19457_vm0, %v635_v0, 0  ;;  %v14743_v2 = vmov 0   ;;  %vm19455_vm3 = vsmask.f32 7938  ;;  %vm386_vm4 = vcmask 31744   ;;  %s19483_s22 = smov 8  }
  0x17   : > { %13696 = vmatpush3.bf16.msra.mxu0 %v693_v1  ;;  %13882 = vmatpush3.bf16.msra.mxu1 %v693_v1  ;;  %s381_s12 = scalar_select %p380_p10, %s14844_s21, 1  ;;  %433 = vst.msk [vmem:[#allocation3] sm:$0xf] %vm19450_vm1, %v14743_v2  ;;  %434 = vst.msk [vmem:[#allocation3 + $0x4] sm:$0xf] %vm19450_vm1, %v14743_v2  ;;  %vm19467_vm6 = vcmask 1046528  }
  0x18   : > { %436 = vst.msk [vmem:[#allocation3 + $0x8] sm:$0x1] %vm435_vm2, %v14743_v2  ;;  %440 = vst.msk [vmem:[#allocation3 + $0xd4] sm:$0x1] %vm435_vm2, %v14743_v2  ;;  %vm442_vm7 = vsmask.f32 256 }
  0x19   : > { %438 = vst.msk [vmem:[#allocation3 + $0xcc] sm:$0xf] %vm19450_vm1, %v14743_v2  ;;  %439 = vst.msk [vmem:[#allocation3 + $0xd0] sm:$0xf] %vm19450_vm1, %v14743_v2  ;;  %s13536_s13 = sshll.u32 %s381_s12, 8  ;;  %v19488_v59 = vmov 0 }
  0x1a   : > { %s14888_s16 = scalar_lea.vmem %s19381_s0, %s13536_s13  ;;  %vm14895_vm5 = vmand %vm435_vm2, %vm19455_vm3  ;;  %vm19468_vm9 = vsmask.f32 7424  ;;  %s14745_s24 = smov 4   ;;  %vm2960_vm10 = vcmask 64544   ;;  %vm1863_vm11 = vsmask.f32 4368 }
  0x1b   : > { %v554_v3 = vld [vmem:[%s14888_s16] sm:$0xff]  ;;  %v555_v4 = vld [vmem:[%s14888_s16 + $0x8] sm:$0xff]  ;;  %v556_v9 = vld [vmem:[%s14888_s16 + $0x10] sm:$0xff]  ;;  %s19459_s25 = smov 24   ;;  %s14747_s29 = smov 28   ;;  %vm19458_vm13 = vcmask 97344  }
  0x1c   : > { %v570_v5 = vld [vmem:[%s14888_s16 + $0x80] sm:$0xff]  ;;  %587 = vst.msk [vmem:[#allocation2 + $0x19] sm:$0xff] %vm386_vm4, %v554_v3  ;;  %588 = vst.msk [vmem:[#allocation2 + $0x21] sm:$0xff] %vm386_vm4, %v555_v4  ;;  %v619_v7 = vpack.c.bf16 %v555_v4, %v554_v3  ;;  %v571_v8 = vld [vmem:[%s14888_s16 + $0x88] sm:$0xff]  ;;  %s14748_s13 = smov 118   ;;  %s14749_s14 = smov 122  }
  0x1d   : > { %603 = vst.msk [vmem:[#allocation2 + $0xd9] sm:$0xff] %vm386_vm4, %v570_v5  ;;  %v557_v10 = vld [vmem:[%s14888_s16 + $0x18] sm:$0xff]  ;;  %604 = vst.msk [vmem:[#allocation2 + $0xe1] sm:$0xff] %vm386_vm4, %v571_v8  ;;  %v627_v11 = vpack.c.bf16 %v571_v8, %v570_v5  ;;  %v572_v13 = vld [vmem:[%s14888_s16 + $0x90] sm:$0xff]  ;;  %vm2282_vm14 = vcmask 27648   ;;  %s14750_s15 = smov 12  }
  0x1e   : > { %589 = vst.msk [vmem:[#allocation2 + $0x31] sm:$0xff] %vm386_vm4, %v556_v9  ;;  %590 = vst.msk [vmem:[#allocation2 + $0x39] sm:$0xff] %vm386_vm4, %v557_v10  ;;  %v620_v12 = vpack.c.bf16 %v557_v10, %v556_v9  ;;  %v573_v14 = vld [vmem:[%s14888_s16 + $0x98] sm:$0xff]  ;;  %v558_v15 = vld [vmem:[%s14888_s16 + $0x20] sm:$0xff]  ;;  %13697 = vmatprep.mubr.msk.bf16.mxu0 %vm386_vm4, %v619_v7  ;;  %s14752_s30 = smov 32   ;;  %s19477_s12 = smov 16  }
  0x1f   : > { %605 = vst.msk [vmem:[#allocation2 + $0xf1] sm:$0xff] %vm386_vm4, %v572_v13  ;;  %606 = vst.msk [vmem:[#allocation2 + $0xf9] sm:$0xff] %vm386_vm4, %v573_v14  ;;  %v628_v16 = vpack.c.bf16 %v573_v14, %v572_v13  ;;  %v559_v17 = vld [vmem:[%s14888_s16 + $0x28] sm:$0xff]  ;;  %v560_v18 = vld [vmem:[%s14888_s16 + $0x30] sm:$0xff]  ;;  %13713 = vmatprep.mubr.msk.bf16.mxu1 %vm386_vm4, %v627_v11  ;;  %vm19469_vm1 = vcmask 195744   ;;  %vm19466_vm0 = vcmask 294144  }
  0x20   : > { %591 = vst.msk [vmem:[#allocation2 + $0x49] sm:$0xff] %vm386_vm4, %v558_v15  ;;  %v561_v19 = vld [vmem:[%s14888_s16 + $0x38] sm:$0xff]  ;;  %13698 = vmatmul.mubr.msk.bf16.vlgmr.msra.gmra.mrb[0].mxu0 %vm386_vm4, %v620_v12  ;;  %592 = vst.msk [vmem:[#allocation2 + $0x51] sm:$0xff] %vm386_vm4, %v559_v17  ;;  %v621_v20 = vpack.c.bf16 %v559_v17, %v558_v15  ;;  %v574_v21 = vld [vmem:[%s14888_s16 + $0xa0] sm:$0xff] }
  0x21   : > { %593 = vst.msk [vmem:[#allocation2 + $0x61] sm:$0xff] %vm386_vm4, %v560_v18  ;;  %594 = vst.msk [vmem:[#allocation2 + $0x69] sm:$0xff] %vm386_vm4, %v561_v19  ;;  %v575_v22 = vld [vmem:[%s14888_s16 + $0xa8] sm:$0xff]  ;;  %v576_v23 = vld [vmem:[%s14888_s16 + $0xb0] sm:$0xff]  ;;  %13714 = vmatmul.mubr.msk.bf16.vlgmr.msra.gmra.mrb[0].mxu1 %vm386_vm4, %v628_v16  ;;  %v622_v34 = vpack.c.bf16 %v561_v19, %v560_v18 }
  0x22   : > { %607 = vst.msk [vmem:[#allocation2 + $0x109] sm:$0xff] %vm386_vm4, %v574_v21  ;;  %608 = vst.msk [vmem:[#allocation2 + $0x111] sm:$0xff] %vm386_vm4, %v575_v22  ;;  %v629_v24 = vpack.c.bf16 %v575_v22, %v574_v21  ;;  %v577_v25 = vld [vmem:[%s14888_s16 + $0xb8] sm:$0xff]  ;;  %v562_v26 = vld [vmem:[%s14888_s16 + $0x40] sm:$0xff]  ;;  %13701 = vmatprep.mubr.msk.bf16.mxu0 %vm386_vm4, %v621_v20 }
  0x23   : > { %609 = vst.msk [vmem:[#allocation2 + $0x121] sm:$0xff] %vm386_vm4, %v576_v23  ;;  %v563_v27 = vld [vmem:[%s14888_s16 + $0x48] sm:$0xff]  ;;  %610 = vst.msk [vmem:[#allocation2 + $0x129] sm:$0xff] %vm386_vm4, %v577_v25  ;;  %v564_v28 = vld [vmem:[%s14888_s16 + $0x50] sm:$0xff]  ;;  %v630_v38 = vpack.c.bf16 %v577_v25, %v576_v23 }
  0x24   : > { %595 = vst.msk [vmem:[#allocation2 + $0x79] sm:$0xff] %vm386_vm4, %v562_v26  ;;  %596 = vst.msk [vmem:[#allocation2 + $0x81] sm:$0xff] %vm386_vm4, %v563_v27  ;;  %v565_v29 = vld [vmem:[%s14888_s16 + $0x58] sm:$0xff]  ;;  %v578_v30 = vld [vmem:[%s14888_s16 + $0xc0] sm:$0xff]  ;;  %13717 = vmatprep.mubr.msk.bf16.mxu1 %vm386_vm4, %v629_v24  ;;  %v623_v39 = vpack.c.bf16 %v563_v27, %v562_v26 }
  0x25   : > { %597 = vst.msk [vmem:[#allocation2 + $0x91] sm:$0xff] %vm386_vm4, %v564_v28  ;;  %598 = vst.msk [vmem:[#allocation2 + $0x99] sm:$0xff] %vm386_vm4, %v565_v29  ;;  %v579_v31 = vld [vmem:[%s14888_s16 + $0xc8] sm:$0xff]  ;;  %v580_v32 = vld [vmem:[%s14888_s16 + $0xd0] sm:$0xff]  ;;  %v624_v49 = vpack.c.bf16 %v565_v29, %v564_v28 }
  0x26   : > { %611 = vst.msk [vmem:[#allocation2 + $0x139] sm:$0xff] %vm386_vm4, %v578_v30  ;;  %v581_v33 = vld [vmem:[%s14888_s16 + $0xd8] sm:$0xff]  ;;  %612 = vst.msk [vmem:[#allocation2 + $0x141] sm:$0xff] %vm386_vm4, %v579_v31  ;;  %v566_v35 = vld [vmem:[%s14888_s16 + $0x60] sm:$0xff]  ;;  %v631_v43 = vpack.c.bf16 %v579_v31, %v578_v30 }
  0x27   : > { %613 = vst.msk [vmem:[#allocation2 + $0x151] sm:$0xff] %vm386_vm4, %v580_v32  ;;  %614 = vst.msk [vmem:[#allocation2 + $0x159] sm:$0xff] %vm386_vm4, %v581_v33  ;;  %v567_v36 = vld [vmem:[%s14888_s16 + $0x68] sm:$0xff]  ;;  %v568_v37 = vld [vmem:[%s14888_s16 + $0x70] sm:$0xff]  ;;  %v632_v50 = vpack.c.bf16 %v581_v33, %v580_v32 }
  0x28   : > { %599 = vst.msk [vmem:[#allocation2 + $0xa9] sm:$0xff] %vm386_vm4, %v566_v35  ;;  %600 = vst.msk [vmem:[#allocation2 + $0xb1] sm:$0xff] %vm386_vm4, %v567_v36  ;;  %v569_v40 = vld [vmem:[%s14888_s16 + $0x78] sm:$0xff]  ;;  %v582_v41 = vld [vmem:[%s14888_s16 + $0xe0] sm:$0xff]  ;;  %13702 = vmatmul.mubr.msk.bf16.gmra.mrb[4].mxu0 %vm386_vm4, %v622_v34  ;;  %v625_v51 = vpack.c.bf16 %v567_v36, %v566_v35 }
  0x29   : > { %601 = vst.msk [vmem:[#allocation2 + $0xc1] sm:$0xff] %vm386_vm4, %v568_v37  ;;  %v583_v42 = vld [vmem:[%s14888_s16 + $0xe8] sm:$0xff]  ;;  %602 = vst.msk [vmem:[#allocation2 + $0xc9] sm:$0xff] %vm386_vm4, %v569_v40  ;;  %v584_v44 = vld [vmem:[%s14888_s16 + $0xf0] sm:$0xff]  ;;  %13718 = vmatmul.mubr.msk.bf16.gmra.mrb[4].mxu1 %vm386_vm4, %v630_v38  ;;  %13705 = vmatprep.mubr.msk.bf16.mxu0 %vm386_vm4, %v623_v39  ;;  %v626_v57 = vpack.c.bf16 %v569_v40, %v568_v37 }
  0x2a   : > { %615 = vst.msk [vmem:[#allocation2 + $0x169] sm:$0xff] %vm386_vm4, %v582_v41  ;;  %616 = vst.msk [vmem:[#allocation2 + $0x171] sm:$0xff] %vm386_vm4, %v583_v42  ;;  %v585_v45 = vld [vmem:[%s14888_s16 + $0xf8] sm:$0xff]  ;;  %13721 = vmatprep.mubr.msk.bf16.mxu1 %vm386_vm4, %v631_v43  ;;  %v13947_v48 = vld [vmem:[#allocation3] sm:$0xfe]   ;;  %v633_v52 = vpack.c.bf16 %v583_v42, %v582_v41  ;;  %s14751_s16 = smov 20  }
  0x2b   : > { %v500_v46 = vld [vmem:[#allocation3 + $0x8] sm:$0x1]  ;;  %617 = vst.msk [vmem:[#allocation2 + $0x181] sm:$0xff] %vm386_vm4, %v584_v44  ;;  %618 = vst.msk [vmem:[#allocation2 + $0x189] sm:$0xff] %vm386_vm4, %v585_v45  ;;  %v3154_v54 = vrot.slane %v13947_v48, 1  ;;  %v634_v58 = vpack.c.bf16 %v585_v45, %v584_v44 }
  0x2c   : > { %v501_v47 = vsel %vm14895_vm5, 0, %v500_v46  ;;  %vm14982_vm8 = vmand %vm435_vm2, %vm442_vm7  ;;  %v444_v60 = vld [vmem:[#allocation3] sm:$0x1]  ;;  %v495_v62 = vld [vmem:[#allocation3 + $0xcc] sm:$0x1]  ;;  %vm19456_vm2 = vcmask 24576  }
  0x2d   : > { %502 = vst [vmem:[#allocation3 + $0x8] sm:$0x1] %v501_v47  ;;  %v19489_v59 = vsel %vm14982_vm8, 4294967295, %v19488_v59  ;;  %v445_v61 = vsel %vm14982_vm8, 0, %v444_v60  ;;  %v496_v63 = vsel %vm14982_vm8, 0, %v495_v62  ;;  %vm15107_vm12 = vmor %vm442_vm7, %vm1863_vm11  ;;  %vm3860_vm11 = vcmask 162944  }
  0x2e   : > { %19490 = vst [vmem:[#allocation8_spill] sm:$0xff] %v19489_v59  ;;  %446 = vst [vmem:[#allocation3] sm:$0x1] %v445_v61  ;;  %v551_v0 = vld [vmem:[#allocation3 + $0xd4] sm:$0x1] }
  0x2f   : > { %497 = vst [vmem:[#allocation3 + $0xcc] sm:$0x1] %v496_v63  ;;  %v552_v1 = vsel %vm14895_vm5, 0, %v551_v0  ;;  %v15004_v25 = vld [vmem:[%s19385_s4] ss:$0 sm:$0xff]  ;;  %vm15577_vm15 = vmand %vm2282_vm14, %vm19455_vm3  ;;  %vm19462_vm3 = vcmask 228544  }
  0x30   : > { %13706 = vmatmul.mubr.msk.bf16.gmra.mrb[8].mxu0 %vm386_vm4, %v624_v49  ;;  %553 = vst [vmem:[#allocation3 + $0xd4] sm:$0x1] %v552_v1  ;;  %v450_v27 = vld [vmem:[#allocation3 + $0x18] sm:$0x1] }
  0x31   : > { %13722 = vmatmul.mubr.msk.bf16.gmra.mrb[8].mxu1 %vm386_vm4, %v632_v50  ;;  %13709 = vmatprep.mubr.msk.bf16.mxu0 %vm386_vm4, %v625_v51  ;;  %v451_v31 = vsel %vm14982_vm8, 0, %v450_v27 }
  0x32   : > { %13725 = vmatprep.mubr.msk.bf16.mxu1 %vm386_vm4, %v633_v52  ;;  %452 = vst [vmem:[#allocation3 + $0x18] sm:$0x1] %v451_v31 }
  0x34   : > { %v13948_v53 = vld [vmem:[#allocation3 + $0x8] ss:$0 sps:$4 sm:$0x11]  }
  0x35   : > { %v3155_v55 = vrot.slane %v13948_v53, 1  ;;  %v13949_v2 = vld [vmem:[#allocation3] sm:$0xff]   ;;  %v13950_v3 = vld [vmem:[#allocation3 + $0x8] ss:$0 sps:$4 sm:$0x11]  }
  0x36   : > { %v2723_v4 = vshll.u32 %v13949_v2, 16  ;;  %v2721_v5 = vshrl.u32 %v13949_v2, 16  ;;  %v2728_v8 = vshll.u32 %v13950_v3, 16  ;;  %v13952_v9 = vld [vmem:[#allocation3 + $0xcc] sm:$0xff]   ;;  %v13954_v23 = vld [vmem:[#allocation3] sm:$0xff]  }
  0x37   : > { %v3156_v56 = vsel %vm19467_vm6, %v3154_v54, %v3155_v55  ;;  %v4703_v12 = vshll.u32 %v13952_v9, 16  ;;  %v13951_v14 = vld [vmem:[#allocation3 + $0xcc] sm:$0xff]   ;;  %v13953_v15 = vld [vmem:[#allocation3 + $0xd4] ss:$0 sps:$4 sm:$0x11]   ;;  %v4701_v16 = vshrl.u32 %v13952_v9, 16 }
  0x38   : > { %3202 = vrot.lane.b32.xlu0 %v3156_v56, %s19483_s22  ;;  %13710 = vmatmul.mubr.msk.bf16.gmra.mrb[12].mxu0 %vm386_vm4, %v626_v57  ;;  %v2725_v7 = vrot.slane %v2723_v4, 1  ;;  %v2730_v11 = vrot.slane %v2728_v8, 1  ;;  %v4708_v18 = vshll.u32 %v13953_v15, 16  ;;  %2527 = vst.msk [vmem:[#allocation4] sm:$0xff] %vm386_vm4, %v13954_v23 }
  0x39   : > { %13726 = vmatmul.mubr.msk.bf16.gmra.mrb[12].mxu1 %vm386_vm4, %v634_v58  ;;  %v4705_v17 = vrot.slane %v4703_v12, 1  ;;  %4309 = vrot.lane.b32.xlu1 %v13951_v14, %s19459_s25 }
  0x3a   : > { %v2726_v10 = vor.u32 %v2725_v7, %v2721_v5  ;;  %v4710_v20 = vrot.slane %v4708_v18, 1 }
  0x3b   : > { %v4706_v19 = vor.u32 %v4705_v17, %v4701_v16 }
  0x3c   : > { %v2731_v13 = vsel %vm19468_vm9, %v2726_v10, %v2730_v11 }
  0x3d   : > { %2912 = vrot.lane.b32.xlu0 %v2731_v13, %s14745_s24  ;;  %v4711_v21 = vsel %vm19468_vm9, %v4706_v19, %v4710_v20 }
  0x3e   : > { %4742 = vrot.lane.b32.xlu1 %v4711_v21, %s14747_s29 }
  0xaa   : > { %v14997_v22 = vpop.permute.xlu0 %3202 }
  0xaf   : > { %v2913_v24 = vpop.permute.xlu0 %2912 }
  0xb0   : > { %2961 = vst.msk [vmem:[#allocation4] sm:$0xff] %vm2960_vm10, %v2913_v24 }
  0xb1   : > { %3251 = vst.msk [vmem:[#allocation4] sm:$0xff] %vm19458_vm13, %v14997_v22 }
  0xf3   : > { %v13699_v26 = vpop.f32.mrb[0].mxu0 }
  0xf4   : > { %v738_v28 = vadd.f32 %v13699_v26, %v15004_v25  ;;  %v13715_v29 = vpop.f32.mrb[0].mxu1  ;;  %v729_v30 = vpop.f32.mrb[1].mxu0 }
  0xf5   : > { %v802_v32 = vadd.f32 %v13715_v29, %v15004_v25  ;;  %v730_v33 = vadd.f32 %v15004_v25, %v729_v30  ;;  %v793_v34 = vpop.f32.mrb[1].mxu1  ;;  %v13700_v35 = vpop.f32.mrb[2].mxu0 }
  0xf6   : > { %v15011_v36 = vmax.f32 %v738_v28, 0.0  ;;  %v794_v37 = vadd.f32 %v15004_v25, %v793_v34  ;;  %v741_v38 = vadd.f32 %v13700_v35, %v15004_v25  ;;  %v13716_v39 = vpop.f32.mrb[2].mxu1  ;;  %v732_v40 = vpop.f32.mrb[3].mxu0 }
  0xf7   : > { %v15015_v41 = vmax.f32 %v802_v32, 0.0  ;;  %v15017_v42 = vmax.f32 %v730_v33, 0.0  ;;  %v796_v43 = vpop.f32.mrb[3].mxu1  ;;  %v805_v58 = vadd.f32 %v13716_v39, %v15004_v25  ;;  %v733_v0 = vadd.f32 %v15004_v25, %v732_v40 }
  0xf8   : > { %19491 = vst [vmem:[#allocation9_spill] sm:$0xff] %v15011_v36  ;;  %v13539_v44 = vpack.c.bf16 %v15011_v36, %v15011_v36  ;;  %v15021_v45 = vmax.f32 %v794_v37, 0.0  ;;  %v15027_v49 = vmax.f32 %v741_v38, 0.0  ;;  %v797_v1 = vadd.f32 %v15004_v25, %v796_v43 }
  0xf9   : > { %19492 = vst [vmem:[#allocation10_spill] sm:$0xff] %v15015_v41  ;;  %19493 = vst [vmem:[#allocation11_spill] sm:$0xff] %v15017_v42  ;;  %v13555_v46 = vpack.c.bf16 %v15015_v41, %v15015_v41  ;;  %v13537_v47 = vpack.c.bf16 %v15017_v42, %v15017_v42  ;;  %v15057_v11 = vmax.f32 %v805_v58, 0.0  ;;  %v15061_v14 = vmax.f32 %v733_v0, 0.0 }
  0xfa   : > { %19494 = vst [vmem:[#allocation12_spill] sm:$0xff] %v15021_v45  ;;  %v1883_v48 = vshrl.u32 %v13539_v44, 16  ;;  %19495 = vst [vmem:[#allocation13_spill] sm:$0xff] %v15027_v49  ;;  %v13553_v52 = vpack.c.bf16 %v15021_v45, %v15021_v45  ;;  %v1886_v57 = vshll.u32 %v13539_v44, 16  ;;  %v13540_v63 = vpack.c.bf16 %v15027_v49, %v15027_v49 }
  0xfb   : > { %v2019_v50 = vshrl.u32 %v13555_v46, 16  ;;  %v1866_v51 = vshrl.u32 %v13537_v47, 16  ;;  %v13703_v53 = vpop.f32.mrb[4].mxu0  ;;  %v2022_v62 = vshll.u32 %v13555_v46, 16  ;;  %v1869_v10 = vshll.u32 %v13537_v47, 16  ;;  %19496 = vst [vmem:[#allocation14_spill] sm:$0xff] %v15057_v11 }
  0xfc   : > { %v15031_v54 = vrot.slane %v1883_v48, 7  ;;  %v15033_v55 = vpop.f32.mrb[5].mxu0  ;;  %v15035_v56 = vpop.f32.mrb[4].mxu1  ;;  %v2002_v7 = vshrl.u32 %v13553_v52, 16  ;;  %v2005_v12 = vshll.u32 %v13553_v52, 16  ;;  %v1891_v13 = vshrl.u32 %v13540_v63, 16 }
  0xfd   : > { %v15038_v60 = vpop.f32.mrb[6].mxu0  ;;  %v15040_v61 = vpop.f32.mrb[5].mxu1  ;;  %v15050_v4 = vrot.slane %v2019_v50, 7  ;;  %v15052_v5 = vrot.slane %v1866_v51, 7  ;;  %19497 = vst [vmem:[#allocation15_spill] sm:$0xff] %v15061_v14  ;;  %v15065_v16 = vmax.f32 %v797_v1, 0.0  ;;  %v13556_v23 = vpack.c.bf16 %v15057_v11, %v15057_v11 }
  0xfe   : > { %v15046_v2 = vpop.f32.mrb[7].mxu0  ;;  %v15048_v3 = vpop.f32.mrb[6].mxu1  ;;  %v1888_v8 = vor.u32 %v1886_v57, %v15031_v54  ;;  %v15063_v15 = vrot.slane %v2002_v7, 7  ;;  %v1893_v29 = vrot.slane %v1891_v13, 7  ;;  %v13538_v30 = vpack.c.bf16 %v15061_v14, %v15061_v14 }
  0xff   : > { %v15055_v9 = vpop.f32.mrb[7].mxu1  ;;  %19498 = vst [vmem:[#allocation16_spill] sm:$0xff] %v15065_v16  ;;  %v15068_v17 = vor.u32 %v2022_v62, %v15050_v4  ;;  %v1871_v18 = vor.u32 %v1869_v10, %v15052_v5  ;;  %v15084_v31 = vpack.c.bf16 %v15065_v16, %v15065_v16  ;;  %v2027_v34 = vshrl.u32 %v13556_v23, 16 }
 0x100   : > { %5360 = vrot.lane.b32.xlu0 %v1888_v8, %s14748_s13  ;;  %2143 = vrot.lane.b32.xlu1 %v1888_v8, %s14749_s14  ;;  %v15087_v32 = vor.u32 %v2005_v12, %v15063_v15  ;;  %v1894_v35 = vshll.u32 %v13540_v63, 16  ;;  %v1874_v37 = vshrl.u32 %v13538_v30, 16  ;;  %v1898_v39 = vrot.slane %v1893_v29, 4 }
 0x101   : > { %v2010_v38 = vshrl.u32 %v15084_v31, 16  ;;  %v754_v44 = vadd.f32 %v13703_v53, %v15004_v25  ;;  %v15102_v48 = vrot.slane %v2027_v34, 7  ;;  %v19500_v50 = vmov 0 }
 0x102   : > { %v1896_v43 = vor.u32 %v1894_v35, %v1893_v29  ;;  %v19501_v50 = vsel %vm15107_vm12, 4294967295, %v19500_v50  ;;  %v1889_v53 = vrot.slane %v15031_v54, 4  ;;  %v1876_v62 = vrot.slane %v1874_v37, 7 }
 0x103   : > { %v13707_v19 = vpop.f32.mrb[8].mxu0  ;;  %19499 = vst [vmem:[#allocation17_spill] sm:$0xff] %v15102_v48  ;;  %19502 = vst [vmem:[#allocation18_spill] sm:$0xff] %v19501_v50  ;;  %v15120_v63 = vrot.slane %v2010_v38, 7  ;;  %v19393_v0 = vrot.slane %v15102_v48, 4  ;;  %v2030_v7 = vshll.u32 %v13556_v23, 16  ;;  %v818_v54 = vadd.f32 %v15035_v56, %v15004_v25 }
 0x104   : > { %v761_v20 = vpop.f32.mrb[9].mxu0  ;;  %v13723_v21 = vpop.f32.mrb[8].mxu1  ;;  %2191 = vrot.lane.b32.xlu1 %v15068_v17, %s14749_s14  ;;  %2137 = vrot.lane.b32.xlu0 %v1871_v18, %s14749_s14  ;;  %v1897_v8 = vsel %vm15107_vm12, %v1889_v53, %v1896_v43  ;;  %v15127_v10 = vmax.f32 %v754_v44, 0.0  ;;  %v1881_v12 = vrot.slane %v1876_v62, 4  ;;  %v2025_v23 = vrot.slane %v15050_v4, 4 }
 0x105   : > { %v13708_v24 = vpop.f32.mrb[10].mxu0  ;;  %v15076_v26 = vpop.f32.mrb[9].mxu1  ;;  %v19394_v13 = vrot.slane %v15120_v63, 4  ;;  %v2032_v34 = vor.u32 %v2030_v7, %v15102_v48  ;;  %v15143_v35 = vadd.f32 %v13707_v19, %v15004_v25  ;;  %v15146_v37 = vadd.f32 %v15004_v25, %v761_v20 }
 0x106   : > { %v764_v27 = vpop.f32.mrb[11].mxu0  ;;  %v15078_v28 = vpop.f32.mrb[10].mxu1  ;;  %19503 = vst [vmem:[#allocation19_spill] sm:$0xff] %v15127_v10  ;;  %v13543_v29 = vpack.c.bf16 %v15127_v10, %v15127_v10  ;;  %v810_v56 = vadd.f32 %v15004_v25, %v15040_v61  ;;  %v15157_v4 = vadd.f32 %v13708_v24, %v15004_v25  ;;  %v1877_v38 = vshll.u32 %v13538_v30, 16 }
 0x107   : > { %v15089_v33 = vpop.f32.mrb[11].mxu1  ;;  %v15160_v19 = vadd.f32 %v15004_v25, %v764_v27  ;;  %v15163_v20 = vadd.f32 %v13723_v21, %v15004_v25  ;;  %v2013_v43 = vshll.u32 %v15084_v31, 16  ;;  %v15170_v53 = vsel %vm15107_vm12, %v2025_v23, %v2032_v34 }
 0x108   : > { %5354 = vrot.lane.b32.xlu1 %v1871_v18, %s14748_s13  ;;  %2185 = vrot.lane.b32.xlu0 %v15087_v32, %s14749_s14  ;;  %v746_v18 = vadd.f32 %v15004_v25, %v15033_v55  ;;  %v15152_v55 = vmax.f32 %v818_v54, 0.0  ;;  %v1917_v44 = vshrl.u32 %v13543_v29, 16  ;;  %v1879_v61 = vor.u32 %v1877_v38, %v1876_v62 }
 0x109   : > { %v15177_v21 = vmax.f32 %v810_v56, 0.0  ;;  %v1872_v27 = vrot.slane %v15052_v5, 4  ;;  %v1920_v30 = vshll.u32 %v13543_v29, 16  ;;  %v757_v7 = vadd.f32 %v15038_v60, %v15004_v25 }
 0x10a   : > { %19504 = vst [vmem:[#allocation20_spill] sm:$0xff] %v15152_v55  ;;  %v13559_v24 = vpack.c.bf16 %v15152_v55, %v15152_v55  ;;  %v15184_v62 = vrot.slane %v1917_v44, 7  ;;  %v15196_v60 = vadd.f32 %v15004_v25, %v15076_v26  ;;  %v15200_v29 = vadd.f32 %v15078_v28, %v15004_v25 }
 0x10b   : > { %v15095_v40 = vpop.f32.mrb[12].mxu0  ;;  %19506 = vst [vmem:[#allocation22_spill] sm:$0xff] %v15177_v21  ;;  %v1880_v54 = vsel %vm15107_vm12, %v1872_v27, %v1879_v61  ;;  %v13557_v5 = vpack.c.bf16 %v15177_v21, %v15177_v21  ;;  %v15208_v56 = vmax.f32 %v757_v7, 0.0  ;;  %v821_v38 = vadd.f32 %v15048_v3, %v15004_v25  ;;  %v536_v21 = vld [vmem:[#allocation3 + $0x98] sm:$0x1] }
 0x10c   : > { %v15098_v46 = vpop.f32.mrb[13].mxu0  ;;  %v15100_v47 = vpop.f32.mrb[12].mxu1  ;;  %2147 = vrot.lane.b32.xlu1 %v1898_v39, %s14749_s14  ;;  %5364 = vrot.lane.b32.xlu0 %v1898_v39, %s14748_s13  ;;  %v15165_v39 = vmax.f32 %v746_v18, 0.0  ;;  %v2015_v18 = vor.u32 %v2013_v43, %v15120_v63  ;;  %v2053_v23 = vshrl.u32 %v13559_v24, 16  ;;  %v2056_v28 = vshll.u32 %v13559_v24, 16 }
 0x10d   : > { %v15111_v51 = vpop.f32.mrb[14].mxu0  ;;  %v15113_v52 = vpop.f32.mrb[13].mxu1  ;;  %19507 = vst [vmem:[#allocation23_spill] sm:$0xff] %v15208_v56  ;;  %v2036_v44 = vshrl.u32 %v13557_v5, 16  ;;  %v13544_v3 = vpack.c.bf16 %v15208_v56, %v15208_v56  ;;  %v2039_v7 = vshll.u32 %v13557_v5, 16  ;;  %v15232_v24 = vadd.f32 %v15095_v40, %v15004_v25 }
 0x10e   : > { %v15116_v57 = vpop.f32.mrb[15].mxu0  ;;  %v15118_v58 = vpop.f32.mrb[14].mxu1  ;;  %19505 = vst [vmem:[#allocation21_spill] sm:$0xff] %v15165_v39  ;;  %v13541_v31 = vpack.c.bf16 %v15165_v39, %v15165_v39  ;;  %v15216_v43 = vrot.slane %v2053_v23, 7  ;;  %v813_v40 = vadd.f32 %v15004_v25, %v15055_v9  ;;  %v15257_v5 = vadd.f32 %v15100_v47, %v15004_v25 }
 0x10f   : > { %v15123_v1 = vpop.f32.mrb[15].mxu1  ;;  %v15253_v23 = vadd.f32 %v15004_v25, %v15116_v57 }
 0x110   : > { %2195 = vrot.lane.b32.xlu1 %v19393_v0, %s14749_s14  ;;  %2145 = vrot.lane.b32.xlu0 %v1897_v8, %s14749_s14  ;;  %v1900_v34 = vshrl.u32 %v13541_v31, 16  ;;  %v1903_v61 = vshll.u32 %v13541_v31, 16  ;;  %v15243_v31 = vadd.f32 %v15004_v25, %v15098_v46  ;;  %v15274_v47 = vmax.f32 %v813_v40, 0.0  ;;  %v447_v0 = vld [vmem:[#allocation3 + $0xc] sm:$0x1] }
 0x111   : > { %v15291_v40 = vadd.f32 %v15118_v58, %v15004_v25  ;;  %v471_v58 = vld [vmem:[#allocation3 + $0x6c] sm:$0x1] }
 0x112   : > { %19511 = vst [vmem:[#allocation27_spill] sm:$0xff] %v15274_v47 }
 0x114   : > { %2141 = vrot.lane.b32.xlu1 %v1881_v12, %s14749_s14  ;;  %2189 = vrot.lane.b32.xlu0 %v19394_v13, %s14749_s14 }
 0x118   : > { %5358 = vrot.lane.b32.xlu1 %v1881_v12, %s14748_s13  ;;  %2193 = vrot.lane.b32.xlu0 %v15170_v53, %s14749_s14  ;;  %v2008_v12 = vrot.slane %v15063_v15, 4  ;;  %v15204_v15 = vadd.f32 %v15004_v25, %v15089_v33  ;;  %v15222_v33 = vrot.slane %v1900_v34, 7 }
 0x11a   : > { %v15214_v26 = vsel %vm15107_vm12, %v2008_v12, %v2015_v18  ;;  %v15228_v12 = vmax.f32 %v821_v38, 0.0  ;;  %v15234_v18 = vrot.slane %v2036_v44, 7  ;;  %v1905_v34 = vor.u32 %v1903_v61, %v15222_v33 }
 0x11b   : > { %v1928_v44 = vshll.u32 %v13544_v3, 16  ;;  %v1906_v55 = vrot.slane %v15222_v33, 4  ;;  %v509_v33 = vld [vmem:[#allocation3 + $0x2c] sm:$0x1] }
 0x11c   : > { %5362 = vrot.lane.b32.xlu1 %v1897_v8, %s14748_s13  ;;  %2139 = vrot.lane.b32.xlu0 %v1880_v54, %s14749_s14  ;;  %v749_v8 = vadd.f32 %v15004_v25, %v15046_v2  ;;  %v1922_v2 = vor.u32 %v1920_v30, %v15184_v62  ;;  %19509 = vst [vmem:[#allocation25_spill] sm:$0xff] %v15228_v12 }
 0x11d   : > { %v15239_v30 = vor.u32 %v2056_v28, %v15216_v43  ;;  %v15272_v9 = vor.u32 %v2039_v7, %v15234_v18  ;;  %v15287_v7 = vadd.f32 %v15004_v25, %v15113_v52  ;;  %v1923_v52 = vrot.slane %v15184_v62, 4 }
 0x11e   : > { %v15224_v27 = vmax.f32 %v749_v8, 0.0  ;;  %v1925_v8 = vshrl.u32 %v13544_v3, 16  ;;  %v15298_v3 = vmax.f32 %v15143_v35, 0.0  ;;  %v472_v62 = vsel %vm14982_vm8, 0, %v471_v58 }
 0x11f   : > { %19510 = vst [vmem:[#allocation26_spill] sm:$0xff] %v15239_v30  ;;  %473 = vst [vmem:[#allocation3 + $0x6c] sm:$0x1] %v472_v62  ;;  %v456_v62 = vld [vmem:[#allocation3 + $0x30] sm:$0x1] }
 0x120   : > { %2187 = vrot.lane.b32.xlu1 %v15214_v26, %s14749_s14  ;;  %5356 = vrot.lane.b32.xlu0 %v1880_v54, %s14748_s13  ;;  %19508 = vst [vmem:[#allocation24_spill] sm:$0xff] %v15224_v27  ;;  %v15247_v54 = vadd.f32 %v15111_v51, %v15004_v25  ;;  %v15262_v46 = vpack.c.bf16 %v15224_v27, %v15224_v27  ;;  %v1927_v57 = vrot.slane %v1925_v8, 7  ;;  %v474_v8 = vld [vmem:[#allocation3 + $0x78] sm:$0x1]  ;;  %19512 = vst [vmem:[#allocation28_spill] sm:$0xff] %v15298_v3 }
 0x121   : > { %v15266_v51 = vpack.c.bf16 %v15228_v12, %v15228_v12 }
 0x122   : > { %v1908_v38 = vshrl.u32 %v15262_v46, 16  ;;  %v1932_v61 = vrot.slane %v1927_v57, 4  ;;  %v1930_v11 = vor.u32 %v1928_v44, %v1927_v57  ;;  %v530_v57 = vld [vmem:[#allocation3 + $0x80] sm:$0x1]  ;;  %v503_v44 = vld [vmem:[#allocation3 + $0x14] sm:$0x1] }
 0x123   : > { %v2061_v28 = vshrl.u32 %v15266_v51, 16  ;;  %v2064_v16 = vshll.u32 %v15266_v51, 16  ;;  %v15332_v51 = vmax.f32 %v15146_v37, 0.0 }
 0x124   : > { %2155 = vrot.lane.b32.xlu1 %v1922_v2, %s14749_s14  ;;  %5372 = vrot.lane.b32.xlu0 %v1922_v2, %s14748_s13  ;;  %v15283_v2 = vpack.c.bf16 %v15274_v47, %v15274_v47  ;;  %v1910_v13 = vrot.slane %v1908_v38, 7  ;;  %v1931_v58 = vsel %vm15107_vm12, %v1923_v52, %v1930_v11  ;;  %v504_v52 = vsel %vm14895_vm5, 0, %v503_v44 }
 0x125   : > { %v15300_v12 = vrot.slane %v2061_v28, 7  ;;  %v506_v28 = vld [vmem:[#allocation3 + $0x20] sm:$0x1]  ;;  %19515 = vst [vmem:[#allocation31_spill] sm:$0xff] %v15332_v51  ;;  %505 = vst [vmem:[#allocation3 + $0x14] sm:$0x1] %v504_v52 }
 0x126   : > { %v2044_v47 = vshrl.u32 %v15283_v2, 16  ;;  %v1915_v38 = vrot.slane %v1910_v13, 4  ;;  %v462_v52 = vld [vmem:[#allocation3 + $0x48] sm:$0x1]  ;;  %v2343_v6 = vld [vmem:[#allocation3 + $0x6c] sm:$0xf] }
 0x127   : > { %19513 = vst [vmem:[#allocation29_spill] sm:$0xff] %v15300_v12  ;;  %v19400_v35 = vrot.slane %v15300_v12, 4  ;;  %v2066_v41 = vor.u32 %v2064_v16, %v15300_v12 }
 0x128   : > { %2203 = vrot.lane.b32.xlu1 %v15239_v30, %s14749_s14  ;;  %2149 = vrot.lane.b32.xlu0 %v1905_v34, %s14749_s14 }
 0x12c   : > { %5366 = vrot.lane.b32.xlu1 %v1905_v34, %s14748_s13  ;;  %2197 = vrot.lane.b32.xlu0 %v15272_v9, %s14749_s14  ;;  %v15295_v34 = vadd.f32 %v15004_v25, %v15123_v1  ;;  %v475_v25 = vsel %vm14982_vm8, 0, %v474_v8  ;;  %v448_v1 = vsel %vm14982_vm8, 0, %v447_v0  ;;  %v1911_v8 = vshll.u32 %v15262_v46, 16 }
 0x12d   : > { %476 = vst [vmem:[#allocation3 + $0x78] sm:$0x1] %v475_v25  ;;  %449 = vst [vmem:[#allocation3 + $0xc] sm:$0x1] %v448_v1  ;;  %v2047_v0 = vshll.u32 %v15283_v2, 16  ;;  %v15324_v1 = vrot.slane %v2044_v47, 7 }
 0x12e   : > { %v527_v25 = vld [vmem:[#allocation3 + $0x74] sm:$0x1]  ;;  %v507_v46 = vsel %vm14895_vm5, 0, %v506_v28  ;;  %v15335_v2 = vmax.f32 %v15163_v20, 0.0  ;;  %v531_v47 = vsel %vm14895_vm5, 0, %v530_v57 }
 0x12f   : > { %19514 = vst [vmem:[#allocation30_spill] sm:$0xff] %v15324_v1  ;;  %508 = vst [vmem:[#allocation3 + $0x20] sm:$0x1] %v507_v46  ;;  %v528_v37 = vsel %vm14895_vm5, 0, %v527_v25  ;;  %v480_v20 = vld [vmem:[#allocation3 + $0x90] sm:$0x1]  ;;  %v1913_v46 = vor.u32 %v1911_v8, %v1910_v13 }
 0x130   : > { %2159 = vrot.lane.b32.xlu1 %v1932_v61, %s14749_s14  ;;  %5376 = vrot.lane.b32.xlu0 %v1932_v61, %s14748_s13  ;;  %v15313_v61 = vpack.c.bf16 %v15298_v3, %v15298_v3  ;;  %19516 = vst [vmem:[#allocation32_spill] sm:$0xff] %v15335_v2  ;;  %532 = vst [vmem:[#allocation3 + $0x80] sm:$0x1] %v531_v47  ;;  %v477_v28 = vld [vmem:[#allocation3 + $0x84] sm:$0x1]  ;;  %v13563_v44 = vpack.c.bf16 %v15335_v2, %v15335_v2  ;;  %v457_v25 = vsel %vm14982_vm8, 0, %v456_v62 }
 0x131   : > { %529 = vst [vmem:[#allocation3 + $0x74] sm:$0x1] %v528_v37  ;;  %v512_v57 = vld [vmem:[#allocation3 + $0x38] sm:$0x1]  ;;  %v533_v47 = vld [vmem:[#allocation3 + $0x8c] sm:$0x1] }
 0x132   : > { %v1951_v11 = vshrl.u32 %v15313_v61, 16  ;;  %v15356_v37 = vmax.f32 %v15196_v60, 0.0  ;;  %458 = vst [vmem:[#allocation3 + $0x30] sm:$0x1] %v457_v25  ;;  %v478_v8 = vsel %vm14982_vm8, 0, %v477_v28  ;;  %v513_v16 = vsel %vm14895_vm5, 0, %v512_v57 }
 0x133   : > { %v19518_v62 = vrot.slane %v15324_v1, 4  ;;  %479 = vst [vmem:[#allocation3 + $0x84] sm:$0x1] %v478_v8  ;;  %514 = vst [vmem:[#allocation3 + $0x38] sm:$0x1] %v513_v16  ;;  %v537_v60 = vsel %vm14895_vm5, 0, %v536_v21  ;;  %v1914_v21 = vsel %vm15107_vm12, %v1906_v55, %v1913_v46 }
 0x134   : > { %2207 = vrot.lane.b32.xlu1 %v19400_v35, %s14749_s14  ;;  %2153 = vrot.lane.b32.xlu0 %v1915_v38, %s14749_s14  ;;  %v2059_v35 = vrot.slane %v15216_v43, 4  ;;  %v453_v43 = vld [vmem:[#allocation3 + $0x24] sm:$0x1]  ;;  %19517 = vst [vmem:[#allocation33_spill] sm:$0xff] %v15356_v37  ;;  %v463_v28 = vsel %vm14982_vm8, 0, %v462_v52  ;;  %v2042_v57 = vrot.slane %v15234_v18, 4  ;;  %v13561_v22 = vpack.c.bf16 %v15356_v37, %v15356_v37 }
 0x135   : > { %v454_v13 = vsel %vm14982_vm8, 0, %v453_v43  ;;  %v534_v43 = vsel %vm14895_vm5, 0, %v533_v47  ;;  %538 = vst [vmem:[#allocation3 + $0x98] sm:$0x1] %v537_v60  ;;  %464 = vst [vmem:[#allocation3 + $0x48] sm:$0x1] %v463_v28  ;;  %v2049_v47 = vor.u32 %v2047_v0, %v15324_v1 }
 0x136   : > { %455 = vst [vmem:[#allocation3 + $0x24] sm:$0x1] %v454_v13  ;;  %535 = vst [vmem:[#allocation3 + $0x8c] sm:$0x1] %v534_v43  ;;  %v15388_v25 = vrot.slane %v1951_v11, 7  ;;  %v2087_v52 = vshrl.u32 %v13563_v44, 16 }
 0x137   : > { %v15401_v18 = vsel %vm15107_vm12, %v2042_v57, %v2049_v47  ;;  %v2070_v0 = vshrl.u32 %v13561_v22, 16  ;;  %v486_v46 = vld [vmem:[#allocation3 + $0xa8] sm:$0x1]  ;;  %v459_v13 = vld [vmem:[#allocation3 + $0x3c] sm:$0x1]  ;;  %v15418_v60 = vmax.f32 %v15160_v19, 0.0 }
 0x138   : > { %5370 = vrot.lane.b32.xlu1 %v1915_v38, %s14748_s13  ;;  %2157 = vrot.lane.b32.xlu0 %v1931_v58, %s14749_s14  ;;  %v481_v38 = vsel %vm14982_vm8, 0, %v480_v20  ;;  %v510_v20 = vsel %vm14895_vm5, 0, %v509_v33  ;;  %v15384_v33 = vsel %vm15107_vm12, %v2059_v35, %v2066_v41  ;;  %v15397_v41 = vmax.f32 %v15157_v4, 0.0  ;;  %19521 = vst [vmem:[#allocation36_spill] sm:$0xff] %v15401_v18  ;;  %v518_v57 = vld [vmem:[#allocation3 + $0x50] sm:$0x1] }
 0x139   : > { %482 = vst [vmem:[#allocation3 + $0x90] sm:$0x1] %v481_v38  ;;  %511 = vst [vmem:[#allocation3 + $0x2c] sm:$0x1] %v510_v20  ;;  %v1954_v38 = vshll.u32 %v15313_v61, 16  ;;  %v15403_v35 = vrot.slane %v2087_v52, 7  ;;  %v13546_v52 = vpack.c.bf16 %v15418_v60, %v15418_v60 }
 0x13a   : > { %19519 = vst [vmem:[#allocation34_spill] sm:$0xff] %v15384_v33  ;;  %19520 = vst [vmem:[#allocation35_spill] sm:$0xff] %v15397_v41  ;;  %v2090_v61 = vshll.u32 %v13563_v44, 16  ;;  %v487_v16 = vsel %vm14982_vm8, 0, %v486_v46  ;;  %v13548_v44 = vpack.c.bf16 %v15397_v41, %v15397_v41  ;;  %v15421_v20 = vmax.f32 %v15200_v29, 0.0 }
 0x13b   : > { %v1956_v11 = vor.u32 %v1954_v38, %v15388_v25  ;;  %19522 = vst [vmem:[#allocation37_spill] sm:$0xff] %v15418_v60  ;;  %488 = vst [vmem:[#allocation3 + $0xa8] sm:$0x1] %v487_v16  ;;  %v15423_v43 = vrot.slane %v2070_v0, 7  ;;  %v2073_v28 = vshll.u32 %v13561_v22, 16  ;;  %v519_v29 = vsel %vm14895_vm5, 0, %v518_v57 }
 0x13c   : > { %5374 = vrot.lane.b32.xlu1 %v1931_v58, %s14748_s13  ;;  %2201 = vrot.lane.b32.xlu0 %v19518_v62, %s14749_s14  ;;  %v13545_v58 = vpack.c.bf16 %v15332_v51, %v15332_v51  ;;  %v460_v62 = vsel %vm14982_vm8, 0, %v459_v13  ;;  %19523 = vst [vmem:[#allocation38_spill] sm:$0xff] %v15421_v20  ;;  %520 = vst [vmem:[#allocation3 + $0x50] sm:$0x1] %v519_v29  ;;  %v1959_v38 = vshrl.u32 %v13548_v44, 16  ;;  %v1942_v0 = vshrl.u32 %v13546_v52, 16 }
 0x13d   : > { %461 = vst [vmem:[#allocation3 + $0x3c] sm:$0x1] %v460_v62  ;;  %v13564_v22 = vpack.c.bf16 %v15421_v20, %v15421_v20  ;;  %v15446_v46 = vmax.f32 %v15204_v15, 0.0  ;;  %v542_v13 = vld [vmem:[#allocation3 + $0xb0] sm:$0x1] }
 0x13e   : > { %v1934_v55 = vshrl.u32 %v13545_v58, 16  ;;  %v1937_v4 = vshll.u32 %v13545_v58, 16  ;;  %v15428_v58 = vor.u32 %v2090_v61, %v15403_v35  ;;  %v1961_v61 = vrot.slane %v1959_v38, 7  ;;  %v539_v29 = vld [vmem:[#allocation3 + $0xa4] sm:$0x1] }
 0x13f   : > { %19526 = vst [vmem:[#allocation41_spill] sm:$0xff] %v15446_v46  ;;  %v543_v16 = vsel %vm14895_vm5, 0, %v542_v13  ;;  %v1944_v57 = vrot.slane %v1942_v0, 7  ;;  %v2347_v45 = vld [vmem:[#allocation3 + $0x74] sm:$0x1] }
 0x140   : > { %2151 = vrot.lane.b32.xlu1 %v1914_v21, %s14749_s14  ;;  %2205 = vrot.lane.b32.xlu0 %v15384_v33, %s14749_s14  ;;  %v15409_v8 = vrot.slane %v1934_v55, 7  ;;  %19524 = vst [vmem:[#allocation39_spill] sm:$0xff] %v15428_v58  ;;  %v15443_v55 = vor.u32 %v2073_v28, %v15423_v43  ;;  %v1966_v28 = vrot.slane %v1961_v61, 4  ;;  %544 = vst [vmem:[#allocation3 + $0xb0] sm:$0x1] %v543_v16  ;;  %v1945_v16 = vshll.u32 %v13546_v52, 16 }
 0x141   : > { %v1949_v13 = vrot.slane %v1944_v57, 4  ;;  %v468_v52 = vld [vmem:[#allocation3 + $0x60] sm:$0x1]  ;;  %v2357_v51 = vld [vmem:[#allocation3 + $0x84] sm:$0xf] }
 0x142   : > { %v1939_v47 = vor.u32 %v1937_v4, %v15409_v8  ;;  %19525 = vst [vmem:[#allocation40_spill] sm:$0xff] %v15443_v55  ;;  %v515_v4 = vld [vmem:[#allocation3 + $0x44] sm:$0x1] }
 0x143   : > { %v516_v62 = vsel %vm14895_vm5, 0, %v515_v4  ;;  %v15470_v4 = vmax.f32 %v15232_v24, 0.0  ;;  %v15484_v24 = vmax.f32 %v15243_v31, 0.0 }
 0x144   : > { %2199 = vrot.lane.b32.xlu1 %v15401_v18, %s14749_s14  ;;  %5368 = vrot.lane.b32.xlu0 %v1914_v21, %s14748_s13  ;;  %v483_v21 = vld [vmem:[#allocation3 + $0x9c] sm:$0x1]  ;;  %517 = vst [vmem:[#allocation3 + $0x44] sm:$0x1] %v516_v62  ;;  %v2098_v62 = vshll.u32 %v13564_v22, 16 }
 0x145   : > { %v484_v19 = vsel %vm14982_vm8, 0, %v483_v21  ;;  %v1962_v21 = vshll.u32 %v13548_v44, 16  ;;  %v1957_v44 = vrot.slane %v15388_v25, 4  ;;  %19528 = vst [vmem:[#allocation43_spill] sm:$0xff] %v15470_v4  ;;  %v13551_v25 = vpack.c.bf16 %v15470_v4, %v15470_v4  ;;  %19531 = vst [vmem:[#allocation46_spill] sm:$0xff] %v15484_v24 }
 0x146   : > { %485 = vst [vmem:[#allocation3 + $0x9c] sm:$0x1] %v484_v19  ;;  %v13562_v19 = vpack.c.bf16 %v15446_v46, %v15446_v46  ;;  %v548_v46 = vld [vmem:[#allocation3 + $0xc8] sm:$0x1] }
 0x147   : > { %v1964_v0 = vor.u32 %v1962_v21, %v1961_v61  ;;  %v15481_v61 = vmax.f32 %v15257_v5, 0.0  ;;  %v1940_v21 = vrot.slane %v15409_v8, 4  ;;  %v15493_v5 = vmax.f32 %v15287_v7, 0.0 }
 0x148   : > { %2167 = vrot.lane.b32.xlu1 %v1956_v11, %s14749_s14  ;;  %5384 = vrot.lane.b32.xlu0 %v1956_v11, %s14748_s13  ;;  %v2095_v11 = vshrl.u32 %v13564_v22, 16  ;;  %v1985_v31 = vshrl.u32 %v13551_v25, 16 }
 0x149   : > { %19530 = vst [vmem:[#allocation45_spill] sm:$0xff] %v15481_v61  ;;  %19532 = vst [vmem:[#allocation47_spill] sm:$0xff] %v15493_v5  ;;  %v13567_v8 = vpack.c.bf16 %v15481_v61, %v15481_v61  ;;  %v549_v61 = vsel %vm14895_vm5, 0, %v548_v46 }
 0x14a   : > { %v15455_v15 = vrot.slane %v2095_v11, 7  ;;  %v2078_v11 = vshrl.u32 %v13562_v19, 16  ;;  %550 = vst [vmem:[#allocation3 + $0xc8] sm:$0x1] %v549_v61 }
 0x14c   : > { %2215 = vrot.lane.b32.xlu1 %v15428_v58, %s14749_s14  ;;  %2161 = vrot.lane.b32.xlu0 %v1939_v47, %s14749_s14  ;;  %19527 = vst [vmem:[#allocation42_spill] sm:$0xff] %v15455_v15  ;;  %v19403_v38 = vrot.slane %v15455_v15, 4 }
 0x150   : > { %5378 = vrot.lane.b32.xlu1 %v1939_v47, %s14748_s13  ;;  %2209 = vrot.lane.b32.xlu0 %v15443_v55, %s14749_s14  ;;  %v540_v47 = vsel %vm14895_vm5, 0, %v539_v29  ;;  %v15474_v29 = vrot.slane %v2078_v11, 7  ;;  %v2100_v11 = vor.u32 %v2098_v62, %v15455_v15 }
 0x151   : > { %541 = vst [vmem:[#allocation3 + $0xa4] sm:$0x1] %v540_v47  ;;  %v1947_v47 = vor.u32 %v1945_v16, %v1944_v57  ;;  %v13549_v57 = vpack.c.bf16 %v15484_v24, %v15484_v24  ;;  %v2076_v16 = vrot.slane %v15423_v43, 4 }
 0x152   : > { %19529 = vst [vmem:[#allocation44_spill] sm:$0xff] %v15474_v29  ;;  %v19404_v22 = vrot.slane %v15474_v29, 4 }
 0x154   : > { %2171 = vrot.lane.b32.xlu1 %v1966_v28, %s14749_s14  ;;  %5388 = vrot.lane.b32.xlu0 %v1966_v28, %s14748_s13  ;;  %v1965_v28 = vsel %vm15107_vm12, %v1957_v44, %v1964_v0  ;;  %v2081_v44 = vshll.u32 %v13562_v19, 16  ;;  %v2093_v0 = vrot.slane %v15403_v35, 4  ;;  %v1948_v35 = vsel %vm15107_vm12, %v1940_v21, %v1947_v47 }
 0x155   : > { %v13565_v19 = vpack.c.bf16 %v15493_v5, %v15493_v5  ;;  %v1968_v21 = vshrl.u32 %v13549_v57, 16  ;;  %v15519_v47 = vmax.f32 %v15247_v54, 0.0 }
 0x156   : > { %v15507_v7 = vsel %vm15107_vm12, %v2093_v0, %v2100_v11  ;;  %v2083_v62 = vor.u32 %v2081_v44, %v15474_v29  ;;  %v15521_v0 = vpop.permute.xlu1 %4309  ;;  %v15524_v11 = vmax.f32 %v15253_v23, 0.0 }
 0x157   : > { %19533 = vst [vmem:[#allocation48_spill] sm:$0xff] %v15507_v7  ;;  %19534 = vst [vmem:[#allocation49_spill] sm:$0xff] %v15519_v47  ;;  %v2104_v43 = vshrl.u32 %v13565_v19, 16 }
 0x158   : > { %2219 = vrot.lane.b32.xlu1 %v19403_v38, %s14749_s14  ;;  %2165 = vrot.lane.b32.xlu0 %v1949_v13, %s14749_s14  ;;  %19535 = vst [vmem:[#allocation50_spill] sm:$0xff] %v15521_v0  ;;  %19536 = vst [vmem:[#allocation51_spill] sm:$0xff] %v15524_v11  ;;  %v15528_v44 = vsel %vm15107_vm12, %v2076_v16, %v2083_v62  ;;  %v492_v38 = vld [vmem:[#allocation3 + $0xc0] sm:$0x1]  ;;  %v15540_v16 = vrot.slane %v1968_v21, 7  ;;  %v1971_v62 = vshll.u32 %v13549_v57, 16 }
 0x159   : > { %19537 = vst [vmem:[#allocation52_spill] sm:$0xff] %v15528_v44  ;;  %v493_v23 = vsel %vm14982_vm8, 0, %v492_v38  ;;  %v15551_v38 = vmax.f32 %v15291_v40, 0.0  ;;  %v524_v21 = vld [vmem:[#allocation3 + $0x68] sm:$0x1] }
 0x15a   : > { %494 = vst [vmem:[#allocation3 + $0xc0] sm:$0x1] %v493_v23  ;;  %v521_v23 = vld [vmem:[#allocation3 + $0x5c] sm:$0x1]  ;;  %v525_v40 = vsel %vm14895_vm5, 0, %v524_v21 }
 0x15b   : > { %19538 = vst [vmem:[#allocation53_spill] sm:$0xff] %v15551_v38  ;;  %526 = vst [vmem:[#allocation3 + $0x68] sm:$0x1] %v525_v40  ;;  %v13568_v21 = vpack.c.bf16 %v15551_v38, %v15551_v38  ;;  %v2305_v0 = vld [vmem:[#allocation3 + $0x2c] sm:$0x1] }
 0x15c   : > { %5382 = vrot.lane.b32.xlu1 %v1949_v13, %s14748_s13  ;;  %2169 = vrot.lane.b32.xlu0 %v1965_v28, %s14749_s14  ;;  %v469_v13 = vsel %vm14982_vm8, 0, %v468_v52  ;;  %v1988_v52 = vshll.u32 %v13551_v25, 16 }
 0x15d   : > { %470 = vst [vmem:[#allocation3 + $0x60] sm:$0x1] %v469_v13  ;;  %v2121_v13 = vshrl.u32 %v13567_v8, 16  ;;  %v2129_v2 = vshrl.u32 %v13568_v21, 16 }
 0x15f   : > { %v15530_v25 = vrot.slane %v2121_v13, 7  ;;  %v2107_v13 = vshll.u32 %v13565_v19, 16  ;;  %v522_v19 = vsel %vm14895_vm5, 0, %v521_v23  ;;  %v15610_v37 = vrot.slane %v2129_v2, 7 }
 0x160   : > { %5386 = vrot.lane.b32.xlu1 %v1965_v28, %s14748_s13  ;;  %2213 = vrot.lane.b32.xlu0 %v19404_v22, %s14749_s14  ;;  %v15513_v28 = vrot.slane %v1985_v31, 7  ;;  %v2124_v31 = vshll.u32 %v13567_v8, 16  ;;  %v465_v22 = vld [vmem:[#allocation3 + $0x54] sm:$0x1]  ;;  %v13552_v8 = vpack.c.bf16 %v15519_v47, %v15519_v47  ;;  %523 = vst [vmem:[#allocation3 + $0x5c] sm:$0x1] %v522_v19 }
 0x161   : > { %v466_v20 = vsel %vm14982_vm8, 0, %v465_v22  ;;  %v15555_v22 = vpop.permute.xlu1 %4742  ;;  %19546 = vst [vmem:[#allocation59_spill] sm:$0xff] %v15610_v37 }
 0x162   : > { %v1990_v54 = vor.u32 %v1988_v52, %v15513_v28  ;;  %467 = vst [vmem:[#allocation3 + $0x54] sm:$0x1] %v466_v20  ;;  %v15548_v52 = vrot.slane %v2104_v43, 7  ;;  %19539 = vst [vmem:[#allocation54_spill] sm:$0xff] %v15555_v22  ;;  %v15558_v57 = vor.u32 %v2124_v31, %v15530_v25  ;;  %v489_v20 = vld [vmem:[#allocation3 + $0xb4] sm:$0x1]  ;;  %v1973_v31 = vor.u32 %v1971_v62, %v15540_v16 }
 0x163   : > { %v490_v43 = vsel %vm14982_vm8, 0, %v489_v20  ;;  %v1993_v5 = vshrl.u32 %v13552_v8, 16  ;;  %v2294_v62 = vld [vmem:[#allocation3 + $0x18] sm:$0xf]  ;;  %v1996_v23 = vshll.u32 %v13552_v8, 16  ;;  %v1991_v60 = vrot.slane %v15513_v28, 4 }
 0x164   : > { %2163 = vrot.lane.b32.xlu1 %v1948_v35, %s14749_s14  ;;  %2217 = vrot.lane.b32.xlu0 %v15507_v7, %s14749_s14  ;;  %19540 = vst [vmem:[#allocation55_spill] sm:$0xff] %v15558_v57  ;;  %491 = vst [vmem:[#allocation3 + $0xb4] sm:$0x1] %v490_v43  ;;  %v15585_v46 = vor.u32 %v2107_v13, %v15548_v52  ;;  %v2350_v8 = vld [vmem:[#allocation3 + $0x78] sm:$0xf] }
 0x165   : > { %v15593_v19 = vrot.slane %v1993_v5, 7  ;;  %v2284_v13 = vld [vmem:[#allocation3 + $0xc] sm:$0xf] }
 0x166   : > { %19545 = vst [vmem:[#allocation58_spill] sm:$0xff] %v15585_v46 }
 0x167   : > { %v19547_v28 = vrot.slane %v15593_v19, 4 }
 0x168   : > { %2211 = vrot.lane.b32.xlu1 %v15528_v44, %s14749_s14  ;;  %5380 = vrot.lane.b32.xlu0 %v1948_v35, %s14748_s13  ;;  %v15546_v35 = vpack.c.bf16 %v15524_v11, %v15524_v11 }
 0x16a   : > { %v1976_v20 = vshrl.u32 %v15546_v35, 16 }
 0x16c   : > { %2179 = vrot.lane.b32.xlu1 %v1990_v54, %s14749_s14  ;;  %5396 = vrot.lane.b32.xlu0 %v1990_v54, %s14748_s13  ;;  %v15567_v54 = vmax.f32 %v15295_v34, 0.0  ;;  %v19542_v34 = vmov 0  ;;  %v1978_v38 = vrot.slane %v1976_v20, 7 }
 0x16d   : > { %v19543_v34 = vsel %vm15577_vm15, 4294967295, %v19542_v34 }
 0x16e   : > { %19541 = vst [vmem:[#allocation56_spill] sm:$0xff] %v15567_v54  ;;  %19544 = vst [vmem:[#allocation57_spill] sm:$0xff] %v19543_v34  ;;  %v15589_v43 = vpack.c.bf16 %v15567_v54, %v15567_v54  ;;  %v545_v54 = vld [vmem:[#allocation3 + $0xbc] sm:$0x1]  ;;  %v1983_v20 = vrot.slane %v1978_v38, 4 }
 0x170   : > { %2227 = vrot.lane.b32.xlu1 %v15558_v57, %s14749_s14  ;;  %2173 = vrot.lane.b32.xlu0 %v1973_v31, %s14749_s14  ;;  %v2112_v11 = vshrl.u32 %v15589_v43, 16 }
 0x172   : > { %v15591_v61 = vpop.permute.xlu0 %5360  ;;  %v2144_v40 = vpop.permute.xlu1 %2143 }
 0x173   : > { %v2295_v47 = vsel %vm15577_vm15, %v2144_v40, %v2294_v62  ;;  %v1998_v40 = vor.u32 %v1996_v23, %v15593_v19 }
 0x174   : > { %2296 = vst [vmem:[#allocation3 + $0x18] sm:$0xf] %v2295_v47  ;;  %5390 = vrot.lane.b32.xlu1 %v1973_v31, %s14748_s13  ;;  %2221 = vrot.lane.b32.xlu0 %v15585_v46, %s14749_s14  ;;  %v546_v47 = vsel %vm14895_vm5, 0, %v545_v54  ;;  %v1979_v54 = vshll.u32 %v15546_v35, 16  ;;  %vm15625_vm5 = vmand %vm19456_vm2, %vm442_vm7  ;;  %v2298_v35 = vld [vmem:[#allocation3 + $0x20] sm:$0x1] }
 0x175   : > { %547 = vst [vmem:[#allocation3 + $0xbc] sm:$0x1] %v546_v47  ;;  %v19549_v47 = vmov 0  ;;  %vm3427_vm7 = vcmask 130144   ;;  %vm19463_vm2 = vcmask 261344  }
 0x176   : > { %v2192_v5 = vpop.permute.xlu1 %2191  ;;  %v2138_v41 = vpop.permute.xlu0 %2137  ;;  %v19550_v47 = vsel %vm15625_vm5, 4294967295, %v19549_v47 }
 0x177   : > { %v2351_v31 = vsel %vm15577_vm15, %v2192_v5, %v2350_v8  ;;  %v2285_v62 = vsel %vm15577_vm15, %v2138_v41, %v2284_v13  ;;  %v2132_v8 = vshll.u32 %v13568_v21, 16  ;;  %v15617_v5 = vrot.slane %v2112_v11, 7  ;;  %19551 = vst [vmem:[#allocation61_spill] sm:$0xff] %v19550_v47  ;;  %v19600_v47 = vld [vmem:[#allocation39_spill] sm:$0xff] }
 0x178   : > { %2352 = vst [vmem:[#allocation3 + $0x78] sm:$0xf] %v2351_v31  ;;  %2286 = vst [vmem:[#allocation3 + $0xc] sm:$0xf] %v2285_v62  ;;  %2183 = vrot.lane.b32.xlu1 %v19547_v28, %s14749_s14  ;;  %2177 = vrot.lane.b32.xlu0 %v1983_v20, %s14749_s14  ;;  %v2115_v41 = vshll.u32 %v15589_v43, 16  ;;  %v19417_v13 = vrot.slane %v15610_v37, 4  ;;  %v1999_v11 = vsel %vm15107_vm12, %v1991_v60, %v1998_v40 }
 0x179   : > { %19548 = vst [vmem:[#allocation60_spill] sm:$0xff] %v15617_v5  ;;  %v19420_v62 = vrot.slane %v15617_v5, 4  ;;  %v2127_v28 = vrot.slane %v15530_v25, 4  ;;  %v2354_v40 = vld [vmem:[#allocation3 + $0x80] sm:$0x1] }
 0x17a   : > { %v15620_v23 = vpop.permute.xlu1 %5354  ;;  %v2186_v2 = vpop.permute.xlu0 %2185  ;;  %v2291_v25 = vld [vmem:[#allocation3 + $0x14] sm:$0x1] }
 0x17b   : > { %v2344_v31 = vsel %vm15577_vm15, %v2186_v2, %v2343_v6  ;;  %v1974_v6 = vrot.slane %v15540_v16, 4  ;;  %v2110_v2 = vrot.slane %v15548_v52, 4 }
 0x17c   : > { %2345 = vst [vmem:[#allocation3 + $0x6c] sm:$0xf] %v2344_v31  ;;  %2231 = vrot.lane.b32.xlu1 %v19417_v13, %s14749_s14  ;;  %2181 = vrot.lane.b32.xlu0 %v1999_v11, %s14749_s14  ;;  %v2134_v31 = vor.u32 %v2132_v8, %v15610_v37  ;;  %v1981_v8 = vor.u32 %v1979_v54, %v1978_v38 }
 0x17e   : > { %v2148_v21 = vpop.permute.xlu1 %2147  ;;  %v15637_v43 = vpop.permute.xlu0 %5364  ;;  %v15655_v52 = vsel %vm15107_vm12, %v2127_v28, %v2134_v31  ;;  %v2117_v28 = vor.u32 %v2115_v41, %v15617_v5 }
 0x17f   : > { %v2299_v60 = vsel %vm15625_vm5, %v2148_v21, %v2298_v35  ;;  %19552 = vst [vmem:[#allocation62_spill] sm:$0xff] %v15655_v52 }
 0x180   : > { %2300 = vst [vmem:[#allocation3 + $0x20] sm:$0x1] %v2299_v60  ;;  %5394 = vrot.lane.b32.xlu1 %v1983_v20, %s14748_s13  ;;  %2225 = vrot.lane.b32.xlu0 %v19420_v62, %s14749_s14 }
 0x182   : > { %v2196_v13 = vpop.permute.xlu1 %2195  ;;  %v2146_v56 = vpop.permute.xlu0 %2145 }
 0x183   : > { %v2355_v16 = vsel %vm15625_vm5, %v2196_v13, %v2354_v40  ;;  %2297 = vst.msk [vmem:[#allocation3 + $0x1c] sm:$0xf] %vm2282_vm14, %v2146_v56  ;;  %v1982_v56 = vsel %vm15107_vm12, %v1974_v6, %v1981_v8 }
 0x184   : > { %2356 = vst [vmem:[#allocation3 + $0x80] sm:$0x1] %v2355_v16  ;;  %5398 = vrot.lane.b32.xlu1 %v1999_v11, %s14748_s13  ;;  %2229 = vrot.lane.b32.xlu0 %v15655_v52, %s14749_s14 }
 0x186   : > { %v2142_v20 = vpop.permute.xlu1 %2141  ;;  %v2190_v35 = vpop.permute.xlu0 %2189 }
 0x187   : > { %v2292_v21 = vsel %vm15625_vm5, %v2142_v20, %v2291_v25  ;;  %v2348_v13 = vsel %vm15625_vm5, %v2190_v35, %v2347_v45  ;;  %v15674_v45 = vsel %vm15107_vm12, %v2110_v2, %v2117_v28  ;;  %v2308_v2 = vld [vmem:[#allocation3 + $0x30] sm:$0xf]  ;;  %v13963_v16 = vld [vmem:[#allocation3 + $0x20] ss:$0 sps:$4 sm:$0x11]  }
 0x188   : > { %2293 = vst [vmem:[#allocation3 + $0x14] sm:$0x1] %v2292_v21  ;;  %2349 = vst [vmem:[#allocation3 + $0x74] sm:$0x1] %v2348_v13  ;;  %2175 = vrot.lane.b32.xlu1 %v1982_v56, %s14749_s14  ;;  %5392 = vrot.lane.b32.xlu0 %v1982_v56, %s14748_s13 }
 0x189   : > { %19553 = vst [vmem:[#allocation63_spill] sm:$0xff] %v15674_v45  ;;  %v13965_v35 = vld [vmem:[#allocation3 + $0x20] ss:$0 sps:$4 sm:$0x11]  }
 0x18a   : > { %v15669_v38 = vpop.permute.xlu1 %5358  ;;  %v2194_v54 = vpop.permute.xlu0 %2193  ;;  %v13955_v11 = vld [vmem:[#allocation3 + $0x18] sm:$0xff]   ;;  %v15687_v13 = vld [vmem:[#allocation3 + $0x20] ss:$0 sps:$4 sm:$0x11]   ;;  %v3161_v4 = vrot.slane %v13965_v35, 1 }
 0x18b   : > { %2353 = vst.msk [vmem:[#allocation3 + $0x7c] sm:$0xf] %vm2282_vm14, %v2194_v54  ;;  %v13956_v60 = vld [vmem:[#allocation3 + $0x18] sm:$0xff]   ;;  %v15690_v56 = vld [vmem:[#allocation3 + $0x80] ss:$0 sps:$4 sm:$0x11]  }
 0x18c   : > { %2223 = vrot.lane.b32.xlu1 %v15674_v45, %s14749_s14  ;;  %4279 = vrot.lane.b32.xlu0 %v13955_v11, %s19459_s25  ;;  %v13962_v20 = vld [vmem:[#allocation3 + $0x18] sm:$0xfe]   ;;  %v13969_v10 = vld [vmem:[#allocation3 + $0x80] ss:$0 sps:$4 sm:$0x11]   ;;  %s19479_s14 = smov 64  }
 0x18d   : > { %v13964_v21 = vld [vmem:[#allocation3 + $0x18] sm:$0xfe]   ;;  %v4056_v62 = vrot.slane %v13962_v20, 1  ;;  %v3185_v59 = vrot.slane %v13969_v10, 1 }
 0x18e   : > { %v15679_v41 = vpop.permute.xlu1 %5362  ;;  %v2140_v6 = vpop.permute.xlu0 %2139  ;;  %v3160_v27 = vrot.slane %v13964_v21, 1  ;;  %v15703_v20 = vld [vmem:[#allocation3 + $0x18] sm:$0xfe]   ;;  %v15705_v21 = vld [vmem:[#allocation3 + $0x80] ss:$0 sps:$4 sm:$0x11]  }
 0x18f   : > { %2288 = vst.msk [vmem:[#allocation3 + $0x10] sm:$0xf] %vm2282_vm14, %v2140_v6  ;;  %v13973_v35 = vld [vmem:[#allocation3 + $0x14] ss:$0 sps:$4 sm:$0x11]   ;;  %v15745_v57 = vld [vmem:[#allocation3 + $0x18] sm:$0xff]  }
 0x190   : > { %3381 = vrot.lane.b32.xlu1 %v13956_v60, %s14750_s15  ;;  %v2364_v60 = vld [vmem:[#allocation3 + $0x90] sm:$0xf]  ;;  %v15713_v39 = vld [vmem:[#allocation3 + $0x74] ss:$0 sps:$4 sm:$0x11]   ;;  %v3162_v42 = vsel %vm19467_vm6, %v3160_v27, %v3161_v4 }
 0x191   : > { %v3182_v27 = vrot.slane %v15713_v39, 1  ;;  %v13987_v52 = vld [vmem:[#allocation3 + $0x20] ss:$0 sps:$4 sm:$0x11]  }
 0x192   : > { %v2188_v40 = vpop.permute.xlu1 %2187  ;;  %v15683_v31 = vpop.permute.xlu0 %5356  ;;  %v13957_v25 = vld [vmem:[#allocation3 + $0x78] sm:$0xff]  }
 0x193   : > { %2346 = vst.msk [vmem:[#allocation3 + $0x70] sm:$0xf] %vm2282_vm14, %v2188_v40  ;;  %v13958_v8 = vld [vmem:[#allocation3 + $0x78] sm:$0xff]   ;;  %4295 = vrot.lane.b32.xlu0 %v13957_v25, %s19459_s25  ;;  %v2301_v40 = vld [vmem:[#allocation3 + $0x24] sm:$0xf]  ;;  %v4057_v25 = vrot.slane %v13963_v16, 1 }
 0x194   : > { %3397 = vrot.lane.b32.xlu1 %v13958_v8, %s14750_s15  ;;  %v13966_v49 = vld [vmem:[#allocation3 + $0x78] sm:$0xfe]   ;;  %v4081_v8 = vrot.slane %v15690_v56, 1 }
 0x195   : > { %v13968_v56 = vld [vmem:[#allocation3 + $0x78] sm:$0xfe]  }
 0x196   : > { %v2156_v28 = vpop.permute.xlu1 %2155  ;;  %v15692_v54 = vpop.permute.xlu0 %5372  ;;  %v13959_v11 = vld [vmem:[#allocation3 + $0xc] sm:$0xff]  }
 0x197   : > { %v2309_v6 = vsel %vm15577_vm15, %v2156_v28, %v2308_v2  ;;  %3379 = vrot.lane.b32.xlu0 %v13959_v11, %s14750_s15  ;;  %v13972_v11 = vld [vmem:[#allocation3 + $0xc] sm:$0xfe]  }
 0x198   : > { %2310 = vst [vmem:[#allocation3 + $0x30] sm:$0xf] %v2309_v6  ;;  %v15709_v6 = vld [vmem:[#allocation3 + $0x78] sm:$0xfe]   ;;  %v3157_v37 = vrot.slane %v13972_v11, 1 }
 0x199   : > { %v13981_v11 = vld [vmem:[#allocation3 + $0x74] ss:$0 sps:$4 sm:$0x11]  }
 0x19a   : > { %v2204_v24 = vpop.permute.xlu1 %2203  ;;  %v2150_v14 = vpop.permute.xlu0 %2149  ;;  %v13960_v3 = vld [vmem:[#allocation3 + $0x6c] sm:$0xff]  }
 0x19b   : > { %v2365_v2 = vsel %vm15577_vm15, %v2204_v24, %v2364_v60  ;;  %v2302_v28 = vsel %vm15577_vm15, %v2150_v14, %v2301_v40  ;;  %v13961_v16 = vld [vmem:[#allocation3 + $0x6c] sm:$0xff]   ;;  %4293 = vrot.lane.b32.xlu1 %v13960_v3, %s19459_s25  ;;  %v2312_v14 = vld [vmem:[#allocation3 + $0x38] sm:$0x1]  ;;  %v4080_v40 = vrot.slane %v13966_v49, 1  ;;  %v3184_v49 = vrot.slane %v13968_v56, 1 }
 0x19c   : > { %2366 = vst [vmem:[#allocation3 + $0x90] sm:$0xf] %v2365_v2  ;;  %2303 = vst [vmem:[#allocation3 + $0x24] sm:$0xf] %v2302_v28  ;;  %3395 = vrot.lane.b32.xlu0 %v13961_v16, %s14750_s15  ;;  %v4058_v2 = vsel %vm19467_vm6, %v4056_v62, %v4057_v25  ;;  %v15718_v28 = vld [vmem:[#allocation3 + $0xc] sm:$0xfe]  }
 0x19d   : > { %v15720_v3 = vld [vmem:[#allocation3 + $0x14] ss:$0 sps:$4 sm:$0x11]   ;;  %v15722_v16 = vld [vmem:[#allocation3 + $0x18] sm:$0xff]   ;;  %v4977_v62 = vrot.slane %v15709_v6, 1  ;;  %v4978_v25 = vrot.slane %v15705_v21, 1  ;;  %v3186_v21 = vsel %vm19467_vm6, %v3184_v49, %v3185_v59 }
 0x19e   : > { %v15711_v24 = vpop.permute.xlu1 %5366  ;;  %v2198_v60 = vpop.permute.xlu0 %2197  ;;  %v5509_v6 = vld [vmem:[#allocation3 + $0x20] sm:$0x1]  ;;  %v15742_v39 = vld [vmem:[#allocation3 + $0x6c] sm:$0xfe]  }
 0x19f   : > { %v2358_v36 = vsel %vm15577_vm15, %v2198_v60, %v2357_v51  ;;  %4103 = vrot.lane.b32.xlu1 %v4058_v2, %s14751_s16  ;;  %v4953_v51 = vrot.slane %v15703_v20, 1  ;;  %v3158_v60 = vrot.slane %v13973_v35, 1  ;;  %v13976_v2 = vld [vmem:[#allocation3 + $0x6c] sm:$0xfe]   ;;  %v3633_v35 = vshrl.u32 %v15722_v16, 16 }
 0x1a0   : > { %2359 = vst [vmem:[#allocation3 + $0x84] sm:$0xf] %v2358_v36  ;;  %3206 = vrot.lane.b32.xlu0 %v3162_v42, %s19483_s22  ;;  %v2368_v36 = vld [vmem:[#allocation3 + $0x98] sm:$0x1]  ;;  %v4082_v42 = vsel %vm19467_vm6, %v4080_v40, %v4081_v8  ;;  %v13980_v20 = vld [vmem:[#allocation3 + $0x6c] sm:$0xfe]  }
 0x1a1   : > { %v3635_v8 = vshll.u32 %v15722_v16, 16  ;;  %v3181_v4 = vrot.slane %v13976_v2, 1  ;;  %v3159_v49 = vsel %vm19467_vm6, %v3157_v37, %v3158_v60  ;;  %v19554_v16 = vrot.slane %v15687_v13, 1  ;;  %v15786_v15 = vld [vmem:[#allocation3 + $0x6c] sm:$0xff]  }
 0x1a2   : > { %v2160_v50 = vpop.permute.xlu1 %2159  ;;  %v15730_v22 = vpop.permute.xlu0 %5376  ;;  %v4974_v56 = vrot.slane %v13980_v20, 1  ;;  %v4077_v37 = vrot.slane %v15742_v39, 1  ;;  %v13989_v20 = vld [vmem:[#allocation3 + $0x80] ss:$0 sps:$4 sm:$0x11]   ;;  %v15771_v39 = vld [vmem:[#allocation3 + $0x78] sm:$0xff]  }
 0x1a3   : > { %v2313_v10 = vsel %vm15625_vm5, %v2160_v50, %v2312_v14  ;;  %4119 = vrot.lane.b32.xlu1 %v4082_v42, %s14751_s16  ;;  %v13985_v50 = vld [vmem:[#allocation3 + $0x20] ss:$0 sps:$4 sm:$0x11]   ;;  %v15752_v42 = vld [vmem:[#allocation3 + $0x74] ss:$0 sps:$4 sm:$0x11]   ;;  %v4955_v2 = vsel %vm19467_vm6, %v4953_v51, %v19554_v16 }
 0x1a4   : > { %2314 = vst [vmem:[#allocation3 + $0x38] sm:$0x1] %v2313_v10  ;;  %3222 = vrot.lane.b32.xlu0 %v3186_v21, %s19483_s22  ;;  %v15754_v21 = vld [vmem:[#allocation3 + $0x78] sm:$0xff]   ;;  %v3637_v60 = vrot.slane %v3635_v8, 1  ;;  %v2361_v51 = vld [vmem:[#allocation3 + $0x8c] sm:$0x1] }
 0x1a5   : > { %v15773_v8 = vld [vmem:[#allocation3 + $0xc] sm:$0xff]   ;;  %v5502_v16 = vld [vmem:[#allocation3 + $0x14] sm:$0x1] }
 0x1a6   : > { %v2208_v14 = vpop.permute.xlu1 %2207  ;;  %v2154_v40 = vpop.permute.xlu0 %2153 }
 0x1a7   : > { %v2369_v10 = vsel %vm15625_vm5, %v2208_v14, %v2368_v36  ;;  %v2306_v59 = vsel %vm15625_vm5, %v2154_v40, %v2305_v0  ;;  %3204 = vrot.lane.b32.xlu1 %v3159_v49, %s19483_s22  ;;  %v4975_v0 = vrot.slane %v13981_v11, 1  ;;  %v3640_v36 = vshll.u32 %v13985_v50, 16  ;;  %v13991_v50 = vld [vmem:[#allocation3 + $0x80] ss:$0 sps:$4 sm:$0x11]  }
 0x1a8   : > { %2370 = vst [vmem:[#allocation3 + $0x98] sm:$0x1] %v2369_v10  ;;  %2307 = vst [vmem:[#allocation3 + $0x2c] sm:$0x1] %v2306_v59  ;;  %5001 = vrot.lane.b32.xlu0 %v4955_v2, %s14752_s30  ;;  %v5510_v14 = vsel %vm15625_vm5, %v15637_v43, %v5509_v6  ;;  %v2747_v10 = vshll.u32 %v15745_v57, 16  ;;  %v3183_v59 = vsel %vm19467_vm6, %v3181_v4, %v3182_v27  ;;  %v3731_v11 = vshll.u32 %v15754_v21, 16 }
 0x1a9   : > { %v4979_v43 = vsel %vm19467_vm6, %v4977_v62, %v4978_v25  ;;  %v2752_v6 = vshll.u32 %v13987_v52, 16  ;;  %v15777_v49 = vld [vmem:[#allocation3 + $0x20] ss:$0 sps:$4 sm:$0x11]   ;;  %v4976_v2 = vsel %vm19467_vm6, %v4974_v56, %v4975_v0  ;;  %v4078_v27 = vrot.slane %v15752_v42, 1 }
 0x1aa   : > { %v15765_v40 = vpop.permute.xlu1 %5370  ;;  %v2158_v13 = vpop.permute.xlu0 %2157  ;;  %v3638_v4 = vor.u32 %v3637_v60, %v3633_v35  ;;  %5511 = vst [vmem:[#allocation3 + $0x20] sm:$0x1] %v5510_v14  ;;  %v3642_v62 = vrot.slane %v3640_v36, 1  ;;  %v2749_v25 = vrot.slane %v2747_v10, 1  ;;  %v3729_v52 = vshrl.u32 %v15754_v21, 16  ;;  %v13994_v10 = vld [vmem:[#allocation3 + $0x18] sm:$0xff]  }
 0x1ab   : > { %2311 = vst.msk [vmem:[#allocation3 + $0x34] sm:$0xf] %vm2282_vm14, %v2158_v13  ;;  %3220 = vrot.lane.b32.xlu1 %v3183_v59, %s19483_s22  ;;  %v2745_v13 = vshrl.u32 %v15745_v57, 16  ;;  %v3736_v59 = vshll.u32 %v13989_v20, 16  ;;  %v3733_v56 = vrot.slane %v3731_v11, 1  ;;  %v2843_v42 = vshll.u32 %v15771_v39, 16 }
 0x1ac   : > { %5017 = vrot.lane.b32.xlu0 %v4979_v43, %s14752_s30  ;;  %v2735_v35 = vshll.u32 %v15773_v8, 16  ;;  %v19555_v57 = vrot.slane %v15720_v3, 1  ;;  %v19556_v0 = vrot.slane %v15718_v28, 1  ;;  %v2754_v21 = vrot.slane %v2752_v6, 1 }
 0x1ad   : > { %v2841_v36 = vshrl.u32 %v15771_v39, 16  ;;  %v2848_v14 = vshll.u32 %v13991_v50, 16  ;;  %v5503_v20 = vsel %vm15625_vm5, %v15669_v38, %v5502_v16  ;;  %v2750_v28 = vor.u32 %v2749_v25, %v2745_v13  ;;  %v13998_v13 = vld [vmem:[#allocation3 + $0x78] sm:$0xff]   ;;  %v15810_v25 = vld [vmem:[#allocation3 + $0x14] ss:$0 sps:$4 sm:$0x11]  }
 0x1ae   : > { %v15783_v45 = vpop.permute.xlu1 %5374  ;;  %v2202_v5 = vpop.permute.xlu0 %2201  ;;  %v4055_v60 = vsel %vm19467_vm6, %v19556_v0, %v19555_v57  ;;  %v2831_v57 = vshll.u32 %v15786_v15, 16  ;;  %v3643_v39 = vsel %vm19468_vm9, %v3638_v4, %v3642_v62  ;;  %v3734_v50 = vor.u32 %v3733_v56, %v3729_v52  ;;  %v2322_v56 = vld [vmem:[#allocation3 + $0x48] sm:$0xf] }
 0x1af   : > { %v2362_v43 = vsel %vm15625_vm5, %v2202_v5, %v2361_v51  ;;  %5015 = vrot.lane.b32.xlu1 %v4976_v2, %s14752_s30  ;;  %v13993_v5 = vld [vmem:[#allocation3 + $0x14] ss:$0 sps:$4 sm:$0x11]   ;;  %v2845_v6 = vrot.slane %v2843_v42, 1  ;;  %v2737_v2 = vrot.slane %v2735_v35, 1  ;;  %v4079_v0 = vsel %vm19467_vm6, %v4077_v37, %v4078_v27 }
 0x1b0   : > { %2363 = vst [vmem:[#allocation3 + $0x8c] sm:$0x1] %v2362_v43  ;;  %4101 = vrot.lane.b32.xlu0 %v4055_v60, %s14751_s16  ;;  %v13997_v51 = vld [vmem:[#allocation3 + $0x74] ss:$0 sps:$4 sm:$0x11]   ;;  %v3738_v43 = vrot.slane %v3736_v59, 1  ;;  %v2755_v37 = vsel %vm19468_vm9, %v2750_v28, %v2754_v21 }
 0x1b1   : > { %v2733_v38 = vshrl.u32 %v15773_v8, 16  ;;  %v4523_v16 = vshll.u32 %v13994_v10, 16  ;;  %v2740_v59 = vshll.u32 %v13993_v5, 16  ;;  %v4528_v60 = vshll.u32 %v15777_v49, 16  ;;  %5504 = vst [vmem:[#allocation3 + $0x14] sm:$0x1] %v5503_v20 }
 0x1b2   : > { %v2152_v3 = vpop.permute.xlu1 %2151  ;;  %v2206_v11 = vpop.permute.xlu0 %2205  ;;  %v2850_v27 = vrot.slane %v2848_v14, 1  ;;  %v2833_v52 = vrot.slane %v2831_v57, 1  ;;  %v3739_v8 = vsel %vm19468_vm9, %v3734_v50, %v3738_v43  ;;  %v2846_v42 = vor.u32 %v2845_v6, %v2841_v36  ;;  %v2378_v43 = vld [vmem:[#allocation3 + $0xa8] sm:$0xf]  ;;  %v2315_v50 = vld [vmem:[#allocation3 + $0x3c] sm:$0xf] }
 0x1b3   : > { %2304 = vst.msk [vmem:[#allocation3 + $0x28] sm:$0xf] %vm2282_vm14, %v2152_v3  ;;  %2367 = vst.msk [vmem:[#allocation3 + $0x94] sm:$0xf] %vm2282_vm14, %v2206_v11  ;;  %3814 = vrot.lane.b32.xlu1 %v3643_v39, %s19477_s12  ;;  %v2738_v35 = vor.u32 %v2737_v2, %v2733_v38  ;;  %v2836_v3 = vshll.u32 %v13997_v51, 16  ;;  %v4521_v5 = vshrl.u32 %v13994_v10, 16 }
 0x1b4   : > { %4117 = vrot.lane.b32.xlu0 %v4079_v0, %s14751_s16  ;;  %v4525_v49 = vrot.slane %v4523_v16, 1  ;;  %v2829_v20 = vshrl.u32 %v15786_v15, 16  ;;  %v4619_v11 = vshll.u32 %v13998_v13, 16  ;;  %v14001_v39 = vld [vmem:[#allocation3 + $0xc] sm:$0xff]   ;;  %v2742_v21 = vrot.slane %v2740_v59, 1 }
 0x1b5   : > { %v4530_v14 = vrot.slane %v4528_v60, 1  ;;  %v13999_v6 = vld [vmem:[#allocation3 + $0x80] ss:$0 sps:$4 sm:$0x11]   ;;  %v14004_v51 = vld [vmem:[#allocation3 + $0x6c] sm:$0xff]   ;;  %v2838_v15 = vrot.slane %v2836_v3, 1  ;;  %v2851_v38 = vsel %vm19468_vm9, %v2846_v42, %v2850_v27 }
 0x1b6   : > { %v2200_v4 = vpop.permute.xlu1 %2199  ;;  %v15814_v62 = vpop.permute.xlu0 %5368  ;;  %v2834_v36 = vor.u32 %v2833_v52, %v2829_v20  ;;  %v2743_v2 = vsel %vm19468_vm9, %v2738_v35, %v2742_v21  ;;  %v14006_v0 = vld [vmem:[#allocation3 + $0x6c] sm:$0xff]   ;;  %v4526_v16 = vor.u32 %v4525_v49, %v4521_v5  ;;  %v4621_v59 = vrot.slane %v4619_v11, 1  ;;  %v14005_v21 = vld [vmem:[#allocation3 + $0x74] ss:$0 sps:$4 sm:$0x11]  }
 0x1b7   : > { %2360 = vst.msk [vmem:[#allocation3 + $0x88] sm:$0xf] %vm2282_vm14, %v2200_v4  ;;  %3830 = vrot.lane.b32.xlu1 %v3739_v8, %s19477_s12  ;;  %v3623_v60 = vshll.u32 %v14001_v39, 16  ;;  %v2371_v8 = vld [vmem:[#allocation3 + $0x9c] sm:$0xf]  ;;  %v4624_v20 = vshll.u32 %v13999_v6, 16 }
 0x1b8   : > { %2916 = vrot.lane.b32.xlu0 %v2755_v37, %s14745_s24  ;;  %v2839_v52 = vsel %vm19468_vm9, %v2834_v36, %v2838_v15  ;;  %v3719_v42 = vshll.u32 %v14004_v51, 16  ;;  %v4607_v3 = vshll.u32 %v14006_v0, 16  ;;  %v4531_v5 = vsel %vm19468_vm9, %v4526_v16, %v4530_v14  ;;  %v15924_v29 = vld [vmem:[#allocation3 + $0x30] sm:$0xff]  }
 0x1b9   : > { %v3625_v11 = vrot.slane %v3623_v60, 1  ;;  %v3621_v36 = vshrl.u32 %v14001_v39, 16  ;;  %v4605_v39 = vshrl.u32 %v14006_v0, 16 }
 0x1ba   : > { %v2168_v28 = vpop.permute.xlu1 %2167  ;;  %v15822_v57 = vpop.permute.xlu0 %5384  ;;  %v4609_v14 = vrot.slane %v4607_v3, 1  ;;  %v2319_v3 = vld [vmem:[#allocation3 + $0x44] sm:$0x1]  ;;  %v15918_v46 = vld [vmem:[#allocation3 + $0x90] sm:$0xfe]  }
 0x1bb   : > { %v2323_v10 = vsel %vm15577_vm15, %v2168_v28, %v2322_v56  ;;  %2914 = vrot.lane.b32.xlu1 %v2743_v2, %s14745_s24  ;;  %v4617_v56 = vshrl.u32 %v13998_v13, 16  ;;  %v14007_v28 = vld [vmem:[#allocation3 + $0x74] ss:$0 sps:$4 sm:$0x11]   ;;  %v3626_v16 = vor.u32 %v3625_v11, %v3621_v36 }
 0x1bc   : > { %2324 = vst [vmem:[#allocation3 + $0x48] sm:$0xf] %v2323_v10  ;;  %2932 = vrot.lane.b32.xlu0 %v2851_v38, %s14745_s24  ;;  %v14000_v13 = vld [vmem:[#allocation3 + $0x30] sm:$0xff]   ;;  %v3628_v10 = vshll.u32 %v15810_v25, 16  ;;  %v4612_v60 = vshll.u32 %v14007_v28, 16 }
 0x1bd   : > { %v4622_v49 = vor.u32 %v4621_v59, %v4617_v56  ;;  %v2326_v38 = vld [vmem:[#allocation3 + $0x50] sm:$0x1]  ;;  %v3721_v59 = vrot.slane %v3719_v42, 1  ;;  %v3717_v56 = vshrl.u32 %v14004_v51, 16  ;;  %v14013_v36 = vld [vmem:[#allocation3 + $0x30] sm:$0xfe]  }
 0x1be   : > { %v2216_v4 = vpop.permute.xlu1 %2215  ;;  %v2162_v37 = vpop.permute.xlu0 %2161  ;;  %v3630_v25 = vrot.slane %v3628_v10, 1  ;;  %v2382_v42 = vld [vmem:[#allocation3 + $0xb0] sm:$0x1]  ;;  %v14009_v10 = vld [vmem:[#allocation3 + $0x24] sm:$0xff]  }
 0x1bf   : > { %v2379_v35 = vsel %vm15577_vm15, %v2216_v4, %v2378_v43  ;;  %v2316_v27 = vsel %vm15577_vm15, %v2162_v37, %v2315_v50  ;;  %2930 = vrot.lane.b32.xlu1 %v2839_v52, %s14745_s24  ;;  %v4626_v50 = vrot.slane %v4624_v20, 1  ;;  %v14003_v52 = vld [vmem:[#allocation3 + $0x90] sm:$0xff]   ;;  %v3722_v0 = vor.u32 %v3721_v59, %v3717_v56 }
 0x1c0   : > { %2380 = vst [vmem:[#allocation3 + $0xa8] sm:$0xf] %v2379_v35  ;;  %2317 = vst [vmem:[#allocation3 + $0x3c] sm:$0xf] %v2316_v27  ;;  %4712 = vrot.lane.b32.xlu0 %v4531_v5, %s14747_s29  ;;  %v4610_v35 = vor.u32 %v4609_v14, %v4605_v39  ;;  %v3631_v27 = vsel %vm19468_vm9, %v3626_v16, %v3630_v25  ;;  %v4614_v5 = vrot.slane %v4612_v60, 1  ;;  %v15863_v16 = vld [vmem:[#allocation3 + $0x30] sm:$0xff]  }
 0x1c1   : > { %v4627_v15 = vsel %vm19468_vm9, %v4622_v49, %v4626_v50  ;;  %v14008_v59 = vld [vmem:[#allocation3 + $0x30] sm:$0xff]   ;;  %v2375_v39 = vld [vmem:[#allocation3 + $0xa4] sm:$0x1] }
 0x1c2   : > { %v15838_v43 = vpop.permute.xlu1 %5378  ;;  %v2210_v6 = vpop.permute.xlu0 %2209  ;;  %v14011_v60 = vld [vmem:[#allocation3 + $0x84] sm:$0xff]   ;;  %v14010_v56 = vld [vmem:[#allocation3 + $0x90] sm:$0xff]  }
 0x1c3   : > { %v2372_v2 = vsel %vm15577_vm15, %v2210_v6, %v2371_v8  ;;  %3385 = vrot.lane.b32.xlu1 %v14000_v13, %s14750_s15  ;;  %v3724_v8 = vshll.u32 %v14005_v21, 16  ;;  %v4615_v13 = vsel %vm19468_vm9, %v4610_v35, %v4614_v5  ;;  %v14014_v6 = vld [vmem:[#allocation3 + $0x38] ss:$0 sps:$4 sm:$0x11]  }
 0x1c4   : > { %2373 = vst [vmem:[#allocation3 + $0x9c] sm:$0xf] %v2372_v2  ;;  %4728 = vrot.lane.b32.xlu0 %v4627_v15, %s14747_s29  ;;  %v14016_v2 = vld [vmem:[#allocation3 + $0x90] sm:$0xfe]   ;;  %v4063_v25 = vrot.slane %v14014_v6, 1 }
 0x1c5   : > { %v3726_v28 = vrot.slane %v3724_v8, 1  ;;  %v15870_v8 = vld [vmem:[#allocation3 + $0x90] sm:$0xff]  }
 0x1c6   : > { %v2172_v4 = vpop.permute.xlu1 %2171  ;;  %v15846_v37 = vpop.permute.xlu0 %5388 }
 0x1c7   : > { %v2327_v20 = vsel %vm15625_vm5, %v2172_v4, %v2326_v38  ;;  %3401 = vrot.lane.b32.xlu1 %v14003_v52, %s14750_s15  ;;  %v3727_v50 = vsel %vm19468_vm9, %v3722_v0, %v3726_v28  ;;  %v14017_v38 = vld [vmem:[#allocation3 + $0x98] ss:$0 sps:$4 sm:$0x11]   ;;  %v4062_v4 = vrot.slane %v14013_v36, 1  ;;  %v15867_v52 = vld [vmem:[#allocation3 + $0x30] sm:$0xfe]  }
 0x1c8   : > { %2328 = vst [vmem:[#allocation3 + $0x50] sm:$0x1] %v2327_v20  ;;  %3812 = vrot.lane.b32.xlu0 %v3631_v27, %s19477_s12  ;;  %v4086_v27 = vrot.slane %v14016_v2, 1  ;;  %v3659_v0 = vshll.u32 %v15863_v16, 16  ;;  %v14020_v28 = vld [vmem:[#allocation3 + $0x24] sm:$0xfe]  }
 0x1c9   : > { %v15883_v36 = vld [vmem:[#allocation3 + $0x8c] ss:$0 sps:$4 sm:$0x11]   ;;  %v14024_v2 = vld [vmem:[#allocation3 + $0x90] sm:$0xfe]  }
 0x1ca   : > { %v2220_v49 = vpop.permute.xlu1 %2219  ;;  %v2166_v11 = vpop.permute.xlu0 %2165 }
 0x1cb   : > { %v2383_v51 = vsel %vm15625_vm5, %v2220_v49, %v2382_v42  ;;  %v2320_v21 = vsel %vm15625_vm5, %v2166_v11, %v2319_v3  ;;  %4726 = vrot.lane.b32.xlu1 %v4615_v13, %s14747_s29  ;;  %v4087_v42 = vrot.slane %v14017_v38, 1  ;;  %v14019_v49 = vld [vmem:[#allocation3 + $0x38] ss:$0 sps:$4 sm:$0x11]   ;;  %v15881_v13 = vld [vmem:[#allocation3 + $0x84] sm:$0xfe]  }
 0x1cc   : > { %2384 = vst [vmem:[#allocation3 + $0xb0] sm:$0x1] %v2383_v51  ;;  %2321 = vst [vmem:[#allocation3 + $0x44] sm:$0x1] %v2320_v21  ;;  %3828 = vrot.lane.b32.xlu0 %v3727_v50, %s19477_s12  ;;  %v14012_v51 = vld [vmem:[#allocation3 + $0x24] sm:$0xff]   ;;  %v3166_v21 = vrot.slane %v15867_v52, 1 }
 0x1cd   : > { %v14021_v11 = vld [vmem:[#allocation3 + $0x2c] ss:$0 sps:$4 sm:$0x11]   ;;  %v3755_v38 = vshll.u32 %v15870_v8, 16  ;;  %v15893_v52 = vld [vmem:[#allocation3 + $0x24] sm:$0xff]  }
 0x1ce   : > { %v15861_v14 = vpop.permute.xlu1 %5382  ;;  %v2170_v15 = vpop.permute.xlu0 %2169  ;;  %v14029_v3 = vld [vmem:[#allocation3 + $0x38] ss:$0 sps:$4 sm:$0x11]   ;;  %v2759_v44 = vshll.u32 %v15893_v52, 16 }
 0x1cf   : > { %2325 = vst.msk [vmem:[#allocation3 + $0x4c] sm:$0xf] %vm2282_vm14, %v2170_v15  ;;  %4281 = vrot.lane.b32.xlu1 %v14009_v10, %s19459_s25  ;;  %v4064_v10 = vsel %vm19467_vm6, %v4062_v4, %v4063_v25  ;;  %v15888_v15 = vrot.slane %v3659_v0, 1  ;;  %v2336_v25 = vld [vmem:[#allocation3 + $0x60] sm:$0xf]  ;;  %v3187_v0 = vrot.slane %v15881_v13, 1 }
 0x1d0   : > { %4283 = vrot.lane.b32.xlu0 %v14008_v59, %s19459_s25  ;;  %v3167_v59 = vrot.slane %v14019_v49, 1  ;;  %v4088_v49 = vsel %vm19467_vm6, %v4086_v27, %v4087_v42  ;;  %v15907_v13 = vld [vmem:[#allocation3 + $0x84] sm:$0xfe]   ;;  %v2329_v27 = vld [vmem:[#allocation3 + $0x54] sm:$0xf] }
 0x1d1   : > { %v16137_v18 = vld [vmem:[#allocation3 + $0x50] ss:$0 sps:$4 sm:$0x11]  }
 0x1d2   : > { %v15872_v20 = vpop.permute.xlu1 %5386  ;;  %v2214_v35 = vpop.permute.xlu0 %2213 }
 0x1d3   : > { %v2376_v5 = vsel %vm15625_vm5, %v2214_v35, %v2375_v39  ;;  %4297 = vrot.lane.b32.xlu1 %v14011_v60, %s19459_s25  ;;  %v3163_v39 = vrot.slane %v14020_v28, 1  ;;  %v3164_v35 = vrot.slane %v14021_v11, 1  ;;  %v3190_v28 = vrot.slane %v14024_v2, 1  ;;  %v14027_v11 = vld [vmem:[#allocation3 + $0x2c] ss:$0 sps:$4 sm:$0x11]  }
 0x1d4   : > { %2377 = vst [vmem:[#allocation3 + $0xa4] sm:$0x1] %v2376_v5  ;;  %4299 = vrot.lane.b32.xlu0 %v14010_v56, %s19459_s25  ;;  %v14015_v56 = vld [vmem:[#allocation3 + $0x84] sm:$0xff]   ;;  %v14025_v5 = vld [vmem:[#allocation3 + $0x98] ss:$0 sps:$4 sm:$0x11]  }
 0x1d5   : > { %v15902_v60 = vrot.slane %v3755_v38, 1  ;;  %v3191_v42 = vrot.slane %v14025_v5, 1  ;;  %v15911_v2 = vld [vmem:[#allocation3 + $0x8c] ss:$0 sps:$4 sm:$0x11]   ;;  %v3165_v7 = vsel %vm19467_vm6, %v3163_v39, %v3164_v35  ;;  %v4960_v35 = vrot.slane %v14029_v3, 1 }
 0x1d6   : > { %v2164_v6 = vpop.permute.xlu1 %2163  ;;  %v2218_v50 = vpop.permute.xlu0 %2217  ;;  %v15913_v38 = vld [vmem:[#allocation3 + $0x98] ss:$0 sps:$4 sm:$0x11]   ;;  %v4983_v3 = vrot.slane %v15918_v46, 1 }
 0x1d7   : > { %2318 = vst.msk [vmem:[#allocation3 + $0x40] sm:$0xf] %vm2282_vm14, %v2164_v6  ;;  %2381 = vst.msk [vmem:[#allocation3 + $0xac] sm:$0xf] %vm2282_vm14, %v2218_v50  ;;  %4107 = vrot.lane.b32.xlu1 %v4064_v10, %s14751_s16  ;;  %v3188_v50 = vrot.slane %v15883_v36, 1 }
 0x1d8   : > { %3383 = vrot.lane.b32.xlu0 %v14012_v51, %s14750_s15  ;;  %v14026_v10 = vld [vmem:[#allocation3 + $0x24] sm:$0xfe]   ;;  %v14028_v51 = vld [vmem:[#allocation3 + $0x30] sm:$0xfe]  }
 0x1d9   : > { %v4956_v5 = vrot.slane %v14026_v10, 1  ;;  %v4959_v39 = vrot.slane %v14028_v51, 1  ;;  %v3192_v10 = vsel %vm19467_vm6, %v3190_v28, %v3191_v42  ;;  %v4984_v51 = vrot.slane %v15913_v38, 1  ;;  %v14036_v42 = vld [vmem:[#allocation3 + $0x24] sm:$0xfe]  }
 0x1da   : > { %v2212_v6 = vpop.permute.xlu1 %2211  ;;  %v15896_v4 = vpop.permute.xlu0 %5380  ;;  %v14039_v38 = vld [vmem:[#allocation3 + $0x98] ss:$0 sps:$4 sm:$0x11]  }
 0x1db   : > { %2374 = vst.msk [vmem:[#allocation3 + $0xa0] sm:$0xf] %vm2282_vm14, %v2212_v6  ;;  %4123 = vrot.lane.b32.xlu1 %v4088_v49, %s14751_s16  ;;  %v2392_v6 = vld [vmem:[#allocation3 + $0xc0] sm:$0xf]  ;;  %v3760_v30 = vshll.u32 %v14039_v38, 16 }
 0x1dc   : > { %3399 = vrot.lane.b32.xlu0 %v14015_v56, %s14750_s15  ;;  %v3168_v56 = vsel %vm19467_vm6, %v3166_v21, %v3167_v59  ;;  %v3189_v59 = vsel %vm19467_vm6, %v3187_v0, %v3188_v50  ;;  %v15954_v0 = vld [vmem:[#allocation3 + $0x38] ss:$0 sps:$4 sm:$0x11]  }
 0x1de   : > { %v2180_v36 = vpop.permute.xlu1 %2179  ;;  %v15909_v58 = vpop.permute.xlu0 %5396  ;;  %v16146_v48 = vld [vmem:[#allocation3 + $0xa8] sm:$0xff]  }
 0x1df   : > { %19557 = vst [vmem:[#allocation64_spill] sm:$0xff] %v15909_v58  ;;  %v2337_v49 = vsel %vm15577_vm15, %v2180_v36, %v2336_v25  ;;  %3208 = vrot.lane.b32.xlu1 %v3165_v7, %s19483_s22  ;;  %v14035_v58 = vld [vmem:[#allocation3 + $0x38] ss:$0 sps:$4 sm:$0x11]   ;;  %v2385_v25 = vld [vmem:[#allocation3 + $0xb4] sm:$0xf] }
 0x1e0   : > { %2338 = vst [vmem:[#allocation3 + $0x60] sm:$0xf] %v2337_v49  ;;  %3210 = vrot.lane.b32.xlu0 %v3168_v56, %s19483_s22  ;;  %v4957_v36 = vrot.slane %v14027_v11, 1  ;;  %v4980_v49 = vrot.slane %v15907_v13, 1  ;;  %v4981_v11 = vrot.slane %v15911_v2, 1  ;;  %v15937_v13 = vrot.slane %v2759_v44, 1 }
 0x1e1   : > { %v14037_v56 = vld [vmem:[#allocation3 + $0x2c] ss:$0 sps:$4 sm:$0x11]   ;;  %v2771_v2 = vshll.u32 %v15924_v29, 16 }
 0x1e2   : > { %v2228_v12 = vpop.permute.xlu1 %2227  ;;  %v2174_v55 = vpop.permute.xlu0 %2173  ;;  %v4958_v44 = vsel %vm19467_vm6, %v4956_v5, %v4957_v36 }
 0x1e3   : > { %v2393_v21 = vsel %vm15577_vm15, %v2228_v12, %v2392_v6  ;;  %v2330_v7 = vsel %vm15577_vm15, %v2174_v55, %v2329_v27  ;;  %3224 = vrot.lane.b32.xlu1 %v3189_v59, %s19483_s22  ;;  %v5523_v12 = vld [vmem:[#allocation3 + $0x38] sm:$0x1]  ;;  %v3664_v55 = vshll.u32 %v14035_v58, 16  ;;  %v2340_v6 = vld [vmem:[#allocation3 + $0x68] sm:$0x1]  ;;  %v4961_v58 = vsel %vm19467_vm6, %v4959_v39, %v4960_v35  ;;  %v15962_v35 = vld [vmem:[#allocation3 + $0x90] sm:$0xff]  }
 0x1e4   : > { %2394 = vst [vmem:[#allocation3 + $0xc0] sm:$0xf] %v2393_v21  ;;  %2331 = vst [vmem:[#allocation3 + $0x54] sm:$0xf] %v2330_v7  ;;  %3226 = vrot.lane.b32.xlu0 %v3192_v10, %s19483_s22  ;;  %v2333_v27 = vld [vmem:[#allocation3 + $0x5c] sm:$0x1]  ;;  %v5524_v5 = vsel %vm15625_vm5, %v15730_v22, %v5523_v12 }
 0x1e5   : > { %v15947_v21 = vld [vmem:[#allocation3 + $0x84] sm:$0xff]   ;;  %v3666_v59 = vrot.slane %v3664_v55, 1  ;;  %v14041_v10 = vld [vmem:[#allocation3 + $0x8c] ss:$0 sps:$4 sm:$0x11]   ;;  %v4059_v39 = vrot.slane %v14036_v42, 1 }
 0x1e6   : > { %v15941_v50 = vpop.permute.xlu1 %5390  ;;  %v2222_v28 = vpop.permute.xlu0 %2221  ;;  %v15951_v7 = vld [vmem:[#allocation3 + $0x84] sm:$0xfe]   ;;  %v14043_v22 = vld [vmem:[#allocation3 + $0x2c] ss:$0 sps:$4 sm:$0x11]   ;;  %v2855_v42 = vshll.u32 %v15947_v21, 16 }
 0x1e7   : > { %19558 = vst [vmem:[#allocation65_spill] sm:$0xff] %v15941_v50  ;;  %v2386_v46 = vsel %vm15577_vm15, %v2222_v28, %v2385_v25  ;;  %5003 = vrot.lane.b32.xlu1 %v4958_v44, %s14752_s30  ;;  %v2396_v28 = vld [vmem:[#allocation3 + $0xc8] sm:$0x1]  ;;  %v4982_v50 = vsel %vm19467_vm6, %v4980_v49, %v4981_v11  ;;  %v15971_v12 = vld [vmem:[#allocation3 + $0x38] ss:$0 sps:$4 sm:$0x11]  }
 0x1e8   : > { %2387 = vst [vmem:[#allocation3 + $0xb4] sm:$0xf] %v2386_v46  ;;  %5005 = vrot.lane.b32.xlu0 %v4961_v58, %s14752_s30  ;;  %v19559_v46 = vshrl.u32 %v15863_v16, 16  ;;  %v4985_v16 = vsel %vm19467_vm6, %v4983_v3, %v4984_v51  ;;  %5525 = vst [vmem:[#allocation3 + $0x38] sm:$0x1] %v5524_v5  ;;  %v4084_v5 = vrot.slane %v14041_v10, 1 }
 0x1e9   : > { %v14047_v51 = vld [vmem:[#allocation3 + $0x8c] ss:$0 sps:$4 sm:$0x11]   ;;  %v2857_v10 = vrot.slane %v2855_v42, 1  ;;  %v19562_v42 = vshrl.u32 %v15924_v29, 16 }
 0x1ea   : > { %v2184_v25 = vpop.permute.xlu1 %2183  ;;  %v2178_v36 = vpop.permute.xlu0 %2177  ;;  %v3662_v44 = vor.u32 %v15888_v15, %v19559_v46  ;;  %v4060_v15 = vrot.slane %v14037_v56, 1  ;;  %v2867_v56 = vshll.u32 %v15962_v35, 16  ;;  %v2773_v46 = vrot.slane %v2771_v2, 1 }
 0x1eb   : > { %v2341_v55 = vsel %vm15625_vm5, %v2184_v25, %v2340_v6  ;;  %v2334_v58 = vsel %vm15625_vm5, %v2178_v36, %v2333_v27  ;;  %5019 = vrot.lane.b32.xlu1 %v4982_v50, %s14752_s30  ;;  %v4083_v6 = vrot.slane %v15951_v7, 1  ;;  %v5516_v27 = vld [vmem:[#allocation3 + $0x2c] sm:$0x1]  ;;  %v2389_v25 = vld [vmem:[#allocation3 + $0xbc] sm:$0x1]  ;;  %v19560_v50 = vshrl.u32 %v15870_v8, 16 }
 0x1ec   : > { %2342 = vst [vmem:[#allocation3 + $0x68] sm:$0x1] %v2341_v55  ;;  %2335 = vst [vmem:[#allocation3 + $0x5c] sm:$0x1] %v2334_v58  ;;  %5021 = vrot.lane.b32.xlu0 %v4985_v16, %s14752_s30  ;;  %v3667_v38 = vsel %vm19468_vm9, %v3662_v44, %v3666_v59  ;;  %v3762_v7 = vrot.slane %v3760_v30, 1  ;;  %v14050_v55 = vld [vmem:[#allocation3 + $0x30] sm:$0xff]   ;;  %v4061_v59 = vsel %vm19467_vm6, %v4059_v39, %v4060_v15 }
 0x1ed   : > { %v3758_v3 = vor.u32 %v15902_v60, %v19560_v50  ;;  %v2764_v8 = vshll.u32 %v14043_v22, 16  ;;  %v14049_v44 = vld [vmem:[#allocation3 + $0x98] ss:$0 sps:$4 sm:$0x11]   ;;  %v2776_v60 = vshll.u32 %v15954_v0, 16  ;;  %v2853_v58 = vshrl.u32 %v15947_v21, 16 }
 0x1ee   : > { %v2232_v49 = vpop.permute.xlu1 %2231  ;;  %v2182_v11 = vpop.permute.xlu0 %2181  ;;  %v19561_v30 = vshrl.u32 %v15893_v52, 16  ;;  %v5517_v39 = vsel %vm15625_vm5, %v15765_v40, %v5516_v27  ;;  %v4547_v22 = vshll.u32 %v14050_v55, 16  ;;  %v16000_v15 = vld [vmem:[#allocation3 + $0x2c] ss:$0 sps:$4 sm:$0x11]   ;;  %v4085_v52 = vsel %vm19467_vm6, %v4083_v6, %v4084_v5  ;;  %v14058_v6 = vld [vmem:[#allocation3 + $0x24] sm:$0xff]  }
 0x1ef   : > { %v2397_v36 = vsel %vm15625_vm5, %v2232_v49, %v2396_v28  ;;  %2339 = vst.msk [vmem:[#allocation3 + $0x64] sm:$0xf] %vm2282_vm14, %v2182_v11  ;;  %3818 = vrot.lane.b32.xlu1 %v3667_v38, %s19477_s12  ;;  %v2860_v49 = vshll.u32 %v14047_v51, 16  ;;  %v2869_v11 = vrot.slane %v2867_v56, 1  ;;  %v14053_v38 = vld [vmem:[#allocation3 + $0x90] sm:$0xff]   ;;  %v3763_v21 = vsel %vm19468_vm9, %v3758_v3, %v3762_v7 }
 0x1f0   : > { %2398 = vst [vmem:[#allocation3 + $0xc8] sm:$0x1] %v2397_v36  ;;  %4105 = vrot.lane.b32.xlu0 %v4061_v59, %s14751_s16  ;;  %v2762_v2 = vor.u32 %v15937_v13, %v19561_v30  ;;  %v2766_v13 = vrot.slane %v2764_v8, 1  ;;  %v2774_v50 = vor.u32 %v2773_v46, %v19562_v42  ;;  %v2865_v51 = vshrl.u32 %v15962_v35, 16 }
 0x1f1   : > { %v2778_v40 = vrot.slane %v2776_v60, 1  ;;  %v2872_v27 = vshll.u32 %v14049_v44, 16  ;;  %v16008_v3 = vld [vmem:[#allocation3 + $0x2c] ss:$0 sps:$4 sm:$0x11]   ;;  %v4643_v59 = vshll.u32 %v14053_v38, 16  ;;  %v2858_v29 = vor.u32 %v2857_v10, %v2853_v58 }
 0x1f2   : > { %v15989_v28 = vpop.permute.xlu1 %5394  ;;  %v2226_v16 = vpop.permute.xlu0 %2225  ;;  %v2767_v7 = vsel %vm19468_vm9, %v2762_v2, %v2766_v13  ;;  %5518 = vst [vmem:[#allocation3 + $0x2c] sm:$0x1] %v5517_v39  ;;  %v2862_v5 = vrot.slane %v2860_v49, 1  ;;  %v2870_v35 = vor.u32 %v2869_v11, %v2865_v51  ;;  %v4549_v46 = vrot.slane %v4547_v22, 1  ;;  %v14062_v58 = vld [vmem:[#allocation3 + $0x84] sm:$0xff]  }
 0x1f3   : > { %v2390_v0 = vsel %vm15625_vm5, %v2226_v16, %v2389_v25  ;;  %3834 = vrot.lane.b32.xlu1 %v3763_v21, %s19477_s12  ;;  %v14056_v25 = vld [vmem:[#allocation3 + $0x24] sm:$0xff]   ;;  %v2779_v8 = vsel %vm19468_vm9, %v2774_v50, %v2778_v40  ;;  %v4552_v44 = vshll.u32 %v15971_v12, 16  ;;  %v14054_v60 = vld [vmem:[#allocation3 + $0x98] ss:$0 sps:$4 sm:$0x11]   ;;  %v2874_v16 = vrot.slane %v2872_v27, 1 }
 0x1f4   : > { %2391 = vst [vmem:[#allocation3 + $0xbc] sm:$0x1] %v2390_v0  ;;  %4121 = vrot.lane.b32.xlu0 %v4085_v52, %s14751_s16  ;;  %v3647_v30 = vshll.u32 %v14056_v25, 16  ;;  %v4545_v0 = vshrl.u32 %v14050_v55, 16  ;;  %v4645_v39 = vrot.slane %v4643_v59, 1  ;;  %v4535_v21 = vshll.u32 %v14058_v6, 16 }
 0x1f5   : > { %v14060_v52 = vld [vmem:[#allocation3 + $0x84] sm:$0xff]   ;;  %v2863_v10 = vsel %vm19468_vm9, %v2858_v29, %v2862_v5  ;;  %v2875_v49 = vsel %vm19468_vm9, %v2870_v35, %v2874_v16  ;;  %v4554_v22 = vrot.slane %v4552_v44, 1  ;;  %v4641_v42 = vshrl.u32 %v14053_v38, 16  ;;  %v5505_v55 = vld [vmem:[#allocation3 + $0x18] sm:$0xf] }
 0x1f6   : > { %v16010_v56 = vpop.permute.xlu1 %5398  ;;  %v2230_v36 = vpop.permute.xlu0 %2229  ;;  %v4550_v12 = vor.u32 %v4549_v46, %v4545_v0  ;;  %v14052_v13 = vld [vmem:[#allocation3 + $0x48] sm:$0xff]   ;;  %v4648_v50 = vshll.u32 %v14054_v60, 16  ;;  %v3645_v51 = vshrl.u32 %v14056_v25, 16  ;;  %v3649_v40 = vrot.slane %v3647_v30, 1 }
 0x1f7   : > { %19563 = vst [vmem:[#allocation66_spill] sm:$0xff] %v16010_v56  ;;  %2395 = vst.msk [vmem:[#allocation3 + $0xc4] sm:$0xf] %vm2282_vm14, %v2230_v36  ;;  %2918 = vrot.lane.b32.xlu1 %v2767_v7, %s14745_s24  ;;  %v4537_v36 = vrot.slane %v4535_v21, 1  ;;  %v4540_v7 = vshll.u32 %v16008_v3, 16  ;;  %v4646_v29 = vor.u32 %v4645_v39, %v4641_v42  ;;  %v3743_v5 = vshll.u32 %v14060_v52, 16 }
 0x1f8   : > { %2920 = vrot.lane.b32.xlu0 %v2779_v8, %s14745_s24  ;;  %v14063_v59 = vld [vmem:[#allocation3 + $0x8c] ss:$0 sps:$4 sm:$0x11]   ;;  %v4631_v35 = vshll.u32 %v14062_v58, 16  ;;  %v4555_v46 = vsel %vm19468_vm9, %v4550_v12, %v4554_v22  ;;  %v4650_v8 = vrot.slane %v4648_v50, 1  ;;  %v3652_v25 = vshll.u32 %v16000_v15, 16 }
 0x1f9   : > { %v14055_v38 = vld [vmem:[#allocation3 + $0xa8] sm:$0xff]   ;;  %v4533_v44 = vshrl.u32 %v14058_v6, 16  ;;  %v5506_v3 = vsel %vm15577_vm15, %v15591_v61, %v5505_v55  ;;  %v3650_v0 = vor.u32 %v3649_v40, %v3645_v51  ;;  %v3745_v15 = vrot.slane %v3743_v5, 1  ;;  %v14086_v22 = vld [vmem:[#allocation3 + $0x18] sm:$0xff]  }
 0x1fa   : > { %v2176_v2 = vpop.permute.xlu1 %2175  ;;  %v16021_v11 = vpop.permute.xlu0 %5392  ;;  %v14061_v60 = vld [vmem:[#allocation3 + $0x8c] ss:$0 sps:$4 sm:$0x11]   ;;  %v4633_v21 = vrot.slane %v4631_v35, 1  ;;  %v4629_v6 = vshrl.u32 %v14062_v58, 16  ;;  %v4636_v12 = vshll.u32 %v14063_v59, 16 }
 0x1fb   : > { %2332 = vst.msk [vmem:[#allocation3 + $0x58] sm:$0xf] %vm2282_vm14, %v2176_v2  ;;  %19564 = vst [vmem:[#allocation67_spill] sm:$0xff] %v16021_v11  ;;  %2934 = vrot.lane.b32.xlu1 %v2863_v10, %s14745_s24  ;;  %v5498_v16 = vld [vmem:[#allocation3 + $0xc] sm:$0xf]  ;;  %v4651_v2 = vsel %vm19468_vm9, %v4646_v29, %v4650_v8  ;;  %v4538_v39 = vor.u32 %v4537_v36, %v4533_v44  ;;  %v3741_v42 = vshrl.u32 %v14060_v52, 16 }
 0x1fc   : > { %2936 = vrot.lane.b32.xlu0 %v2875_v49, %s14745_s24  ;;  %v4542_v49 = vrot.slane %v4540_v7, 1  ;;  %5507 = vst [vmem:[#allocation3 + $0x18] sm:$0xf] %v5506_v3  ;;  %5508 = vst.msk [vmem:[#allocation3 + $0x1c] sm:$0xf] %vm2282_vm14, %v15679_v41  ;;  %v3748_v50 = vshll.u32 %v14061_v60, 16  ;;  %v5499_v55 = vsel %vm15577_vm15, %v15620_v23, %v5498_v16  ;;  %v4634_v51 = vor.u32 %v4633_v21, %v4629_v6 }
 0x1fd   : > { %2529 = vst.msk [vmem:[#allocation4 + $0x10] sm:$0xff] %vm386_vm4, %v14086_v22  ;;  %v2401_v40 = vld [vmem:[#allocation3 + $0xc] sm:$0xff]   ;;  %v3746_v41 = vor.u32 %v3745_v15, %v3741_v42  ;;  %v14091_v52 = vld [vmem:[#allocation3 + $0x78] sm:$0xff]   ;;  %v4638_v36 = vrot.slane %v4636_v12, 1 }
 0x1fe   : > { %v2224_v27 = vpop.permute.xlu1 %2223  ;;  %v16034_v30 = vpop.permute.xlu0 %4279  ;;  %v4543_v58 = vsel %vm19468_vm9, %v4538_v39, %v4542_v49  ;;  %5500 = vst [vmem:[#allocation3 + $0xc] sm:$0xf] %v5499_v55  ;;  %5501 = vst.msk [vmem:[#allocation3 + $0x10] sm:$0xf] %vm2282_vm14, %v15683_v31  ;;  %v3750_v59 = vrot.slane %v3748_v50, 1  ;;  %v14064_v31 = vld [vmem:[#allocation3 + $0x48] sm:$0xff]  }
 0x1ff   : > { %2388 = vst.msk [vmem:[#allocation3 + $0xb8] sm:$0xf] %vm2282_vm14, %v2224_v27  ;;  %3389 = vrot.lane.b32.xlu1 %v14052_v13, %s14750_s15  ;;  %v3654_v13 = vrot.slane %v3652_v25, 1  ;;  %v4639_v29 = vsel %vm19468_vm9, %v4634_v51, %v4638_v36  ;;  %v14069_v35 = vld [vmem:[#allocation3 + $0x48] sm:$0xfe]   ;;  %v14067_v16 = vld [vmem:[#allocation3 + $0x9c] sm:$0xff]  }
 0x200   : > { %4716 = vrot.lane.b32.xlu0 %v4555_v46, %s14747_s29  ;;  %2528 = vst.msk [vmem:[#allocation4 + $0x8] sm:$0xff] %vm386_vm4, %v2401_v40  ;;  %2537 = vst.msk [vmem:[#allocation4 + $0x50] sm:$0xff] %vm386_vm4, %v14091_v52  ;;  %v3751_v5 = vsel %vm19468_vm9, %v3746_v41, %v3750_v59  ;;  %v14070_v8 = vld [vmem:[#allocation3 + $0x50] ss:$0 sps:$4 sm:$0x11]   ;;  %v4068_v15 = vrot.slane %v14069_v35, 1 }
 0x201   : > { %v3655_v27 = vsel %vm19468_vm9, %v3650_v0, %v3654_v13  ;;  %v14073_v25 = vld [vmem:[#allocation3 + $0xb0] ss:$0 sps:$4 sm:$0x11]   ;;  %v14072_v60 = vld [vmem:[#allocation3 + $0xa8] sm:$0xfe]   ;;  %v4069_v13 = vrot.slane %v14070_v8, 1 }
 0x202   : > { %v16037_v10 = vpop.permute.xlu1 %3381  ;;  %v14074_v3 = vld [vmem:[#allocation3 + $0x48] sm:$0xfe]   ;;  %v14076_v39 = vld [vmem:[#allocation3 + $0x3c] sm:$0xfe]   ;;  %v4092_v42 = vrot.slane %v14072_v60, 1  ;;  %v4093_v50 = vrot.slane %v14073_v25, 1 }
 0x203   : > { %3405 = vrot.lane.b32.xlu1 %v14055_v38, %s14750_s15  ;;  %v14065_v38 = vld [vmem:[#allocation3 + $0x3c] sm:$0xff]   ;;  %v14066_v0 = vld [vmem:[#allocation3 + $0xa8] sm:$0xff]   ;;  %v14077_v21 = vld [vmem:[#allocation3 + $0x44] ss:$0 sps:$4 sm:$0x11]   ;;  %v3172_v51 = vrot.slane %v14074_v3, 1  ;;  %v4070_v59 = vsel %vm19467_vm6, %v4068_v15, %v4069_v13 }
 0x204   : > { %4732 = vrot.lane.b32.xlu0 %v4651_v2, %s14747_s29  ;;  %v14075_v2 = vld [vmem:[#allocation3 + $0x50] ss:$0 sps:$4 sm:$0x11]   ;;  %v14078_v6 = vld [vmem:[#allocation3 + $0x9c] sm:$0xfe]   ;;  %v16075_v55 = vld [vmem:[#allocation3 + $0x48] sm:$0xff]  }
 0x205   : > { %v16043_v61 = vpop.permute.xlu0 %4295  ;;  %v14079_v12 = vld [vmem:[#allocation3 + $0xa4] ss:$0 sps:$4 sm:$0x11]   ;;  %v14080_v40 = vld [vmem:[#allocation3 + $0xa8] sm:$0xfe]   ;;  %v3173_v52 = vrot.slane %v14075_v2, 1 }
 0x206   : > { %19565 = vst [vmem:[#allocation68_spill] sm:$0xff] %v16043_v61  ;;  %v16055_v7 = vpop.permute.xlu1 %3397  ;;  %v3169_v36 = vrot.slane %v14076_v39, 1  ;;  %v14081_v35 = vld [vmem:[#allocation3 + $0xb0] ss:$0 sps:$4 sm:$0x11]   ;;  %v3196_v8 = vrot.slane %v14080_v40, 1  ;;  %v4094_v39 = vsel %vm19467_vm6, %v4092_v42, %v4093_v50 }
 0x207   : > { %4714 = vrot.lane.b32.xlu1 %v4543_v58, %s14747_s29  ;;  %v14068_v58 = vld [vmem:[#allocation3 + $0x3c] sm:$0xff]   ;;  %v3683_v2 = vshll.u32 %v16075_v55, 16  ;;  %v3197_v15 = vrot.slane %v14081_v35, 1  ;;  %v14090_v40 = vld [vmem:[#allocation3 + $0xb0] ss:$0 sps:$4 sm:$0x11]  }
 0x208   : > { %3816 = vrot.lane.b32.xlu0 %v3655_v27, %s19477_s12  ;;  %v14096_v27 = vld [vmem:[#allocation3 + $0x6c] sm:$0xff]   ;;  %v14082_v3 = vld [vmem:[#allocation3 + $0x3c] sm:$0xfe]  }
 0x209   : > { %v3380_v23 = vpop.permute.xlu0 %3379  ;;  %2536 = vst.msk [vmem:[#allocation4 + $0x48] sm:$0xff] %vm386_vm4, %v14096_v27  ;;  %v4962_v42 = vrot.slane %v14082_v3, 1  ;;  %v16103_v61 = vld [vmem:[#allocation3 + $0xa8] sm:$0xff]   ;;  %v3198_v3 = vsel %vm19467_vm6, %v3196_v8, %v3197_v15  ;;  %v16124_v15 = vld [vmem:[#allocation3 + $0xa4] ss:$0 sps:$4 sm:$0x11]  }
 0x20a   : > { %3428 = vst.msk [vmem:[#allocation4] sm:$0xff] %vm3427_vm7, %v3380_v23 }
 0x20b   : > { %4730 = vrot.lane.b32.xlu1 %v4639_v29, %s14747_s29  ;;  %v3170_v29 = vrot.slane %v14077_v21, 1  ;;  %v14084_v21 = vld [vmem:[#allocation3 + $0x48] sm:$0xfe]  }
 0x20c   : > { %3832 = vrot.lane.b32.xlu0 %v3751_v5, %s19477_s12  ;;  %v3193_v5 = vrot.slane %v14078_v6, 1  ;;  %v14085_v6 = vld [vmem:[#allocation3 + $0x50] ss:$0 sps:$4 sm:$0x11]   ;;  %v4965_v35 = vrot.slane %v14084_v21, 1 }
 0x20d   : > { %v16064_v46 = vpop.permute.xlu1 %4293  ;;  %v3171_v25 = vsel %vm19467_vm6, %v3169_v36, %v3170_v29  ;;  %v4966_v11 = vrot.slane %v14085_v6, 1  ;;  %v4990_v29 = vrot.slane %v14090_v40, 1  ;;  %v14094_v21 = vld [vmem:[#allocation3 + $0x3c] sm:$0xfe]   ;;  %v3777_v6 = vshrl.u32 %v16103_v61, 16  ;;  %v16126_v40 = vld [vmem:[#allocation3 + $0x48] sm:$0xff]  }
 0x20e   : > { %19566 = vst [vmem:[#allocation69_spill] sm:$0xff] %v16064_v46  ;;  %v16066_v44 = vpop.permute.xlu0 %3395  ;;  %v14089_v46 = vld [vmem:[#allocation3 + $0xa8] sm:$0xfe]   ;;  %v2795_v1 = vshll.u32 %v16126_v40, 16 }
 0x20f   : > { %19567 = vst [vmem:[#allocation70_spill] sm:$0xff] %v16066_v44  ;;  %4285 = vrot.lane.b32.xlu1 %v14065_v38, %s19459_s25  ;;  %v14071_v38 = vld [vmem:[#allocation3 + $0x9c] sm:$0xff]   ;;  %v4989_v36 = vrot.slane %v14089_v46, 1  ;;  %v14095_v46 = vld [vmem:[#allocation3 + $0x44] ss:$0 sps:$4 sm:$0x11]  }
 0x210   : > { %4287 = vrot.lane.b32.xlu0 %v14064_v31, %s19459_s25  ;;  %v3194_v31 = vrot.slane %v14079_v12, 1  ;;  %v14087_v12 = vld [vmem:[#allocation3 + $0x9c] sm:$0xfe]  }
 0x211   : > { %v16070_v49 = vpop.permute.xlu1 %4103 }
 0x212   : > { %v16072_v22 = vpop.permute.xlu0 %3206 }
 0x213   : > { %4301 = vrot.lane.b32.xlu1 %v14067_v16, %s19459_s25  ;;  %v14083_v16 = vld [vmem:[#allocation3 + $0x44] ss:$0 sps:$4 sm:$0x11]  }
 0x214   : > { %4303 = vrot.lane.b32.xlu0 %v14066_v0, %s19459_s25  ;;  %v4963_v50 = vrot.slane %v14083_v16, 1  ;;  %v5537_v16 = vld [vmem:[#allocation3 + $0x50] sm:$0x1] }
 0x215   : > { %v16078_v41 = vpop.permute.xlu1 %4119 }
 0x216   : > { %v16080_v23 = vpop.permute.xlu0 %3222  ;;  %v4964_v8 = vsel %vm19467_vm6, %v4962_v42, %v4963_v50  ;;  %v5538_v42 = vsel %vm15625_vm5, %v15846_v37, %v5537_v16  ;;  %v4066_v37 = vrot.slane %v14095_v46, 1 }
 0x217   : > { %4111 = vrot.lane.b32.xlu1 %v4070_v59, %s14751_s16  ;;  %v3174_v59 = vsel %vm19467_vm6, %v3172_v51, %v3173_v52  ;;  %v3195_v51 = vsel %vm19467_vm6, %v3193_v5, %v3194_v31  ;;  %v16119_v31 = vld [vmem:[#allocation3 + $0x9c] sm:$0xfe]  }
 0x218   : > { %3387 = vrot.lane.b32.xlu0 %v14068_v58, %s14750_s15  ;;  %v14088_v58 = vld [vmem:[#allocation3 + $0xa4] ss:$0 sps:$4 sm:$0x11]  }
 0x219   : > { %v16087_v60 = vpop.permute.xlu1 %3204  ;;  %v4987_v52 = vrot.slane %v14088_v58, 1 }
 0x21a   : > { %v16090_v0 = vpop.permute.xlu0 %5001 }
 0x21b   : > { %4127 = vrot.lane.b32.xlu1 %v4094_v39, %s14751_s16  ;;  %v3685_v39 = vrot.slane %v3683_v2, 1 }
 0x21c   : > { %3403 = vrot.lane.b32.xlu0 %v14071_v38, %s14750_s15  ;;  %v14093_v38 = vld [vmem:[#allocation3 + $0x50] ss:$0 sps:$4 sm:$0x11]  }
 0x21d   : > { %v16095_v13 = vpop.permute.xlu1 %3220  ;;  %v3688_v2 = vshll.u32 %v14093_v38, 16 }
 0x21e   : > { %v16097_v27 = vpop.permute.xlu0 %5017 }
 0x21f   : > { %19568 = vst [vmem:[#allocation71_spill] sm:$0xff] %v16097_v27  ;;  %3212 = vrot.lane.b32.xlu1 %v3171_v25, %s19483_s22  ;;  %v4986_v27 = vrot.slane %v14087_v12, 1  ;;  %v14098_v25 = vld [vmem:[#allocation3 + $0xb0] ss:$0 sps:$4 sm:$0x11]   ;;  %v3779_v12 = vshll.u32 %v16103_v61, 16  ;;  %v4967_v61 = vsel %vm19467_vm6, %v4965_v35, %v4966_v11 }
 0x220   : > { %3214 = vrot.lane.b32.xlu0 %v3174_v59, %s19483_s22  ;;  %v16115_v59 = vld [vmem:[#allocation3 + $0x3c] sm:$0xff]   ;;  %v3784_v38 = vshll.u32 %v14098_v25, 16  ;;  %v4991_v25 = vsel %vm19467_vm6, %v4989_v36, %v4990_v29  ;;  %v2793_v29 = vshrl.u32 %v16126_v40, 16  ;;  %v14108_v40 = vld [vmem:[#allocation3 + $0xb0] ss:$0 sps:$4 sm:$0x11]  }
 0x221   : > { %v16105_v44 = vpop.permute.xlu1 %5015  ;;  %v3781_v33 = vrot.slane %v3779_v12, 1  ;;  %v4988_v35 = vsel %vm19467_vm6, %v4986_v27, %v4987_v52  ;;  %v2781_v12 = vshrl.u32 %v16115_v59, 16  ;;  %v16156_v52 = vld [vmem:[#allocation3 + $0x50] ss:$0 sps:$4 sm:$0x11]  }
 0x222   : > { %19569 = vst [vmem:[#allocation72_spill] sm:$0xff] %v16105_v44  ;;  %v16107_v56 = vpop.permute.xlu0 %4101  ;;  %v2783_v44 = vshll.u32 %v16115_v59, 16  ;;  %v3786_v16 = vrot.slane %v3784_v38, 1  ;;  %5539 = vst [vmem:[#allocation3 + $0x50] sm:$0x1] %v5538_v42 }
 0x223   : > { %3228 = vrot.lane.b32.xlu1 %v3195_v51, %s19483_s22  ;;  %v14102_v51 = vld [vmem:[#allocation3 + $0x44] ss:$0 sps:$4 sm:$0x11]   ;;  %v3782_v38 = vor.u32 %v3781_v33, %v3777_v6  ;;  %v2800_v33 = vshll.u32 %v16137_v18, 16 }
 0x224   : > { %3230 = vrot.lane.b32.xlu0 %v3198_v3, %s19483_s22  ;;  %v4065_v3 = vrot.slane %v14094_v21, 1  ;;  %v19571_v21 = vshrl.u32 %v16075_v55, 16  ;;  %v4090_v55 = vrot.slane %v16124_v15, 1  ;;  %v2785_v27 = vrot.slane %v2783_v44, 1 }
 0x225   : > { %v16117_v5 = vpop.permute.xlu1 %3814  ;;  %v2891_v44 = vshll.u32 %v16146_v48, 16 }
 0x226   : > { %v16121_v58 = vpop.permute.xlu0 %4117  ;;  %v4067_v15 = vsel %vm19467_vm6, %v4065_v3, %v4066_v37  ;;  %v14113_v3 = vld [vmem:[#allocation3 + $0xb0] ss:$0 sps:$4 sm:$0x11]   ;;  %v16195_v37 = vld [vmem:[#allocation3 + $0x44] ss:$0 sps:$4 sm:$0x11]  }
 0x227   : > { %19570 = vst [vmem:[#allocation73_spill] sm:$0xff] %v16121_v58  ;;  %5007 = vrot.lane.b32.xlu1 %v4964_v8, %s14752_s30  ;;  %v3690_v58 = vrot.slane %v3688_v2, 1  ;;  %v16139_v8 = vld [vmem:[#allocation3 + $0x9c] sm:$0xff]   ;;  %v4089_v2 = vrot.slane %v16119_v31, 1  ;;  %v5530_v31 = vld [vmem:[#allocation3 + $0x44] sm:$0x1] }
 0x228   : > { %5009 = vrot.lane.b32.xlu0 %v4967_v61, %s14752_s30  ;;  %v3686_v61 = vor.u32 %v3685_v39, %v19571_v21  ;;  %v2788_v39 = vshll.u32 %v14102_v51, 16  ;;  %v2879_v46 = vshll.u32 %v16139_v8, 16  ;;  %v16168_v51 = vld [vmem:[#allocation3 + $0x48] sm:$0xff]   ;;  %v2877_v6 = vshrl.u32 %v16139_v8, 16 }
 0x229   : > { %v16135_v50 = vpop.permute.xlu1 %3830  ;;  %v2893_v18 = vrot.slane %v2891_v44, 1  ;;  %v16185_v21 = vld [vmem:[#allocation3 + $0xa8] sm:$0xff]   ;;  %v4091_v8 = vsel %vm19467_vm6, %v4089_v2, %v4090_v55  ;;  %v2896_v2 = vshll.u32 %v14108_v40, 16  ;;  %v16207_v55 = vld [vmem:[#allocation3 + $0x44] ss:$0 sps:$4 sm:$0x11]  }
 0x22a   : > { %v2917_v11 = vpop.permute.xlu0 %2916  ;;  %v14119_v44 = vld [vmem:[#allocation3 + $0x9c] sm:$0xff]  }
 0x22b   : > { %2963 = vst.msk [vmem:[#allocation4 + $0x10] sm:$0xff] %vm2960_vm10, %v2917_v11  ;;  %5023 = vrot.lane.b32.xlu1 %v4988_v35, %s14752_s30  ;;  %v2797_v11 = vrot.slane %v2795_v1, 1  ;;  %v14106_v35 = vld [vmem:[#allocation3 + $0xa4] ss:$0 sps:$4 sm:$0x11]   ;;  %v2790_v1 = vrot.slane %v2788_v39, 1 }
 0x22c   : > { %3253 = vst.msk [vmem:[#allocation4 + $0x10] sm:$0xff] %vm19458_vm13, %v16072_v22  ;;  %5025 = vrot.lane.b32.xlu0 %v4991_v25, %s14752_s30  ;;  %v3691_v22 = vsel %vm19468_vm9, %v3686_v61, %v3690_v58  ;;  %v2881_v58 = vrot.slane %v2879_v46, 1  ;;  %v4571_v61 = vshll.u32 %v16168_v51, 16 }
 0x22d   : > { %v2915_v36 = vpop.permute.xlu1 %2914  ;;  %v2798_v25 = vor.u32 %v2797_v11, %v2793_v29  ;;  %v14117_v29 = vld [vmem:[#allocation3 + $0x3c] sm:$0xff]  }
 0x22e   : > { %2962 = vst.msk [vmem:[#allocation4 + $0x8] sm:$0xff] %vm2960_vm10, %v2915_v36  ;;  %v2933_v59 = vpop.permute.xlu0 %2932  ;;  %v2882_v36 = vor.u32 %v2881_v58, %v2877_v6  ;;  %v4573_v46 = vrot.slane %v4571_v61, 1 }
 0x22f   : > { %3252 = vst.msk [vmem:[#allocation4 + $0x8] sm:$0xff] %vm19458_vm13, %v16087_v60  ;;  %3822 = vrot.lane.b32.xlu1 %v3691_v22, %s19477_s12 }
 0x230   : > { %2971 = vst.msk [vmem:[#allocation4 + $0x50] sm:$0xff] %vm2960_vm10, %v2933_v59  ;;  %4109 = vrot.lane.b32.xlu0 %v4067_v15, %s14751_s16  ;;  %v4672_v59 = vshll.u32 %v14113_v3, 16  ;;  %v14111_v3 = vld [vmem:[#allocation3 + $0x60] sm:$0xff]  }
 0x231   : > { %3429 = vst.msk [vmem:[#allocation4 + $0x8] sm:$0xff] %vm3427_vm7, %v16037_v10  ;;  %v2931_v60 = vpop.permute.xlu1 %2930  ;;  %v3787_v10 = vsel %vm19468_vm9, %v3782_v38, %v3786_v16  ;;  %v2884_v16 = vshll.u32 %v14106_v35, 16  ;;  %v4569_v38 = vshrl.u32 %v16168_v51, 16  ;;  %v2898_v35 = vrot.slane %v2896_v2, 1 }
 0x232   : > { %3261 = vst.msk [vmem:[#allocation4 + $0x50] sm:$0xff] %vm19458_vm13, %v16080_v23  ;;  %v16180_v42 = vpop.permute.xlu0 %4712  ;;  %v2786_v23 = vor.u32 %v2785_v27, %v2781_v12  ;;  %v16201_v12 = vld [vmem:[#allocation3 + $0x3c] sm:$0xff]  }
 0x233   : > { %3862 = vst.msk [vmem:[#allocation4 + $0x8] sm:$0xff] %vm3860_vm11, %v16117_v5  ;;  %v5531_v5 = vsel %vm15625_vm5, %v15861_v14, %v5530_v31  ;;  %3838 = vrot.lane.b32.xlu1 %v3787_v10, %s19477_s12  ;;  %v2889_v14 = vshrl.u32 %v16146_v48, 16  ;;  %v4667_v48 = vshll.u32 %v16185_v21, 16  ;;  %v4576_v31 = vshll.u32 %v16156_v52, 16 }
 0x234   : > { %2970 = vst.msk [vmem:[#allocation4 + $0x48] sm:$0xff] %vm2960_vm10, %v2931_v60  ;;  %4125 = vrot.lane.b32.xlu0 %v4091_v8, %s14751_s16  ;;  %5532 = vst [vmem:[#allocation3 + $0x44] sm:$0x1] %v5531_v5  ;;  %v2886_v22 = vrot.slane %v2884_v16, 1  ;;  %v3671_v11 = vshll.u32 %v16201_v12, 16  ;;  %v4559_v52 = vshll.u32 %v14117_v29, 16  ;;  %v4574_v6 = vor.u32 %v4573_v46, %v4569_v38 }
 0x235   : > { %4151 = vst.msk [vmem:[#allocation4 + $0x8] sm:$0xff] %vm19469_vm1, %v16070_v49  ;;  %v2802_v49 = vrot.slane %v2800_v33, 1  ;;  %v4669_v33 = vrot.slane %v4667_v48, 1  ;;  %v14121_v60 = vld [vmem:[#allocation3 + $0x9c] sm:$0xff]   ;;  %v4578_v58 = vrot.slane %v4576_v31, 1  ;;  %v4674_v10 = vrot.slane %v4672_v59, 1 }
 0x236   : > { %3260 = vst.msk [vmem:[#allocation4 + $0x48] sm:$0xff] %vm19458_vm13, %v16095_v13  ;;  %v16203_v13 = vpop.permute.xlu1 %3385  ;;  %v16209_v27 = vpop.permute.xlu0 %4728  ;;  %v2887_v40 = vsel %vm19468_vm9, %v2882_v36, %v2886_v22  ;;  %vm19461_vm13 = vcmask 293888   ;;  %v14120_v5 = vld [vmem:[#allocation3 + $0xa4] ss:$0 sps:$4 sm:$0x11]   ;;  %v4655_v8 = vshll.u32 %v14119_v44, 16 }
 0x237   : > { %3437 = vst.msk [vmem:[#allocation4 + $0x48] sm:$0xff] %vm3427_vm7, %v16055_v7  ;;  %19572 = vst [vmem:[#allocation74_spill] sm:$0xff] %v16209_v27  ;;  %v2791_v7 = vsel %vm19468_vm9, %v2786_v23, %v2790_v1  ;;  %v2803_v39 = vsel %vm19468_vm9, %v2798_v25, %v2802_v49  ;;  %v4665_v1 = vshrl.u32 %v16185_v21, 16  ;;  %v3673_v23 = vrot.slane %v3671_v11, 1  ;;  %v5519_v11 = vld [vmem:[#allocation3 + $0x30] sm:$0xf] }
 0x238   : > { %3870 = vst.msk [vmem:[#allocation4 + $0x48] sm:$0xff] %vm3860_vm11, %v16135_v50  ;;  %2922 = vrot.lane.b32.xlu1 %v2791_v7, %s14745_s24  ;;  %v2894_v50 = vor.u32 %v2893_v18, %v2889_v14  ;;  %2924 = vrot.lane.b32.xlu0 %v2803_v39, %s14745_s24  ;;  %v3676_v25 = vshll.u32 %v16195_v37, 16  ;;  %v4564_v21 = vshll.u32 %v16207_v55, 16  ;;  %v4561_v49 = vrot.slane %v4559_v52, 1 }
 0x239   : > { %4159 = vst.msk [vmem:[#allocation4 + $0x48] sm:$0xff] %vm19469_vm1, %v16078_v41  ;;  %v3767_v16 = vshll.u32 %v14121_v60, 16  ;;  %v4579_v37 = vsel %vm19468_vm9, %v4574_v6, %v4578_v58  ;;  %v3669_v14 = vshrl.u32 %v16201_v12, 16  ;;  %v4557_v55 = vshrl.u32 %v14117_v29, 16 }
 0x23a   : > { %v16221_v41 = vpop.permute.xlu1 %3401  ;;  %v3813_v15 = vpop.permute.xlu0 %3812  ;;  %v2899_v51 = vsel %vm19468_vm9, %v2894_v50, %v2898_v35  ;;  %v3678_v2 = vrot.slane %v3676_v25, 1  ;;  %v4653_v48 = vshrl.u32 %v14119_v44, 16  ;;  %v4657_v50 = vrot.slane %v4655_v8, 1  ;;  %v5512_v35 = vld [vmem:[#allocation3 + $0x24] sm:$0xf]  ;;  %v14123_v8 = vld [vmem:[#allocation3 + $0x54] sm:$0xff]  }
 0x23b   : > { %3861 = vst.msk [vmem:[#allocation4] sm:$0xff] %vm3860_vm11, %v3813_v15  ;;  %v3674_v46 = vor.u32 %v3673_v23, %v3669_v14  ;;  %v4566_v31 = vrot.slane %v4564_v21, 1  ;;  %v4660_v59 = vshll.u32 %v14120_v5, 16  ;;  %v3769_v22 = vrot.slane %v3767_v16, 1  ;;  %v14146_v5 = vld [vmem:[#allocation3 + $0x30] sm:$0xff]   ;;  %v14124_v16 = vld [vmem:[#allocation3 + $0x60] sm:$0xff]  }
 0x23c   : > { %2938 = vrot.lane.b32.xlu1 %v2887_v40, %s14745_s24  ;;  %4150 = vst.msk [vmem:[#allocation4] sm:$0xff] %vm19469_vm1, %v16107_v56  ;;  %2940 = vrot.lane.b32.xlu0 %v2899_v51, %s14745_s24  ;;  %v4670_v56 = vor.u32 %v4669_v33, %v4665_v1  ;;  %v3765_v29 = vshrl.u32 %v14121_v60, 16  ;;  %v4658_v1 = vor.u32 %v4657_v50, %v4653_v48  ;;  %v14128_v21 = vld [vmem:[#allocation3 + $0x68] ss:$0 sps:$4 sm:$0x11]   ;;  %v19470_v27 = vmov 0.0  }
 0x23d   : > { %4328 = vst.msk [vmem:[#allocation4] sm:$0xff] %vm19462_vm3, %v16034_v30  ;;  %v14114_v30 = vld [vmem:[#allocation3 + $0xc0] sm:$0xff]   ;;  %v3679_v33 = vsel %vm19468_vm9, %v3674_v46, %v3678_v2  ;;  %v4662_v60 = vrot.slane %v4660_v59, 1  ;;  %v5513_v51 = vsel %vm15577_vm15, %v15711_v24, %v5512_v35  ;;  %v14125_v2 = vld [vmem:[#allocation3 + $0xb4] sm:$0xff]  }
 0x23e   : > { %v16234_v18 = vpop.permute.xlu1 %4726  ;;  %4761 = vst.msk [vmem:[#allocation4] sm:$0xff] %vm19463_vm2, %v16180_v42  ;;  %v16239_v61 = vpop.permute.xlu0 %3828  ;;  %v14122_v42 = vld [vmem:[#allocation3 + $0xa4] ss:$0 sps:$4 sm:$0x11]   ;;  %v4675_v36 = vsel %vm19468_vm9, %v4670_v56, %v4674_v10  ;;  %v3770_v52 = vor.u32 %v3769_v22, %v3765_v29  ;;  %v5520_v10 = vsel %vm15577_vm15, %v15692_v54, %v5519_v11  ;;  %v16288_v50 = vld [vmem:[#allocation3 + $0xb4] sm:$0xfe]  }
 0x23f   : > { %19573 = vst [vmem:[#allocation75_spill] sm:$0xff] %v16234_v18  ;;  %19574 = vst [vmem:[#allocation76_spill] sm:$0xff] %v16239_v61  ;;  %v3772_v38 = vshll.u32 %v14122_v42, 16  ;;  %v4663_v25 = vsel %vm19468_vm9, %v4658_v1, %v4662_v60  ;;  %v14127_v56 = vld [vmem:[#allocation3 + $0x60] sm:$0xfe]   ;;  %v14152_v46 = vld [vmem:[#allocation3 + $0x90] sm:$0xff]  }
 0x240   : > { %5050 = vst.msk [vmem:[#allocation4] sm:$0xff] %vm19466_vm0, %v16090_v0  ;;  %3393 = vrot.lane.b32.xlu1 %v14111_v3, %s14750_s15  ;;  %4720 = vrot.lane.b32.xlu0 %v4579_v37, %s14747_s29  ;;  %v4562_v0 = vor.u32 %v4561_v49, %v4557_v55  ;;  %v14145_v3 = vld [vmem:[#allocation3 + $0x24] sm:$0xff]   ;;  %5521 = vst [vmem:[#allocation3 + $0x30] sm:$0xf] %v5520_v10  ;;  %v4075_v55 = vrot.slane %v14128_v21, 1  ;;  %v14129_v35 = vld [vmem:[#allocation3 + $0x54] sm:$0xff]  }
 0x241   : > { %v3774_v58 = vrot.slane %v3772_v38, 1  ;;  %5514 = vst [vmem:[#allocation3 + $0x24] sm:$0xf] %v5513_v51  ;;  %5515 = vst.msk [vmem:[#allocation3 + $0x28] sm:$0xf] %vm2282_vm14, %v15814_v62  ;;  %v14151_v54 = vld [vmem:[#allocation3 + $0x84] sm:$0xff]  }
 0x242   : > { %v4282_v7 = vpop.permute.xlu1 %4281  ;;  %v16248_v39 = vpop.permute.xlu0 %4283  ;;  %v4567_v44 = vsel %vm19468_vm9, %v4562_v0, %v4566_v31  ;;  %v14130_v49 = vld [vmem:[#allocation3 + $0xc0] sm:$0xfe]   ;;  %2530 = vst.msk [vmem:[#allocation4 + $0x18] sm:$0xff] %vm386_vm4, %v14145_v3  ;;  %2531 = vst.msk [vmem:[#allocation4 + $0x20] sm:$0xff] %vm386_vm4, %v14146_v5  ;;  %v3199_v3 = vrot.slane %v16288_v50, 1  ;;  %v14132_v21 = vld [vmem:[#allocation3 + $0xb4] sm:$0xff]  }
 0x243   : > { %4329 = vst.msk [vmem:[#allocation4 + $0x8] sm:$0xff] %vm19462_vm3, %v4282_v7  ;;  %v3775_v24 = vsel %vm19468_vm9, %v3770_v52, %v3774_v58  ;;  %v14131_v37 = vld [vmem:[#allocation3 + $0xc8] ss:$0 sps:$4 sm:$0x11]   ;;  %v14135_v7 = vld [vmem:[#allocation3 + $0x60] sm:$0xfe]  }
 0x244   : > { %3409 = vrot.lane.b32.xlu1 %v14114_v30, %s14750_s15  ;;  %4736 = vrot.lane.b32.xlu0 %v4675_v36, %s14747_s29  ;;  %5522 = vst.msk [vmem:[#allocation3 + $0x34] sm:$0xf] %vm2282_vm14, %v15783_v45  ;;  %v16282_v30 = vld [vmem:[#allocation3 + $0x54] sm:$0xfe]   ;;  %v4074_v45 = vrot.slane %v14127_v56, 1  ;;  %v14126_v36 = vld [vmem:[#allocation3 + $0xc0] sm:$0xff]  }
 0x245   : > { %2538 = vst.msk [vmem:[#allocation4 + $0x58] sm:$0xff] %vm386_vm4, %v14151_v54  ;;  %v14134_v42 = vld [vmem:[#allocation3 + $0x5c] ss:$0 sps:$4 sm:$0x11]   ;;  %v4098_v0 = vrot.slane %v14130_v49, 1  ;;  %v4099_v59 = vrot.slane %v14131_v37, 1 }
 0x246   : > { %v4298_v12 = vpop.permute.xlu1 %4297  ;;  %v16254_v15 = vpop.permute.xlu0 %4299  ;;  %v14136_v48 = vld [vmem:[#allocation3 + $0x68] ss:$0 sps:$4 sm:$0x11]   ;;  %v14138_v22 = vld [vmem:[#allocation3 + $0xbc] ss:$0 sps:$4 sm:$0x11]   ;;  %v4076_v51 = vsel %vm19467_vm6, %v4074_v45, %v4075_v55 }
 0x247   : > { %4337 = vst.msk [vmem:[#allocation4 + $0x48] sm:$0xff] %vm19462_vm3, %v4298_v12  ;;  %v5066_v40 = vld [vmem:[#allocation4] sm:$0xff]  ;;  %v3175_v29 = vrot.slane %v16282_v30, 1  ;;  %v16295_v38 = vld [vmem:[#allocation3 + $0x68] ss:$0 sps:$4 sm:$0x11]  }
 0x248   : > { %13769 = vmatprep.mubr.msk.bf16.mxu0 %vm19461_vm13, %v5066_v40  ;;  %4718 = vrot.lane.b32.xlu1 %v4567_v44, %s14747_s29  ;;  %2539 = vst.msk [vmem:[#allocation4 + $0x60] sm:$0xff] %vm386_vm4, %v14152_v46  ;;  %v14139_v11 = vld [vmem:[#allocation3 + $0x60] sm:$0xfe]   ;;  %v16300_v40 = vld [vmem:[#allocation3 + $0x54] sm:$0xfe]   ;;  %v3178_v52 = vrot.slane %v14135_v7, 1 }
 0x249   : > { %3820 = vrot.lane.b32.xlu0 %v3679_v33, %s19477_s12  ;;  %v16302_v44 = vld [vmem:[#allocation3 + $0x5c] ss:$0 sps:$4 sm:$0x11]   ;;  %v3176_v33 = vrot.slane %v14134_v42, 1  ;;  %v3179_v58 = vrot.slane %v14136_v48, 1  ;;  %v4972_v5 = vrot.slane %v16295_v38, 1 }
 0x24a   : > { %v16264_v6 = vpop.permute.xlu1 %4107  ;;  %v3384_v23 = vpop.permute.xlu0 %3383  ;;  %v16310_v10 = vld [vmem:[#allocation3 + $0xc0] sm:$0xfe]   ;;  %v4969_v37 = vrot.slane %v16302_v44, 1  ;;  %v14154_v45 = vld [vmem:[#allocation3 + $0x68] ss:$0 sps:$4 sm:$0x11]  }
 0x24b   : > { %3430 = vst.msk [vmem:[#allocation4 + $0x10] sm:$0xff] %vm3427_vm7, %v3384_v23  ;;  %v3200_v23 = vrot.slane %v14138_v22, 1  ;;  %v16316_v56 = vld [vmem:[#allocation3 + $0x60] sm:$0xff]   ;;  %v4995_v30 = vrot.slane %v16310_v10, 1  ;;  %v3177_v48 = vsel %vm19467_vm6, %v3175_v29, %v3176_v33  ;;  %v16339_v50 = vld [vmem:[#allocation3 + $0x54] sm:$0xfe]   ;;  %v3180_v22 = vsel %vm19467_vm6, %v3178_v52, %v3179_v58 }
 0x24c   : > { %4734 = vrot.lane.b32.xlu1 %v4663_v25, %s14747_s29  ;;  %v4971_v25 = vrot.slane %v14139_v11, 1  ;;  %v3705_v55 = vshrl.u32 %v16316_v56, 16  ;;  %v16341_v46 = vld [vmem:[#allocation3 + $0x5c] ss:$0 sps:$4 sm:$0x11]   ;;  %v3712_v38 = vshll.u32 %v14154_v45, 16 }
 0x24d   : > { %3836 = vrot.lane.b32.xlu0 %v3775_v24, %s19477_s12  ;;  %v4968_v24 = vrot.slane %v16300_v40, 1  ;;  %v16346_v11 = vld [vmem:[#allocation3 + $0xb4] sm:$0xfe]   ;;  %v16349_v40 = vld [vmem:[#allocation3 + $0xbc] ss:$0 sps:$4 sm:$0x11]   ;;  %v3201_v52 = vsel %vm19467_vm6, %v3199_v3, %v3200_v23 }
 0x24e   : > { %v16280_v62 = vpop.permute.xlu1 %4123  ;;  %v3400_v14 = vpop.permute.xlu0 %3399  ;;  %v16351_v44 = vld [vmem:[#allocation3 + $0x60] sm:$0xff]   ;;  %v4072_v3 = vrot.slane %v16341_v46, 1  ;;  %vm19575_vm13 = vcmask 97344   ;;  %387 = vst.msk [vmem:[#allocation2] sm:$0xff] %vm386_vm4, %v19470_v27  ;;  %388 = vst.msk [vmem:[#allocation2 + $0x8] sm:$0xff] %vm386_vm4, %v19470_v27 }
 0x24f   : > { %3438 = vst.msk [vmem:[#allocation4 + $0x50] sm:$0xff] %vm3427_vm7, %v3400_v14  ;;  %v16327_v14 = vld [vmem:[#allocation3 + $0xb4] sm:$0xfe]   ;;  %v16381_v46 = vld [vmem:[#allocation3 + $0x60] sm:$0xff]   ;;  %vm19576_vm3 = vmmov %vm19575_vm13 }
 0x250   : > { %4289 = vrot.lane.b32.xlu1 %v14123_v8, %s19459_s25  ;;  %v14144_v8 = vld [vmem:[#allocation3 + $0xc8] ss:$0 sps:$4 sm:$0x11]   ;;  %v4992_v58 = vrot.slane %v16327_v14, 1  ;;  %v16371_v14 = vld [vmem:[#allocation3 + $0x54] sm:$0xff]   ;;  %392 = vst.msk [vmem:[#allocation2 + $0x198] sm:$0xff] %vm386_vm4, %v19470_v27 }
 0x251   : > { %4291 = vrot.lane.b32.xlu0 %v14124_v16, %s19459_s25  ;;  %v4100_v16 = vsel %vm19467_vm6, %v4098_v0, %v4099_v59  ;;  %v4996_v7 = vrot.slane %v14144_v8, 1  ;;  %v3707_v59 = vshll.u32 %v16316_v56, 16  ;;  %v14160_v56 = vld [vmem:[#allocation3 + $0x68] ss:$0 sps:$4 sm:$0x11]   ;;  %393 = vst.msk [vmem:[#allocation2 + $0x1a0] sm:$0xff] %vm386_vm4, %v19470_v27 }
 0x252   : > { %v16290_v31 = vpop.permute.xlu1 %3208  ;;  %v16292_v12 = vpop.permute.xlu0 %3210  ;;  %v2824_v18 = vshll.u32 %v14160_v56, 16  ;;  %v4595_v56 = vshll.u32 %v16381_v46, 16 }
 0x253   : > { %v3709_v8 = vrot.slane %v3707_v59, 1  ;;  %v3714_v59 = vrot.slane %v3712_v38, 1 }
 0x254   : > { %4305 = vrot.lane.b32.xlu1 %v14125_v2, %s19459_s25  ;;  %v16329_v2 = vld [vmem:[#allocation3 + $0xbc] ss:$0 sps:$4 sm:$0x11]  }
 0x255   : > { %4307 = vrot.lane.b32.xlu0 %v14126_v36, %s19459_s25  ;;  %v16334_v36 = vld [vmem:[#allocation3 + $0xc0] sm:$0xff]   ;;  %s14756_s25 = smov 40  }
 0x256   : > { %v16304_v1 = vpop.permute.xlu1 %3224  ;;  %v16306_v60 = vpop.permute.xlu0 %3226  ;;  %v3803_v33 = vshll.u32 %v16334_v36, 16  ;;  %v3801_v23 = vshrl.u32 %v16334_v36, 16  ;;  %v4997_v36 = vsel %vm19467_vm6, %v4995_v30, %v4996_v7 }
 0x258   : > { %4115 = vrot.lane.b32.xlu1 %v4076_v51, %s14751_s16  ;;  %v14161_v51 = vld [vmem:[%s19386_s5] sm:$0xff]  }
 0x259   : > { %3391 = vrot.lane.b32.xlu0 %v14129_v35, %s14750_s15  ;;  %v14158_v35 = vld [vmem:[#allocation3 + $0xc8] ss:$0 sps:$4 sm:$0x11]   ;;  %13763 = vmatprep.subr.bf16.mxu0 %v14161_v51 }
 0x25a   : > { %v16318_v49 = vpop.permute.xlu1 %5003  ;;  %v16320_v54 = vpop.permute.xlu0 %5005  ;;  %v3808_v45 = vshll.u32 %v14158_v35, 16  ;;  %13764 = vmatpush3.bf16.msra.mxu0 %v14161_v51  ;;  %v3805_v35 = vrot.slane %v3803_v33, 1  ;;  %v16394_v33 = vld [vmem:[#allocation3 + $0x68] ss:$0 sps:$4 sm:$0x11]  }
 0x25c   : > { %4131 = vrot.lane.b32.xlu1 %v4100_v16, %s14751_s16  ;;  %v4973_v16 = vsel %vm19467_vm6, %v4971_v25, %v4972_v5  ;;  %v4095_v25 = vrot.slane %v16346_v11, 1  ;;  %v4096_v5 = vrot.slane %v16349_v40, 1  ;;  %v16385_v51 = vrot.slane %v3808_v45, 1  ;;  %v16387_v11 = vld [vmem:[#allocation3 + $0x5c] ss:$0 sps:$4 sm:$0x11]  }
 0x25d   : > { %3407 = vrot.lane.b32.xlu0 %v14132_v21, %s14750_s15  ;;  %v4993_v21 = vrot.slane %v16329_v2, 1  ;;  %v2807_v40 = vshll.u32 %v16371_v14, 16  ;;  %v16401_v45 = vld [vmem:[#allocation3 + $0xbc] ss:$0 sps:$4 sm:$0x11]  }
 0x25e   : > { %v16332_v42 = vpop.permute.xlu1 %5019  ;;  %v16336_v0 = vpop.permute.xlu0 %5021 }
 0x25f   : > { %v4994_v7 = vsel %vm19467_vm6, %v4992_v58, %v4993_v21  ;;  %v2812_v58 = vshll.u32 %v16387_v11, 16  ;;  %v2809_v11 = vrot.slane %v2807_v40, 1  ;;  %v16438_v40 = vld [vmem:[#allocation3 + $0x5c] ss:$0 sps:$4 sm:$0x11]  }
 0x260   : > { %3216 = vrot.lane.b32.xlu1 %v3177_v48, %s19483_s22  ;;  %v2819_v48 = vshll.u32 %v16351_v44, 16 }
 0x261   : > { %3218 = vrot.lane.b32.xlu0 %v3180_v22, %s19483_s22  ;;  %v4071_v22 = vrot.slane %v16339_v50, 1  ;;  %v2817_v50 = vshrl.u32 %v16351_v44, 16  ;;  %v3710_v44 = vor.u32 %v3709_v8, %v3705_v55  ;;  %v2805_v8 = vshrl.u32 %v16371_v14, 16 }
 0x262   : > { %v16353_v29 = vpop.permute.xlu1 %3818  ;;  %v16359_v10 = vpop.permute.xlu0 %4105  ;;  %v2821_v38 = vrot.slane %v2819_v48, 1  ;;  %v5544_v48 = vld [vmem:[#allocation3 + $0x5c] sm:$0x1]  ;;  %v3806_v14 = vor.u32 %v3805_v35, %v3801_v23  ;;  %v4097_v23 = vsel %vm19467_vm6, %v4095_v25, %v4096_v5  ;;  %v2908_v25 = vshll.u32 %v16401_v45, 16 }
 0x263   : > { %v4073_v55 = vsel %vm19467_vm6, %v4071_v22, %v4072_v3  ;;  %v3715_v3 = vsel %vm19468_vm9, %v3710_v44, %v3714_v59  ;;  %v5526_v59 = vld [vmem:[#allocation3 + $0x3c] sm:$0xf] }
 0x264   : > { %3232 = vrot.lane.b32.xlu1 %v3201_v52, %s19483_s22  ;;  %v3811_v44 = vsel %vm19468_vm9, %v3806_v14, %v16385_v51  ;;  %v5527_v51 = vsel %vm15577_vm15, %v15838_v43, %v5526_v59  ;;  %v14177_v59 = vld [vmem:[#allocation3 + $0xbc] ss:$0 sps:$4 sm:$0x11]  }
 0x265   : > { %5013 = vrot.lane.b32.xlu0 %v4973_v16, %s14752_s30  ;;  %v4970_v16 = vsel %vm19467_vm6, %v4968_v24, %v4969_v37  ;;  %v14166_v24 = vld [vmem:[%s19386_s5 + $0x8] sm:$0xff]  }
 0x266   : > { %v16373_v2 = vpop.permute.xlu1 %3834  ;;  %v16377_v52 = vpop.permute.xlu0 %4121  ;;  %13765 = vmatprep.subr.bf16.mxu0 %v14166_v24 }
 0x267   : > { %13766 = vmatpush3.bf16.msra.mxu0 %v14166_v24  ;;  %v4593_v24 = vshrl.u32 %v16381_v46, 16  ;;  %v5545_v46 = vsel %vm15625_vm5, %v15989_v28, %v5544_v48  ;;  %v16454_v28 = vld [vmem:[#allocation3 + $0x54] sm:$0xff]  }
 0x268   : > { %5011 = vrot.lane.b32.xlu1 %v4970_v16, %s14752_s30  ;;  %v16396_v16 = vld [vmem:[#allocation3 + $0xb4] sm:$0xff]  }
 0x269   : > { %5029 = vrot.lane.b32.xlu0 %v4997_v36, %s14752_s30  ;;  %v16409_v36 = vld [vmem:[#allocation3 + $0xc0] sm:$0xff]   ;;  %v2903_v21 = vshll.u32 %v16396_v16, 16 }
 0x26a   : > { %v2919_v37 = vpop.permute.xlu1 %2918  ;;  %v2921_v30 = vpop.permute.xlu0 %2920  ;;  %v4691_v35 = vshll.u32 %v16409_v36, 16  ;;  %v4689_v14 = vshrl.u32 %v16409_v36, 16 }
 0x26b   : > { %2964 = vst.msk [vmem:[#allocation4 + $0x18] sm:$0xff] %vm2960_vm10, %v2919_v37  ;;  %2965 = vst.msk [vmem:[#allocation4 + $0x20] sm:$0xff] %vm2960_vm10, %v2921_v30  ;;  %v14170_v37 = vld [vmem:[#allocation3 + $0xc8] ss:$0 sps:$4 sm:$0x11]   ;;  %v4600_v30 = vshll.u32 %v16394_v33, 16  ;;  %v2810_v33 = vor.u32 %v2809_v11, %v2805_v8 }
 0x26c   : > { %3254 = vst.msk [vmem:[#allocation4 + $0x18] sm:$0xff] %vm19575_vm13, %v16290_v31  ;;  %5027 = vrot.lane.b32.xlu1 %v4994_v7, %s14752_s30  ;;  %v2826_v31 = vrot.slane %v2824_v18, 1  ;;  %vm19577_vm13 = vcmask 1041408   ;;  %v16463_v7 = vld [vmem:[#allocation3 + $0x5c] ss:$0 sps:$4 sm:$0x11]  }
 0x26d   : > { %3431 = vst.msk [vmem:[#allocation4 + $0x18] sm:$0xff] %vm3427_vm7, %v16203_v13  ;;  %4113 = vrot.lane.b32.xlu0 %v4073_v55, %s14751_s16  ;;  %v14171_v13 = vld [vmem:[%s19386_s5 + $0x10] ss:$0 sps:$4 sm:$0x33]   ;;  %v4693_v55 = vrot.slane %v4691_v35, 1  ;;  %v2814_v8 = vrot.slane %v2812_v58, 1 }
 0x26e   : > { %3255 = vst.msk [vmem:[#allocation4 + $0x20] sm:$0xff] %vm19576_vm3, %v16292_v12  ;;  %v2935_v22 = vpop.permute.xlu1 %2934  ;;  %v16424_v12 = vld [vmem:[#allocation3 + $0x54] sm:$0xff]   ;;  %v2937_v18 = vpop.permute.xlu0 %2936  ;;  %13886 = vmatprep.subr.msk.bf16.mxu0 %vm19577_vm13, %v14171_v13  ;;  %5546 = vst [vmem:[#allocation3 + $0x5c] sm:$0x1] %v5545_v46  ;;  %v14180_v35 = vld [vmem:[#allocation3 + $0x3c] sm:$0xff]   ;;  %v4588_v46 = vshll.u32 %v16438_v40, 16 }
 0x26f   : > { %3864 = vst.msk [vmem:[#allocation4 + $0x18] sm:$0xff] %vm3860_vm11, %v16353_v29  ;;  %v4597_v29 = vrot.slane %v4595_v56, 1  ;;  %v5533_v56 = vld [vmem:[#allocation3 + $0x48] sm:$0xf]  ;;  %5528 = vst [vmem:[#allocation3 + $0x3c] sm:$0xf] %v5527_v51 }
 0x270   : > { %4153 = vst.msk [vmem:[#allocation4 + $0x18] sm:$0xff] %vm19469_vm1, %v16264_v6  ;;  %3826 = vrot.lane.b32.xlu1 %v3715_v3, %s19477_s12  ;;  %v2822_v6 = vor.u32 %v2821_v38, %v2817_v50  ;;  %v4696_v50 = vshll.u32 %v14170_v37, 16  ;;  %v4583_v38 = vshll.u32 %v16424_v12, 16  ;;  %v4602_v37 = vrot.slane %v4600_v30, 1 }
 0x271   : > { %2972 = vst.msk [vmem:[#allocation4 + $0x58] sm:$0xff] %vm2960_vm10, %v2935_v22  ;;  %2973 = vst.msk [vmem:[#allocation4 + $0x60] sm:$0xff] %vm2960_vm10, %v2937_v18  ;;  %4129 = vrot.lane.b32.xlu0 %v4097_v23, %s14751_s16  ;;  %v4598_v48 = vor.u32 %v4597_v29, %v4593_v24  ;;  %v2901_v22 = vshrl.u32 %v16396_v16, 16  ;;  %v4581_v18 = vshrl.u32 %v16424_v12, 16  ;;  %v2815_v24 = vsel %vm19468_vm9, %v2810_v33, %v2814_v8 }
 0x272   : > { %3262 = vst.msk [vmem:[#allocation4 + $0x58] sm:$0xff] %vm19576_vm3, %v16304_v1  ;;  %3263 = vst.msk [vmem:[#allocation4 + $0x60] sm:$0xff] %vm19576_vm3, %v16306_v60  ;;  %v2905_v1 = vrot.slane %v2903_v21, 1  ;;  %v16451_v5 = vpop.permute.xlu1 %3389  ;;  %v16459_v60 = vpop.permute.xlu0 %4716  ;;  %v2827_v45 = vsel %vm19468_vm9, %v2822_v6, %v2826_v31  ;;  %v16470_v21 = vld [vmem:[#allocation3 + $0xb4] sm:$0xff]   ;;  %v2910_v31 = vrot.slane %v2908_v25, 1  ;;  %v4585_v43 = vrot.slane %v4583_v38, 1 }
 0x273   : > { %3439 = vst.msk [vmem:[#allocation4 + $0x58] sm:$0xff] %vm3427_vm7, %v16221_v41  ;;  %v5159_v41 = vsel %vm19577_vm13, %v14171_v13, 0  ;;  %v4698_v13 = vrot.slane %v4696_v50, 1  ;;  %v4603_v16 = vsel %vm19468_vm9, %v4598_v48, %v4602_v37  ;;  %v4694_v30 = vor.u32 %v4693_v55, %v4689_v14  ;;  %v14179_v6 = vld [vmem:[#allocation3 + $0xbc] ss:$0 sps:$4 sm:$0x11]  }
 0x274   : > { %3872 = vst.msk [vmem:[#allocation4 + $0x58] sm:$0xff] %vm3860_vm11, %v16373_v2  ;;  %13768 = vmatpush3.bf16.msra.mxu0 %v5159_v41  ;;  %v16465_v2 = vld [vmem:[#allocation3 + $0xb4] sm:$0xff]   ;;  %3842 = vrot.lane.b32.xlu1 %v3811_v44, %s19477_s12  ;;  %v2906_v29 = vor.u32 %v2905_v1, %v2901_v22  ;;  %v3791_v36 = vshll.u32 %v16470_v21, 16  ;;  %v5534_v12 = vsel %vm15577_vm15, %v15822_v57, %v5533_v56  ;;  %v14181_v1 = vld [vmem:[#allocation3 + $0x48] sm:$0xff]   ;;  %v3693_v50 = vshrl.u32 %v16454_v28, 16  ;;  %v16545_v14 = vld [vmem:[#allocation3] sm:$0xff]  }
 0x275   : > { %4161 = vst.msk [vmem:[#allocation4 + $0x58] sm:$0xff] %vm19469_vm1, %v16280_v62  ;;  %v3695_v62 = vshll.u32 %v16454_v28, 16  ;;  %2928 = vrot.lane.b32.xlu0 %v2827_v45, %s14745_s24  ;;  %v4679_v58 = vshll.u32 %v16465_v2, 16  ;;  %v3700_v38 = vshll.u32 %v16463_v7, 16  ;;  %5535 = vst [vmem:[#allocation3 + $0x48] sm:$0xf] %v5534_v12  ;;  %v4586_v41 = vor.u32 %v4585_v43, %v4581_v18 }
 0x276   : > { %v16477_v3 = vpop.permute.xlu1 %3405  ;;  %v16481_v11 = vpop.permute.xlu0 %4732  ;;  %5529 = vst.msk [vmem:[#allocation3 + $0x40] sm:$0xf] %vm2282_vm14, %v15896_v4  ;;  %5536 = vst.msk [vmem:[#allocation3 + $0x4c] sm:$0xf] %vm2282_vm14, %v15872_v20  ;;  %v2911_v40 = vsel %vm19468_vm9, %v2906_v29, %v2910_v31  ;;  %v14182_v4 = vld [vmem:[#allocation3 + $0x9c] sm:$0xff]   ;;  %v4699_v28 = vsel %vm19468_vm9, %v4694_v30, %v4698_v13  ;;  %v3793_v33 = vrot.slane %v3791_v36, 1 }
 0x277   : > { %v3697_v23 = vrot.slane %v3695_v62, 1  ;;  %2532 = vst.msk [vmem:[#allocation4 + $0x28] sm:$0xff] %vm386_vm4, %v14180_v35  ;;  %v4681_v44 = vrot.slane %v4679_v58, 1  ;;  %2533 = vst.msk [vmem:[#allocation4 + $0x30] sm:$0xff] %vm386_vm4, %v14181_v1  ;;  %v14183_v7 = vld [vmem:[#allocation3 + $0xa8] sm:$0xff]   ;;  %v4590_v56 = vrot.slane %v4588_v46, 1 }
 0x278   : > { %2926 = vrot.lane.b32.xlu1 %v2815_v24, %s14745_s24  ;;  %v4677_v45 = vshrl.u32 %v16465_v2, 16  ;;  %v4684_v48 = vshll.u32 %v14177_v59, 16  ;;  %2540 = vst.msk [vmem:[#allocation4 + $0x68] sm:$0xff] %vm386_vm4, %v14182_v4  ;;  %vm19578_vm3 = vcmask 228544   ;;  %v3702_v55 = vrot.slane %v3700_v38, 1  ;;  %2541 = vst.msk [vmem:[#allocation4 + $0x70] sm:$0xff] %vm386_vm4, %v14183_v7 }
 0x279   : > { %4724 = vrot.lane.b32.xlu0 %v4603_v16, %s14747_s29  ;;  %v3698_v20 = vor.u32 %v3697_v23, %v3693_v50  ;;  %v3789_v62 = vshrl.u32 %v16470_v21, 16  ;;  %v3796_v51 = vshll.u32 %v14179_v6, 16  ;;  %v4591_v2 = vsel %vm19468_vm9, %v4586_v41, %v4590_v56  ;;  %vm19579_vm13 = vmmov %vm19578_vm3  ;;  %v16558_v29 = vld [vmem:[#allocation3] sm:$0xfe]   ;;  %v16563_v16 = vld [vmem:[#allocation3 + $0xc] sm:$0xff]  }
 0x27a   : > { %v4715_v25 = vpop.permute.xlu1 %4714  ;;  %v3817_v57 = vpop.permute.xlu0 %3816  ;;  %v4682_v8 = vor.u32 %v4681_v44, %v4677_v45  ;;  %v16560_v43 = vld [vmem:[#allocation3 + $0x8] ss:$0 sps:$4 sm:$0x11]   ;;  %v5933_v58 = vshll.u32 %v16545_v14, 16  ;;  %v5945_v1 = vshll.u32 %v16563_v16, 16  ;;  %v16601_v4 = vld [vmem:[#allocation3 + $0x18] sm:$0xff]  }
 0x27b   : > { %4762 = vst.msk [vmem:[#allocation4 + $0x8] sm:$0xff] %vm19463_vm2, %v4715_v25  ;;  %v3794_v21 = vor.u32 %v3793_v33, %v3789_v62  ;;  %v3798_v37 = vrot.slane %v3796_v51, 1  ;;  %v14189_v30 = vld [vmem:[#allocation3 + $0x14] ss:$0 sps:$4 sm:$0x11]   ;;  %v19586_v62 = vld [vmem:[#allocation30_spill] sm:$0xff] }
 0x27c   : > { %5051 = vst.msk [vmem:[#allocation4 + $0x8] sm:$0xff] %vm19466_vm0, %v16318_v49  ;;  %2942 = vrot.lane.b32.xlu1 %v2911_v40, %s14745_s24  ;;  %v16574_v35 = vrot.slane %v5933_v58, 1  ;;  %v16586_v25 = vld [vmem:[#allocation3 + $0xc] sm:$0xfe]   ;;  %v19587_v51 = vrot.slane %v19586_v62, 4  ;;  %v16692_v46 = vld [vmem:[#allocation3 + $0x18] sm:$0xff]  }
 0x27d   : > { %3863 = vst.msk [vmem:[#allocation4 + $0x10] sm:$0xff] %vm3860_vm11, %v3817_v57  ;;  %4740 = vrot.lane.b32.xlu0 %v4699_v28, %s14747_s29  ;;  %v16593_v40 = vld [vmem:[#allocation3 + $0xc] sm:$0xff]   ;;  %v14194_v41 = vld [vmem:[#allocation3 + $0x14] ss:$0 sps:$4 sm:$0x11]   ;;  %v16705_v57 = vld [vmem:[#allocation3 + $0x24] sm:$0xff]  }
 0x27e   : > { %4152 = vst.msk [vmem:[#allocation4 + $0x10] sm:$0xff] %vm19469_vm1, %v16359_v10  ;;  %v4731_v49 = vpop.permute.xlu1 %4730  ;;  %v3833_v10 = vpop.permute.xlu0 %3832  ;;  %v14199_v56 = vld [vmem:[#allocation3 + $0x20] ss:$0 sps:$4 sm:$0x11]   ;;  %v16710_v23 = vld [vmem:[#allocation3 + $0x54] sm:$0xf] }
 0x27f   : > { %4330 = vst.msk [vmem:[#allocation4 + $0x10] sm:$0xff] %vm19578_vm3, %v16248_v39  ;;  %v3703_v39 = vsel %vm19468_vm9, %v3698_v20, %v3702_v55  ;;  %v16615_v55 = vld [vmem:[#allocation3 + $0xc] sm:$0xfe]   ;;  %v14204_v58 = vld [vmem:[#allocation3 + $0x20] ss:$0 sps:$4 sm:$0x11]  }
 0x280   : > { %4763 = vst.msk [vmem:[#allocation4 + $0x10] sm:$0xff] %vm19463_vm2, %v16459_v60  ;;  %4770 = vst.msk [vmem:[#allocation4 + $0x48] sm:$0xff] %vm19463_vm2, %v4731_v49  ;;  %4722 = vrot.lane.b32.xlu1 %v4591_v2, %s14747_s29  ;;  %v4686_v60 = vrot.slane %v4684_v48, 1  ;;  %v6829_v48 = vshll.u32 %v16593_v40, 16  ;;  %v6841_v2 = vshll.u32 %v16601_v4, 16  ;;  %v7730_v62 = vshll.u32 %v14204_v58, 16 }
 0x281   : > { %5052 = vst.msk [vmem:[#allocation4 + $0x10] sm:$0xff] %vm19466_vm0, %v16320_v54  ;;  %5059 = vst.msk [vmem:[#allocation4 + $0x48] sm:$0xff] %vm19466_vm0, %v16332_v42  ;;  %3824 = vrot.lane.b32.xlu0 %v3703_v39, %s19477_s12  ;;  %v16687_v7 = vld [vmem:[#allocation3 + $0x20] ss:$0 sps:$4 sm:$0x11]   ;;  %v19597_v39 = vld [vmem:[#allocation52_spill] sm:$0xff] }
 0x282   : > { %3871 = vst.msk [vmem:[#allocation4 + $0x50] sm:$0xff] %vm3860_vm11, %v3833_v10  ;;  %v4286_v54 = vpop.permute.xlu1 %4285  ;;  %v16536_v42 = vpop.permute.xlu0 %4287  ;;  %v4687_v22 = vsel %vm19468_vm9, %v4682_v8, %v4686_v60  ;;  %v16620_v10 = vld [vmem:[#allocation3 + $0x14] ss:$0 sps:$4 sm:$0x11]   ;;  %v19588_v8 = vld [vmem:[#allocation36_spill] sm:$0xff]  ;;  %v19601_v33 = vld [vmem:[#allocation66_spill] sm:$0xff] }
 0x283   : > { %4160 = vst.msk [vmem:[#allocation4 + $0x50] sm:$0xff] %vm19469_vm1, %v16377_v52  ;;  %v5067_v31 = vld [vmem:[#allocation4 + $0x8] sm:$0xff]  ;;  %v3799_v52 = vsel %vm19468_vm9, %v3794_v21, %v3798_v37  ;;  %v6846_v21 = vshll.u32 %v14199_v56, 16  ;;  %v16630_v37 = vld [vmem:[#allocation3 + $0x18] sm:$0xfe]  }
 0x284   : > { %4338 = vst.msk [vmem:[#allocation4 + $0x50] sm:$0xff] %vm19579_vm13, %v16254_v15  ;;  %4738 = vrot.lane.b32.xlu1 %v4687_v22, %s14747_s29  ;;  %vm19580_vm13 = vcmask 293888   ;;  %v16632_v22 = vld [vmem:[#allocation3 + $0x18] sm:$0xff]  }
 0x285   : > { %4771 = vst.msk [vmem:[#allocation4 + $0x50] sm:$0xff] %vm19463_vm2, %v16481_v11  ;;  %13770 = vmatmul.mubr.msk.bf16.vlgmr.msra.gmra.mrb[16].mxu0 %vm19580_vm13, %v5067_v31  ;;  %3840 = vrot.lane.b32.xlu0 %v3799_v52, %s19477_s12  ;;  %vm19581_vm2 = vmmov %vm19580_vm13  ;;  %v19582_v11 = vrot.slane %v15593_v19, 4 }
 0x286   : > { %4331 = vst.msk [vmem:[#allocation4 + $0x18] sm:$0xff] %vm19578_vm3, %v4286_v54  ;;  %v4302_v15 = vpop.permute.xlu1 %4301  ;;  %v16548_v13 = vpop.permute.xlu0 %4303  ;;  %v16628_v54 = vrot.slane %v6829_v48, 1  ;;  %v16660_v48 = vld [vmem:[#allocation3 + $0x18] sm:$0xfe]  }
 0x287   : > { %5060 = vst.msk [vmem:[#allocation4 + $0x50] sm:$0xff] %vm19466_vm0, %v16336_v0  ;;  %v14185_v0 = vld [vmem:[#allocation3 + $0x8] ss:$0 sps:$4 sm:$0x11]  }
 0x288   : > { %4339 = vst.msk [vmem:[#allocation4 + $0x58] sm:$0xff] %vm19578_vm3, %v4302_v15  ;;  %v5068_v18 = vld [vmem:[#allocation4 + $0x10] sm:$0xff]  ;;  %5402 = vrot.lane.b32.xlu1 %v15087_v32, %s14748_s13  ;;  %v19583_v32 = vrot.slane %v15120_v63, 4  ;;  %v5938_v6 = vshll.u32 %v14185_v0, 16  ;;  %v5950_v63 = vshll.u32 %v14189_v30, 16  ;;  %v16647_v30 = vrot.slane %v6846_v21, 1 }
 0x289   : > { %13773 = vmatprep.mubr.msk.bf16.mxu0 %vm19581_vm2, %v5068_v18  ;;  %5400 = vrot.lane.b32.xlu0 %v19582_v11, %s14748_s13  ;;  %v19589_v18 = vld [vmem:[#allocation34_spill] sm:$0xff]  ;;  %v19595_v0 = vld [vmem:[#allocation44_spill] sm:$0xff]  ;;  %vm19602_vm2 = vcmask 24576  }
 0x28a   : > { %v16556_v24 = vpop.permute.xlu1 %4111  ;;  %v3388_v59 = vpop.permute.xlu0 %3387  ;;  %v16590_v38 = vrot.slane %v5938_v6, 1  ;;  %v16606_v20 = vrot.slane %v5950_v63, 1  ;;  %v16649_v6 = vld [vmem:[#allocation3 + $0x20] ss:$0 sps:$4 sm:$0x11]   ;;  %v19596_v11 = vrot.slane %v19595_v0, 4  ;;  %vm19603_vm13 = vmmov %vm19602_vm2 }
 0x28b   : > { %3432 = vst.msk [vmem:[#allocation4 + $0x20] sm:$0xff] %vm3427_vm7, %v3388_v59  ;;  %v16643_v59 = vrot.slane %v6841_v2, 1  ;;  %v19592_v2 = vld [vmem:[#allocation29_spill] sm:$0xff]  ;;  %v19599_v0 = vld [vmem:[#allocation48_spill] sm:$0xff]  ;;  %vm19604_vm3 = vmmov %vm19602_vm2 }
 0x28c   : > { %5406 = vrot.lane.b32.xlu1 %v19583_v32, %s14748_s13  ;;  %v19590_v32 = vld [vmem:[#allocation26_spill] sm:$0xff]  ;;  %397 = vst.msk [vmem:[#allocation2 + $0x18] sm:$0x1] %vm19602_vm2, %v19470_v27  ;;  %vm19605_vm0 = vmmov %vm19602_vm2 }
 0x28d   : > { %5404 = vrot.lane.b32.xlu0 %v15214_v26, %s14748_s13  ;;  %v16582_v26 = vld [vmem:[#allocation3 + $0x14] ss:$0 sps:$4 sm:$0x11]   ;;  %v16674_v63 = vld [vmem:[#allocation3 + $0x24] sm:$0xfe]   ;;  %vm19606_vm6 = vmmov %vm19605_vm0 }
 0x28e   : > { %v16571_v19 = vpop.permute.xlu1 %4127  ;;  %v3404_v36 = vpop.permute.xlu0 %3403  ;;  %398 = vst.msk [vmem:[#allocation2 + $0x30] sm:$0x1] %vm19603_vm13, %v19470_v27  ;;  %vm19607_vm2 = vmmov %vm19605_vm0 }
 0x28f   : > { %3440 = vst.msk [vmem:[#allocation4 + $0x60] sm:$0xff] %vm3427_vm7, %v3404_v36  ;;  %v16651_v36 = vld [vmem:[#allocation3 + $0x24] sm:$0xff]   ;;  %vm19608_vm13 = vmmov %vm19605_vm0 }
 0x290   : > { %5410 = vrot.lane.b32.xlu1 %v15170_v53, %s14748_s13  ;;  %v16599_v53 = vrot.slane %v5945_v1, 1  ;;  %v7737_v21 = vshll.u32 %v16651_v36, 16  ;;  %415 = vst.msk [vmem:[#allocation2 + $0x29] sm:$0x1] %vm19604_vm3, %v19470_v27  ;;  %vm19609_vm3 = vmmov %vm19605_vm0 }
 0x291   : > { %5408 = vrot.lane.b32.xlu0 %v15068_v17, %s14748_s13  ;;  %v19584_v17 = vld [vmem:[#allocation17_spill] sm:$0xff]  ;;  %416 = vst.msk [vmem:[#allocation2 + $0x41] sm:$0x1] %vm19605_vm0, %v19470_v27  ;;  %403 = vst.msk [vmem:[#allocation2 + $0xa8] sm:$0x1] %vm19605_vm0, %v19470_v27 }
 0x292   : > { %v16588_v50 = vpop.permute.xlu1 %3212  ;;  %v16595_v44 = vpop.permute.xlu0 %3214  ;;  %v19585_v28 = vrot.slane %v19584_v17, 4  ;;  %v7725_v17 = vshll.u32 %v16632_v22, 16  ;;  %19594 = vst [vmem:[#allocation17_spill] sm:$0xff] %v16674_v63  ;;  %399 = vst.msk [vmem:[#allocation2 + $0x48] sm:$0x1] %vm19606_vm6, %v19470_v27 }
 0x293   : > { %400 = vst.msk [vmem:[#allocation2 + $0x60] sm:$0x1] %vm19607_vm2, %v19470_v27  ;;  %vm19610_vm9 = vmmov %vm19605_vm0  ;;  %v14235_v63 = vld [vmem:[#allocation3 + $0x38] ss:$0 sps:$4 sm:$0x11]  }
 0x294   : > { %5414 = vrot.lane.b32.xlu1 %v15272_v9, %s14748_s13  ;;  %v6834_v9 = vshll.u32 %v14194_v41, 16  ;;  %v5547_v41 = vld [vmem:[#allocation3 + $0x60] sm:$0xf]  ;;  %401 = vst.msk [vmem:[#allocation2 + $0x78] sm:$0x1] %vm19608_vm13, %v19470_v27  ;;  %vm19611_vm1 = vmmov %vm19605_vm0 }
 0x295   : > { %5412 = vrot.lane.b32.xlu0 %v19585_v28, %s14748_s13  ;;  %v14209_v28 = vld [vmem:[#allocation3 + $0x2c] ss:$0 sps:$4 sm:$0x11]   ;;  %402 = vst.msk [vmem:[#allocation2 + $0x90] sm:$0x1] %vm19609_vm3, %v19470_v27  ;;  %vm19612_vm6 = vmmov %vm19605_vm0 }
 0x296   : > { %v16610_v45 = vpop.permute.xlu1 %3228  ;;  %v16613_v49 = vpop.permute.xlu0 %3230  ;;  %v16636_v52 = vrot.slane %v6834_v9, 1  ;;  %v19591_v9 = vld [vmem:[#allocation40_spill] sm:$0xff]  ;;  %v7742_v58 = vshll.u32 %v14209_v28, 16  ;;  %404 = vst.msk [vmem:[#allocation2 + $0xc0] sm:$0x1] %vm19610_vm9, %v19470_v27  ;;  %vm19613_vm2 = vmmov %vm19605_vm0 }
 0x297   : > { %405 = vst.msk [vmem:[#allocation2 + $0xd8] sm:$0x1] %vm19611_vm1, %v19470_v27  ;;  %vm19614_vm13 = vmmov %vm19605_vm0 }
 0x298   : > { %5418 = vrot.lane.b32.xlu1 %v19587_v51, %s14748_s13  ;;  %v16664_v51 = vld [vmem:[#allocation3 + $0x20] ss:$0 sps:$4 sm:$0x11]   ;;  %406 = vst.msk [vmem:[#allocation2 + $0xf0] sm:$0x1] %vm19612_vm6, %v19470_v27  ;;  %vm19615_vm3 = vmmov %vm19605_vm0 }
 0x299   : > { %5416 = vrot.lane.b32.xlu0 %v19588_v8, %s14748_s13  ;;  %v19593_v8 = vrot.slane %v19592_v2, 4  ;;  %v16682_v2 = vrot.slane %v7725_v17, 1  ;;  %407 = vst.msk [vmem:[#allocation2 + $0x108] sm:$0x1] %vm19613_vm2, %v19470_v27  ;;  %vm19616_vm9 = vmmov %vm19605_vm0 }
 0x29a   : > { %v16626_v60 = vpop.permute.xlu1 %5007  ;;  %v16634_v31 = vpop.permute.xlu0 %5009  ;;  %408 = vst.msk [vmem:[#allocation2 + $0x120] sm:$0x1] %vm19614_vm13, %v19470_v27  ;;  %vm19617_vm1 = vmmov %vm19605_vm0 }
 0x29b   : > { %409 = vst.msk [vmem:[#allocation2 + $0x138] sm:$0x1] %vm19615_vm3, %v19470_v27  ;;  %vm19618_vm6 = vmmov %vm19605_vm0 }
 0x29c   : > { %5422 = vrot.lane.b32.xlu1 %v19589_v18, %s14748_s13  ;;  %v16670_v18 = vld [vmem:[#allocation3 + $0x2c] ss:$0 sps:$4 sm:$0x11]   ;;  %410 = vst.msk [vmem:[#allocation2 + $0x150] sm:$0x1] %vm19605_vm0, %v19470_v27  ;;  %vm19619_vm2 = vmmov %vm19605_vm0 }
 0x29d   : > { %5420 = vrot.lane.b32.xlu0 %v19590_v32, %s14748_s13  ;;  %411 = vst.msk [vmem:[#allocation2 + $0x168] sm:$0x1] %vm19616_vm9, %v19470_v27  ;;  %vm19620_vm13 = vmmov %vm19605_vm0 }
 0x29e   : > { %v16653_v1 = vpop.permute.xlu1 %5023  ;;  %v16658_v56 = vpop.permute.xlu0 %5025  ;;  %412 = vst.msk [vmem:[#allocation2 + $0x180] sm:$0x1] %vm19617_vm1, %v19470_v27  ;;  %vm19621_vm3 = vmmov %vm19605_vm0 }
 0x29f   : > { %417 = vst.msk [vmem:[#allocation2 + $0x59] sm:$0x1] %vm19618_vm6, %v19470_v27  ;;  %vm19622_vm9 = vmmov %vm19605_vm0 }
 0x2a0   : > { %5426 = vrot.lane.b32.xlu1 %v19591_v9, %s14748_s13  ;;  %418 = vst.msk [vmem:[#allocation2 + $0x71] sm:$0x1] %vm19619_vm2, %v19470_v27  ;;  %vm19623_vm1 = vmmov %vm19605_vm0  ;;  %v16808_v9 = vld [vmem:[#allocation3 + $0x24] sm:$0xff]  }
 0x2a1   : > { %5424 = vrot.lane.b32.xlu0 %v19593_v8, %s14748_s13  ;;  %v16684_v8 = vrot.slane %v7730_v62, 1  ;;  %v16701_v62 = vrot.slane %v7742_v58, 1  ;;  %419 = vst.msk [vmem:[#allocation2 + $0x89] sm:$0x1] %vm19620_vm13, %v19470_v27  ;;  %vm19624_vm6 = vmmov %vm19605_vm0 }
 0x2a2   : > { %v16672_v32 = vpop.permute.xlu1 %3822  ;;  %v16676_v15 = vpop.permute.xlu0 %4109  ;;  %420 = vst.msk [vmem:[#allocation2 + $0xa1] sm:$0x1] %vm19621_vm3, %v19470_v27  ;;  %vm19625_vm2 = vmmov %vm19605_vm0  ;;  %v14222_v58 = vld [vmem:[#allocation3 + $0x2c] ss:$0 sps:$4 sm:$0x11]  }
 0x2a3   : > { %421 = vst.msk [vmem:[#allocation2 + $0xb9] sm:$0x1] %vm19605_vm0, %v19470_v27  ;;  %vm19626_vm13 = vmmov %vm19605_vm0 }
 0x2a4   : > { %5430 = vrot.lane.b32.xlu1 %v19596_v11, %s14748_s13  ;;  %v16697_v11 = vrot.slane %v7737_v21, 1  ;;  %v14224_v21 = vld [vmem:[#allocation3 + $0x60] sm:$0xff]   ;;  %422 = vst.msk [vmem:[#allocation2 + $0xd1] sm:$0x1] %vm19622_vm9, %v19470_v27  ;;  %vm19627_vm3 = vmmov %vm19605_vm0 }
 0x2a5   : > { %5428 = vrot.lane.b32.xlu0 %v19597_v39, %s14748_s13  ;;  %v19598_v39 = vld [vmem:[#allocation64_spill] sm:$0xff]  ;;  %5550 = vst.msk [vmem:[#allocation3 + $0x64] sm:$0xf] %vm2282_vm14, %v19601_v33  ;;  %vm19628_vm9 = vmmov %vm19605_vm0 }
 0x2a6   : > { %v16694_v28 = vpop.permute.xlu1 %3838  ;;  %v16699_v17 = vpop.permute.xlu0 %4125  ;;  %v5548_v12 = vsel %vm15577_vm15, %v19598_v39, %v5547_v41  ;;  %423 = vst.msk [vmem:[#allocation2 + $0xe9] sm:$0x1] %vm19623_vm1, %v19470_v27  ;;  %vm19629_vm1 = vmmov %vm19605_vm0  ;;  %v16800_v41 = vld [vmem:[#allocation3 + $0x20] ss:$0 sps:$4 sm:$0x11]   ;;  %v19633_v39 = vld [vmem:[#allocation58_spill] sm:$0xff] }
 0x2a7   : > { %5549 = vst [vmem:[#allocation3 + $0x60] sm:$0xf] %v5548_v12  ;;  %424 = vst.msk [vmem:[#allocation2 + $0x101] sm:$0x1] %vm19624_vm6, %v19470_v27  ;;  %v16792_v12 = vld [vmem:[#allocation3 + $0x18] sm:$0xfe]  }
 0x2a8   : > { %5434 = vrot.lane.b32.xlu1 %v19599_v0, %s14748_s13  ;;  %425 = vst.msk [vmem:[#allocation2 + $0x119] sm:$0x1] %vm19625_vm2, %v19470_v27  ;;  %vm19630_vm6 = vmmov %vm19605_vm0  ;;  %v5969_v0 = vshll.u32 %v16705_v57, 16 }
 0x2a9   : > { %5432 = vrot.lane.b32.xlu0 %v19600_v47, %s14748_s13  ;;  %426 = vst.msk [vmem:[#allocation2 + $0x131] sm:$0x1] %vm19626_vm13, %v19470_v27  ;;  %vm19631_vm2 = vmmov %vm19605_vm0  ;;  %vm19632_vm13 = vcmask 97344  }
 0x2aa   : > { %427 = vst.msk [vmem:[#allocation2 + $0x149] sm:$0x1] %vm19627_vm3, %v19470_v27  ;;  %v2923_v47 = vpop.permute.xlu1 %2922  ;;  %v2925_v33 = vpop.permute.xlu0 %2924  ;;  %vm19635_vm3 = vmmov %vm19632_vm13 }
 0x2ab   : > { %428 = vst.msk [vmem:[#allocation2 + $0x161] sm:$0x1] %vm19605_vm0, %v19470_v27  ;;  %vm19640_vm0 = vcmask 195744  }
 0x2ac   : > { %429 = vst.msk [vmem:[#allocation2 + $0x179] sm:$0x1] %vm19628_vm9, %v19470_v27  ;;  %5438 = vrot.lane.b32.xlu1 %v19633_v39, %s14748_s13  ;;  %v14229_v39 = vld [vmem:[#allocation3 + $0x54] sm:$0xff]   ;;  %vm19641_vm9 = vmmov %vm19635_vm3 }
 0x2ad   : > { %430 = vst.msk [vmem:[#allocation2 + $0x191] sm:$0x1] %vm19629_vm1, %v19470_v27  ;;  %vm19646_vm1 = vmmov %vm19635_vm3 }
 0x2ae   : > { %2535 = vst.msk [vmem:[#allocation4 + $0x40] sm:$0xff] %vm386_vm4, %v14224_v21  ;;  %v14217_v21 = vld [vmem:[#allocation3 + $0x2c] ss:$0 sps:$4 sm:$0x11]   ;;  %v2939_v61 = vpop.permute.xlu1 %2938  ;;  %2534 = vst.msk [vmem:[#allocation4 + $0x38] sm:$0xff] %vm386_vm4, %v14229_v39 }
 0x2af   : > { %396 = vst.msk [vmem:[#allocation2] sm:$0x1] %vm19630_vm6, %v19470_v27  ;;  %vm19650_vm6 = vmmov %vm19640_vm0 }
 0x2b0   : > { %413 = vst.msk [vmem:[#allocation2 + $0x198] sm:$0x1] %vm19631_vm2, %v19470_v27  ;;  %v19634_v27 = vld [vmem:[#allocation65_spill] sm:$0xff]  ;;  %vm19653_vm2 = vsmask.f32 7424 }
 0x2b1   : > { %2966 = vst.msk [vmem:[#allocation4 + $0x28] sm:$0xff] %vm2960_vm10, %v2923_v47  ;;  %2967 = vst.msk [vmem:[#allocation4 + $0x30] sm:$0xff] %vm2960_vm10, %v2925_v33  ;;  %v5541_v47 = vsel %vm15577_vm15, %v19634_v27, %v16710_v23  ;;  %v19638_v27 = vshll.u32 %v16692_v46, 16 }
 0x2b2   : > { %3256 = vst.msk [vmem:[#allocation4 + $0x28] sm:$0xff] %vm19632_vm13, %v16588_v50  ;;  %v19636_v50 = vld [vmem:[#allocation42_spill] sm:$0xff]  ;;  %5542 = vst [vmem:[#allocation3 + $0x54] sm:$0xf] %v5541_v47  ;;  %v19642_v47 = vld [vmem:[#allocation60_spill] sm:$0xff]  ;;  %vm19660_vm13 = vcmask 1046528  }
 0x2b3   : > { %3433 = vst.msk [vmem:[#allocation4 + $0x28] sm:$0xff] %vm3427_vm7, %v16451_v5  ;;  %v19637_v33 = vrot.slane %v19636_v50, 4  ;;  %v16826_v23 = vrot.slane %v19638_v27, 1  ;;  %v19639_v5 = vld [vmem:[#allocation67_spill] sm:$0xff]  ;;  %v19644_v27 = vshrl.u32 %v16545_v14, 16  ;;  %v16856_v14 = vrot.slane %v5969_v0, 1 }
 0x2b4   : > { %3257 = vst.msk [vmem:[#allocation4 + $0x30] sm:$0xff] %vm19635_vm3, %v16595_v44  ;;  %v2941_v44 = vpop.permute.xlu0 %2940  ;;  %v6858_v0 = vshll.u32 %v14222_v58, 16  ;;  %v19659_v50 = vrot.slane %v16558_v29, 1  ;;  %vm19661_vm3 = vcmask 261344  }
 0x2b5   : > { %5436 = vrot.lane.b32.xlu0 %v19637_v33, %s14748_s13  ;;  %3866 = vst.msk [vmem:[#allocation4 + $0x28] sm:$0xff] %vm3860_vm11, %v16672_v32  ;;  %v14233_v32 = vld [vmem:[#allocation3 + $0xb4] sm:$0xff]   ;;  %v19643_v33 = vrot.slane %v19642_v47, 4  ;;  %v16858_v47 = vld [vmem:[#allocation3 + $0x24] sm:$0xfe]  }
 0x2b6   : > { %5543 = vst.msk [vmem:[#allocation3 + $0x58] sm:$0xf] %vm2282_vm14, %v19639_v5  ;;  %19648 = vst [vmem:[#allocation30_spill] sm:$0xff] %v16858_v47  ;;  %v16906_v47 = vld [vmem:[#allocation3 + $0x30] sm:$0xff]  }
 0x2b7   : > { %4155 = vst.msk [vmem:[#allocation4 + $0x28] sm:$0xff] %vm19640_vm0, %v16556_v24  ;;  %5442 = vrot.lane.b32.xlu1 %v19643_v33, %s14748_s13  ;;  %v5936_v24 = vor.u32 %v16574_v35, %v19644_v27  ;;  %v5974_v35 = vshll.u32 %v14217_v21, 16  ;;  %v16870_v27 = vld [vmem:[#allocation3 + $0x30] sm:$0xff]   ;;  %v19651_v21 = vld [vmem:[#allocation62_spill] sm:$0xff]  ;;  %vm19662_vm0 = vcmask 294144  }
 0x2b8   : > { %2974 = vst.msk [vmem:[#allocation4 + $0x68] sm:$0xff] %vm2960_vm10, %v2939_v61  ;;  %2975 = vst.msk [vmem:[#allocation4 + $0x70] sm:$0xff] %vm2960_vm10, %v2941_v44  ;;  %v19645_v61 = vshll.u32 %v16687_v7, 16  ;;  %v6853_v7 = vshll.u32 %v16808_v9, 16  ;;  %v4721_v33 = vpop.permute.xlu0 %4720  ;;  %v16882_v44 = vld [vmem:[#allocation3 + $0x24] sm:$0xfe]  }
 0x2b9   : > { %3264 = vst.msk [vmem:[#allocation4 + $0x68] sm:$0xff] %vm19641_vm9, %v16610_v45  ;;  %v19647_v45 = vld [vmem:[#allocation63_spill] sm:$0xff]  ;;  %v16886_v58 = vrot.slane %v5974_v35, 1  ;;  %v19658_v35 = vrot.slane %v16560_v43, 1  ;;  %vm19663_vm9 = vmmov %vm19653_vm2 }
 0x2ba   : > { %v16846_v5 = vrot.slane %v19645_v61, 1  ;;  %3441 = vst.msk [vmem:[#allocation4 + $0x68] sm:$0xff] %vm3427_vm7, %v16477_v3  ;;  %5440 = vrot.lane.b32.xlu0 %v19647_v45, %s14748_s13  ;;  %v16864_v3 = vpop.permute.xlu1 %3393  ;;  %v16874_v61 = vld [vmem:[#allocation3 + $0x2c] ss:$0 sps:$4 sm:$0x11]   ;;  %v19652_v45 = vld [vmem:[#allocation55_spill] sm:$0xff] }
 0x2bb   : > { %3265 = vst.msk [vmem:[#allocation4 + $0x70] sm:$0xff] %vm19646_vm1, %v16613_v49  ;;  %19649 = vst [vmem:[#allocation36_spill] sm:$0xff] %v16864_v3  ;;  %v16866_v49 = vld [vmem:[#allocation3 + $0x2c] ss:$0 sps:$4 sm:$0x11]   ;;  %5446 = vrot.lane.b32.xlu1 %v19651_v21, %s14748_s13  ;;  %v6364_v21 = vsel %vm19660_vm13, %v19659_v50, %v19658_v35  ;;  %v7754_v35 = vshll.u32 %v14235_v63, 16 }
 0x2bc   : > { %2542 = vst.msk [vmem:[#allocation4 + $0x78] sm:$0xff] %vm386_vm4, %v14233_v32  ;;  %v14228_v32 = vld [vmem:[#allocation3 + $0x38] ss:$0 sps:$4 sm:$0x11]   ;;  %v16913_v43 = vld [vmem:[#allocation3 + $0x30] sm:$0xfe]   ;;  %vm19664_vm1 = vmmov %vm19650_vm6 }
 0x2bd   : > { %3874 = vst.msk [vmem:[#allocation4 + $0x68] sm:$0xff] %vm3860_vm11, %v16694_v28  ;;  %v5941_v28 = vsel %vm19653_vm2, %v5936_v24, %v16590_v38  ;;  %v16895_v24 = vrot.slane %v6853_v7, 1  ;;  %v6870_v38 = vshll.u32 %v14228_v32, 16  ;;  %v14190_v50 = vld [vmem:[#allocation3 + $0xc] sm:$0xff]   ;;  %vm19666_vm2 = vmmov %vm19661_vm3 }
 0x2be   : > { %4163 = vst.msk [vmem:[#allocation4 + $0x68] sm:$0xff] %vm19650_vm6, %v16571_v19  ;;  %5444 = vrot.lane.b32.xlu0 %v19652_v45, %s14748_s13  ;;  %v16880_v39 = vpop.permute.xlu1 %3409  ;;  %v16884_v19 = vpop.permute.xlu0 %4736  ;;  %v19655_v45 = vshrl.u32 %v16563_v16, 16  ;;  %vm19665_vm6 = vcmask 228544   ;;  %vm19667_vm13 = vmmov %vm19666_vm2  ;;  %v14240_v7 = vld [vmem:[#allocation3 + $0x44] ss:$0 sps:$4 sm:$0x11]  }
 0x2bf   : > { %19654 = vst [vmem:[#allocation34_spill] sm:$0xff] %v16880_v39  ;;  %6122 = vrot.lane.b32.xlu1 %v5941_v28, %s14745_s24  ;;  %v19656_v39 = vld [vmem:[#allocation59_spill] sm:$0xff]  ;;  %v6865_v28 = vshll.u32 %v16870_v27, 16 }
 0x2c0   : > { %v5948_v34 = vor.u32 %v16599_v53, %v19655_v45  ;;  %v19657_v3 = vrot.slane %v19656_v39, 4  ;;  %v16908_v53 = vrot.slane %v6858_v0, 1  ;;  %v16922_v0 = vld [vmem:[#allocation3 + $0x38] ss:$0 sps:$4 sm:$0x11]  }
 0x2c1   : > { %v16927_v32 = vrot.slane %v6865_v28, 1  ;;  %v19668_v28 = vshrl.u32 %v16593_v40, 16 }
 0x2c2   : > { %5448 = vrot.lane.b32.xlu0 %v19657_v3, %s14748_s13  ;;  %v4719_v16 = vpop.permute.xlu1 %4718  ;;  %v3821_v39 = vpop.permute.xlu0 %3820  ;;  %v5953_v29 = vsel %vm19663_vm9, %v5948_v34, %v16606_v20  ;;  %v6863_v3 = vshrl.u32 %v16870_v27, 16  ;;  %v16934_v20 = vrot.slane %v6870_v38, 1  ;;  %vm19672_vm9 = vcmask 1046528   ;;  %s19685_s13 = smov 24  }
 0x2c3   : > { %4764 = vst.msk [vmem:[#allocation4 + $0x18] sm:$0xff] %vm19661_vm3, %v4719_v16  ;;  %6410 = vrot.lane.b32.xlu1 %v6364_v21, %s19483_s22  ;;  %v16930_v16 = vld [vmem:[#allocation3 + $0x3c] sm:$0xff]   ;;  %v16936_v21 = vld [vmem:[#allocation3 + $0x30] sm:$0xfe]   ;;  %v6832_v63 = vor.u32 %v16628_v54, %v19668_v28  ;;  %vm19669_vm3 = vmmov %vm19662_vm0  ;;  %v7747_v38 = vshrl.u32 %v16906_v47, 16 }
 0x2c4   : > { %5053 = vst.msk [vmem:[#allocation4 + $0x18] sm:$0xff] %vm19662_vm0, %v16626_v60  ;;  %v7749_v60 = vshll.u32 %v16906_v47, 16  ;;  %v16970_v28 = vld [vmem:[#allocation3 + $0x30] sm:$0xff]   ;;  %v14248_v54 = vld [vmem:[#allocation3 + $0x44] ss:$0 sps:$4 sm:$0x11]  }
 0x2c5   : > { %3865 = vst.msk [vmem:[#allocation4 + $0x20] sm:$0xff] %vm3860_vm11, %v3821_v39  ;;  %v16938_v39 = vld [vmem:[#allocation3 + $0x38] ss:$0 sps:$4 sm:$0x11]  }
 0x2c6   : > { %4154 = vst.msk [vmem:[#allocation4 + $0x20] sm:$0xff] %vm19664_vm1, %v16676_v15  ;;  %6124 = vrot.lane.b32.xlu0 %v5953_v29, %s14745_s24  ;;  %v4735_v34 = vpop.permute.xlu1 %4734  ;;  %v3837_v15 = vpop.permute.xlu0 %3836  ;;  %v17008_v29 = vld [vmem:[#allocation3 + $0x30] sm:$0xfe]  }
 0x2c7   : > { %4332 = vst.msk [vmem:[#allocation4 + $0x20] sm:$0xff] %vm19665_vm6, %v16536_v42  ;;  %6586 = vrot.lane.b32.xlu1 %v14190_v50, %s14750_s15  ;;  %v19670_v42 = vrot.slane %v16582_v26, 1  ;;  %v14244_v50 = vld [vmem:[#allocation3 + $0x38] ss:$0 sps:$4 sm:$0x11]  }
 0x2c8   : > { %4765 = vst.msk [vmem:[#allocation4 + $0x20] sm:$0xff] %vm19666_vm2, %v4721_v33  ;;  %v19671_v33 = vrot.slane %v16586_v25, 1 }
 0x2c9   : > { %4772 = vst.msk [vmem:[#allocation4 + $0x58] sm:$0xff] %vm19667_vm13, %v4735_v34  ;;  %v16964_v34 = vrot.slane %v7754_v35, 1  ;;  %vm19673_vm13 = vmmov %vm19665_vm6 }
 0x2ca   : > { %5054 = vst.msk [vmem:[#allocation4 + $0x20] sm:$0xff] %vm19669_vm3, %v16634_v31  ;;  %v6367_v40 = vsel %vm19672_vm9, %v19671_v33, %v19670_v42  ;;  %v14195_v31 = vld [vmem:[#allocation3 + $0x18] sm:$0xff]   ;;  %v4290_v25 = vpop.permute.xlu1 %4289  ;;  %vm19674_vm3 = vsmask.f32 7424  ;;  %v19675_v42 = vshrl.u32 %v16601_v4, 16  ;;  %vm19676_vm9 = vcmask 293888  }
 0x2cb   : > { %5061 = vst.msk [vmem:[#allocation4 + $0x58] sm:$0xff] %vm19662_vm0, %v16653_v1  ;;  %6412 = vrot.lane.b32.xlu0 %v6367_v40, %s19483_s22  ;;  %v16962_v1 = vrot.slane %v7749_v60, 1  ;;  %v6837_v60 = vsel %vm19674_vm3, %v6832_v63, %v16636_v52  ;;  %v5069_v35 = vld [vmem:[#allocation4 + $0x18] sm:$0xff]  ;;  %v16983_v40 = vld [vmem:[#allocation3 + $0x3c] sm:$0xfe]   ;;  %v5986_v33 = vshll.u32 %v14244_v50, 16 }
 0x2cc   : > { %3873 = vst.msk [vmem:[#allocation4 + $0x60] sm:$0xff] %vm3860_vm11, %v3837_v15  ;;  %v7761_v15 = vshll.u32 %v16930_v16, 16  ;;  %7018 = vrot.lane.b32.xlu1 %v6837_v60, %s19477_s12  ;;  %13774 = vmatmul.mubr.msk.bf16.gmra.mrb[20].mxu0 %vm19676_vm9, %v5069_v35  ;;  %v16990_v52 = vld [vmem:[#allocation3 + $0x44] ss:$0 sps:$4 sm:$0x11]   ;;  %v16992_v63 = vld [vmem:[#allocation3 + $0x3c] sm:$0xff]  }
 0x2cd   : > { %4162 = vst.msk [vmem:[#allocation4 + $0x60] sm:$0xff] %vm19664_vm1, %v16699_v17  ;;  %v16975_v17 = vpop.permute.xlu0 %4291  ;;  %v16995_v4 = vld [vmem:[#allocation3 + $0x38] ss:$0 sps:$4 sm:$0x11]   ;;  %vm19677_vm1 = vmmov %vm19665_vm6  ;;  %v19678_v35 = vrot.slane %v16620_v10, 1  ;;  %v17029_v10 = vrot.slane %v5986_v33, 1 }
 0x2ce   : > { %4340 = vst.msk [vmem:[#allocation4 + $0x60] sm:$0xff] %vm19665_vm6, %v16548_v13  ;;  %v6844_v13 = vor.u32 %v16643_v59, %v19675_v42  ;;  %v4306_v59 = vpop.permute.xlu1 %4305  ;;  %v5981_v42 = vshll.u32 %v16970_v28, 16  ;;  %vm19680_vm6 = vcmask 1046528   ;;  %v14200_v50 = vld [vmem:[#allocation3 + $0x18] sm:$0xff]   ;;  %v5991_v45 = vshrl.u32 %v16992_v63, 16 }
 0x2cf   : > { %4773 = vst.msk [vmem:[#allocation4 + $0x60] sm:$0xff] %vm19666_vm2, %v16884_v19  ;;  %6588 = vrot.lane.b32.xlu0 %v14195_v31, %s14750_s15  ;;  %vm19681_vm2 = vmmov %vm19674_vm3  ;;  %vm389_vm3 = vcmask 25600   ;;  %v19689_v33 = vshrl.u32 %v16692_v46, 16 }
 0x2d0   : > { %4333 = vst.msk [vmem:[#allocation4 + $0x28] sm:$0xff] %vm19673_vm13, %v4290_v25  ;;  %v7766_v25 = vshll.u32 %v14240_v7, 16  ;;  %v19679_v7 = vrot.slane %v16615_v55, 1  ;;  %v6849_v31 = vsel %vm19681_vm2, %v6844_v13, %v16647_v30  ;;  %vm19682_vm13 = vmmov %vm19676_vm9  ;;  %v5993_v55 = vshll.u32 %v16992_v63, 16 }
 0x2d1   : > { %5062 = vst.msk [vmem:[#allocation4 + $0x60] sm:$0xff] %vm19662_vm0, %v16658_v56  ;;  %v16999_v56 = vpop.permute.xlu0 %4307  ;;  %v5070_v60 = vld [vmem:[#allocation4 + $0x20] sm:$0xff]  ;;  %v19683_v30 = vshrl.u32 %v16632_v22, 16  ;;  %vm19688_vm0 = vmmov %vm19680_vm6  ;;  %v5960_v63 = vor.u32 %v16826_v23, %v19689_v33  ;;  %vm19692_vm9 = vcmask 24576   ;;  %v19695_v23 = vshrl.u32 %v16808_v9, 16 }
 0x2d2   : > { %4341 = vst.msk [vmem:[#allocation4 + $0x68] sm:$0xff] %vm19677_vm1, %v4306_v59  ;;  %v7260_v19 = vsel %vm19680_vm6, %v19679_v7, %v19678_v35  ;;  %13777 = vmatprep.mubr.msk.bf16.mxu0 %vm19682_vm13, %v5070_v60  ;;  %v17012_v59 = vrot.slane %v7761_v15, 1  ;;  %v17014_v26 = vrot.slane %v7766_v25, 1  ;;  %v5979_v60 = vshrl.u32 %v16970_v28, 16  ;;  %vm19693_vm1 = vmmov %vm19692_vm9 }
 0x2d3   : > { %7306 = vrot.lane.b32.xlu1 %v7260_v19, %s14751_s16  ;;  %7020 = vrot.lane.b32.xlu0 %v6849_v31, %s19477_s12  ;;  %v7728_v13 = vor.u32 %v16682_v2, %v19683_v30  ;;  %v17024_v19 = vpop.permute.xlu1 %4115  ;;  %v19684_v15 = vshrl.u32 %v16651_v36, 16  ;;  %v5983_v7 = vrot.slane %v5981_v42, 1  ;;  %v17032_v31 = vld [vmem:[#allocation3 + $0x3c] sm:$0xff]   ;;  %v5998_v35 = vshll.u32 %v14248_v54, 16  ;;  %vm19694_vm6 = vmmov %vm19681_vm2 }
 0x2d4   : > { %v19686_v36 = vrot.slane %v16649_v6, 1  ;;  %v19690_v42 = vshrl.u32 %v16705_v57, 16  ;;  %v5995_v54 = vrot.slane %v5993_v55, 1  ;;  %v14253_v2 = vld [vmem:[#allocation3 + $0x44] ss:$0 sps:$4 sm:$0x11]   ;;  %vm19698_vm2 = vmmov %vm19688_vm0 }
 0x2d5   : > { %v7740_v25 = vor.u32 %v16697_v11, %v19684_v15  ;;  %v3392_v22 = vpop.permute.xlu0 %3391  ;;  %v19687_v11 = vrot.slane %v16630_v37, 1  ;;  %v19691_v30 = vmov 0.0   ;;  %v14205_v6 = vld [vmem:[#allocation3 + $0x24] sm:$0xff]   ;;  %v17052_v37 = vld [vmem:[#allocation3 + $0x3c] sm:$0xfe]   ;;  %v7733_v57 = vsel %vm19694_vm6, %v7728_v13, %v16684_v8  ;;  %vm19699_vm13 = vmmov %vm19694_vm6 }
 0x2d6   : > { %3434 = vst.msk [vmem:[#allocation4 + $0x30] sm:$0xff] %vm3427_vm7, %v3392_v22  ;;  %v5972_v15 = vor.u32 %v16856_v14, %v19690_v42  ;;  %v6856_v14 = vor.u32 %v16895_v24, %v19695_v23  ;;  %v6877_v55 = vshll.u32 %v17032_v31, 16  ;;  %v19700_v8 = vrot.slane %v16670_v18, 1  ;;  %v19701_v13 = vld [vmem:[#allocation17_spill] sm:$0xff]  ;;  %v14257_v42 = vld [vmem:[#allocation3 + $0x48] sm:$0xff]  }
 0x2d7   : > { %7482 = vrot.lane.b32.xlu1 %v14200_v50, %s19685_s13  ;;  %v7263_v28 = vsel %vm19688_vm0, %v19687_v11, %v19686_v36  ;;  %390 = vst.msk [vmem:[#allocation2 + $0x10] sm:$0x3] %vm389_vm3, %v19691_v30  ;;  %394 = vst.msk [vmem:[#allocation2 + $0x1a8] sm:$0x3] %vm389_vm3, %v19691_v30  ;;  %v17058_v46 = vpop.permute.xlu1 %4131  ;;  %v19696_v36 = vrot.slane %v16664_v51, 1  ;;  %v19697_v11 = vrot.slane %v16660_v48, 1 }
 0x2d8   : > { %7308 = vrot.lane.b32.xlu0 %v7263_v28, %s14751_s16  ;;  %414 = vst.msk [vmem:[#allocation2 + $0x11] sm:$0x1] %vm19692_vm9, %v19691_v30  ;;  %v17065_v50 = vld [vmem:[#allocation3 + $0x44] ss:$0 sps:$4 sm:$0x11]   ;;  %v7745_v28 = vsel %vm19699_vm13, %v7740_v25, %v16701_v62  ;;  %v19702_v9 = vrot.slane %v19701_v13, 1  ;;  %vm19703_vm3 = vmmov %vm19688_vm0 }
 0x2d9   : > { %431 = vst.msk [vmem:[#allocation2 + $0x1a9] sm:$0x1] %vm19693_vm1, %v19691_v30  ;;  %v3408_v22 = vpop.permute.xlu0 %3407  ;;  %v8156_v30 = vsel %vm19698_vm2, %v19697_v11, %v19696_v36  ;;  %v6000_v33 = vrot.slane %v5998_v35, 1  ;;  %vm19704_vm0 = vmmov %vm19694_vm6  ;;  %v19705_v51 = vrot.slane %v16800_v41, 1  ;;  %v19706_v23 = vrot.slane %v16792_v12, 1 }
 0x2da   : > { %v8159_v24 = vsel %vm19703_vm3, %v19702_v9, %v19700_v8  ;;  %3442 = vst.msk [vmem:[#allocation4 + $0x70] sm:$0xff] %vm3427_vm7, %v3408_v22  ;;  %v5965_v48 = vsel %vm19704_vm0, %v5960_v63, %v16846_v5  ;;  %vm19707_vm9 = vmmov %vm19698_vm2  ;;  %v6882_v35 = vshll.u32 %v14253_v2, 16  ;;  %v14255_v25 = vld [vmem:[#allocation3 + $0x3c] sm:$0xfe]   ;;  %v6868_v5 = vor.u32 %v16927_v32, %v6863_v3  ;;  %v19710_v2 = vld [vmem:[#allocation30_spill] sm:$0xff] }
 0x2db   : > { %7914 = vrot.lane.b32.xlu1 %v7733_v57, %s14747_s29  ;;  %v17089_v62 = vsel %vm19707_vm9, %v19706_v23, %v19705_v51  ;;  %vm19708_vm1 = vmmov %vm19704_vm0  ;;  %v14258_v36 = vld [vmem:[#allocation3 + $0x50] ss:$0 sps:$4 sm:$0x11]   ;;  %v7752_v12 = vor.u32 %v16962_v1, %v7747_v38  ;;  %v6875_v41 = vshrl.u32 %v17032_v31, 16  ;;  %v6889_v63 = vshll.u32 %v14257_v42, 16  ;;  %v17103_v57 = vpop.permute.xlu1 %3216 }
 0x2dc   : > { %v17093_v18 = vsel %vm19708_vm1, %v5972_v15, %v16886_v58  ;;  %7484 = vrot.lane.b32.xlu0 %v14205_v6, %s19685_s13  ;;  %v19709_v58 = vrot.slane %v16866_v49, 1  ;;  %v19711_v15 = vrot.slane %v19710_v2, 1  ;;  %vm19712_vm6 = vmmov %vm19698_vm2  ;;  %v6377_v47 = vrot.slane %v17052_v37, 1 }
 0x2dd   : > { %vm19713_vm2 = vmmov %vm19704_vm0  ;;  %v6879_v3 = vrot.slane %v6877_v55, 1  ;;  %v17117_v32 = vpop.permute.xlu0 %3218  ;;  %v19714_v38 = vrot.slane %v16874_v61, 1  ;;  %v19715_v1 = vrot.slane %v16882_v44, 1  ;;  %v19717_v31 = vshrl.u32 %v16930_v16, 16  ;;  %v17131_v61 = vld [vmem:[#allocation3 + $0x48] sm:$0xfe]  }
 0x2de   : > { %v17110_v22 = vsel %vm19712_vm6, %v19711_v15, %v19709_v58  ;;  %v17114_v27 = vsel %vm19713_vm2, %v6856_v14, %v16908_v53  ;;  %vm19716_vm13 = vmmov %vm19703_vm3  ;;  %v5984_v11 = vor.u32 %v5983_v7, %v5979_v60  ;;  %v6378_v53 = vrot.slane %v17065_v50, 1  ;;  %v14256_v14 = vld [vmem:[#allocation3 + $0x44] ss:$0 sps:$4 sm:$0x11]   ;;  %v17133_v44 = vld [vmem:[#allocation3 + $0x48] sm:$0xff]  }
 0x2df   : > { %v17124_v49 = vsel %vm19716_vm13, %v19715_v1, %v19714_v38  ;;  %v7764_v6 = vor.u32 %v17012_v59, %v19717_v31  ;;  %8202 = vrot.lane.b32.xlu1 %v8156_v30, %s14752_s30  ;;  %v5996_v37 = vor.u32 %v5995_v54, %v5991_v45  ;;  %v6884_v55 = vrot.slane %v6882_v35, 1  ;;  %vm19718_vm3 = vmmov %vm19704_vm0  ;;  %v17151_v50 = vld [vmem:[#allocation3 + $0x50] ss:$0 sps:$4 sm:$0x11]   ;;  %v936_v31 = vld [vmem:[#allocation2 + $0x18] sm:$0xff] }
 0x2e0   : > { %v7270_v8 = vrot.slane %v14255_v25, 1  ;;  %v6891_v13 = vrot.slane %v6889_v63, 1  ;;  %7916 = vrot.lane.b32.xlu0 %v7745_v28, %s14747_s29  ;;  %v17138_v16 = vsel %vm19718_vm3, %v6868_v5, %v16934_v20  ;;  %v19719_v59 = vrot.slane %v16922_v0, 1  ;;  %vm19721_vm0 = vmmov %vm19712_vm6  ;;  %v1515_v30 = vld [vmem:[%s19382_s1] sm:$0x3]  ;;  %v17156_v20 = vpop.permute.xlu1 %3232 }
 0x2e1   : > { %v19720_v60 = vrot.slane %v16913_v43, 1  ;;  %vm19722_vm9 = vmmov %vm19708_vm1  ;;  %v6894_v54 = vshll.u32 %v14258_v36, 16  ;;  %v19723_v0 = vrot.slane %v16938_v39, 1  ;;  %v19724_v43 = vrot.slane %v16936_v21, 1  ;;  %v17167_v23 = vpop.permute.xlu0 %5013 }
 0x2e2   : > { %v17149_v45 = vsel %vm19722_vm9, %v7752_v12, %v16964_v34  ;;  %vm19725_vm1 = vmmov %vm19721_vm0  ;;  %v6880_v9 = vor.u32 %v6879_v3, %v6875_v41  ;;  %v6887_v51 = vshrl.u32 %v14257_v42, 16  ;;  %vm19726_vm6 = vcmask 1041408   ;;  %v14263_v5 = vld [vmem:[#allocation3 + $0x50] ss:$0 sps:$4 sm:$0x11]  }
 0x2e3   : > { %v17145_v7 = vsel %vm19721_vm0, %v19720_v60, %v19719_v59  ;;  %v17163_v28 = vsel %vm19725_vm1, %v19724_v43, %v19723_v0  ;;  %13885 = vmatprep.subr.msk.bf16.mxu1 %vm19726_vm6, %v1515_v30  ;;  %vm19727_vm2 = vmmov %vm19726_vm6  ;;  %v19729_v25 = vrot.slane %v16990_v52, 1  ;;  %v19730_v39 = vrot.slane %v16983_v40, 1  ;;  %8204 = vrot.lane.b32.xlu1 %v8159_v24, %s14752_s30  ;;  %v941_v0 = vld [vmem:[#allocation2 + $0x40] sm:$0x3] }
 0x2e4   : > { %v1572_v34 = vsel %vm19727_vm2, %v1515_v30, 0  ;;  %vm19728_vm13 = vmmov %vm19718_vm3  ;;  %v7271_v36 = vrot.slane %v14256_v14, 1  ;;  %v19733_v12 = vrot.slane %v16995_v4, 1  ;;  %v6892_v41 = vor.u32 %v6891_v13, %v6887_v51  ;;  %6126 = vrot.lane.b32.xlu0 %v5965_v48, %s14745_s24  ;;  %v17201_v15 = vpop.permute.xlu1 %5011  ;;  %v890_v48 = vld [vmem:[#allocation2 + $0x10] sm:$0x3] }
 0x2e5   : > { %v17171_v35 = vsel %vm19728_vm13, %v7764_v6, %v17014_v26  ;;  %vm19731_vm3 = vmmov %vm19721_vm0  ;;  %13730 = vmatpush3.bf16.msra.mxu1 %v1572_v34  ;;  %v19734_v26 = vrot.slane %v17008_v29, 1  ;;  %v7773_v63 = vshll.u32 %v17133_v44, 16  ;;  %v6896_v24 = vrot.slane %v6894_v54, 1  ;;  %v889_v29 = vld [vmem:[#allocation2 + $0x8] sm:$0xff]  ;;  %v17210_v6 = vpop.permute.xlu0 %5029  ;;  %v17213_v13 = vld [vmem:[#allocation2 + $0x30] sm:$0xff] }
 0x2e6   : > { %v17178_v21 = vsel %vm19731_vm3, %v19730_v39, %v19729_v25  ;;  %vm19732_vm0 = vmmov %vm19722_vm9  ;;  %v7778_v2 = vshll.u32 %v14263_v5, 16  ;;  %v1035_v54 = vld [vmem:[#allocation2 + $0x40] sm:$0x3]  ;;  %v893_v30 = vld [vmem:[#allocation2 + $0x28] sm:$0x3] }
 0x2e7   : > { %v17182_v42 = vsel %vm19732_vm0, %v5984_v11, %v17029_v10  ;;  %vm19735_vm9 = vmmov %vm19725_vm1  ;;  %v888_v10 = vld [vmem:[#allocation2] sm:$0xff]  ;;  %v7775_v1 = vrot.slane %v7773_v63, 1  ;;  %v7771_v11 = vshrl.u32 %v17133_v44, 16  ;;  %6414 = vrot.lane.b32.xlu1 %v17089_v62, %s19483_s22  ;;  %v17220_v59 = vsel %vm19732_vm0, %v6892_v41, %v6896_v24  ;;  %v17230_v25 = vld [vmem:[#allocation2 + $0x48] sm:$0xff] }
 0x2e8   : > { %v17190_v52 = vsel %vm19735_vm9, %v19734_v26, %v19733_v12  ;;  %vm19736_vm1 = vmmov %vm19732_vm0  ;;  %v984_v14 = vadd.f32 %v936_v31, %v888_v10  ;;  %19741 = vst [vmem:[#allocation40_spill] sm:$0xff] %v17220_v59  ;;  %v987_v44 = vadd.f32 %v17213_v13, %v936_v31  ;;  %6128 = vrot.lane.b32.xlu0 %v17093_v18, %s14745_s24  ;;  %v17232_v39 = vld [vmem:[#allocation2 + $0x50] sm:$0xff]  ;;  %v17234_v5 = vpop.permute.xlu1 %5027 }
 0x2e9   : > { %v17193_v40 = vsel %vm19736_vm1, %v5996_v37, %v6000_v33  ;;  %vm19737_vm6 = vmmov %vm19731_vm3  ;;  %v989_v34 = vadd.f32 %v941_v0, %v893_v30  ;;  %v7776_v12 = vor.u32 %v7775_v1, %v7771_v11  ;;  %v17238_v63 = vpop.permute.xlu0 %4113  ;;  %v14266_v1 = vld [vmem:[#allocation3 + $0x50] ss:$0 sps:$4 sm:$0x11]  }
 0x2ea   : > { %v17198_v58 = vsel %vm19737_vm6, %v6377_v47, %v6378_v53  ;;  %vm19738_vm2 = vmmov %vm19732_vm0  ;;  %v937_v47 = vld [vmem:[#allocation2 + $0x20] sm:$0xff]  ;;  %v938_v53 = vld [vmem:[#allocation2 + $0x28] sm:$0x3]  ;;  %v1081_v51 = vadd.f32 %v17213_v13, %v984_v14  ;;  %v1084_v41 = vadd.f32 %v17230_v25, %v987_v44 }
 0x2eb   : > { %v17204_v3 = vsel %vm19738_vm2, %v6880_v9, %v6884_v55  ;;  %vm19739_vm13 = vmmov %vm19731_vm3  ;;  %v985_v37 = vadd.f32 %v937_v47, %v889_v29  ;;  %v17215_v55 = vld [vmem:[#allocation2 + $0x38] sm:$0xff]  ;;  %vm1322_vm3 = vcmask 1045504   ;;  %v986_v60 = vadd.f32 %v938_v53, %v890_v48 }
 0x2ec   : > { %v17207_v33 = vsel %vm19739_vm13, %v7270_v8, %v7271_v36  ;;  %v14218_v8 = vld [vmem:[#allocation3 + $0x24] sm:$0xff]   ;;  %v988_v43 = vadd.f32 %v17215_v55, %v937_v47  ;;  %v17226_v9 = vrot.slane %v7778_v2, 1  ;;  %v1178_v10 = vrot.slane %v1081_v51, 1  ;;  %6416 = vrot.lane.b32.xlu0 %v17110_v22, %s19483_s22  ;;  %vm19742_vm9 = vmmov %vm19737_vm6  ;;  %v17247_v30 = vpop.permute.xlu1 %3826 }
 0x2ed   : > { %19740 = vst [vmem:[#allocation26_spill] sm:$0xff] %v17207_v33  ;;  %v1082_v62 = vadd.f32 %v17215_v55, %v985_v37  ;;  %v1038_v36 = vld [vmem:[#allocation2 + $0x58] sm:$0x3]  ;;  %v1083_v26 = vadd.f32 %v1035_v54, %v986_v60  ;;  %v1323_v2 = vrot.slane %v1081_v51, 2  ;;  %6590 = vrot.lane.b32.xlu1 %v14218_v8, %s14750_s15  ;;  %v1183_v14 = vrot.slane %v1084_v41, 1  ;;  %vm19743_vm1 = vmmov %vm19737_vm6 }
 0x2ee   : > { %v1085_v18 = vadd.f32 %v17232_v39, %v988_v43  ;;  %v17240_v48 = vld [vmem:[#allocation3 + $0x48] sm:$0xfe]   ;;  %v1086_v53 = vadd.f32 %v1038_v36, %v989_v34  ;;  %v1328_v54 = vrot.slane %v1084_v41, 2  ;;  %v14267_v34 = vld [vmem:[#allocation3 + $0x54] sm:$0xff]   ;;  %v17251_v36 = vpop.permute.xlu0 %4129  ;;  %vm19744_vm6 = vmmov %vm19743_vm1 }
 0x2ef   : > { %v1179_v24 = vrot.slane %v1082_v62, 1  ;;  %v1324_v29 = vrot.slane %v1082_v62, 2  ;;  %v1181_v31 = vrot.slane %v1083_v26, 1  ;;  %v1326_v47 = vrot.slane %v1083_v26, 2  ;;  %v14223_v26 = vld [vmem:[#allocation3 + $0x30] sm:$0xff]   ;;  %vm19745_vm2 = vmmov %vm19743_vm1 }
 0x2f0   : > { %v1184_v60 = vrot.slane %v1085_v18, 1  ;;  %v1186_v43 = vrot.slane %v1086_v53, 1  ;;  %v1331_v38 = vrot.slane %v1086_v53, 2  ;;  %6592 = vrot.lane.b32.xlu0 %v14223_v26, %s14750_s15  ;;  %vm19748_vm13 = vmmov %vm19743_vm1  ;;  %v19750_v26 = vld [vmem:[#allocation70_spill] sm:$0xff] }
 0x2f1   : > { %v1180_v11 = vsel %vm19742_vm9, %v1178_v10, %v1179_v24  ;;  %v1325_v37 = vsel %vm1322_vm3, %v1323_v2, %v1324_v29  ;;  %v1182_v0 = vsel %vm19743_vm1, %v1179_v24, %v1181_v31  ;;  %v1327_v8 = vsel %vm1322_vm3, %v1324_v29, %v1326_v47  ;;  %v14268_v2 = vld [vmem:[#allocation3 + $0x5c] ss:$0 sps:$4 sm:$0x11]   ;;  %7022 = vrot.lane.b32.xlu1 %v17114_v27, %s19477_s12  ;;  %v17258_v31 = vld [vmem:[#allocation3 + $0x48] sm:$0xff]  }
 0x2f2   : > { %v1290_v44 = vadd.f32 %v1180_v11, %v1081_v51  ;;  %v1291_v4 = vadd.f32 %v1182_v0, %v1082_v62  ;;  %v1185_v22 = vsel %vm19744_vm6, %v1183_v14, %v1184_v60  ;;  %v1329_v10 = vrot.slane %v1085_v18, 2  ;;  %v14269_v11 = vld [vmem:[#allocation3 + $0x54] sm:$0xfe]   ;;  %v17263_v0 = vpop.permute.xlu1 %3842 }
 0x2f3   : > { %v1187_v24 = vsel %vm19745_vm2, %v1184_v60, %v1186_v43  ;;  %v1292_v51 = vadd.f32 %v1185_v22, %v1084_v41  ;;  %v8166_v29 = vrot.slane %v17240_v48, 1  ;;  %v7783_v60 = vshrl.u32 %v14267_v34, 16  ;;  %v2929_v41 = vpop.permute.xlu0 %2928 }
 0x2f4   : > { %v1435_v59 = vadd.f32 %v1325_v37, %v1290_v44  ;;  %v1436_v47 = vadd.f32 %v1327_v8, %v1291_v4  ;;  %v1293_v62 = vadd.f32 %v1187_v24, %v1085_v18  ;;  %v1330_v14 = vsel %vm1322_vm3, %v1328_v54, %v1329_v10  ;;  %2969 = vst.msk [vmem:[#allocation4 + $0x40] sm:$0xff] %vm2960_vm10, %v2929_v41  ;;  %v14270_v54 = vld [vmem:[#allocation3 + $0x5c] ss:$0 sps:$4 sm:$0x11]  }
 0x2f5   : > { %v1332_v53 = vsel %vm1322_vm3, %v1329_v10, %v1331_v38  ;;  %v1437_v37 = vadd.f32 %v1330_v14, %v1292_v51  ;;  %v8167_v44 = vrot.slane %v14266_v1, 1  ;;  %v7785_v22 = vshll.u32 %v14267_v34, 16  ;;  %7310 = vrot.lane.b32.xlu1 %v17124_v49, %s14751_s16  ;;  %7024 = vrot.lane.b32.xlu0 %v17138_v16, %s19477_s12  ;;  %v14272_v24 = vld [vmem:[#allocation3 + $0x50] ss:$0 sps:$4 sm:$0x11]   ;;  %v19751_v51 = vld [vmem:[#allocation76_spill] sm:$0xff] }
 0x2f6   : > { %v1467_v27 = vmul.f32 0.11111111, %v1435_v59  ;;  %v1468_v43 = vmul.f32 0.11111111, %v1436_v47  ;;  %v1438_v48 = vadd.f32 %v1332_v53, %v1293_v62  ;;  %v7790_v33 = vshll.u32 %v14268_v2, 16 }
 0x2f7   : > { %v19746_v4 = vrot.slane %v17151_v50, 1  ;;  %v19747_v38 = vrot.slane %v17131_v61, 1  ;;  %v17277_v59 = vsel %vm19732_vm0, %v7776_v12, %v17226_v9  ;;  %v1469_v1 = vmul.f32 0.11111111, %v1437_v37  ;;  %v2927_v9 = vpop.permute.xlu1 %2926  ;;  %v14230_v12 = vld [vmem:[#allocation3 + $0x30] sm:$0xff]  }
 0x2f8   : > { %v8169_v8 = vrot.slane %v14269_v11, 1  ;;  %vm19749_vm9 = vcmask 97344   ;;  %v1499_v49 = vpack.c.bf16 %v1468_v43, %v1467_v27  ;;  %v1470_v50 = vmul.f32 0.11111111, %v1438_v48  ;;  %2968 = vst.msk [vmem:[#allocation4 + $0x38] sm:$0xff] %vm2960_vm10, %v2927_v9  ;;  %v19752_v27 = vld [vmem:[#allocation73_spill] sm:$0xff] }
 0x2f9   : > { %v17273_v18 = vsel %vm19748_vm13, %v19747_v38, %v19746_v4  ;;  %3259 = vst.msk [vmem:[#allocation4 + $0x40] sm:$0xff] %vm19749_vm9, %v17117_v32  ;;  %v7787_v34 = vrot.slane %v7785_v22, 1  ;;  %v990_v61 = vadd.f32 %v17230_v25, %v17213_v13  ;;  %v17288_v10 = vsel %vm19743_vm1, %v8166_v29, %v8167_v44  ;;  %v17296_v13 = vpop.permute.xlu0 %4724  ;;  %v896_v53 = vld [vmem:[#allocation2 + $0x40] sm:$0x3]  ;;  %v944_v11 = vld [vmem:[#allocation2 + $0x58] sm:$0x3]  ;;  %vm19754_vm2 = vmmov %vm19749_vm9  ;;  %7486 = vrot.lane.b32.xlu1 %v14230_v12, %s19685_s13 }
 0x2fa   : > { %3436 = vst.msk [vmem:[#allocation4 + $0x40] sm:$0xff] %vm3427_vm7, %v19750_v26  ;;  %v8170_v2 = vrot.slane %v14270_v54, 1  ;;  %v6005_v32 = vshll.u32 %v17258_v31, 16  ;;  %v991_v16 = vadd.f32 %v17232_v39, %v17215_v55  ;;  %13731 = vmatprep.mubr.msk.bf16.mxu1 %vm386_vm4, %v1499_v49  ;;  %v1500_v47 = vpack.c.bf16 %v1470_v50, %v1469_v1  ;;  %vm19755_vm13 = vmmov %vm19743_vm1  ;;  %v19756_v43 = vld [vmem:[#allocation68_spill] sm:$0xff]  ;;  %7312 = vrot.lane.b32.xlu0 %v17145_v7, %s14751_s16  ;;  %v899_v1 = vld [vmem:[#allocation2 + $0x58] sm:$0x3] }
 0x2fb   : > { %3869 = vst.msk [vmem:[#allocation4 + $0x40] sm:$0xff] %vm3860_vm11, %v19751_v51  ;;  %v7788_v62 = vor.u32 %v7787_v34, %v7783_v60  ;;  %v7792_v29 = vrot.slane %v7790_v33, 1  ;;  %v6003_v14 = vshrl.u32 %v17258_v31, 16  ;;  %vm19753_vm6 = vcmask 195744   ;;  %v17308_v60 = vld [vmem:[#allocation2 + $0x60] sm:$0xff]  ;;  %v17310_v33 = vld [vmem:[#allocation2 + $0x68] sm:$0xff]  ;;  %v2943_v7 = vpop.permute.xlu1 %2942 }
 0x2fc   : > { %4158 = vst.msk [vmem:[#allocation4 + $0x40] sm:$0xff] %vm19753_vm6, %v19752_v27  ;;  %v17306_v55 = vsel %vm19755_vm13, %v8169_v8, %v8170_v2  ;;  %v6007_v37 = vrot.slane %v6005_v32, 1  ;;  %v6010_v44 = vshll.u32 %v14272_v24, 16  ;;  %v992_v41 = vadd.f32 %v944_v11, %v896_v53  ;;  %v1041_v31 = vld [vmem:[#allocation2 + $0x70] sm:$0x3]  ;;  %v19758_v48 = vld [vmem:[#allocation36_spill] sm:$0xff]  ;;  %13732 = vmatmul.mubr.msk.bf16.vlgmr.msra.gmra.mrb[16].mxu1 %vm386_vm4, %v1500_v47 }
 0x2fd   : > { %3258 = vst.msk [vmem:[#allocation4 + $0x38] sm:$0xff] %vm19754_vm2, %v17103_v57  ;;  %vm19757_vm0 = vcmask 228544   ;;  %v14236_v57 = vld [vmem:[#allocation3 + $0x3c] sm:$0xff]   ;;  %vm19759_vm9 = vsmask.f32 7424  ;;  %v1087_v4 = vadd.f32 %v17308_v60, %v990_v61  ;;  %v1088_v38 = vadd.f32 %v17310_v33, %v991_v16  ;;  %v17324_v8 = vld [vmem:[#allocation2 + $0x78] sm:$0xff]  ;;  %v17339_v24 = vpop.permute.xlu0 %4740  ;;  %7918 = vrot.lane.b32.xlu1 %v17149_v45, %s14747_s29 }
 0x2fe   : > { %4336 = vst.msk [vmem:[#allocation4 + $0x40] sm:$0xff] %vm19757_vm0, %v19756_v43  ;;  %v17320_v22 = vsel %vm19759_vm9, %v7788_v62, %v7792_v29  ;;  %v947_v54 = vld [vmem:[#allocation2 + $0x70] sm:$0x3]  ;;  %v19760_v49 = vld [vmem:[#allocation74_spill] sm:$0xff]  ;;  %vm19761_vm1 = vcmask 261344   ;;  %v6008_v50 = vor.u32 %v6007_v37, %v6003_v14  ;;  %v6012_v34 = vrot.slane %v6010_v44, 1  ;;  %vm19766_vm13 = vmmov %vm19757_vm0  ;;  %7488 = vrot.lane.b32.xlu0 %v14236_v57, %s19685_s13 }
 0x2ff   : > { %3435 = vst.msk [vmem:[#allocation4 + $0x38] sm:$0xff] %vm3427_vm7, %v19758_v48  ;;  %v1089_v26 = vadd.f32 %v1041_v31, %v992_v41  ;;  %v993_v9 = vadd.f32 %v17308_v60, %v17230_v25  ;;  %v17332_v61 = vld [vmem:[#allocation2 + $0x80] sm:$0xff]  ;;  %v1044_v12 = vld [vmem:[#allocation2 + $0x88] sm:$0x3]  ;;  %vm19763_vm6 = vcmask 294144   ;;  %vm19764_vm2 = vcmask 195744  }
 0x300   : > { %4769 = vst.msk [vmem:[#allocation4 + $0x40] sm:$0xff] %vm19761_vm1, %v19760_v49  ;;  %v19762_v2 = vld [vmem:[#allocation71_spill] sm:$0xff]  ;;  %v1189_v32 = vrot.slane %v1088_v38, 1  ;;  %v1333_v16 = vrot.slane %v1087_v4, 2  ;;  %v1334_v51 = vrot.slane %v1088_v38, 2  ;;  %v19765_v47 = vld [vmem:[#allocation69_spill] sm:$0xff]  ;;  %v17348_v25 = vsel %vm19759_vm9, %v6008_v50, %v6012_v34  ;;  %vm19775_vm9 = vmmov %vm19761_vm1 }
 0x301   : > { %3868 = vst.msk [vmem:[#allocation4 + $0x38] sm:$0xff] %vm3860_vm11, %v17247_v30  ;;  %v1188_v30 = vrot.slane %v1087_v4, 1  ;;  %vm19767_vm0 = vcmask 97344   ;;  %v1336_v62 = vrot.slane %v1089_v26, 2  ;;  %v994_v29 = vadd.f32 %v17310_v33, %v17232_v39  ;;  %v14273_v14 = vld [vmem:[#allocation3 + $0x48] sm:$0xfe]   ;;  %v4723_v39 = vpop.permute.xlu1 %4722  ;;  %8206 = vrot.lane.b32.xlu1 %v17163_v28, %s14752_s30 }
 0x302   : > { %5058 = vst.msk [vmem:[#allocation4 + $0x40] sm:$0xff] %vm19763_vm6, %v19762_v2  ;;  %v19768_v53 = vld [vmem:[#allocation75_spill] sm:$0xff]  ;;  %v19769_v11 = vld [vmem:[#allocation34_spill] sm:$0xff]  ;;  %vm19770_vm6 = vcmask 1046528   ;;  %v1335_v45 = vsel %vm1322_vm3, %v1333_v16, %v1334_v51  ;;  %v995_v27 = vadd.f32 %v947_v54, %v899_v1  ;;  %v1090_v37 = vadd.f32 %v17324_v8, %v993_v9  ;;  %v19771_v41 = vld [vmem:[#allocation72_spill] sm:$0xff]  ;;  %v3825_v1 = vpop.permute.xlu0 %3824  ;;  %7920 = vrot.lane.b32.xlu0 %v17171_v35, %s14747_s29 }
 0x303   : > { %4157 = vst.msk [vmem:[#allocation4 + $0x38] sm:$0xff] %vm19764_vm2, %v17024_v19  ;;  %v1191_v19 = vrot.slane %v1089_v26, 1  ;;  %v14274_v44 = vld [vmem:[#allocation3 + $0x50] ss:$0 sps:$4 sm:$0x11]   ;;  %vm19772_vm2 = vcmask 294144   ;;  %v1337_v48 = vsel %vm1322_vm3, %v1334_v51, %v1336_v62  ;;  %v1091_v57 = vadd.f32 %v17332_v61, %v994_v29 }
 0x304   : > { %2976 = vst.msk [vmem:[#allocation4 + $0x78] sm:$0xff] %vm2960_vm10, %v2943_v7  ;;  %v17367_v49 = vld [vmem:[#allocation3 + $0x54] sm:$0xff]   ;;  %v1092_v7 = vadd.f32 %v1044_v12, %v995_v27  ;;  %v1193_v50 = vrot.slane %v1090_v37, 1  ;;  %v19776_v34 = vld [vmem:[#allocation50_spill] sm:$0xff]  ;;  %v6380_v9 = vrot.slane %v14273_v14, 1  ;;  %v17390_v62 = vld [vmem:[#allocation2 + $0x90] sm:$0xff] }
 0x305   : > { %4335 = vst.msk [vmem:[#allocation4 + $0x38] sm:$0xff] %vm19766_vm13, %v19765_v47  ;;  %vm19773_vm13 = vmmov %vm19770_vm6  ;;  %v1339_v26 = vrot.slane %v1091_v57, 2  ;;  %v14276_v2 = vld [vmem:[#allocation3 + $0x5c] ss:$0 sps:$4 sm:$0x11]   ;;  %v4739_v28 = vpop.permute.xlu1 %4738  ;;  %8208 = vrot.lane.b32.xlu1 %v17178_v21, %s14752_s30  ;;  %v996_v21 = vadd.f32 %v17324_v8, %v17308_v60 }
 0x306   : > { %3266 = vst.msk [vmem:[#allocation4 + $0x78] sm:$0xff] %vm19767_vm0, %v17156_v20  ;;  %v1190_v20 = vsel %vm19770_vm6, %v1188_v30, %v1189_v32  ;;  %v1192_v31 = vsel %vm19773_vm13, %v1189_v32, %v1191_v19  ;;  %vm19774_vm0 = vcmask 195744   ;;  %vm19778_vm6 = vmmov %vm19772_vm2  ;;  %v1196_v12 = vrot.slane %v1092_v7, 1  ;;  %v3841_v35 = vpop.permute.xlu0 %3840  ;;  %v14278_v27 = vld [vmem:[#allocation3 + $0x54] sm:$0xfe]   ;;  %6130 = vrot.lane.b32.xlu0 %v17182_v42, %s14745_s24  ;;  %v17418_v42 = vld [vmem:[#allocation2 + $0x98] sm:$0xff] }
 0x307   : > { %4768 = vst.msk [vmem:[#allocation4 + $0x38] sm:$0xff] %vm19761_vm1, %v19768_v53  ;;  %v1294_v43 = vadd.f32 %v1190_v20, %v1087_v4  ;;  %v1295_v54 = vadd.f32 %v1192_v31, %v1088_v38  ;;  %vm19777_vm1 = vcmask 228544   ;;  %v19779_v38 = vld [vmem:[#allocation54_spill] sm:$0xff]  ;;  %vm19781_vm13 = vmmov %vm19774_vm0  ;;  %v1341_v30 = vrot.slane %v1092_v7, 2  ;;  %v950_v7 = vld [vmem:[#allocation2 + $0x88] sm:$0x3] }
 0x308   : > { %3443 = vst.msk [vmem:[#allocation4 + $0x78] sm:$0xff] %vm3427_vm7, %v19769_v11  ;;  %v6381_v32 = vrot.slane %v14274_v44, 1  ;;  %v6015_v19 = vshrl.u32 %v17367_v49, 16  ;;  %v6017_v20 = vshll.u32 %v17367_v49, 16 }
 0x309   : > { %5057 = vst.msk [vmem:[#allocation4 + $0x38] sm:$0xff] %vm19772_vm2, %v19771_v41  ;;  %v1439_v4 = vadd.f32 %v1335_v45, %v1294_v43  ;;  %vm19780_vm2 = vmmov %vm19775_vm9  ;;  %v1342_v14 = vsel %vm1322_vm3, %v1339_v26, %v1341_v30  ;;  %v6022_v45 = vshll.u32 %v14276_v2, 16  ;;  %v14279_v44 = vld [vmem:[#allocation3 + $0x5c] ss:$0 sps:$4 sm:$0x11]   ;;  %v997_v41 = vadd.f32 %v17332_v61, %v17310_v33  ;;  %6418 = vrot.lane.b32.xlu1 %v17190_v52, %s19483_s22 }
 0x30a   : > { %3876 = vst.msk [vmem:[#allocation4 + $0x78] sm:$0xff] %vm3860_vm11, %v17263_v0  ;;  %v1338_v0 = vrot.slane %v1090_v37, 2  ;;  %3867 = vst.msk [vmem:[#allocation4 + $0x30] sm:$0xff] %vm3860_vm11, %v3825_v1  ;;  %v6019_v43 = vrot.slane %v6017_v20, 1  ;;  %v5401_v1 = vpop.permute.xlu0 %5400  ;;  %6132 = vrot.lane.b32.xlu0 %v17193_v40, %s14745_s24  ;;  %v999_v40 = vadd.f32 %v17390_v62, %v17324_v8  ;;  %v1000_v20 = vadd.f32 %v17418_v42, %v17332_v61 }
 0x30b   : > { %4165 = vst.msk [vmem:[#allocation4 + $0x78] sm:$0xff] %vm19774_vm0, %v17058_v46  ;;  %v1194_v46 = vrot.slane %v1091_v57, 1  ;;  %vm19782_vm0 = vmmov %vm19777_vm1  ;;  %v1471_v16 = vmul.f32 0.11111111, %v1439_v4  ;;  %v5558_v4 = vld [vmem:[#allocation3 + $0x74] sm:$0x1] }
 0x30c   : > { %4766 = vst.msk [vmem:[#allocation4 + $0x28] sm:$0xff] %vm19775_vm9, %v4723_v39  ;;  %vm19783_vm9 = vcmask 1046528   ;;  %v1340_v47 = vsel %vm1322_vm3, %v1338_v0, %v1339_v26  ;;  %v5403_v39 = vpop.permute.xlu1 %5402  ;;  %v17426_v0 = vld [vmem:[#allocation2 + $0xa8] sm:$0xff] }
 0x30d   : > { %4343 = vst.msk [vmem:[#allocation4 + $0x78] sm:$0xff] %vm19777_vm1, %v19776_v34  ;;  %v1195_v51 = vsel %vm19783_vm9, %v1193_v50, %v1194_v46  ;;  %vm19784_vm1 = vmmov %vm19780_vm2  ;;  %v1093_v50 = vadd.f32 %v17390_v62, %v996_v21 }
 0x30e   : > { %5055 = vst.msk [vmem:[#allocation4 + $0x28] sm:$0xff] %vm19778_vm6, %v17201_v15  ;;  %v1440_v15 = vadd.f32 %v1337_v48, %v1295_v54  ;;  %vm19785_vm6 = vmmov %vm19784_vm1  ;;  %v6383_v48 = vrot.slane %v14278_v27, 1  ;;  %6420 = vrot.lane.b32.xlu0 %v17198_v58, %s19483_s22 }
 0x30f   : > { %4776 = vst.msk [vmem:[#allocation4 + $0x78] sm:$0xff] %vm19780_vm2, %v19779_v38  ;;  %vm19786_vm2 = vmmov %vm19783_vm9  ;;  %v1047_v38 = vld [vmem:[#allocation2 + $0xa0] sm:$0x3]  ;;  %v1198_v30 = vrot.slane %v1093_v50, 1  ;;  %v1343_v52 = vrot.slane %v1093_v50, 2 }
 0x310   : > { %4156 = vst.msk [vmem:[#allocation4 + $0x30] sm:$0xff] %vm19781_vm13, %v17238_v63  ;;  %v1472_v63 = vmul.f32 0.11111111, %v1440_v15  ;;  %v1197_v29 = vsel %vm19786_vm2, %v1194_v46, %v1196_v12  ;;  %vm19787_vm13 = vcmask 294144   ;;  %vm19789_vm9 = vmmov %vm19786_vm2  ;;  %vm19792_vm2 = vcmask 261344   ;;  %v14249_v46 = vld [vmem:[#allocation3 + $0x3c] sm:$0xff]  }
 0x311   : > { %4334 = vst.msk [vmem:[#allocation4 + $0x30] sm:$0xff] %vm19782_vm0, %v16975_v17  ;;  %v1296_v17 = vadd.f32 %v1195_v51, %v1090_v37  ;;  %vm19788_vm0 = vmmov %vm19787_vm13  ;;  %v1297_v53 = vadd.f32 %v1197_v29, %v1091_v57  ;;  %v17405_v11 = vsel %vm19789_vm9, %v6380_v9, %v6381_v32  ;;  %v902_v57 = vld [vmem:[#allocation2 + $0x70] sm:$0x3]  ;;  %v6020_v9 = vor.u32 %v6019_v43, %v6015_v19  ;;  %v905_v15 = vld [vmem:[#allocation2 + $0x88] sm:$0x3]  ;;  %v5407_v51 = vpop.permute.xlu1 %5406 }
 0x312   : > { %4767 = vst.msk [vmem:[#allocation4 + $0x30] sm:$0xff] %vm19784_vm1, %v17296_v13  ;;  %v5554_v13 = vld [vmem:[#allocation3 + $0x6c] sm:$0xf]  ;;  %vm19790_vm1 = vcmask 195744   ;;  %v998_v2 = vadd.f32 %v950_v7, %v902_v57  ;;  %v1094_v12 = vadd.f32 %v17418_v42, %v997_v41  ;;  %v953_v32 = vld [vmem:[#allocation2 + $0xa0] sm:$0x3]  ;;  %v5559_v29 = vsel %vm15625_vm5, %v5407_v51, %v5558_v4  ;;  %6594 = vrot.lane.b32.xlu1 %v14249_v46, %s14750_s15 }
 0x313   : > { %4774 = vst.msk [vmem:[#allocation4 + $0x68] sm:$0xff] %vm19785_vm6, %v4739_v28  ;;  %v1441_v37 = vadd.f32 %v1340_v47, %v1296_v17  ;;  %vm19791_vm6 = vcmask 228544   ;;  %v1442_v31 = vadd.f32 %v1342_v14, %v1297_v53  ;;  %v5555_v60 = vsel %vm15577_vm15, %v5403_v39, %v5554_v13  ;;  %v17441_v28 = vld [vmem:[#allocation2 + $0xb0] sm:$0xff]  ;;  %v5405_v17 = vpop.permute.xlu0 %5404  ;;  %5560 = vst [vmem:[#allocation3 + $0x74] sm:$0x1] %v5559_v29 }
 0x314   : > { %5056 = vst.msk [vmem:[#allocation4 + $0x30] sm:$0xff] %vm19787_vm13, %v17167_v23  ;;  %v5551_v23 = vld [vmem:[#allocation3 + $0x68] sm:$0x1]  ;;  %vm19794_vm13 = vmmov %vm19788_vm0  ;;  %v1199_v13 = vrot.slane %v1094_v12, 1  ;;  %v1344_v53 = vrot.slane %v1094_v12, 2  ;;  %v1001_v27 = vadd.f32 %v953_v32, %v905_v15  ;;  %v1097_v21 = vadd.f32 %v17441_v28, %v1000_v20 }
 0x315   : > { %5063 = vst.msk [vmem:[#allocation4 + $0x68] sm:$0xff] %vm19788_vm0, %v17234_v5  ;;  %v1501_v5 = vpack.c.bf16 %v1472_v63, %v1471_v16  ;;  %v5071_v54 = vld [vmem:[#allocation4 + $0x28] sm:$0xff]  ;;  %v1473_v33 = vmul.f32 0.11111111, %v1441_v37  ;;  %5556 = vst [vmem:[#allocation3 + $0x6c] sm:$0xf] %v5555_v60  ;;  %v5411_v39 = vpop.permute.xlu1 %5410 }
 0x316   : > { %3875 = vst.msk [vmem:[#allocation4 + $0x70] sm:$0xff] %vm3860_vm11, %v3841_v35  ;;  %vm19796_vm0 = vcmask 293888   ;;  %v1474_v26 = vmul.f32 0.11111111, %v1442_v31  ;;  %v17443_v16 = vld [vmem:[#allocation3 + $0x54] sm:$0xff]   ;;  %v1095_v35 = vadd.f32 %v1047_v38, %v998_v2  ;;  %v14254_v37 = vld [vmem:[#allocation3 + $0x48] sm:$0xff]   ;;  %7026 = vrot.lane.b32.xlu1 %v17204_v3, %s19477_s12 }
 0x317   : > { %4164 = vst.msk [vmem:[#allocation4 + $0x70] sm:$0xff] %vm19790_vm1, %v17251_v36  ;;  %v6024_v36 = vrot.slane %v6022_v45, 1  ;;  %13735 = vmatprep.mubr.msk.bf16.mxu1 %vm386_vm4, %v1501_v5  ;;  %13778 = vmatmul.mubr.msk.bf16.gmra.mrb[24].mxu0 %vm19796_vm0, %v5071_v54  ;;  %vm19797_vm1 = vsmask.f32 7424  ;;  %v1050_v63 = vld [vmem:[#allocation2 + $0xb8] sm:$0x3]  ;;  %v5409_v60 = vpop.permute.xlu0 %5408 }
 0x318   : > { %4342 = vst.msk [vmem:[#allocation4 + $0x70] sm:$0xff] %vm19791_vm6, %v16999_v56  ;;  %v6384_v56 = vrot.slane %v14279_v44, 1  ;;  %v1502_v47 = vpack.c.bf16 %v1474_v26, %v1473_v33  ;;  %vm19798_vm6 = vmmov %vm19796_vm0  ;;  %v1201_v45 = vrot.slane %v1095_v35, 1  ;;  %v1346_v8 = vrot.slane %v1095_v35, 2  ;;  %v5561_v5 = vld [vmem:[#allocation3 + $0x78] sm:$0xf]  ;;  %6596 = vrot.lane.b32.xlu0 %v14254_v37, %s14750_s15 }
 0x319   : > { %4775 = vst.msk [vmem:[#allocation4 + $0x70] sm:$0xff] %vm19792_vm2, %v17339_v24  ;;  %v5552_v24 = vsel %vm15625_vm5, %v5401_v1, %v5551_v23  ;;  %v17446_v19 = vsel %vm19797_vm1, %v6020_v9, %v6024_v36  ;;  %v1096_v23 = vadd.f32 %v17426_v0, %v999_v40  ;;  %vm19799_vm2 = vmmov %vm19789_vm9  ;;  %v1345_v44 = vsel %vm1322_vm3, %v1343_v52, %v1344_v53  ;;  %v5074_v31 = vld [vmem:[#allocation4 + $0x40] sm:$0xff]  ;;  %v5073_v1 = vld [vmem:[#allocation4 + $0x38] sm:$0xff]  ;;  %v5415_v32 = vpop.permute.xlu1 %5414 }
 0x31a   : > { %5064 = vst.msk [vmem:[#allocation4 + $0x70] sm:$0xff] %vm19794_vm13, %v17210_v6  ;;  %5553 = vst [vmem:[#allocation3 + $0x68] sm:$0x1] %v5552_v24  ;;  %v17438_v6 = vsel %vm19789_vm9, %v6383_v48, %v6384_v56  ;;  %13736 = vmatmul.mubr.msk.bf16.gmra.mrb[20].mxu1 %vm386_vm4, %v1502_v47  ;;  %v1200_v61 = vsel %vm19799_vm2, %v1198_v30, %v1199_v13  ;;  %v6899_v41 = vshrl.u32 %v17443_v16, 16  ;;  %v1204_v56 = vrot.slane %v1097_v21, 1  ;;  %v17473_v2 = vld [vmem:[#allocation3 + $0x60] sm:$0xff]  }
 0x31b   : > { %v5072_v14 = vld [vmem:[#allocation4 + $0x30] sm:$0xff]  ;;  %5557 = vst.msk [vmem:[#allocation3 + $0x70] sm:$0xf] %vm2282_vm14, %v5405_v17  ;;  %vm19800_vm13 = vmmov %vm19799_vm2  ;;  %v1298_v36 = vadd.f32 %v1200_v61, %v1093_v50  ;;  %v1347_v48 = vsel %vm1322_vm3, %v1344_v53, %v1346_v8  ;;  %v1098_v58 = vadd.f32 %v1050_v63, %v1001_v27  ;;  %v14281_v57 = vld [vmem:[#allocation3 + $0x5c] ss:$0 sps:$4 sm:$0x11]   ;;  %v5562_v24 = vsel %vm15577_vm15, %v5409_v60, %v5561_v5  ;;  %v5413_v17 = vpop.permute.xlu0 %5412 }
 0x31c   : > { %13781 = vmatprep.mubr.msk.bf16.mxu0 %vm19798_vm6, %v5072_v14  ;;  %v1202_v43 = vsel %vm19800_vm13, %v1199_v13, %v1201_v45  ;;  %5564 = vst.msk [vmem:[#allocation3 + $0x7c] sm:$0xf] %vm2282_vm14, %v5411_v39  ;;  %v1203_v33 = vrot.slane %v1096_v23, 1  ;;  %v1348_v7 = vrot.slane %v1096_v23, 2  ;;  %v5568_v50 = vld [vmem:[#allocation3 + $0x84] sm:$0xf]  ;;  %vm19801_vm9 = vmmov %vm19796_vm0 }
 0x31d   : > { %v1299_v54 = vadd.f32 %v1202_v43, %v1094_v12  ;;  %v1443_v4 = vadd.f32 %v1345_v44, %v1298_v36  ;;  %v1206_v46 = vrot.slane %v1098_v58, 1  ;;  %v1349_v26 = vrot.slane %v1097_v21, 2  ;;  %v14283_v9 = vld [vmem:[#allocation3 + $0x54] sm:$0xfe]   ;;  %5563 = vst [vmem:[#allocation3 + $0x78] sm:$0xf] %v5562_v24  ;;  %vm19802_vm1 = vmmov %vm19799_vm2  ;;  %v5419_v60 = vpop.permute.xlu1 %5418 }
 0x31e   : > { %v1205_v15 = vsel %vm19802_vm1, %v1203_v33, %v1204_v56  ;;  %v1351_v12 = vrot.slane %v1098_v58, 2  ;;  %v6901_v3 = vshll.u32 %v17443_v16, 16  ;;  %v14284_v30 = vld [vmem:[#allocation3 + $0x5c] ss:$0 sps:$4 sm:$0x11]   ;;  %v14287_v52 = vld [vmem:[#allocation3] sm:$0xff]   ;;  %vm19803_vm6 = vmmov %vm19802_vm1  ;;  %v5569_v63 = vsel %vm15577_vm15, %v5415_v32, %v5568_v50 }
 0x31f   : > { %13782 = vmatmul.mubr.msk.bf16.gmra.mrb[28].mxu0 %vm19796_vm0, %v5073_v1  ;;  %v1444_v38 = vadd.f32 %v1347_v48, %v1299_v54  ;;  %v1475_v51 = vmul.f32 0.11111111, %v1443_v4  ;;  %v1207_v47 = vsel %vm19803_vm6, %v1204_v56, %v1206_v46  ;;  %v1300_v35 = vadd.f32 %v1205_v15, %v1096_v23  ;;  %v5565_v29 = vld [vmem:[#allocation3 + $0x80] sm:$0x1]  ;;  %5738 = vst.msk [vmem:[#allocation4] sm:$0xff] %vm386_vm4, %v14287_v52  ;;  %v19804_v45 = vld [vmem:[#allocation26_spill] sm:$0xff]  ;;  %v5417_v50 = vpop.permute.xlu0 %5416  ;;  %vm19806_vm2 = vmmov %vm19802_vm1 }
 0x320   : > { %13785 = vmatprep.mubr.msk.bf16.mxu0 %vm19801_vm9, %v5074_v31  ;;  %v1350_v40 = vsel %vm1322_vm3, %v1348_v7, %v1349_v26  ;;  %v1301_v13 = vadd.f32 %v1207_v47, %v1097_v21  ;;  %v1352_v53 = vsel %vm1322_vm3, %v1349_v26, %v1351_v12  ;;  %5570 = vst [vmem:[#allocation3 + $0x84] sm:$0xf] %v5569_v63  ;;  %v5572_v8 = vld [vmem:[#allocation3 + $0x8c] sm:$0x1]  ;;  %v6903_v5 = vrot.slane %v6901_v3, 1  ;;  %v19805_v44 = vld [vmem:[#allocation40_spill] sm:$0xff]  ;;  %vm19807_vm13 = vmmov %vm19796_vm0 }
 0x321   : > { %v1476_v14 = vmul.f32 0.11111111, %v1444_v38  ;;  %v5566_v20 = vsel %vm15625_vm5, %v5413_v17, %v5565_v29  ;;  %7314 = vrot.lane.b32.xlu1 %v19804_v45, %s14751_s16  ;;  %v14259_v27 = vld [vmem:[#allocation3 + $0x48] sm:$0xff]   ;;  %v1445_v23 = vadd.f32 %v1350_v40, %v1300_v35  ;;  %v6906_v37 = vshll.u32 %v14281_v57, 16  ;;  %7028 = vrot.lane.b32.xlu0 %v19805_v44, %s19477_s12  ;;  %v5075_v21 = vld [vmem:[#allocation4 + $0x48] sm:$0xff]  ;;  %v17491_v58 = vld [vmem:[#allocation2 + $0xc0] sm:$0xff]  ;;  %v5423_v63 = vpop.permute.xlu1 %5422 }
 0x322   : > { %v14286_v61 = vld [vmem:[#allocation3 + $0x68] ss:$0 sps:$4 sm:$0x11]   ;;  %5567 = vst [vmem:[#allocation3 + $0x80] sm:$0x1] %v5566_v20  ;;  %v1446_v31 = vadd.f32 %v1352_v53, %v1301_v13  ;;  %v7276_v43 = vrot.slane %v14283_v9, 1  ;;  %v6904_v33 = vor.u32 %v6903_v5, %v6899_v41  ;;  %v5573_v24 = vsel %vm15625_vm5, %v5419_v60, %v5572_v8  ;;  %vm19810_vm6 = vmmov %vm19806_vm2 }
 0x323   : > { %v1503_v39 = vpack.c.bf16 %v1476_v14, %v1475_v51  ;;  %v7277_v36 = vrot.slane %v14284_v30, 1  ;;  %v908_v48 = vld [vmem:[#allocation2 + $0xa0] sm:$0x3]  ;;  %v5076_v1 = vld [vmem:[#allocation4 + $0x50] sm:$0xff]  ;;  %v1477_v54 = vmul.f32 0.11111111, %v1445_v23  ;;  %v1002_v15 = vadd.f32 %v17426_v0, %v17390_v62  ;;  %v5421_v13 = vpop.permute.xlu0 %5420 }
 0x324   : > { %v6908_v57 = vrot.slane %v6906_v37, 1  ;;  %v6911_v56 = vshrl.u32 %v17473_v2, 16  ;;  %v956_v7 = vld [vmem:[#allocation2 + $0xb8] sm:$0x3]  ;;  %v1478_v4 = vmul.f32 0.11111111, %v1446_v31  ;;  %v1005_v62 = vadd.f32 %v17491_v58, %v17426_v0 }
 0x325   : > { %13739 = vmatprep.mubr.msk.bf16.mxu1 %vm386_vm4, %v1503_v39  ;;  %v17500_v46 = vsel %vm19806_vm2, %v7276_v43, %v7277_v36  ;;  %v6913_v26 = vshll.u32 %v17473_v2, 16  ;;  %v17503_v9 = vld [vmem:[#allocation2 + $0xc8] sm:$0xff]  ;;  %v1053_v16 = vld [vmem:[#allocation2 + $0xd0] sm:$0x3]  ;;  %5574 = vst [vmem:[#allocation3 + $0x8c] sm:$0x1] %v5573_v24  ;;  %7490 = vrot.lane.b32.xlu1 %v14259_v27, %s19685_s13  ;;  %v1003_v2 = vadd.f32 %v17441_v28, %v17418_v42  ;;  %v5427_v36 = vpop.permute.xlu1 %5426 }
 0x326   : > { %5571 = vst.msk [vmem:[#allocation3 + $0x88] sm:$0xf] %vm2282_vm14, %v5417_v50  ;;  %vm19808_vm0 = vsmask.f32 7424  ;;  %v6918_v38 = vshll.u32 %v14286_v61, 16  ;;  %v17515_v30 = vld [vmem:[#allocation2 + $0xd8] sm:$0xff]  ;;  %7316 = vrot.lane.b32.xlu0 %v17273_v18, %s14751_s16  ;;  %v1504_v51 = vpack.c.bf16 %v1478_v4, %v1477_v54  ;;  %v1004_v35 = vadd.f32 %v956_v7, %v908_v48 }
 0x327   : > { %13786 = vmatmul.mubr.msk.bf16.gmra.mrb[32].mxu0 %vm19807_vm13, %v5075_v21  ;;  %v17509_v41 = vsel %vm19808_vm0, %v6904_v33, %v6908_v57  ;;  %v911_v12 = vld [vmem:[#allocation2 + $0xb8] sm:$0x3]  ;;  %v959_v3 = vld [vmem:[#allocation2 + $0xd0] sm:$0x3]  ;;  %v5575_v52 = vld [vmem:[#allocation3 + $0x90] sm:$0xf]  ;;  %v1099_v29 = vadd.f32 %v17491_v58, %v1002_v15  ;;  %v1100_v17 = vadd.f32 %v17503_v9, %v1003_v2  ;;  %v1006_v18 = vadd.f32 %v17503_v9, %v17441_v28  ;;  %v5425_v33 = vpop.permute.xlu0 %5424 }
 0x328   : > { %13789 = vmatprep.mubr.msk.bf16.mxu0 %vm19801_vm9, %v5076_v1  ;;  %v14264_v32 = vld [vmem:[#allocation3 + $0x54] sm:$0xff]   ;;  %v6915_v47 = vrot.slane %v6913_v26, 1  ;;  %v14291_v40 = vld [vmem:[#allocation3 + $0xc] sm:$0xff]   ;;  %v6920_v42 = vrot.slane %v6918_v38, 1  ;;  %5578 = vst.msk [vmem:[#allocation3 + $0x94] sm:$0xf] %vm2282_vm14, %v5423_v63  ;;  %13740 = vmatmul.mubr.msk.bf16.gmra.mrb[24].mxu1 %vm386_vm4, %v1504_v51  ;;  %v1101_v20 = vadd.f32 %v1053_v16, %v1004_v35  ;;  %v1007_v0 = vadd.f32 %v959_v3, %v911_v12  ;;  %vm19809_vm1 = vmmov %vm19808_vm0 }
 0x329   : > { %v17526_v14 = vld [vmem:[#allocation2 + $0xe0] sm:$0xff]  ;;  %v1056_v45 = vld [vmem:[#allocation2 + $0xe8] sm:$0x3]  ;;  %v17531_v8 = vadd.f32 %v17515_v30, %v1005_v62  ;;  %5739 = vst.msk [vmem:[#allocation4 + $0x8] sm:$0xff] %vm386_vm4, %v14291_v40  ;;  %v5576_v27 = vsel %vm15577_vm15, %v5421_v13, %v5575_v52  ;;  %7922 = vrot.lane.b32.xlu1 %v17277_v59, %s14747_s29  ;;  %v5582_v28 = vld [vmem:[#allocation3 + $0x9c] sm:$0xf]  ;;  %v5431_v51 = vpop.permute.xlu1 %5430 }
 0x32a   : > { %v6916_v53 = vor.u32 %v6915_v47, %v6911_v56  ;;  %v1208_v23 = vrot.slane %v1099_v29, 1  ;;  %v1209_v5 = vrot.slane %v1100_v17, 1  ;;  %v1353_v37 = vrot.slane %v1099_v29, 2  ;;  %v17538_v61 = vld [vmem:[#allocation3 + $0x60] sm:$0xfe]   ;;  %7492 = vrot.lane.b32.xlu0 %v14264_v32, %s19685_s13  ;;  %v5077_v57 = vld [vmem:[#allocation4 + $0x58] sm:$0xff]  ;;  %vm19811_vm13 = vmmov %vm19801_vm9 }
 0x32b   : > { %5577 = vst [vmem:[#allocation3 + $0x90] sm:$0xf] %v5576_v27  ;;  %v5579_v44 = vld [vmem:[#allocation3 + $0x98] sm:$0x1]  ;;  %v1211_v39 = vrot.slane %v1101_v20, 1  ;;  %v1354_v31 = vrot.slane %v1100_v17, 2  ;;  %v1103_v59 = vadd.f32 %v17526_v14, %v1006_v18  ;;  %v1104_v60 = vadd.f32 %v1056_v45, %v1007_v0  ;;  %vm19812_vm0 = vmmov %vm19801_vm9 }
 0x32c   : > { %v17542_v21 = vsel %vm19809_vm1, %v6916_v53, %v6920_v42  ;;  %v1356_v43 = vrot.slane %v1101_v20, 2  ;;  %v1210_v48 = vsel %vm19810_vm6, %v1208_v23, %v1209_v5  ;;  %v1213_v1 = vrot.slane %v17531_v8, 1  ;;  %v5078_v56 = vld [vmem:[#allocation4 + $0x60] sm:$0xff]  ;;  %v5586_v26 = vld [vmem:[#allocation3 + $0xa4] sm:$0x1]  ;;  %vm19813_vm9 = vmmov %vm19806_vm2 }
 0x32d   : > { %v5583_v54 = vsel %vm15577_vm15, %v5427_v36, %v5582_v28  ;;  %v1212_v7 = vsel %vm19806_vm2, %v1209_v5, %v1211_v39  ;;  %v1302_v24 = vadd.f32 %v1210_v48, %v1099_v29  ;;  %v1355_v50 = vsel %vm1322_vm3, %v1353_v37, %v1354_v31  ;;  %8210 = vrot.lane.b32.xlu1 %v17288_v10, %s14752_s30  ;;  %v17557_v2 = vld [vmem:[#allocation3 + $0x60] sm:$0xff]   ;;  %v14290_v32 = vld [vmem:[#allocation3 + $0x68] ss:$0 sps:$4 sm:$0x11]   ;;  %vm19814_vm1 = vmmov %vm19806_vm2 }
 0x32e   : > { %5584 = vst [vmem:[#allocation3 + $0x9c] sm:$0xf] %v5583_v54  ;;  %v5580_v4 = vsel %vm15625_vm5, %v5425_v33, %v5579_v44  ;;  %v1303_v16 = vadd.f32 %v1212_v7, %v1100_v17  ;;  %v1357_v38 = vsel %vm1322_vm3, %v1354_v31, %v1356_v43  ;;  %v1214_v15 = vrot.slane %v1103_v59, 1  ;;  %7924 = vrot.lane.b32.xlu0 %v17320_v22, %s14747_s29  ;;  %v14293_v63 = vld [vmem:[#allocation3 + $0x68] ss:$0 sps:$4 sm:$0x11]   ;;  %v5429_v22 = vpop.permute.xlu0 %5428  ;;  %vm19815_vm6 = vmmov %vm19814_vm1 }
 0x32f   : > { %13790 = vmatmul.mubr.msk.bf16.gmra.mrb[36].mxu0 %vm19811_vm13, %v5077_v57  ;;  %5581 = vst [vmem:[#allocation3 + $0x98] sm:$0x1] %v5580_v4  ;;  %v1447_v12 = vadd.f32 %v1355_v50, %v1302_v24  ;;  %v1216_v3 = vrot.slane %v1104_v60, 1  ;;  %v1358_v52 = vrot.slane %v17531_v8, 2  ;;  %v1359_v10 = vrot.slane %v1103_v59, 2  ;;  %v5079_v23 = vld [vmem:[#allocation4 + $0x68] sm:$0xff]  ;;  %vm19816_vm2 = vmmov %vm19812_vm0 }
 0x330   : > { %13793 = vmatprep.mubr.msk.bf16.mxu0 %vm19812_vm0, %v5078_v56  ;;  %v1448_v47 = vadd.f32 %v1357_v38, %v1303_v16  ;;  %v1215_v35 = vsel %vm19813_vm9, %v1213_v1, %v1214_v15  ;;  %v1361_v62 = vrot.slane %v1104_v60, 2  ;;  %v7279_v40 = vrot.slane %v17538_v61, 1  ;;  %v914_v13 = vld [vmem:[#allocation2 + $0xd0] sm:$0x3]  ;;  %5585 = vst.msk [vmem:[#allocation3 + $0xa0] sm:$0xf] %vm2282_vm14, %v5429_v22  ;;  %vm19817_vm13 = vmmov %vm19812_vm0 }
 0x331   : > { %v5587_v42 = vsel %vm15625_vm5, %v5431_v51, %v5586_v26  ;;  %v1479_v29 = vmul.f32 0.11111111, %v1447_v12  ;;  %v1217_v17 = vsel %vm19814_vm1, %v1214_v15, %v1216_v3  ;;  %v1304_v18 = vadd.f32 %v1215_v35, %v17531_v8  ;;  %8212 = vrot.lane.b32.xlu1 %v17306_v55, %s14752_s30  ;;  %v962_v27 = vld [vmem:[#allocation2 + $0xe8] sm:$0x3]  ;;  %v5589_v28 = vld [vmem:[#allocation3 + $0xa8] sm:$0xf]  ;;  %v5435_v55 = vpop.permute.xlu1 %5434  ;;  %vm19819_vm9 = vmmov %vm19814_vm1 }
 0x332   : > { %5588 = vst [vmem:[#allocation3 + $0xa4] sm:$0x1] %v5587_v42  ;;  %v1480_v53 = vmul.f32 0.11111111, %v1448_v47  ;;  %v1305_v20 = vadd.f32 %v1217_v17, %v1103_v59  ;;  %v1360_v0 = vsel %vm1322_vm3, %v1358_v52, %v1359_v10  ;;  %v1362_v45 = vsel %vm1322_vm3, %v1359_v10, %v1361_v62  ;;  %6134 = vrot.lane.b32.xlu0 %v17348_v25, %s14745_s24  ;;  %v17578_v44 = vld [vmem:[#allocation2 + $0xf0] sm:$0xff]  ;;  %v17582_v48 = vld [vmem:[#allocation2 + $0xf8] sm:$0xff]  ;;  %v5433_v59 = vpop.permute.xlu0 %5432 }
 0x333   : > { %v1449_v8 = vadd.f32 %v1360_v0, %v1304_v18  ;;  %v7280_v5 = vrot.slane %v14290_v32, 1  ;;  %v7795_v37 = vshrl.u32 %v17557_v2, 16  ;;  %v7797_v61 = vshll.u32 %v17557_v2, 16  ;;  %v17584_v25 = vld [vmem:[#allocation3 + $0x60] sm:$0xfe]   ;;  %v5080_v60 = vld [vmem:[#allocation4 + $0x70] sm:$0xff] }
 0x334   : > { %v1505_v39 = vpack.c.bf16 %v1480_v53, %v1479_v29  ;;  %v1450_v31 = vadd.f32 %v1362_v45, %v1305_v20  ;;  %v7802_v43 = vshll.u32 %v14293_v63, 16  ;;  %v1008_v36 = vadd.f32 %v17515_v30, %v17491_v58  ;;  %5592 = vst.msk [vmem:[#allocation3 + $0xac] sm:$0xf] %vm2282_vm14, %v5435_v55  ;;  %v1059_v56 = vld [vmem:[#allocation2 + $0x100] sm:$0x3]  ;;  %v14277_v24 = vld [vmem:[#allocation3 + $0x54] sm:$0xff]  }
 0x335   : > { %v1481_v1 = vmul.f32 0.11111111, %v1449_v8  ;;  %v17588_v54 = vsel %vm19815_vm6, %v7279_v40, %v7280_v5  ;;  %v7799_v33 = vrot.slane %v7797_v61, 1  ;;  %v1009_v57 = vadd.f32 %v17526_v14, %v17503_v9  ;;  %6422 = vrot.lane.b32.xlu1 %v17405_v11, %s19483_s22  ;;  %v5596_v7 = vld [vmem:[#allocation3 + $0xb4] sm:$0xf]  ;;  %v17597_v16 = vld [vmem:[#allocation2 + $0x108] sm:$0xff]  ;;  %v5439_v3 = vpop.permute.xlu1 %5438  ;;  %vm19820_vm6 = vmmov %vm19814_vm1 }
 0x336   : > { %v5590_v58 = vsel %vm15577_vm15, %v5433_v59, %v5589_v28  ;;  %v1482_v50 = vmul.f32 0.11111111, %v1450_v31  ;;  %v7804_v4 = vrot.slane %v7802_v43, 1  ;;  %v1010_v26 = vadd.f32 %v962_v27, %v914_v13  ;;  %6136 = vrot.lane.b32.xlu0 %v17446_v19, %s14745_s24  ;;  %v5593_v9 = vld [vmem:[#allocation3 + $0xb0] sm:$0x1]  ;;  %v17604_v2 = vld [vmem:[#allocation2 + $0x110] sm:$0xff]  ;;  %13743 = vmatprep.mubr.msk.bf16.mxu1 %vm386_vm4, %v1505_v39  ;;  %v5437_v62 = vpop.permute.xlu0 %5436 }
 0x337   : > { %13794 = vmatmul.mubr.msk.bf16.gmra.mrb[40].mxu0 %vm19816_vm2, %v5079_v23  ;;  %5591 = vst [vmem:[#allocation3 + $0xa8] sm:$0xf] %v5590_v58  ;;  %v7800_v38 = vor.u32 %v7799_v33, %v7795_v37  ;;  %v1105_v15 = vadd.f32 %v17578_v44, %v1008_v36  ;;  %v1106_v11 = vadd.f32 %v17582_v48, %v1009_v57  ;;  %v8172_v12 = vrot.slane %v17584_v25, 1  ;;  %v917_v32 = vld [vmem:[#allocation2 + $0xe8] sm:$0x3]  ;;  %v17628_v37 = vld [vmem:[#allocation3 + $0x6c] sm:$0xff]   ;;  %vm19821_vm2 = vmmov %vm19814_vm1 }
 0x338   : > { %13797 = vmatprep.mubr.msk.bf16.mxu0 %vm19817_vm13, %v5080_v60  ;;  %v1506_v52 = vpack.c.bf16 %v1482_v50, %v1481_v1  ;;  %v1107_v10 = vadd.f32 %v1059_v56, %v1010_v26  ;;  %v965_v51 = vld [vmem:[#allocation2 + $0x100] sm:$0x3]  ;;  %v1011_v19 = vadd.f32 %v17578_v44, %v17515_v30  ;;  %v1012_v47 = vadd.f32 %v17582_v48, %v17526_v14  ;;  %v5600_v29 = vld [vmem:[#allocation3 + $0xbc] sm:$0x1]  ;;  %v1062_v18 = vld [vmem:[#allocation2 + $0x118] sm:$0x3] }
 0x339   : > { %v5597_v35 = vsel %vm15577_vm15, %v5439_v3, %v5596_v7  ;;  %vm19818_vm0 = vsmask.f32 7424  ;;  %v1218_v63 = vrot.slane %v1105_v15, 1  ;;  %v1219_v42 = vrot.slane %v1106_v11, 1  ;;  %6598 = vrot.lane.b32.xlu1 %v14277_v24, %s14750_s15  ;;  %v5443_v27 = vpop.permute.xlu1 %5442  ;;  %v14282_v55 = vld [vmem:[#allocation3 + $0x60] sm:$0xff]  }
 0x33a   : > { %v17615_v40 = vsel %vm19818_vm0, %v7800_v38, %v7804_v4  ;;  %5598 = vst [vmem:[#allocation3 + $0xb4] sm:$0xf] %v5597_v35  ;;  %v5594_v22 = vsel %vm15625_vm5, %v5437_v62, %v5593_v9  ;;  %13744 = vmatmul.mubr.msk.bf16.gmra.mrb[28].mxu1 %vm386_vm4, %v1506_v52  ;;  %v1221_v30 = vrot.slane %v1107_v10, 1  ;;  %v1363_v14 = vrot.slane %v1105_v15, 2  ;;  %6424 = vrot.lane.b32.xlu0 %v17438_v6, %s19483_s22  ;;  %v5441_v61 = vpop.permute.xlu0 %5440  ;;  %v17636_v57 = vld [vmem:[#allocation3 + $0x60] sm:$0xff]   ;;  %vm19825_vm13 = vmmov %vm19818_vm0 }
 0x33b   : > { %v1364_v17 = vrot.slane %v1106_v11, 2  ;;  %5595 = vst [vmem:[#allocation3 + $0xb0] sm:$0x1] %v5594_v22  ;;  %v1220_v13 = vsel %vm19819_vm9, %v1218_v63, %v1219_v42  ;;  %v1366_v53 = vrot.slane %v1107_v10, 2  ;;  %v1013_v20 = vadd.f32 %v965_v51, %v917_v32  ;;  %5599 = vst.msk [vmem:[#allocation3 + $0xb8] sm:$0xf] %vm2282_vm14, %v5441_v61 }
 0x33c   : > { %v1108_v0 = vadd.f32 %v17597_v16, %v1011_v19  ;;  %v14296_v45 = vld [vmem:[#allocation3 + $0x68] ss:$0 sps:$4 sm:$0x11]   ;;  %v1222_v28 = vsel %vm19814_vm1, %v1219_v42, %v1221_v30  ;;  %v1306_v23 = vadd.f32 %v1220_v13, %v1105_v15  ;;  %v1109_v5 = vadd.f32 %v17604_v2, %v1012_v47  ;;  %v14298_v33 = vld [vmem:[#allocation3 + $0x74] ss:$0 sps:$4 sm:$0x11]   ;;  %vm19826_vm9 = vmmov %vm19814_vm1 }
 0x33d   : > { %v1365_v8 = vsel %vm1322_vm3, %v1363_v14, %v1364_v17  ;;  %v5601_v6 = vsel %vm15625_vm5, %v5443_v27, %v5600_v29  ;;  %v1307_v39 = vadd.f32 %v1222_v28, %v1106_v11  ;;  %v1367_v31 = vsel %vm1322_vm3, %v1364_v17, %v1366_v53  ;;  %7030 = vrot.lane.b32.xlu1 %v17509_v41, %s19477_s12  ;;  %v14300_v50 = vld [vmem:[#allocation3 + $0x74] ss:$0 sps:$4 sm:$0x11]   ;;  %v5447_v4 = vpop.permute.xlu1 %5446  ;;  %v14299_v15 = vld [vmem:[#allocation3 + $0x6c] sm:$0xfe]  }
 0x33e   : > { %v1110_v43 = vadd.f32 %v1062_v18, %v1013_v20  ;;  %5602 = vst [vmem:[#allocation3 + $0xbc] sm:$0x1] %v5601_v6  ;;  %v1451_v36 = vadd.f32 %v1365_v8, %v1306_v23  ;;  %v1223_v59 = vrot.slane %v1108_v0, 1  ;;  %v1224_v60 = vrot.slane %v1109_v5, 1  ;;  %6600 = vrot.lane.b32.xlu0 %v14282_v55, %s14750_s15  ;;  %5606 = vst.msk [vmem:[#allocation3 + $0xc4] sm:$0xf] %vm2282_vm14, %v5447_v4  ;;  %v5445_v52 = vpop.permute.xlu0 %5444 }
 0x33f   : > { %v1368_v1 = vrot.slane %v1108_v0, 2  ;;  %v1452_v56 = vadd.f32 %v1367_v31, %v1307_v39  ;;  %v1369_v7 = vrot.slane %v1109_v5, 2  ;;  %v8173_v38 = vrot.slane %v14296_v45, 1  ;;  %v14302_v11 = vld [vmem:[#allocation3 + $0x68] ss:$0 sps:$4 sm:$0x11]   ;;  %vm19822_vm14 = vmmov %vm19814_vm1 }
 0x340   : > { %v1226_v58 = vrot.slane %v1110_v43, 1  ;;  %v1371_v24 = vrot.slane %v1110_v43, 2  ;;  %v1483_v26 = vmul.f32 0.11111111, %v1451_v36  ;;  %v1225_v9 = vsel %vm19820_vm6, %v1223_v59, %v1224_v60  ;;  %v5603_v3 = vld [vmem:[#allocation3 + $0xc0] sm:$0xf]  ;;  %vm19828_vm6 = vmmov %vm19821_vm2 }
 0x341   : > { %v7807_v41 = vshrl.u32 %v17628_v37, 16  ;;  %v1484_v10 = vmul.f32 0.11111111, %v1452_v56  ;;  %v1308_v51 = vadd.f32 %v1225_v9, %v1108_v0  ;;  %v1370_v19 = vsel %vm1322_vm3, %v1368_v1, %v1369_v7  ;;  %7318 = vrot.lane.b32.xlu1 %v17500_v46, %s14751_s16  ;;  %v5607_v42 = vld [vmem:[#allocation3 + $0xc8] sm:$0x1]  ;;  %v6123_v17 = vpop.permute.xlu1 %6122  ;;  %v14288_v18 = vld [vmem:[#allocation3 + $0x60] sm:$0xff]  }
 0x342   : > { %v1227_v32 = vsel %vm19821_vm2, %v1224_v60, %v1226_v58  ;;  %v5604_v47 = vsel %vm15577_vm15, %v5445_v52, %v5603_v3  ;;  %v1372_v62 = vsel %vm1322_vm3, %v1369_v7, %v1371_v24  ;;  %v17652_v63 = vsel %vm19822_vm14, %v8172_v12, %v8173_v38  ;;  %7032 = vrot.lane.b32.xlu0 %v17542_v21, %s19477_s12  ;;  %v920_v14 = vld [vmem:[#allocation2 + $0x100] sm:$0x3]  ;;  %v968_v46 = vld [vmem:[#allocation2 + $0x118] sm:$0x3]  ;;  %v17658_v20 = vld [vmem:[#allocation3 + $0x60] sm:$0xfe]   ;;  %v5449_v21 = vpop.permute.xlu0 %5448 }
 0x343   : > { %v1309_v35 = vadd.f32 %v1227_v32, %v1109_v5  ;;  %5605 = vst [vmem:[#allocation3 + $0xc0] sm:$0xf] %v5604_v47  ;;  %v1507_v22 = vpack.c.bf16 %v1484_v10, %v1483_v26  ;;  %v1453_v29 = vadd.f32 %v1370_v19, %v1308_v51  ;;  %v7809_v49 = vshll.u32 %v17628_v37, 16  ;;  %6170 = vst.msk [vmem:[#allocation4] sm:$0xff] %vm2960_vm10, %v6123_v17  ;;  %v17663_v23 = vld [vmem:[#allocation2 + $0x120] sm:$0xff]  ;;  %v17671_v31 = vld [vmem:[#allocation2 + $0x128] sm:$0xff] }
 0x344   : > { %v7814_v30 = vshll.u32 %v14298_v33, 16  ;;  %v8175_v53 = vrot.slane %v14299_v15, 1  ;;  %v8176_v25 = vrot.slane %v14300_v50, 1  ;;  %v6027_v12 = vshrl.u32 %v17636_v57, 16  ;;  %v1065_v8 = vld [vmem:[#allocation2 + $0x130] sm:$0x3]  ;;  %vm19823_vm15 = vmmov %vm19814_vm1 }
 0x345   : > { %v1454_v13 = vadd.f32 %v1372_v62, %v1309_v35  ;;  %13747 = vmatprep.mubr.msk.bf16.mxu1 %vm386_vm4, %v1507_v22  ;;  %v1485_v0 = vmul.f32 0.11111111, %v1453_v29  ;;  %v7811_v45 = vrot.slane %v7809_v49, 1  ;;  %v6029_v28 = vshll.u32 %v17636_v57, 16  ;;  %v923_v5 = vld [vmem:[#allocation2 + $0x118] sm:$0x3]  ;;  %7494 = vrot.lane.b32.xlu1 %v14288_v18, %s19685_s13  ;;  %v6411_v33 = vpop.permute.xlu1 %6410  ;;  %vm19829_vm14 = vmmov %vm19821_vm2 }
 0x346   : > { %v7816_v27 = vrot.slane %v7814_v30, 1  ;;  %v971_v37 = vld [vmem:[#allocation2 + $0x130] sm:$0x3]  ;;  %v5608_v6 = vsel %vm15625_vm5, %v5449_v21, %v5607_v42  ;;  %v17669_v55 = vsel %vm19823_vm15, %v8175_v53, %v8176_v25  ;;  %v6034_v39 = vshll.u32 %v14302_v11, 16  ;;  %7320 = vrot.lane.b32.xlu0 %v17588_v54, %s14751_s16  ;;  %v14294_v43 = vld [vmem:[#allocation3 + $0x6c] sm:$0xff]   ;;  %v6125_v54 = vpop.permute.xlu0 %6124  ;;  %v14318_v49 = vld [vmem:[#allocation3 + $0x18] sm:$0xff]  }
 0x347   : > { %v1486_v61 = vmul.f32 0.11111111, %v1454_v13  ;;  %5609 = vst [vmem:[#allocation3 + $0xc8] sm:$0x1] %v5608_v6  ;;  %v7812_v36 = vor.u32 %v7811_v45, %v7807_v41  ;;  %v6031_v59 = vrot.slane %v6029_v28, 1  ;;  %v1014_v34 = vadd.f32 %v17597_v16, %v17578_v44  ;;  %v17683_v24 = vld [vmem:[#allocation2 + $0x138] sm:$0xff]  ;;  %vm19830_vm15 = vmmov %vm19821_vm2 }
 0x348   : > { %v1015_v60 = vadd.f32 %v17604_v2, %v17582_v48  ;;  %v17679_v1 = vld [vmem:[#allocation3 + $0x68] ss:$0 sps:$4 sm:$0x11]   ;;  %v6036_v56 = vrot.slane %v6034_v39, 1  ;;  %v1016_v58 = vadd.f32 %v968_v46, %v920_v14  ;;  %v1017_v7 = vadd.f32 %v17663_v23, %v17597_v16  ;;  %6171 = vst.msk [vmem:[#allocation4 + $0x8] sm:$0xff] %vm2960_vm10, %v6125_v54  ;;  %v17695_v38 = vld [vmem:[#allocation2 + $0x140] sm:$0xff] }
 0x349   : > { %v1508_v57 = vpack.c.bf16 %v1486_v61, %v1485_v0  ;;  %vm19824_vm5 = vcmask 97344   ;;  %v7817_v50 = vsel %vm19825_vm13, %v7812_v36, %v7816_v27  ;;  %v6032_v44 = vor.u32 %v6031_v59, %v6027_v12  ;;  %7926 = vrot.lane.b32.xlu1 %v17615_v40, %s14747_s29  ;;  %v1068_v41 = vld [vmem:[#allocation2 + $0x148] sm:$0x3]  ;;  %v14313_v40 = vld [vmem:[%s19388_s7] sm:$0xff]   ;;  %v6587_v32 = vpop.permute.xlu1 %6586  ;;  %5740 = vst.msk [vmem:[#allocation4 + $0x10] sm:$0xff] %vm386_vm4, %v14318_v49  ;;  %v17730_v54 = vld [vmem:[#allocation2 + $0x158] sm:$0xff] }
 0x34a   : > { %6458 = vst.msk [vmem:[#allocation4] sm:$0xff] %vm19824_vm5, %v6411_v33  ;;  %v1111_v4 = vadd.f32 %v17663_v23, %v1014_v34  ;;  %v1112_v48 = vadd.f32 %v17671_v31, %v1015_v60  ;;  %v1113_v16 = vadd.f32 %v1065_v8, %v1016_v58  ;;  %v1018_v26 = vadd.f32 %v17671_v31, %v17604_v2  ;;  %v6413_v35 = vpop.permute.xlu0 %6412  ;;  %vm19827_vm1 = vmmov %vm19824_vm5  ;;  %v14306_v18 = vld [vmem:[#allocation3 + $0x74] ss:$0 sps:$4 sm:$0x11]   ;;  %v17714_v13 = vld [vmem:[#allocation3 + $0x6c] sm:$0xfe]  }
 0x34b   : > { %13748 = vmatmul.mubr.msk.bf16.gmra.mrb[32].mxu1 %vm386_vm4, %v1508_v57  ;;  %v1019_v9 = vadd.f32 %v971_v37, %v923_v5  ;;  %v6386_v15 = vrot.slane %v17658_v20, 1  ;;  %7496 = vrot.lane.b32.xlu0 %v14294_v43, %s19685_s13  ;;  %v6037_v11 = vsel %vm19818_vm0, %v6032_v44, %v6036_v56  ;;  %v1114_v47 = vadd.f32 %v17683_v24, %v1017_v7  ;;  %v14305_v21 = vld [vmem:[#allocation3 + $0x6c] sm:$0xff]   ;;  %v14309_v39 = vld [vmem:[#allocation3 + $0x74] ss:$0 sps:$4 sm:$0x11]   ;;  %v17726_v33 = vld [vmem:[#allocation2 + $0x150] sm:$0xff] }
 0x34c   : > { %v1228_v3 = vrot.slane %v1111_v4, 1  ;;  %v1229_v52 = vrot.slane %v1112_v48, 1  ;;  %v1373_v10 = vrot.slane %v1111_v4, 2  ;;  %v1231_v51 = vrot.slane %v1113_v16, 1  ;;  %6634 = vst.msk [vmem:[#allocation4] sm:$0xff] %vm3427_vm7, %v6587_v32  ;;  %13801 = vmatprep.subr.bf16.mxu1 %v14313_v40  ;;  %vm19832_vm13 = vmmov %vm19821_vm2  ;;  %v14307_v49 = vld [vmem:[#allocation3 + $0x6c] sm:$0xff]  }
 0x34d   : > { %v1374_v2 = vrot.slane %v1112_v48, 2  ;;  %v1376_v19 = vrot.slane %v1113_v16, 2  ;;  %v1115_v42 = vadd.f32 %v17695_v38, %v1018_v26  ;;  %v1116_v22 = vadd.f32 %v1068_v41, %v1019_v9  ;;  %6459 = vst.msk [vmem:[#allocation4 + $0x8] sm:$0xff] %vm19827_vm1, %v6413_v35  ;;  %8214 = vrot.lane.b32.xlu1 %v17652_v63, %s14752_s30  ;;  %13802 = vmatpush3.bf16.msra.mxu1 %v14313_v40  ;;  %v7019_v63 = vpop.permute.xlu1 %7018  ;;  %v926_v60 = vld [vmem:[#allocation2 + $0x130] sm:$0x3]  ;;  %v17738_v40 = vld [vmem:[#allocation3 + $0x6c] sm:$0xff]  }
 0x34e   : > { %v1230_v62 = vsel %vm19826_vm9, %v1228_v3, %v1229_v52  ;;  %v6387_v29 = vrot.slane %v17679_v1, 1  ;;  %v1232_v30 = vsel %vm19828_vm6, %v1229_v52, %v1231_v51  ;;  %v1233_v25 = vrot.slane %v1114_v47, 1  ;;  %7066 = vst.msk [vmem:[#allocation4] sm:$0xff] %vm3860_vm11, %v7019_v63  ;;  %v6589_v8 = vpop.permute.xlu0 %6588  ;;  %v974_v1 = vld [vmem:[#allocation2 + $0x148] sm:$0x3]  ;;  %vm19835_vm6 = vmmov %vm19821_vm2 }
 0x34f   : > { %v1310_v14 = vadd.f32 %v1230_v62, %v1111_v4  ;;  %v1375_v46 = vsel %vm1322_vm3, %v1373_v10, %v1374_v2  ;;  %v1377_v17 = vsel %vm1322_vm3, %v1374_v2, %v1376_v19  ;;  %7928 = vrot.lane.b32.xlu0 %v7817_v50, %s14747_s29  ;;  %v1311_v53 = vadd.f32 %v1232_v30, %v1112_v48  ;;  %v1071_v16 = vld [vmem:[#allocation2 + $0x160] sm:$0x3]  ;;  %v929_v3 = vld [vmem:[#allocation2 + $0x148] sm:$0x3] }
 0x350   : > { %v1234_v12 = vrot.slane %v1115_v42, 1  ;;  %v1236_v20 = vrot.slane %v1116_v22, 1  ;;  %v1378_v45 = vrot.slane %v1114_v47, 2  ;;  %v1379_v27 = vrot.slane %v1115_v42, 2  ;;  %6635 = vst.msk [vmem:[#allocation4 + $0x8] sm:$0xff] %vm3427_vm7, %v6589_v8  ;;  %v17736_v10 = vld [vmem:[#allocation2 + $0x168] sm:$0xff] }
 0x351   : > { %v1455_v0 = vadd.f32 %v1375_v46, %v1310_v14  ;;  %v1381_v28 = vrot.slane %v1116_v22, 2  ;;  %v1456_v5 = vadd.f32 %v1377_v17, %v1311_v53  ;;  %v6388_v61 = vsel %vm19830_vm15, %v6386_v15, %v6387_v29  ;;  %8216 = vrot.lane.b32.xlu1 %v17669_v55, %s14752_s30  ;;  %v7307_v50 = vpop.permute.xlu1 %7306  ;;  %v977_v52 = vld [vmem:[#allocation2 + $0x160] sm:$0x3]  ;;  %v17755_v46 = vld [vmem:[#allocation2 + $0x170] sm:$0xff] }
 0x352   : > { %v1235_v37 = vsel %vm19821_vm2, %v1233_v25, %v1234_v12  ;;  %v1237_v6 = vsel %vm19829_vm14, %v1234_v12, %v1236_v20  ;;  %v1380_v34 = vsel %vm1322_vm3, %v1378_v45, %v1379_v27  ;;  %v6039_v58 = vshrl.u32 %v14305_v21, 16  ;;  %v7021_v26 = vpop.permute.xlu0 %7020  ;;  %v1074_v12 = vld [vmem:[#allocation2 + $0x178] sm:$0x3]  ;;  %vm19837_vm14 = vmmov %vm19835_vm6 }
 0x353   : > { %v1487_v43 = vmul.f32 0.11111111, %v1455_v0  ;;  %v1312_v36 = vadd.f32 %v1235_v37, %v1114_v47  ;;  %v1313_v59 = vadd.f32 %v1237_v6, %v1115_v42  ;;  %6138 = vrot.lane.b32.xlu0 %v6037_v11, %s14745_s24  ;;  %v1488_v57 = vmul.f32 0.11111111, %v1456_v5  ;;  %7067 = vst.msk [vmem:[#allocation4 + $0x8] sm:$0xff] %vm3860_vm11, %v7021_v26 }
 0x354   : > { %v1382_v56 = vsel %vm1322_vm3, %v1379_v27, %v1381_v28  ;;  %v6041_v7 = vshll.u32 %v14305_v21, 16  ;;  %v6046_v4 = vshll.u32 %v14306_v18, 16  ;;  %v6389_v48 = vrot.slane %v17714_v13, 1  ;;  %v14323_v28 = vld [vmem:[#allocation3 + $0x24] sm:$0xff]  }
 0x355   : > { %v1457_v55 = vadd.f32 %v1380_v34, %v1312_v36  ;;  %v1458_v44 = vadd.f32 %v1382_v56, %v1313_v59  ;;  %vm19831_vm5 = vcmask 195744   ;;  %v1509_v9 = vpack.c.bf16 %v1488_v57, %v1487_v43  ;;  %6426 = vrot.lane.b32.xlu1 %v6388_v61, %s19483_s22  ;;  %v7483_v29 = vpop.permute.xlu1 %7482  ;;  %v14314_v43 = vld [vmem:[#allocation3 + $0x6c] sm:$0xfe]   ;;  %v14315_v57 = vld [vmem:[#allocation3 + $0x74] ss:$0 sps:$4 sm:$0x11]  }
 0x356   : > { %7354 = vst.msk [vmem:[#allocation4] sm:$0xff] %vm19831_vm5, %v7307_v50  ;;  %v6043_v41 = vrot.slane %v6041_v7, 1  ;;  %v6390_v15 = vrot.slane %v14309_v39, 1  ;;  %v1020_v11 = vadd.f32 %v17683_v24, %v17663_v23  ;;  %v6048_v2 = vrot.slane %v6046_v4, 1  ;;  %v14319_v23 = vld [vmem:[%s19388_s7 + $0x8] sm:$0xff]   ;;  %v7309_v18 = vpop.permute.xlu0 %7308  ;;  %vm19834_vm1 = vmmov %vm19831_vm5 }
 0x357   : > { %v1489_v32 = vmul.f32 0.11111111, %v1457_v55  ;;  %v1490_v51 = vmul.f32 0.11111111, %v1458_v44  ;;  %v1021_v19 = vadd.f32 %v17695_v38, %v17671_v31  ;;  %13751 = vmatprep.mubr.msk.bf16.mxu1 %vm386_vm4, %v1509_v9  ;;  %v1022_v62 = vadd.f32 %v974_v1, %v926_v60  ;;  %13803 = vmatprep.subr.bf16.mxu1 %v14319_v23  ;;  %7355 = vst.msk [vmem:[#allocation4 + $0x8] sm:$0xff] %vm19834_vm1, %v7309_v18  ;;  %v14316_v55 = vld [vmem:[#allocation3 + $0x78] sm:$0xff]   ;;  %vm19839_vm5 = vmmov %vm19835_vm6 }
 0x358   : > { %v6044_v47 = vor.u32 %v6043_v41, %v6039_v58  ;;  %v6391_v35 = vsel %vm19832_vm13, %v6389_v48, %v6390_v15  ;;  %v1117_v42 = vadd.f32 %v17726_v33, %v1020_v11  ;;  %v1023_v31 = vadd.f32 %v17726_v33, %v17683_v24  ;;  %13804 = vmatpush3.bf16.msra.mxu1 %v14319_v23  ;;  %v14311_v39 = vld [vmem:[#allocation3 + $0x74] ss:$0 sps:$4 sm:$0x11]   ;;  %vm19840_vm13 = vmmov %vm19839_vm5  ;;  %v14312_v11 = vld [vmem:[#allocation3 + $0x78] sm:$0xff]  }
 0x359   : > { %v1510_v22 = vpack.c.bf16 %v1490_v51, %v1489_v32  ;;  %v1118_v30 = vadd.f32 %v17730_v54, %v1021_v19  ;;  %v1024_v14 = vadd.f32 %v17730_v54, %v17695_v38  ;;  %vm19833_vm9 = vcmask 228544   ;;  %6602 = vrot.lane.b32.xlu1 %v14307_v49, %s14750_s15  ;;  %v7915_v8 = vpop.permute.xlu1 %7914  ;;  %5741 = vst.msk [vmem:[#allocation4 + $0x18] sm:$0xff] %vm386_vm4, %v14323_v28  ;;  %v17785_v18 = vld [vmem:[%s19388_s7 + $0x10] ss:$0 sps:$4 sm:$0x33]   ;;  %vm19843_vm1 = vmmov %vm19839_vm5 }
 0x35a   : > { %v6049_v17 = vsel %vm19818_vm0, %v6044_v47, %v6048_v2  ;;  %7530 = vst.msk [vmem:[#allocation4] sm:$0xff] %vm19833_vm9, %v7483_v29  ;;  %v1119_v13 = vadd.f32 %v1071_v16, %v1022_v62  ;;  %v1238_v53 = vrot.slane %v1117_v42, 1  ;;  %v1383_v25 = vrot.slane %v1117_v42, 2  ;;  %v7485_v36 = vpop.permute.xlu0 %7484  ;;  %vm19838_vm15 = vmmov %vm19833_vm9  ;;  %v932_v47 = vld [vmem:[#allocation2 + $0x160] sm:$0x3] }
 0x35b   : > { %13752 = vmatmul.mubr.msk.bf16.gmra.mrb[36].mxu1 %vm386_vm4, %v1510_v22  ;;  %6140 = vrot.lane.b32.xlu0 %v6049_v17, %s14745_s24  ;;  %v1239_v24 = vrot.slane %v1118_v30, 1  ;;  %v1384_v38 = vrot.slane %v1118_v30, 2  ;;  %v1025_v20 = vadd.f32 %v977_v52, %v929_v3  ;;  %v1120_v21 = vadd.f32 %v17736_v10, %v1023_v31  ;;  %7531 = vst.msk [vmem:[#allocation4 + $0x8] sm:$0xff] %vm19838_vm15, %v7485_v36  ;;  %v14317_v52 = vld [vmem:[#allocation3 + $0x80] ss:$0 sps:$4 sm:$0x11]  }
 0x35c   : > { %v1241_v63 = vrot.slane %v1119_v13, 1  ;;  %v1386_v0 = vrot.slane %v1119_v13, 2  ;;  %v1121_v45 = vadd.f32 %v17755_v46, %v1024_v14  ;;  %v6923_v27 = vshrl.u32 %v17738_v40, 16  ;;  %v1075_v14 = vld [vmem:[#allocation2 + $0x180] sm:$0xff]  ;;  %v1077_v17 = vld [vmem:[#allocation2 + $0x190] sm:$0x3] }
 0x35d   : > { %v1240_v5 = vsel %vm19835_vm6, %v1238_v53, %v1239_v24  ;;  %v1385_v37 = vsel %vm1322_vm3, %v1383_v25, %v1384_v38  ;;  %v1122_v6 = vadd.f32 %v1074_v12, %v1025_v20  ;;  %v1243_v61 = vrot.slane %v1120_v21, 1  ;;  %v8203_v3 = vpop.permute.xlu1 %8202 }
 0x35e   : > { %vm19836_vm2 = vcmask 261344   ;;  %v1242_v59 = vsel %vm19837_vm14, %v1239_v24, %v1241_v63  ;;  %v1314_v34 = vadd.f32 %v1240_v5, %v1117_v42  ;;  %v1387_v60 = vsel %vm1322_vm3, %v1384_v38, %v1386_v0  ;;  %v7917_v23 = vpop.permute.xlu0 %7916  ;;  %v935_v38 = vld [vmem:[#allocation2 + $0x178] sm:$0x3] }
 0x35f   : > { %7962 = vst.msk [vmem:[#allocation4] sm:$0xff] %vm19836_vm2, %v7915_v8  ;;  %v1244_v1 = vrot.slane %v1121_v45, 1  ;;  %6428 = vrot.lane.b32.xlu0 %v6391_v35, %s19483_s22  ;;  %v1315_v56 = vadd.f32 %v1242_v59, %v1118_v30  ;;  %v1246_v58 = vrot.slane %v1122_v6, 1  ;;  %v1388_v7 = vrot.slane %v1120_v21, 2  ;;  %v980_v35 = vld [vmem:[#allocation2 + $0x178] sm:$0x3]  ;;  %vm19842_vm9 = vmmov %vm19836_vm2 }
 0x360   : > { %v1389_v50 = vrot.slane %v1121_v45, 2  ;;  %v1459_v44 = vadd.f32 %v1385_v37, %v1314_v34  ;;  %v1391_v48 = vrot.slane %v1122_v6, 2  ;;  %v6925_v16 = vshll.u32 %v17738_v40, 16  ;;  %7963 = vst.msk [vmem:[#allocation4 + $0x8] sm:$0xff] %vm19842_vm9, %v7917_v23  ;;  %v983_v6 = vld [vmem:[#allocation2 + $0x190] sm:$0x3] }
 0x361   : > { %v1245_v4 = vsel %vm19839_vm5, %v1243_v61, %v1244_v1  ;;  %v1460_v26 = vadd.f32 %v1387_v60, %v1315_v56  ;;  %v1247_v9 = vsel %vm19840_vm13, %v1244_v1, %v1246_v58  ;;  %vm19841_vm0 = vcmask 294144   ;;  %v8205_v24 = vpop.permute.xlu1 %8204  ;;  %v1078_v61 = vld [vmem:[#allocation2 + $0x198] sm:$0xff]  ;;  %v1079_v59 = vld [vmem:[#allocation2 + $0x1a0] sm:$0xff]  ;;  %v1080_v56 = vld [vmem:[#allocation2 + $0x1a8] sm:$0x3] }
 0x362   : > { %v1316_v41 = vadd.f32 %v1245_v4, %v1120_v21  ;;  %v1390_v15 = vsel %vm1322_vm3, %v1388_v7, %v1389_v50  ;;  %v1491_v32 = vmul.f32 0.11111111, %v1459_v44  ;;  %v1317_v51 = vadd.f32 %v1247_v9, %v1121_v45  ;;  %8250 = vst.msk [vmem:[#allocation4] sm:$0xff] %vm19841_vm0, %v8203_v3  ;;  %vm19844_vm6 = vmmov %vm19841_vm0  ;;  %v6127_v0 = vpop.permute.xlu0 %6126  ;;  %v14321_v44 = vld [vmem:[#allocation3 + $0x78] sm:$0xfe]  }
 0x363   : > { %v1392_v2 = vsel %vm1322_vm3, %v1389_v50, %v1391_v48  ;;  %v6927_v19 = vrot.slane %v6925_v16, 1  ;;  %v1492_v40 = vmul.f32 0.11111111, %v1460_v26  ;;  %v6930_v42 = vshll.u32 %v14311_v39, 16  ;;  %6604 = vrot.lane.b32.xlu0 %v14312_v11, %s14750_s15  ;;  %8251 = vst.msk [vmem:[#allocation4 + $0x8] sm:$0xff] %vm19844_vm6, %v8205_v24  ;;  %vm19849_vm13 = vmmov %vm19843_vm1 }
 0x364   : > { %v1461_v62 = vadd.f32 %v1390_v15, %v1316_v41  ;;  %v7282_v22 = vrot.slane %v14314_v43, 1  ;;  %v1462_v29 = vadd.f32 %v1392_v2, %v1317_v51  ;;  %v7283_v30 = vrot.slane %v14315_v57, 1  ;;  %6172 = vst.msk [vmem:[#allocation4 + $0x10] sm:$0xff] %vm2960_vm10, %v6127_v0  ;;  %v14322_v9 = vld [vmem:[#allocation3 + $0x80] ss:$0 sps:$4 sm:$0x11]   ;;  %vm19850_vm0 = vmmov %vm19843_vm1 }
 0x365   : > { %v6928_v49 = vor.u32 %v6927_v19, %v6923_v27  ;;  %v6935_v31 = vshrl.u32 %v14316_v55, 16  ;;  %v1511_v13 = vpack.c.bf16 %v1492_v40, %v1491_v32  ;;  %v6932_v25 = vrot.slane %v6930_v42, 1  ;;  %v1076_v27 = vld [vmem:[#allocation2 + $0x188] sm:$0xff]  ;;  %v6415_v58 = vpop.permute.xlu1 %6414  ;;  %v14326_v42 = vld [vmem:[#allocation3 + $0x80] ss:$0 sps:$4 sm:$0x11]   ;;  %vm19853_vm6 = vmmov %vm19850_vm0 }
 0x366   : > { %v1493_v53 = vmul.f32 0.11111111, %v1461_v62  ;;  %v6937_v12 = vshll.u32 %v14316_v55, 16  ;;  %v1494_v20 = vmul.f32 0.11111111, %v1462_v29  ;;  %v7284_v21 = vsel %vm19843_vm1, %v7282_v22, %v7283_v30  ;;  %v6129_v4 = vpop.permute.xlu0 %6128  ;;  %v14320_v2 = vld [vmem:[#allocation3 + $0x78] sm:$0xff]   ;;  %vm19852_vm1 = vmmov %vm19850_vm0 }
 0x367   : > { %v6942_v63 = vshll.u32 %v14317_v52, 16  ;;  %v1026_v45 = vadd.f32 %v17736_v10, %v17726_v33  ;;  %vm19845_vm2 = vcmask 1041408   ;;  %13755 = vmatprep.mubr.msk.bf16.mxu1 %vm386_vm4, %v1511_v13  ;;  %vm19846_vm14 = vsmask.f32 7424  ;;  %6173 = vst.msk [vmem:[#allocation4 + $0x18] sm:$0xff] %vm2960_vm10, %v6129_v4  ;;  %v17810_v19 = vld [vmem:[#allocation3 + $0x78] sm:$0xff]  }
 0x368   : > { %13887 = vmatprep.subr.msk.bf16.mxu1 %vm19845_vm2, %v17785_v18  ;;  %v6933_v28 = vsel %vm19846_vm14, %v6928_v49, %v6932_v25  ;;  %v6939_v8 = vrot.slane %v6937_v12, 1  ;;  %v1027_v5 = vadd.f32 %v17755_v46, %v17730_v54  ;;  %v1028_v37 = vadd.f32 %v980_v35, %v932_v47  ;;  %vm19848_vm5 = vmmov %vm19846_vm14  ;;  %v14350_v0 = vld [vmem:[#allocation3 + $0x30] sm:$0xff]  }
 0x369   : > { %v1512_v39 = vpack.c.bf16 %v1494_v20, %v1493_v53  ;;  %7034 = vrot.lane.b32.xlu1 %v6933_v28, %s19477_s12  ;;  %v6944_v33 = vrot.slane %v6942_v63, 1  ;;  %v1123_v43 = vadd.f32 %v1075_v14, %v1026_v45  ;;  %v1029_v36 = vadd.f32 %v1075_v14, %v17736_v10  ;;  %v6591_v23 = vpop.permute.xlu1 %6590  ;;  %v17820_v20 = vld [vmem:[#allocation3 + $0x80] ss:$0 sps:$4 sm:$0x11]   ;;  %vm19854_vm2 = vmmov %vm19850_vm0  ;;  %5742 = vst.msk [vmem:[#allocation4 + $0x20] sm:$0xff] %vm386_vm4, %v14350_v0 }
 0x36a   : > { %v6940_v34 = vor.u32 %v6939_v8, %v6935_v31  ;;  %v1124_v60 = vadd.f32 %v1076_v27, %v1027_v5  ;;  %v1125_v1 = vadd.f32 %v1077_v17, %v1028_v37  ;;  %v1030_v57 = vadd.f32 %v1076_v27, %v17755_v46  ;;  %v6417_v22 = vpop.permute.xlu0 %6416  ;;  %v14330_v5 = vld [vmem:[#allocation3 + $0x84] sm:$0xff]  }
 0x36b   : > { %13756 = vmatmul.mubr.msk.bf16.gmra.mrb[40].mxu1 %vm386_vm4, %v1512_v39  ;;  %v1248_v54 = vrot.slane %v1123_v43, 1  ;;  %v1393_v7 = vrot.slane %v1123_v43, 2  ;;  %v1031_v50 = vadd.f32 %v983_v6, %v935_v38  ;;  %v1126_v55 = vadd.f32 %v1078_v61, %v1029_v36  ;;  %v17824_v6 = vpop.f32.mrb[16].mxu0 }
 0x36c   : > { %vm19847_vm15 = vcmask 97344   ;;  %v6945_v10 = vsel %vm19848_vm5, %v6940_v34, %v6944_v33  ;;  %v1249_v48 = vrot.slane %v1124_v60, 1  ;;  %v1251_v16 = vrot.slane %v1125_v1, 1  ;;  %v17829_v36 = vpop.f32.mrb[17].mxu0 }
 0x36d   : > { %6460 = vst.msk [vmem:[#allocation4 + $0x10] sm:$0xff] %vm19847_vm15, %v6415_v58  ;;  %v1394_v26 = vrot.slane %v1124_v60, 2  ;;  %7322 = vrot.lane.b32.xlu1 %v7284_v21, %s14751_s16  ;;  %7036 = vrot.lane.b32.xlu0 %v6945_v10, %s19477_s12  ;;  %v1396_v46 = vrot.slane %v1125_v1, 2  ;;  %v1127_v41 = vadd.f32 %v1079_v59, %v1030_v57  ;;  %v1128_v15 = vadd.f32 %v1080_v56, %v1031_v50  ;;  %vm19851_vm9 = vmmov %vm19847_vm15  ;;  %v14331_v21 = vld [vmem:[#allocation3 + $0x8c] ss:$0 sps:$4 sm:$0x11]   ;;  %v7023_v63 = vpop.permute.xlu1 %7022 }
 0x36e   : > { %v1253_v11 = vrot.slane %v1126_v55, 1  ;;  %v1250_v3 = vsel %vm19849_vm13, %v1248_v54, %v1249_v48  ;;  %v1252_v52 = vsel %vm19850_vm0, %v1249_v48, %v1251_v16  ;;  %v1398_v51 = vrot.slane %v1126_v55, 2  ;;  %6636 = vst.msk [vmem:[#allocation4 + $0x10] sm:$0xff] %vm3427_vm7, %v6591_v23  ;;  %v6593_v37 = vpop.permute.xlu0 %6592  ;;  %v17834_v57 = vpop.f32.mrb[18].mxu0  ;;  %v14354_v56 = vld [vmem:[#allocation3 + $0x3c] sm:$0xff]   ;;  %vm19857_vm15 = vmmov %vm19848_vm5 }
 0x36f   : > { %v1395_v32 = vsel %vm1322_vm3, %v1393_v7, %v1394_v26  ;;  %v1318_v47 = vadd.f32 %v1250_v3, %v1123_v43  ;;  %v1319_v35 = vadd.f32 %v1252_v52, %v1124_v60  ;;  %v1397_v40 = vsel %vm1322_vm3, %v1394_v26, %v1396_v46  ;;  %6461 = vst.msk [vmem:[#allocation4 + $0x18] sm:$0xff] %vm19851_vm9, %v6417_v22  ;;  %v14328_v43 = vld [vmem:[#allocation3 + $0x78] sm:$0xfe]   ;;  %v14327_v60 = vld [vmem:[#allocation3 + $0x84] sm:$0xff]  }
 0x370   : > { %v1254_v62 = vrot.slane %v1127_v41, 1  ;;  %v1256_v29 = vrot.slane %v1128_v15, 1  ;;  %v1399_v49 = vrot.slane %v1127_v41, 2  ;;  %v1401_v30 = vrot.slane %v1128_v15, 2  ;;  %7068 = vst.msk [vmem:[#allocation4 + $0x10] sm:$0xff] %vm3860_vm11, %v7023_v63  ;;  %v14334_v16 = vld [vmem:[#allocation3 + $0x78] sm:$0xff]  }
 0x371   : > { %v7285_v31 = vrot.slane %v14321_v44, 1  ;;  %v1463_v14 = vadd.f32 %v1395_v32, %v1318_v47  ;;  %v1464_v17 = vadd.f32 %v1397_v40, %v1319_v35  ;;  %7498 = vrot.lane.b32.xlu1 %v14320_v2, %s19685_s13  ;;  %v7286_v53 = vrot.slane %v14322_v9, 1  ;;  %6637 = vst.msk [vmem:[#allocation4 + $0x18] sm:$0xff] %vm3427_vm7, %v6593_v37  ;;  %v17837_v44 = vpop.f32.mrb[19].mxu0  ;;  %v14332_v46 = vld [vmem:[#allocation3 + $0x84] sm:$0xfe]  }
 0x372   : > { %v1255_v13 = vsel %vm19852_vm1, %v1253_v11, %v1254_v62  ;;  %v1257_v25 = vsel %vm19853_vm6, %v1254_v62, %v1256_v29  ;;  %v1400_v24 = vsel %vm1322_vm3, %v1398_v51, %v1399_v49  ;;  %v1402_v38 = vsel %vm1322_vm3, %v1399_v49, %v1401_v30  ;;  %5743 = vst.msk [vmem:[#allocation4 + $0x28] sm:$0xff] %vm386_vm4, %v14354_v56  ;;  %v14338_v15 = vld [vmem:[#allocation3 + $0x84] sm:$0xff]   ;;  %v8266_v3 = vld [vmem:[#allocation4] sm:$0xff]  ;;  %v14333_v23 = vld [vmem:[#allocation3 + $0x8c] ss:$0 sps:$4 sm:$0x11]  }
 0x373   : > { %v1320_v12 = vadd.f32 %v1255_v13, %v1126_v55  ;;  %v1495_v45 = vmul.f32 0.11111111, %v1463_v14  ;;  %v1496_v27 = vmul.f32 0.11111111, %v1464_v17  ;;  %v1321_v28 = vadd.f32 %v1257_v25, %v1127_v41  ;;  %v7311_v55 = vpop.permute.xlu1 %7310  ;;  %v17852_v30 = vld [vmem:[#allocation3 + $0x84] sm:$0xff]   ;;  %vm19861_vm1 = vmmov %vm19857_vm15 }
 0x374   : > { %v7287_v8 = vsel %vm19854_vm2, %v7285_v31, %v7286_v53  ;;  %v7821_v39 = vshll.u32 %v17810_v19, 16  ;;  %v7826_v33 = vshll.u32 %v14326_v42, 16  ;;  %vm19855_vm3 = vcmask 1041408   ;;  %v14335_v41 = vld [vmem:[#allocation3 + $0x80] ss:$0 sps:$4 sm:$0x11]  }
 0x375   : > { %v1465_v61 = vadd.f32 %v1400_v24, %v1320_v12  ;;  %7324 = vrot.lane.b32.xlu0 %v7287_v8, %s14751_s16  ;;  %v1513_v59 = vpack.c.bf16 %v1496_v27, %v1495_v45  ;;  %v1466_v34 = vadd.f32 %v1402_v38, %v1321_v28  ;;  %v8358_v1 = vsel %vm19855_vm3, %v17785_v18, 0  ;;  %v7025_v18 = vpop.permute.xlu0 %7024  ;;  %v14336_v42 = vld [vmem:[#allocation3 + $0x78] sm:$0xfe]   ;;  %v14337_v49 = vld [vmem:[#allocation3 + $0x80] ss:$0 sps:$4 sm:$0x11]   ;;  %vm19864_vm3 = vmmov %vm19861_vm1 }
 0x376   : > { %v7819_v54 = vshrl.u32 %v17810_v19, 16  ;;  %v7823_v7 = vrot.slane %v7821_v39, 1  ;;  %v7828_v50 = vrot.slane %v7826_v33, 1  ;;  %13806 = vmatpush3.bf16.msra.mxu1 %v8358_v1  ;;  %v7833_v10 = vshll.u32 %v14330_v5, 16  ;;  %7069 = vst.msk [vmem:[#allocation4 + $0x18] sm:$0xff] %vm3860_vm11, %v7025_v18  ;;  %v8267_v53 = vld [vmem:[#allocation4 + $0x8] sm:$0xff] }
 0x377   : > { %v1497_v58 = vmul.f32 0.11111111, %v1465_v61  ;;  %13759 = vmatprep.mubr.msk.bf16.mxu1 %vm386_vm4, %v1513_v59  ;;  %v1498_v4 = vmul.f32 0.11111111, %v1466_v34  ;;  %v7838_v48 = vshll.u32 %v14331_v21, 16  ;;  %vm19856_vm14 = vcmask 195744   ;;  %v7487_v47 = vpop.permute.xlu1 %7486 }
 0x378   : > { %7356 = vst.msk [vmem:[#allocation4 + $0x10] sm:$0xff] %vm19856_vm14, %v7311_v55  ;;  %v7824_v26 = vor.u32 %v7823_v7, %v7819_v54  ;;  %v8179_v9 = vrot.slane %v17820_v20, 1  ;;  %v7831_v52 = vshrl.u32 %v14330_v5, 16  ;;  %v7835_v32 = vrot.slane %v7833_v10, 1  ;;  %vm19860_vm9 = vmmov %vm19856_vm14  ;;  %v17856_v21 = vld [vmem:[#allocation3 + $0x90] sm:$0xff]  }
 0x379   : > { %7500 = vrot.lane.b32.xlu0 %v14327_v60, %s19685_s13  ;;  %v1514_v11 = vpack.c.bf16 %v1498_v4, %v1497_v58  ;;  %v7840_v51 = vrot.slane %v7838_v48, 1  ;;  %v8178_v19 = vrot.slane %v14328_v43, 1  ;;  %v6053_v40 = vshll.u32 %v14334_v16, 16  ;;  %v7313_v22 = vpop.permute.xlu0 %7312  ;;  %v14339_v45 = vld [vmem:[#allocation3 + $0x8c] ss:$0 sps:$4 sm:$0x11]   ;;  %vm19865_vm14 = vmmov %vm19850_vm0 }
 0x37a   : > { %v7829_v2 = vsel %vm19857_vm15, %v7824_v26, %v7828_v50  ;;  %v7836_v35 = vor.u32 %v7835_v32, %v7831_v52  ;;  %v6058_v62 = vshll.u32 %v14335_v41, 16  ;;  %vm19858_vm5 = vcmask 228544   ;;  %7357 = vst.msk [vmem:[#allocation4 + $0x18] sm:$0xff] %vm19860_vm9, %v7313_v22  ;;  %v14341_v43 = vld [vmem:[#allocation3 + $0x84] sm:$0xfe]   ;;  %vm19870_vm9 = vmmov %vm19865_vm14  ;;  %v17879_v32 = vld [vmem:[#allocation3 + $0x90] sm:$0xff]  }
 0x37b   : > { %13760 = vmatmul.mubr.msk.bf16.gmra.mrb[44].mxu1 %vm386_vm4, %v1514_v11  ;;  %7930 = vrot.lane.b32.xlu1 %v7829_v2, %s14747_s29  ;;  %7532 = vst.msk [vmem:[#allocation4 + $0x10] sm:$0xff] %vm19858_vm5, %v7487_v47  ;;  %vm19859_vm13 = vcmask 293888   ;;  %v8180_v29 = vsel %vm19850_vm0, %v8178_v19, %v8179_v9  ;;  %v6051_v14 = vshrl.u32 %v14334_v16, 16  ;;  %v6055_v17 = vrot.slane %v6053_v40, 1  ;;  %v7919_v20 = vpop.permute.xlu1 %7918  ;;  %vm19863_vm2 = vmmov %vm19858_vm5  ;;  %v14340_v16 = vld [vmem:[#allocation3 + $0x84] sm:$0xff]   ;;  %v14345_v2 = vld [vmem:[#allocation3 + $0x90] sm:$0xff]  }
 0x37c   : > { %13807 = vmatprep.mubr.msk.bf16.mxu1 %vm19859_vm13, %v8266_v3  ;;  %v7841_v31 = vsel %vm19861_vm1, %v7836_v35, %v7840_v51  ;;  %v6060_v13 = vrot.slane %v6058_v62, 1  ;;  %v8181_v25 = vrot.slane %v14332_v46, 1  ;;  %v8182_v12 = vrot.slane %v14333_v23, 1  ;;  %v14342_v59 = vld [vmem:[#allocation3 + $0x8c] ss:$0 sps:$4 sm:$0x11]   ;;  %vm19866_vm15 = vmmov %vm19859_vm13 }
 0x37d   : > { %7932 = vrot.lane.b32.xlu0 %v7841_v31, %s14747_s29  ;;  %v6063_v24 = vshrl.u32 %v14338_v15, 16  ;;  %v6065_v38 = vshll.u32 %v14338_v15, 16  ;;  %v6056_v63 = vor.u32 %v6055_v17, %v6051_v14  ;;  %v6392_v0 = vrot.slane %v14336_v42, 1  ;;  %v7489_v27 = vpop.permute.xlu0 %7488  ;;  %vm19869_vm0 = vmmov %vm19861_vm1  ;;  %v14344_v4 = vld [vmem:[#allocation3 + $0x8c] ss:$0 sps:$4 sm:$0x11]  }
 0x37e   : > { %vm19862_vm6 = vcmask 261344   ;;  %7533 = vst.msk [vmem:[#allocation4 + $0x18] sm:$0xff] %vm19863_vm2, %v7489_v27  ;;  %v6949_v8 = vshll.u32 %v17852_v30, 16  ;;  %v6393_v37 = vrot.slane %v14337_v49, 1  ;;  %v6070_v61 = vshll.u32 %v14339_v45, 16  ;;  %v14360_v42 = vld [vmem:[#allocation3 + $0x9c] sm:$0xff]  }
 0x37f   : > { %8218 = vrot.lane.b32.xlu1 %v8180_v29, %s14752_s30  ;;  %7964 = vst.msk [vmem:[#allocation4 + $0x10] sm:$0xff] %vm19862_vm6, %v7919_v20  ;;  %v6067_v28 = vrot.slane %v6065_v38, 1  ;;  %v6061_v5 = vsel %vm19864_vm3, %v6056_v63, %v6060_v13  ;;  %v8183_v39 = vsel %vm19865_vm14, %v8181_v25, %v8182_v12  ;;  %v6947_v34 = vshrl.u32 %v17852_v30, 16  ;;  %v8207_v60 = vpop.permute.xlu1 %8206  ;;  %vm19868_vm13 = vmmov %vm19862_vm6  ;;  %v14346_v26 = vld [vmem:[#allocation3 + $0x84] sm:$0xfe]  }
 0x380   : > { %v6072_v1 = vrot.slane %v6070_v61, 1  ;;  %v6951_v56 = vrot.slane %v6949_v8, 1  ;;  %vm19867_vm5 = vcmask 294144   ;;  %v6395_v54 = vrot.slane %v14341_v43, 1  ;;  %vm19872_vm6 = vmmov %vm19870_vm9  ;;  %v14352_v30 = vld [vmem:[#allocation3 + $0x90] sm:$0xfe]  }
 0x381   : > { %6142 = vrot.lane.b32.xlu0 %v6061_v5, %s14745_s24  ;;  %v6068_v33 = vor.u32 %v6067_v28, %v6063_v24  ;;  %8252 = vst.msk [vmem:[#allocation4 + $0x10] sm:$0xff] %vm19867_vm5, %v8207_v60  ;;  %v7921_v58 = vpop.permute.xlu0 %7920  ;;  %v6961_v7 = vshll.u32 %v17856_v21, 16  ;;  %v6396_v55 = vrot.slane %v14342_v59, 1  ;;  %v6394_v10 = vsel %vm19870_vm9, %v6392_v0, %v6393_v37  ;;  %v14347_v9 = vld [vmem:[#allocation3 + $0x8c] ss:$0 sps:$4 sm:$0x11]   ;;  %vm19871_vm1 = vmmov %vm19867_vm5 }
 0x382   : > { %7965 = vst.msk [vmem:[#allocation4 + $0x18] sm:$0xff] %vm19868_vm13, %v7921_v58  ;;  %v6954_v18 = vshll.u32 %v14344_v4, 16  ;;  %v14349_v11 = vld [vmem:[#allocation3 + $0x98] ss:$0 sps:$4 sm:$0x11]   ;;  %v6959_v3 = vshrl.u32 %v17856_v21, 16  ;;  %v6952_v51 = vor.u32 %v6951_v56, %v6947_v34  ;;  %vm19874_vm3 = vmmov %vm19866_vm15 }
 0x383   : > { %13808 = vmatmul.mubr.msk.bf16.vlgmr.msra.gmra.mrb[48].mxu1 %vm19866_vm15, %v8267_v53  ;;  %8220 = vrot.lane.b32.xlu1 %v8183_v39, %s14752_s30  ;;  %v6073_v50 = vsel %vm19869_vm0, %v6068_v33, %v6072_v1  ;;  %v8209_v48 = vpop.permute.xlu1 %8208  ;;  %v6397_v41 = vsel %vm19872_vm6, %v6395_v54, %v6396_v55  ;;  %v6963_v52 = vrot.slane %v6961_v7, 1  ;;  %v6966_v23 = vshll.u32 %v14349_v11, 16  ;;  %v14353_v29 = vld [vmem:[#allocation3 + $0x98] ss:$0 sps:$4 sm:$0x11]   ;;  %vm19875_vm14 = vmmov %vm19869_vm0  ;;  %v14351_v0 = vld [vmem:[#allocation3 + $0x90] sm:$0xff]  }
 0x384   : > { %8253 = vst.msk [vmem:[#allocation4 + $0x18] sm:$0xff] %vm19871_vm1, %v8209_v48  ;;  %v6956_v15 = vrot.slane %v6954_v18, 1  ;;  %vm19873_vm2 = vcmask 97344   ;;  %v7288_v40 = vrot.slane %v14346_v26, 1  ;;  %v7289_v62 = vrot.slane %v14347_v9, 1  ;;  %vm19877_vm5 = vmmov %vm19869_vm0  ;;  %v14362_v28 = vld [vmem:[#allocation3 + $0x90] sm:$0xff]  }
 0x385   : > { %6144 = vrot.lane.b32.xlu0 %v6073_v50, %s14745_s24  ;;  %v6131_v46 = vpop.permute.xlu0 %6130  ;;  %v6968_v22 = vrot.slane %v6966_v23, 1  ;;  %v6964_v14 = vor.u32 %v6963_v52, %v6959_v3  ;;  %v7845_v17 = vshll.u32 %v17879_v32, 16  ;;  %v14356_v53 = vld [vmem:[#allocation3 + $0x98] ss:$0 sps:$4 sm:$0x11]   ;;  %vm19876_vm15 = vmmov %vm19873_vm2  ;;  %v7292_v24 = vrot.slane %v14353_v29, 1 }
 0x386   : > { %6174 = vst.msk [vmem:[#allocation4 + $0x20] sm:$0xff] %vm2960_vm10, %v6131_v46  ;;  %v6957_v49 = vsel %vm19875_vm14, %v6952_v51, %v6956_v15  ;;  %vm19878_vm13 = vmmov %vm19874_vm3  ;;  %v7850_v20 = vshll.u32 %v14356_v53, 16  ;;  %v7857_v21 = vshll.u32 %v14360_v42, 16  ;;  %v7291_v45 = vrot.slane %v14352_v30, 1  ;;  %v14366_v61 = vld [vmem:[#allocation3 + $0x9c] sm:$0xff]  }
 0x387   : > { %6430 = vrot.lane.b32.xlu1 %v6394_v10, %s19483_s22  ;;  %v6419_v19 = vpop.permute.xlu1 %6418  ;;  %v6969_v12 = vsel %vm19877_vm5, %v6964_v14, %v6968_v22  ;;  %vm19879_vm0 = vmmov %vm19872_vm6  ;;  %v7843_v8 = vshrl.u32 %v17879_v32, 16  ;;  %v7847_v5 = vrot.slane %v7845_v17, 1  ;;  %v14359_v37 = vld [vmem:[#allocation3 + $0x98] ss:$0 sps:$4 sm:$0x11]   ;;  %v7855_v43 = vshrl.u32 %v14360_v42, 16 }
 0x388   : > { %6462 = vst.msk [vmem:[#allocation4 + $0x20] sm:$0xff] %vm19873_vm2, %v6419_v19  ;;  %v8268_v35 = vld [vmem:[#allocation4 + $0x10] sm:$0xff]  ;;  %v7290_v38 = vsel %vm19879_vm0, %v7288_v40, %v7289_v62  ;;  %vm19880_vm9 = vmmov %vm19879_vm0  ;;  %v14358_v33 = vld [vmem:[#allocation3 + $0x90] sm:$0xfe]   ;;  %v7859_v59 = vrot.slane %v7857_v21, 1  ;;  %v7852_v34 = vrot.slane %v7850_v20, 1 }
 0x389   : > { %6432 = vrot.lane.b32.xlu0 %v6397_v41, %s19483_s22  ;;  %v6133_v47 = vpop.permute.xlu0 %6132  ;;  %13811 = vmatprep.mubr.msk.bf16.mxu1 %vm19874_vm3, %v8268_v35  ;;  %v7293_v39 = vsel %vm19880_vm9, %v7291_v45, %v7292_v24  ;;  %v14357_v60 = vld [vmem:[#allocation3 + $0x9c] sm:$0xff]   ;;  %v14361_v1 = vld [vmem:[#allocation3 + $0xa4] ss:$0 sps:$4 sm:$0x11]   ;;  %v6075_v54 = vshrl.u32 %v14362_v28, 16  ;;  %vm19881_vm1 = vcmask 195744   ;;  %v7848_v50 = vor.u32 %v7847_v5, %v7843_v8  ;;  %vm19882_vm6 = vmmov %vm19877_vm5 }
 0x38a   : > { %6175 = vst.msk [vmem:[#allocation4 + $0x28] sm:$0xff] %vm2960_vm10, %v6133_v47  ;;  %v14363_v58 = vld [vmem:[#allocation3 + $0x98] ss:$0 sps:$4 sm:$0x11]   ;;  %v7862_v55 = vshll.u32 %v14361_v1, 16  ;;  %v6077_v4 = vshll.u32 %v14362_v28, 16  ;;  %v7860_v48 = vor.u32 %v7859_v59, %v7855_v43  ;;  %vm19884_vm3 = vmmov %vm19881_vm1 }
 0x38b   : > { %6606 = vrot.lane.b32.xlu1 %v14340_v16, %s14750_s15  ;;  %v6595_v31 = vpop.permute.xlu1 %6594  ;;  %v8269_v25 = vld [vmem:[#allocation4 + $0x18] sm:$0xff]  ;;  %v6082_v16 = vshll.u32 %v14363_v58, 16  ;;  %v7853_v26 = vsel %vm19882_vm6, %v7848_v50, %v7852_v34  ;;  %v8185_v9 = vrot.slane %v14359_v37, 1  ;;  %v6089_v41 = vshll.u32 %v14366_v61, 16  ;;  %vm19885_vm14 = vmmov %vm19877_vm5  ;;  %v14368_v40 = vld [vmem:[#allocation3 + $0x9c] sm:$0xfe]  }
 0x38c   : > { %6638 = vst.msk [vmem:[#allocation4 + $0x20] sm:$0xff] %vm3427_vm7, %v6595_v31  ;;  %13812 = vmatmul.mubr.msk.bf16.gmra.mrb[52].mxu1 %vm19878_vm13, %v8269_v25  ;;  %v14364_v10 = vld [vmem:[#allocation3 + $0xcc] sm:$0xfe]   ;;  %v14365_v18 = vld [vmem:[#allocation3 + $0xd4] ss:$0 sps:$4 sm:$0x11]   ;;  %vm19887_vm5 = vmmov %vm19879_vm0 }
 0x38d   : > { %6608 = vrot.lane.b32.xlu0 %v14345_v2, %s14750_s15  ;;  %v6421_v13 = vpop.permute.xlu0 %6420  ;;  %v7864_v46 = vrot.slane %v7862_v55, 1  ;;  %v8184_v11 = vrot.slane %v14358_v33, 1  ;;  %v4998_v3 = vrot.slane %v14364_v10, 1  ;;  %v4999_v52 = vrot.slane %v14365_v18, 1  ;;  %v14378_v14 = vld [vmem:[#allocation3 + $0x9c] sm:$0xff]   ;;  %vm19890_vm9 = vmmov %vm19882_vm6  ;;  %v14380_v59 = vld [vmem:[#allocation3 + $0x48] sm:$0xff]  }
 0x38e   : > { %6463 = vst.msk [vmem:[#allocation4 + $0x28] sm:$0xff] %vm19876_vm15, %v6421_v13  ;;  %v14367_v32 = vld [vmem:[#allocation3 + $0xa4] ss:$0 sps:$4 sm:$0x11]   ;;  %vm19883_vm2 = vcmask 228544   ;;  %v6079_v2 = vrot.slane %v6077_v4, 1  ;;  %vm19886_vm15 = vmmov %vm19879_vm0 }
 0x38f   : > { %7038 = vrot.lane.b32.xlu1 %v6957_v49, %s19477_s12  ;;  %v7027_v63 = vpop.permute.xlu1 %7026  ;;  %v6087_v19 = vshrl.u32 %v14366_v61, 16  ;;  %v7865_v23 = vsel %vm19885_vm14, %v7860_v48, %v7864_v46  ;;  %v6084_v47 = vrot.slane %v6082_v16, 1  ;;  %v6091_v35 = vrot.slane %v6089_v41, 1  ;;  %v14369_v22 = vld [vmem:[#allocation3 + $0xa4] ss:$0 sps:$4 sm:$0x11]   ;;  %vm19889_vm0 = vmmov %vm19883_vm2 }
 0x390   : > { %7070 = vst.msk [vmem:[#allocation4 + $0x20] sm:$0xff] %vm3860_vm11, %v7027_v63  ;;  %v8186_v62 = vsel %vm19886_vm15, %v8184_v11, %v8185_v9  ;;  %v6094_v42 = vshll.u32 %v14367_v32, 16  ;;  %v5000_v49 = vsel %vm19887_vm5, %v4998_v3, %v4999_v52  ;;  %v8187_v30 = vrot.slane %v14368_v40, 1  ;;  %v14370_v53 = vld [vmem:[#allocation3 + $0x9c] sm:$0xfe]   ;;  %v14376_v63 = vld [vmem:[#allocation3 + $0xa8] sm:$0xff]  }
 0x391   : > { %7040 = vrot.lane.b32.xlu0 %v6969_v12, %s19477_s12  ;;  %v6597_v27 = vpop.permute.xlu0 %6596  ;;  %vm19888_vm13 = vcmask 261344   ;;  %v6080_v17 = vor.u32 %v6079_v2, %v6075_v54  ;;  %v8188_v13 = vrot.slane %v14369_v22, 1  ;;  %v14371_v25 = vld [vmem:[#allocation3 + $0xa4] ss:$0 sps:$4 sm:$0x11]   ;;  %v6092_v24 = vor.u32 %v6091_v35, %v6087_v19  ;;  %5744 = vst.msk [vmem:[#allocation4 + $0x30] sm:$0xff] %vm386_vm4, %v14380_v59 }
 0x392   : > { %6639 = vst.msk [vmem:[#allocation4 + $0x28] sm:$0xff] %vm3427_vm7, %v6597_v27  ;;  %v14372_v20 = vld [vmem:[#allocation3 + $0x90] sm:$0xfe]   ;;  %v14373_v45 = vld [vmem:[#allocation3 + $0x98] ss:$0 sps:$4 sm:$0x11]   ;;  %vm19892_vm6 = vmmov %vm19888_vm13 }
 0x393   : > { %7326 = vrot.lane.b32.xlu1 %v7290_v38, %s14751_s16  ;;  %v7315_v56 = vpop.permute.xlu1 %7314  ;;  %v6085_v12 = vsel %vm19890_vm9, %v6080_v17, %v6084_v47  ;;  %v6096_v38 = vrot.slane %v6094_v42, 1  ;;  %v6402_v28 = vrot.slane %v14371_v25, 1  ;;  %v6398_v8 = vrot.slane %v14372_v20, 1  ;;  %v14377_v33 = vld [vmem:[#allocation3 + $0xb0] ss:$0 sps:$4 sm:$0x11]  }
 0x394   : > { %7358 = vst.msk [vmem:[#allocation4 + $0x20] sm:$0xff] %vm19881_vm1, %v7315_v56  ;;  %vm19891_vm1 = vcmask 294144   ;;  %v6399_v37 = vrot.slane %v14373_v45, 1  ;;  %v6973_v61 = vshll.u32 %v14378_v14, 16  ;;  %v14385_v58 = vld [vmem:[#allocation3 + $0x54] sm:$0xff]   ;;  %v6990_v50 = vshll.u32 %v14377_v33, 16 }
 0x395   : > { %7328 = vrot.lane.b32.xlu0 %v7293_v39, %s14751_s16  ;;  %v7029_v7 = vpop.permute.xlu0 %7028  ;;  %vm19895_vm14 = vmmov %vm19891_vm1  ;;  %v14379_v1 = vld [vmem:[#allocation3 + $0xa4] ss:$0 sps:$4 sm:$0x11]   ;;  %5745 = vst.msk [vmem:[#allocation4 + $0x38] sm:$0xff] %vm386_vm4, %v14385_v58  ;;  %v14374_v10 = vld [vmem:[#allocation3 + $0xa8] sm:$0xff]   ;;  %v6971_v48 = vshrl.u32 %v14378_v14, 16 }
 0x396   : > { %7071 = vst.msk [vmem:[#allocation4 + $0x28] sm:$0xff] %vm3860_vm11, %v7029_v7  ;;  %v6975_v56 = vrot.slane %v6973_v61, 1  ;;  %v6978_v55 = vshll.u32 %v14379_v1, 16  ;;  %v14382_v46 = vld [vmem:[#allocation3 + $0xb0] ss:$0 sps:$4 sm:$0x11]  }
 0x397   : > { %7502 = vrot.lane.b32.xlu1 %v14351_v0, %s19685_s13  ;;  %v7491_v15 = vpop.permute.xlu1 %7490  ;;  %v6401_v0 = vrot.slane %v14370_v53, 1  ;;  %v6983_v41 = vshrl.u32 %v14376_v63, 16  ;;  %v14383_v3 = vld [vmem:[#allocation3 + $0x9c] sm:$0xfe]   ;;  %v6992_v52 = vrot.slane %v6990_v50, 1  ;;  %v14390_v14 = vld [vmem:[#allocation3 + $0xa8] sm:$0xff]  }
 0x398   : > { %7534 = vst.msk [vmem:[#allocation4 + $0x20] sm:$0xff] %vm19883_vm2, %v7491_v15  ;;  %vm19893_vm2 = vmmov %vm19887_vm5  ;;  %v6976_v15 = vor.u32 %v6975_v56, %v6971_v48  ;;  %v6980_v11 = vrot.slane %v6978_v55, 1  ;;  %v14381_v32 = vld [vmem:[#allocation3 + $0xa8] sm:$0xfe]   ;;  %v7294_v19 = vrot.slane %v14383_v3, 1  ;;  %v7867_v33 = vshrl.u32 %v14390_v14, 16 }
 0x399   : > { %7504 = vrot.lane.b32.xlu0 %v14357_v60, %s19685_s13  ;;  %v7317_v51 = vpop.permute.xlu0 %7316  ;;  %v8189_v5 = vsel %vm19893_vm2, %v8187_v30, %v8188_v13  ;;  %v6985_v60 = vshll.u32 %v14376_v63, 16  ;;  %vm19896_vm15 = vmmov %vm19893_vm2  ;;  %v7297_v13 = vrot.slane %v14381_v32, 1  ;;  %v14391_v53 = vld [vmem:[#allocation3 + $0xb0] ss:$0 sps:$4 sm:$0x11]   ;;  %v14392_v45 = vld [vmem:[#allocation3 + $0xa8] sm:$0xff]  }
 0x39a   : > { %7359 = vst.msk [vmem:[#allocation4 + $0x28] sm:$0xff] %vm19884_vm3, %v7317_v51  ;;  %vm19894_vm3 = vmmov %vm19890_vm9  ;;  %v6400_v54 = vsel %vm19896_vm15, %v6398_v8, %v6399_v37  ;;  %v14384_v51 = vld [vmem:[#allocation3 + $0xa4] ss:$0 sps:$4 sm:$0x11]   ;;  %v7874_v63 = vshll.u32 %v14391_v53, 16  ;;  %vm19906_vm15 = vcmask 195744  }
 0x39b   : > { %7934 = vrot.lane.b32.xlu1 %v7853_v26, %s14747_s29  ;;  %v7923_v29 = vpop.permute.xlu1 %7922  ;;  %v6097_v39 = vsel %vm19894_vm3, %v6092_v24, %v6096_v38  ;;  %vm19897_vm5 = vmmov %vm19893_vm2  ;;  %v14375_v26 = vld [vmem:[#allocation3 + $0x9c] sm:$0xff]   ;;  %v6987_v9 = vrot.slane %v6985_v60, 1  ;;  %v7295_v40 = vrot.slane %v14384_v51, 1  ;;  %v7869_v24 = vshll.u32 %v14390_v14, 16  ;;  %v14387_v61 = vld [vmem:[#allocation3 + $0xa8] sm:$0xff]  }
 0x39c   : > { %7966 = vst.msk [vmem:[#allocation4 + $0x20] sm:$0xff] %vm19888_vm13, %v7923_v29  ;;  %v6403_v7 = vsel %vm19897_vm5, %v6401_v0, %v6402_v28  ;;  %vm19898_vm13 = vcmask 97344   ;;  %vm19903_vm2 = vmmov %vm19894_vm3  ;;  %v7298_v29 = vrot.slane %v14382_v46, 1  ;;  %v14386_v28 = vld [vmem:[#allocation3 + $0xb4] sm:$0xff]   ;;  %v14394_v56 = vld [vmem:[#allocation3 + $0xa8] sm:$0xfe]  }
 0x39d   : > { %7936 = vrot.lane.b32.xlu0 %v7865_v23, %s14747_s29  ;;  %v7493_v31 = vpop.permute.xlu0 %7492  ;;  %v6988_v35 = vor.u32 %v6987_v9, %v6983_v41  ;;  %vm19900_vm9 = vmmov %vm19898_vm13  ;;  %v7871_v8 = vrot.slane %v7869_v24, 1  ;;  %v14395_v58 = vld [vmem:[#allocation3 + $0xb0] ss:$0 sps:$4 sm:$0x11]   ;;  %v14396_v48 = vld [vmem:[#allocation3 + $0xb4] sm:$0xff]   ;;  %v6099_v46 = vshrl.u32 %v14392_v45, 16 }
 0x39e   : > { %7535 = vst.msk [vmem:[#allocation4 + $0x28] sm:$0xff] %vm19889_vm0, %v7493_v31  ;;  %vm19899_vm0 = vcmask 293888   ;;  %v6111_v3 = vshrl.u32 %v14396_v48, 16  ;;  %v14398_v51 = vld [vmem:[#allocation3 + $0xb4] sm:$0xfe]  }
 0x39f   : > { %8222 = vrot.lane.b32.xlu1 %v8186_v62, %s14752_s30  ;;  %v8211_v21 = vpop.permute.xlu1 %8210  ;;  %v14388_v62 = vld [vmem:[#allocation3 + $0xb4] sm:$0xff]   ;;  %v6993_v22 = vsel %vm19903_vm2, %v6988_v35, %v6992_v52  ;;  %v17949_v38 = vpop.f32.mrb[20].mxu0  ;;  %v6113_v52 = vshll.u32 %v14396_v48, 16 }
 0x3a0   : > { %8254 = vst.msk [vmem:[#allocation4 + $0x20] sm:$0xff] %vm19891_vm1, %v8211_v21  ;;  %vm19901_vm1 = vmmov %vm19899_vm0  ;;  %v7881_v31 = vshll.u32 %v14388_v62, 16  ;;  %v17953_v0 = vpop.f32.mrb[21].mxu0 }
 0x3a1   : > { %5031 = vrot.lane.b32.xlu0 %v5000_v49, %s14752_s30  ;;  %v7925_v27 = vpop.permute.xlu0 %7924  ;;  %v14389_v49 = vld [vmem:[#allocation3 + $0xbc] ss:$0 sps:$4 sm:$0x11]   ;;  %v17960_v50 = vpop.f32.mrb[22].mxu0 }
 0x3a2   : > { %7967 = vst.msk [vmem:[#allocation4 + $0x28] sm:$0xff] %vm19892_vm6, %v7925_v27  ;;  %vm19902_vm6 = vmmov %vm19894_vm3  ;;  %v7883_v21 = vrot.slane %v7881_v31, 1 }
 0x3a3   : > { %6146 = vrot.lane.b32.xlu1 %v6085_v12, %s14745_s24  ;;  %v8213_v43 = vpop.permute.xlu1 %8212  ;;  %v6981_v42 = vsel %vm19902_vm6, %v6976_v15, %v6980_v11  ;;  %vm19904_vm3 = vmmov %vm19897_vm5  ;;  %v7886_v12 = vshll.u32 %v14389_v49, 16  ;;  %vm19907_vm5 = vcmask 228544   ;;  %v8190_v11 = vrot.slane %v14394_v56, 1 }
 0x3a4   : > { %8255 = vst.msk [vmem:[#allocation4 + $0x28] sm:$0xff] %vm19895_vm14, %v8213_v43  ;;  %v7296_v25 = vsel %vm19904_vm3, %v7294_v19, %v7295_v40  ;;  %vm19905_vm14 = vmmov %vm19904_vm3  ;;  %v6101_v43 = vshll.u32 %v14392_v45, 16  ;;  %v6115_v40 = vrot.slane %v6113_v52, 1  ;;  %v14403_v45 = vld [vmem:[#allocation3 + $0xb0] ss:$0 sps:$4 sm:$0x11]  }
 0x3a5   : > { %8224 = vrot.lane.b32.xlu0 %v8189_v5, %s14752_s30  ;;  %v6135_v34 = vpop.permute.xlu0 %6134  ;;  %v7299_v20 = vsel %vm19905_vm14, %v7297_v13, %v7298_v29  ;;  %v14393_v5 = vld [vmem:[#allocation3 + $0xb0] ss:$0 sps:$4 sm:$0x11]   ;;  %v7888_v59 = vrot.slane %v7886_v12, 1  ;;  %vm19912_vm6 = vmmov %vm19907_vm5  ;;  %vm19915_vm14 = vcmask 294144  }
 0x3a6   : > { %6176 = vst.msk [vmem:[#allocation4 + $0x30] sm:$0xff] %vm2960_vm10, %v6135_v34  ;;  %v7876_v34 = vrot.slane %v7874_v63, 1  ;;  %v6106_v1 = vshll.u32 %v14393_v5, 16  ;;  %v14401_v13 = vld [vmem:[#allocation3 + $0xbc] ss:$0 sps:$4 sm:$0x11]  }
 0x3a7   : > { %6148 = vrot.lane.b32.xlu1 %v6097_v39, %s14745_s24  ;;  %v6423_v4 = vpop.permute.xlu1 %6422  ;;  %v8270_v18 = vld [vmem:[#allocation4 + $0x20] sm:$0xff]  ;;  %v7879_v39 = vshrl.u32 %v14388_v62, 16  ;;  %v14402_v63 = vld [vmem:[#allocation3 + $0xa8] sm:$0xfe]   ;;  %v6405_v5 = vrot.slane %v14403_v45, 1 }
 0x3a8   : > { %6464 = vst.msk [vmem:[#allocation4 + $0x30] sm:$0xff] %vm19898_vm13, %v6423_v4  ;;  %13815 = vmatprep.mubr.msk.bf16.mxu1 %vm19899_vm0, %v8270_v18  ;;  %v6103_v4 = vrot.slane %v6101_v43, 1  ;;  %vm19908_vm13 = vmmov %vm19906_vm15  ;;  %v8191_v18 = vrot.slane %v14395_v58, 1  ;;  %v6108_v41 = vrot.slane %v6106_v1, 1  ;;  %v14415_v58 = vld [vmem:[#allocation3 + $0x6c] sm:$0xff]  }
 0x3a9   : > { %6434 = vrot.lane.b32.xlu0 %v6400_v54, %s19483_s22  ;;  %v6137_v16 = vpop.permute.xlu0 %6136  ;;  %v7884_v60 = vor.u32 %v7883_v21, %v7879_v39  ;;  %vm19909_vm0 = vmmov %vm19903_vm2  ;;  %v6408_v21 = vrot.slane %v14401_v13, 1  ;;  %v14407_v43 = vld [vmem:[#allocation3 + $0xc8] ss:$0 sps:$4 sm:$0x11]   ;;  %5747 = vst.msk [vmem:[#allocation4 + $0x48] sm:$0xff] %vm386_vm4, %v14415_v58 }
 0x3aa   : > { %6177 = vst.msk [vmem:[#allocation4 + $0x38] sm:$0xff] %vm2960_vm10, %v6137_v16  ;;  %v6104_v19 = vor.u32 %v6103_v4, %v6099_v46  ;;  %vm19913_vm2 = vmmov %vm19904_vm3  ;;  %v14414_v52 = vld [vmem:[#allocation3 + $0xbc] ss:$0 sps:$4 sm:$0x11]  }
 0x3ab   : > { %6436 = vrot.lane.b32.xlu1 %v6403_v7, %s19483_s22  ;;  %v6599_v2 = vpop.permute.xlu1 %6598  ;;  %v8271_v47 = vld [vmem:[#allocation4 + $0x28] sm:$0xff]  ;;  %v7872_v7 = vor.u32 %v7871_v8, %v7867_v33  ;;  %v8192_v35 = vsel %vm19913_vm2, %v8190_v11, %v8191_v18  ;;  %vm19914_vm3 = vmmov %vm19909_vm0  ;;  %v6404_v8 = vrot.slane %v14402_v63, 1 }
 0x3ac   : > { %6640 = vst.msk [vmem:[#allocation4 + $0x30] sm:$0xff] %vm3427_vm7, %v6599_v2  ;;  %13816 = vmatmul.mubr.msk.bf16.gmra.mrb[56].mxu1 %vm19901_vm1, %v8271_v47  ;;  %vm19911_vm1 = vcmask 261344   ;;  %v17972_v47 = vld [vmem:[#allocation3 + $0xc0] sm:$0xff]   ;;  %v6109_v29 = vsel %vm19914_vm3, %v6104_v19, %v6108_v41 }
 0x3ad   : > { %6610 = vrot.lane.b32.xlu0 %v14375_v26, %s14750_s15  ;;  %v6425_v23 = vpop.permute.xlu0 %6424  ;;  %v7877_v16 = vsel %vm19909_vm0, %v7872_v7, %v7876_v34  ;;  %v14397_v26 = vld [vmem:[#allocation3 + $0xbc] ss:$0 sps:$4 sm:$0x11]   ;;  %v7007_v14 = vshrl.u32 %v17972_v47, 16  ;;  %v7014_v7 = vshll.u32 %v14407_v43, 16 }
 0x3ae   : > { %6465 = vst.msk [vmem:[#allocation4 + $0x38] sm:$0xff] %vm19900_vm9, %v6425_v23  ;;  %vm19910_vm9 = vmmov %vm19909_vm0  ;;  %v6118_v32 = vshll.u32 %v14397_v26, 16  ;;  %v14399_v23 = vld [vmem:[#allocation3 + $0xbc] ss:$0 sps:$4 sm:$0x11]  }
 0x3af   : > { %6612 = vrot.lane.b32.xlu1 %v14374_v10, %s14750_s15  ;;  %v7031_v30 = vpop.permute.xlu1 %7030  ;;  %v17963_v10 = vpop.f32.mrb[23].mxu0  ;;  %v7889_v9 = vsel %vm19910_vm9, %v7884_v60, %v7888_v59  ;;  %v8194_v49 = vrot.slane %v14399_v23, 1  ;;  %vm19920_vm9 = vmmov %vm19913_vm2  ;;  %v14410_v59 = vld [vmem:[#allocation3 + $0x60] sm:$0xff]   ;;  %v14405_v60 = vld [vmem:[#allocation3 + $0xb4] sm:$0xff]   ;;  %v7016_v4 = vrot.slane %v7014_v7, 1  ;;  %v7301_v23 = vrot.slane %v14414_v52, 1 }
 0x3b0   : > { %7072 = vst.msk [vmem:[#allocation4 + $0x30] sm:$0xff] %vm3860_vm11, %v7031_v30  ;;  %v6120_v62 = vrot.slane %v6118_v32, 1  ;;  %v14400_v30 = vld [vmem:[#allocation3 + $0xb4] sm:$0xfe]   ;;  %v6406_v33 = vsel %vm19920_vm9, %v6404_v8, %v6405_v5  ;;  %v14411_v18 = vld [vmem:[#allocation3 + $0xc0] sm:$0xfe]   ;;  %vm19929_vm9 = vmmov %vm19914_vm3 }
 0x3b1   : > { %7042 = vrot.lane.b32.xlu0 %v6981_v42, %s19477_s12  ;;  %v6601_v17 = vpop.permute.xlu0 %6600  ;;  %v8193_v42 = vrot.slane %v14398_v51, 1  ;;  %v6407_v12 = vrot.slane %v14400_v30, 1  ;;  %5746 = vst.msk [vmem:[#allocation4 + $0x40] sm:$0xff] %vm386_vm4, %v14410_v59  ;;  %v14412_v26 = vld [vmem:[#allocation3 + $0xc8] ss:$0 sps:$4 sm:$0x11]  }
 0x3b2   : > { %6641 = vst.msk [vmem:[#allocation4 + $0x38] sm:$0xff] %vm3427_vm7, %v6601_v17  ;;  %v6116_v17 = vor.u32 %v6115_v40, %v6111_v3  ;;  %v14413_v3 = vld [vmem:[#allocation3 + $0xb4] sm:$0xfe]   ;;  %v14429_v43 = vld [vmem:[#allocation3 + $0x9c] sm:$0xff]  }
 0x3b3   : > { %7044 = vrot.lane.b32.xlu1 %v6993_v22, %s19477_s12  ;;  %v7319_v27 = vpop.permute.xlu1 %7318  ;;  %v14408_v22 = vld [vmem:[#allocation3 + $0xb4] sm:$0xff]   ;;  %v7300_v19 = vrot.slane %v14413_v3, 1  ;;  %5751 = vst.msk [vmem:[#allocation4 + $0x68] sm:$0xff] %vm386_vm4, %v14429_v43 }
 0x3b4   : > { %7360 = vst.msk [vmem:[#allocation4 + $0x30] sm:$0xff] %vm19906_vm15, %v7319_v27  ;;  %vm19916_vm15 = vmmov %vm19911_vm1  ;;  %v6995_v24 = vshrl.u32 %v14408_v22, 16 }
 0x3b5   : > { %7330 = vrot.lane.b32.xlu0 %v7296_v25, %s14751_s16  ;;  %v7033_v37 = vpop.permute.xlu0 %7032  ;;  %v7009_v25 = vshll.u32 %v17972_v47, 16 }
 0x3b6   : > { %7073 = vst.msk [vmem:[#allocation4 + $0x38] sm:$0xff] %vm3860_vm11, %v7033_v37 }
 0x3b7   : > { %7332 = vrot.lane.b32.xlu1 %v7299_v20, %s14751_s16  ;;  %v7495_v54 = vpop.permute.xlu1 %7494  ;;  %v7011_v37 = vrot.slane %v7009_v25, 1  ;;  %v14426_v25 = vld [vmem:[#allocation3 + $0x78] sm:$0xff]  }
 0x3b8   : > { %7536 = vst.msk [vmem:[#allocation4 + $0x30] sm:$0xff] %vm19907_vm5, %v7495_v54  ;;  %vm19917_vm5 = vmmov %vm19913_vm2  ;;  %v14404_v54 = vld [vmem:[#allocation3 + $0xc0] sm:$0xff]  }
 0x3b9   : > { %7506 = vrot.lane.b32.xlu0 %v14387_v61, %s19685_s13  ;;  %v7321_v55 = vpop.permute.xlu0 %7320  ;;  %v8195_v20 = vsel %vm19917_vm5, %v8193_v42, %v8194_v49  ;;  %v6997_v61 = vshll.u32 %v14408_v22, 16  ;;  %v7012_v11 = vor.u32 %v7011_v37, %v7007_v14  ;;  %v14419_v42 = vld [vmem:[#allocation3 + $0xc8] ss:$0 sps:$4 sm:$0x11]   ;;  %v14417_v14 = vld [vmem:[#allocation3 + $0xcc] sm:$0xff]   ;;  %5748 = vst.msk [vmem:[#allocation4 + $0x50] sm:$0xff] %vm386_vm4, %v14426_v25 }
 0x3ba   : > { %7361 = vst.msk [vmem:[#allocation4 + $0x38] sm:$0xff] %vm19908_vm13, %v7321_v55  ;;  %vm19918_vm13 = vmmov %vm19909_vm0  ;;  %v14409_v55 = vld [vmem:[#allocation3 + $0xbc] ss:$0 sps:$4 sm:$0x11]   ;;  %v7898_v13 = vshll.u32 %v14419_v42, 16 }
 0x3bb   : > { %7508 = vrot.lane.b32.xlu1 %v14386_v28, %s19685_s13  ;;  %v7927_v15 = vpop.permute.xlu1 %7926  ;;  %v6121_v27 = vsel %vm19918_vm13, %v6116_v17, %v6120_v62  ;;  %vm19919_vm0 = vmmov %vm19915_vm14  ;;  %v6999_v1 = vrot.slane %v6997_v61, 1  ;;  %v14418_v62 = vld [vmem:[#allocation3 + $0xc0] sm:$0xff]   ;;  %v14421_v49 = vld [vmem:[#allocation3 + $0xd4] ss:$0 sps:$4 sm:$0x11]  }
 0x3bc   : > { %7968 = vst.msk [vmem:[#allocation4 + $0x30] sm:$0xff] %vm19911_vm1, %v7927_v15  ;;  %vm19921_vm1 = vmmov %vm19913_vm2  ;;  %vm19923_vm2 = vcmask 293888   ;;  %v7893_v17 = vshll.u32 %v14418_v62, 16  ;;  %v7891_v63 = vshrl.u32 %v14418_v62, 16  ;;  %v14428_v61 = vld [vmem:[#allocation3 + $0x90] sm:$0xff]   ;;  %v14432_v62 = vld [vmem:[#allocation3] sm:$0xff]  }
 0x3bd   : > { %7938 = vrot.lane.b32.xlu0 %v7877_v16, %s14747_s29  ;;  %v7497_v2 = vpop.permute.xlu0 %7496  ;;  %v6409_v34 = vsel %vm19921_vm1, %v6407_v12, %v6408_v21  ;;  %v7000_v48 = vor.u32 %v6999_v1, %v6995_v24  ;;  %v7002_v16 = vshll.u32 %v14409_v55, 16  ;;  %vm19926_vm5 = vmmov %vm19923_vm2  ;;  %v14427_v21 = vld [vmem:[#allocation3 + $0x84] sm:$0xff]   ;;  %5750 = vst.msk [vmem:[#allocation4 + $0x60] sm:$0xff] %vm386_vm4, %v14428_v61 }
 0x3be   : > { %7537 = vst.msk [vmem:[#allocation4 + $0x38] sm:$0xff] %vm19912_vm6, %v7497_v2  ;;  %vm19922_vm6 = vcmask 97344   ;;  %v7304_v2 = vrot.slane %v14412_v26, 1  ;;  %vm19927_vm13 = vmmov %vm19921_vm1  ;;  %v7895_v45 = vrot.slane %v7893_v17, 1 }
 0x3bf   : > { %7940 = vrot.lane.b32.xlu1 %v7889_v9, %s14747_s29  ;;  %v8215_v31 = vpop.permute.xlu1 %8214  ;;  %v7004_v41 = vrot.slane %v7002_v16, 1  ;;  %v7302_v22 = vsel %vm19927_vm13, %v7300_v19, %v7301_v23  ;;  %v14423_v37 = vld [vmem:[#allocation3 + $0xc8] ss:$0 sps:$4 sm:$0x11]   ;;  %5749 = vst.msk [vmem:[#allocation4 + $0x58] sm:$0xff] %vm386_vm4, %v14427_v21 }
 0x3c0   : > { %8256 = vst.msk [vmem:[#allocation4 + $0x30] sm:$0xff] %vm19915_vm14, %v8215_v31  ;;  %vm19924_vm14 = vmmov %vm19914_vm3  ;;  %v14416_v31 = vld [vmem:[#allocation3 + $0xc0] sm:$0xff]   ;;  %v7896_v59 = vor.u32 %v7895_v45, %v7891_v63  ;;  %v8197_v1 = vrot.slane %v14423_v37, 1  ;;  %v14433_v42 = vld [vmem:[#allocation3 + $0x8] ss:$0 sps:$4 sm:$0x11]  }
 0x3c1   : > { %8226 = vrot.lane.b32.xlu0 %v8192_v35, %s14752_s30  ;;  %v7929_v53 = vpop.permute.xlu0 %7928  ;;  %v7005_v32 = vsel %vm19914_vm3, %v7000_v48, %v7004_v41  ;;  %v7017_v51 = vsel %vm19924_vm14, %v7012_v11, %v7016_v4  ;;  %v7303_v35 = vrot.slane %v14411_v18, 1  ;;  %v18027_v4 = vld [vmem:[%s19383_s2] ss:$0 sm:$0xff]  ;;  %vm9211_vm14 = vcmask 64512  }
 0x3c2   : > { %7969 = vst.msk [vmem:[#allocation4 + $0x38] sm:$0xff] %vm19916_vm15, %v7929_v53  ;;  %vm19925_vm15 = vmmov %vm19922_vm6 }
 0x3c3   : > { %6150 = vrot.lane.b32.xlu1 %v6109_v29, %s14745_s24  ;;  %v8217_v28 = vpop.permute.xlu1 %8216  ;;  %v14420_v29 = vld [vmem:[#allocation3 + $0xcc] sm:$0xff]  }
 0x3c4   : > { %8257 = vst.msk [vmem:[#allocation4 + $0x38] sm:$0xff] %vm19919_vm0, %v8217_v28  ;;  %vm19928_vm0 = vmmov %vm19921_vm1  ;;  %v7903_v12 = vshrl.u32 %v14420_v29, 16  ;;  %v7905_v24 = vshll.u32 %v14420_v29, 16  ;;  %v14424_v28 = vld [vmem:[#allocation3 + $0xcc] sm:$0xfe]   ;;  %v9405_v29 = vshrl.u32 %v14432_v62, 16 }
 0x3c5   : > { %8228 = vrot.lane.b32.xlu0 %v8195_v20, %s14752_s30  ;;  %v6139_v39 = vpop.permute.xlu0 %6138  ;;  %v7305_v30 = vsel %vm19928_vm0, %v7303_v35, %v7304_v2  ;;  %v7910_v20 = vshll.u32 %v14421_v49, 16  ;;  %vm19930_vm1 = vmmov %vm19914_vm3  ;;  %v9407_v49 = vshll.u32 %v14432_v62, 16 }
 0x3c6   : > { %6178 = vst.msk [vmem:[#allocation4 + $0x40] sm:$0xff] %vm2960_vm10, %v6139_v39  ;;  %v7907_v8 = vrot.slane %v7905_v24, 1  ;;  %v14422_v39 = vld [vmem:[#allocation3 + $0xc0] sm:$0xfe]   ;;  %vm19933_vm3 = vmmov %vm19928_vm0 }
 0x3c7   : > { %6152 = vrot.lane.b32.xlu1 %v6121_v27, %s14745_s24  ;;  %v6427_v56 = vpop.permute.xlu1 %6426  ;;  %v8272_v46 = vld [vmem:[#allocation4 + $0x30] sm:$0xff]  ;;  %v7900_v27 = vrot.slane %v7898_v13, 1  ;;  %s19476_s24 = sand.u32 1, %s14733_s18   ;;  %v7912_v5 = vrot.slane %v7910_v20, 1  ;;  %v8196_v48 = vrot.slane %v14422_v39, 1  ;;  %v9409_v13 = vrot.slane %v9407_v49, 1 }
 0x3c8   : > { %6466 = vst.msk [vmem:[#allocation4 + $0x40] sm:$0xff] %vm19922_vm6, %v6427_v56  ;;  %13819 = vmatprep.mubr.msk.bf16.mxu1 %vm19923_vm2, %v8272_v46  ;;  %v8199_v56 = vrot.slane %v14424_v28, 1  ;;  %vm19931_vm6 = vmmov %vm19928_vm0  ;;  %vm19932_vm2 = vcmask 195744   ;;  %vm19937_vm0 = vcmask 261344  }
 0x3c9   : > { %6438 = vrot.lane.b32.xlu0 %v6406_v33, %s19483_s22  ;;  %v14425_v33 = vld [vmem:[#allocation3 + $0xd4] ss:$0 sps:$4 sm:$0x11]   ;;  %v9410_v20 = vor.u32 %v9409_v13, %v9405_v29 }
 0x3ca   : > { %v8200_v58 = vrot.slane %v14425_v33, 1 }
 0x3cb   : > { %6440 = vrot.lane.b32.xlu1 %v6409_v34, %s19483_s22  ;;  %v6603_v15 = vpop.permute.xlu1 %6602  ;;  %v8273_v40 = vld [vmem:[#allocation4 + $0x38] sm:$0xff]  ;;  %v7908_v34 = vor.u32 %v7907_v8, %v7903_v12 }
 0x3cc   : > { %6642 = vst.msk [vmem:[#allocation4 + $0x40] sm:$0xff] %vm3427_vm7, %v6603_v15  ;;  %13820 = vmatmul.mubr.msk.bf16.gmra.mrb[60].mxu1 %vm19926_vm5, %v8273_v40  ;;  %v8201_v46 = vsel %vm19931_vm6, %v8199_v56, %v8200_v58  ;;  %v8198_v15 = vsel %vm19933_vm3, %v8196_v48, %v8197_v1  ;;  %vm19935_vm5 = vmmov %vm19932_vm2 }
 0x3cd   : > { %6614 = vrot.lane.b32.xlu0 %v14405_v60, %s14750_s15  ;;  %v6141_v9 = vpop.permute.xlu0 %6140  ;;  %v7913_v7 = vsel %vm19930_vm1, %v7908_v34, %v7912_v5  ;;  %vm19940_vm6 = vmmov %vm19933_vm3 }
 0x3ce   : > { %6179 = vst.msk [vmem:[#allocation4 + $0x48] sm:$0xff] %vm2960_vm10, %v6141_v9  ;;  %v14430_v9 = vld [vmem:[#allocation3 + $0xa8] sm:$0xff]  }
 0x3cf   : > { %6616 = vrot.lane.b32.xlu1 %v14404_v54, %s14750_s15  ;;  %s12648_s15 = sshll.u32 %s19476_s24, 8  ;;  %v7901_v54 = vsel %vm19929_vm9, %v7896_v59, %v7900_v27  ;;  %v13733_v55 = vpop.f32.mrb[16].mxu1  ;;  %5752 = vst.msk [vmem:[#allocation4 + $0x70] sm:$0xff] %vm386_vm4, %v14430_v9  ;;  %vm19938_vm9 = vmmov %vm19930_vm1  ;;  %s20039_s24 = smov 64  }
 0x3d0   : > { %v1617_v26 = vadd.f32 %v13733_v55, %v18027_v4  ;;  %v1608_v41 = vpop.f32.mrb[17].mxu1  ;;  %vm19939_vm1 = vmmov %vm19937_vm0 }
 0x3d1   : > { %7046 = vrot.lane.b32.xlu0 %v7005_v32, %s19477_s12  ;;  %v6429_v47 = vpop.permute.xlu0 %6428  ;;  %v1609_v3 = vadd.f32 %v18027_v4, %v1608_v41  ;;  %v13734_v52 = vpop.f32.mrb[18].mxu1 }
 0x3d2   : > { %6467 = vst.msk [vmem:[#allocation4 + $0x48] sm:$0xff] %vm19925_vm15, %v6429_v47  ;;  %v1737_v11 = vmax.f32 %v1617_v26, 0.0  ;;  %v1620_v32 = vadd.f32 %v13734_v52, %v18027_v4  ;;  %vm19934_vm15 = vcmask 228544  }
 0x3d3   : > { %7048 = vrot.lane.b32.xlu1 %v7017_v51, %s19477_s12  ;;  %v1611_v51 = vpop.f32.mrb[19].mxu1  ;;  %v1735_v19 = vmax.f32 %v1609_v3, 0.0  ;;  %vm19936_vm13 = vmmov %vm19934_vm15 }
 0x3d4   : > { %v1612_v23 = vadd.f32 %v18027_v4, %v1611_v51  ;;  %v1738_v47 = vmax.f32 %v1620_v32, 0.0 }
 0x3d5   : > { %7334 = vrot.lane.b32.xlu0 %v7302_v22, %s14751_s16  ;;  %v6605_v53 = vpop.permute.xlu0 %6604  ;;  %v14434_v22 = vld [vmem:[#allocation3] sm:$0xfe]  }
 0x3d6   : > { %6643 = vst.msk [vmem:[#allocation4 + $0x48] sm:$0xff] %vm3427_vm7, %v6605_v53  ;;  %v1736_v35 = vmax.f32 %v1612_v23, 0.0  ;;  %v9837_v21 = vrot.slane %v14434_v22, 1 }
 0x3d7   : > { %7336 = vrot.lane.b32.xlu1 %v7305_v30, %s14751_s16  ;;  %v9412_v30 = vshll.u32 %v14433_v42, 16  ;;  %s14755_s16 = smov 48  }
 0x3d9   : > { %7510 = vrot.lane.b32.xlu0 %v14416_v31, %s19685_s13  ;;  %v14435_v31 = vld [vmem:[#allocation3 + $0x8] ss:$0 sps:$4 sm:$0x11]   ;;  %v9414_v53 = vrot.slane %v9412_v30, 1 }
 0x3da   : > { %v9838_v63 = vrot.slane %v14435_v31, 1 }
 0x3db   : > { %7512 = vrot.lane.b32.xlu1 %v14417_v14, %s19685_s13  ;;  %v7035_v60 = vpop.permute.xlu1 %7034  ;;  %v9415_v27 = vsel %vm19938_vm9, %v9410_v20, %v9414_v53  ;;  %vm19947_vm9 = vcmask 195744  }
 0x3dc   : > { %7074 = vst.msk [vmem:[#allocation4 + $0x40] sm:$0xff] %vm3860_vm11, %v7035_v60  ;;  %v9839_v39 = vsel %vm19940_vm6, %v9837_v21, %v9838_v63  ;;  %vm19949_vm6 = vcmask 228544  }
 0x3dd   : > { %7942 = vrot.lane.b32.xlu0 %v7901_v54, %s14747_s29 }
 0x3df   : > { %7944 = vrot.lane.b32.xlu1 %v7913_v7, %s14747_s29  ;;  %v7323_v16 = vpop.permute.xlu1 %7322  ;;  %v7037_v18 = vpop.permute.xlu0 %7036  ;;  %s18040_s29 = scalar_lea.vmem [#allocation5], %s12648_s15  ;;  %s19481_s15 = smov 56  }
 0x3e0   : > { %7362 = vst.msk [vmem:[#allocation4 + $0x40] sm:$0xff] %vm19932_vm2, %v7323_v16  ;;  %vm19941_vm2 = vcmask 294144  }
 0x3e1   : > { %7075 = vst.msk [vmem:[#allocation4 + $0x48] sm:$0xff] %vm3860_vm11, %v7037_v18  ;;  %8230 = vrot.lane.b32.xlu0 %v8198_v15, %s14752_s30  ;;  %vm19942_vm3 = vmmov %vm19941_vm2 }
 0x3e2   : > { %12055 = vst.msk [vmem:[%s18040_s29 + $0x10] sm:$0xff] %vm9211_vm14, %v1737_v11  ;;  %12053 = vst.msk [vmem:[%s18040_s29] sm:$0xff] %vm9211_vm14, %v1735_v19 }
 0x3e3   : > { %8232 = vrot.lane.b32.xlu1 %v8201_v46, %s14752_s30  ;;  %v7499_v2 = vpop.permute.xlu1 %7498  ;;  %12056 = vst.msk [vmem:[%s18040_s29 + $0x18] sm:$0xff] %vm9211_vm14, %v1738_v47  ;;  %12054 = vst.msk [vmem:[%s18040_s29 + $0x8] sm:$0xff] %vm9211_vm14, %v1736_v35 }
 0x3e4   : > { %7538 = vst.msk [vmem:[#allocation4 + $0x40] sm:$0xff] %vm19934_vm15, %v7499_v2  ;;  %vm19943_vm15 = vcmask 97344  }
 0x3e5   : > { %9596 = vrot.lane.b32.xlu0 %v9415_v27, %s19483_s22 }
 0x3e7   : > { %v7325_v40 = vpop.permute.xlu0 %7324 }
 0x3e8   : > { %7363 = vst.msk [vmem:[#allocation4 + $0x48] sm:$0xff] %vm19935_vm5, %v7325_v40  ;;  %vm19944_vm5 = vcmask 293888  }
 0x3e9   : > { %9885 = vrot.lane.b32.xlu0 %v9839_v39, %s19477_s12 }
 0x3ea   : > { %v18054_v17 = vpop.f32.mrb[24].mxu0 }
 0x3eb   : > { %v7501_v14 = vpop.permute.xlu0 %7500  ;;  %v18056_v25 = vpop.f32.mrb[25].mxu0 }
 0x3ec   : > { %7539 = vst.msk [vmem:[#allocation4 + $0x48] sm:$0xff] %vm19936_vm13, %v7501_v14  ;;  %v18058_v24 = vpop.f32.mrb[26].mxu0  ;;  %vm19945_vm13 = vmmov %vm19943_vm15 }
 0x3ed   : > { %v7931_v12 = vpop.permute.xlu1 %7930  ;;  %v18061_v45 = vpop.f32.mrb[27].mxu0 }
 0x3ee   : > { %7970 = vst.msk [vmem:[#allocation4 + $0x40] sm:$0xff] %vm19937_vm0, %v7931_v12  ;;  %v13737_v8 = vpop.f32.mrb[20].mxu1  ;;  %vm19946_vm0 = vmmov %vm19944_vm5 }
 0x3ef   : > { %v7933_v28 = vpop.permute.xlu0 %7932  ;;  %v1633_v37 = vadd.f32 %v13737_v8, %v18027_v4  ;;  %v1624_v61 = vpop.f32.mrb[21].mxu1 }
 0x3f0   : > { %7971 = vst.msk [vmem:[#allocation4 + $0x48] sm:$0xff] %vm19939_vm1, %v7933_v28  ;;  %v1625_v33 = vadd.f32 %v18027_v4, %v1624_v61  ;;  %v13738_v43 = vpop.f32.mrb[22].mxu1  ;;  %vm19948_vm1 = vmmov %vm19947_vm9 }
 0x3f1   : > { %v8219_v5 = vpop.permute.xlu1 %8218  ;;  %v1741_v34 = vmax.f32 %v1633_v37, 0.0  ;;  %v1636_v60 = vadd.f32 %v13738_v43, %v18027_v4  ;;  %v1627_v1 = vpop.f32.mrb[23].mxu1 }
 0x3f2   : > { %8258 = vst.msk [vmem:[#allocation4 + $0x40] sm:$0xff] %vm19941_vm2, %v8219_v5  ;;  %v18070_v59 = vpop.f32.mrb[28].mxu0  ;;  %v1739_v54 = vmax.f32 %v1625_v33, 0.0  ;;  %v1628_v7 = vadd.f32 %v18027_v4, %v1627_v1  ;;  %vm19950_vm2 = vmmov %vm19949_vm6 }
 0x3f3   : > { %v6143_v56 = vpop.permute.xlu0 %6142  ;;  %v18073_v58 = vpop.f32.mrb[29].mxu0  ;;  %12059 = vst.msk [vmem:[%s18040_s29 + $0x30] sm:$0xff] %vm9211_vm14, %v1741_v34  ;;  %v1742_v16 = vmax.f32 %v1636_v60, 0.0 }
 0x3f4   : > { %6180 = vst.msk [vmem:[#allocation4 + $0x50] sm:$0xff] %vm2960_vm10, %v6143_v56  ;;  %v18078_v48 = vpop.f32.mrb[30].mxu0  ;;  %v1740_v26 = vmax.f32 %v1628_v7, 0.0 }
 0x3f5   : > { %v8221_v55 = vpop.permute.xlu1 %8220  ;;  %v18083_v18 = vpop.f32.mrb[31].mxu0  ;;  %12057 = vst.msk [vmem:[%s18040_s29 + $0x20] sm:$0xff] %vm9211_vm14, %v1739_v54  ;;  %12060 = vst.msk [vmem:[%s18040_s29 + $0x38] sm:$0xff] %vm9211_vm14, %v1742_v16 }
 0x3f6   : > { %8259 = vst.msk [vmem:[#allocation4 + $0x48] sm:$0xff] %vm19942_vm3, %v8221_v55  ;;  %vm19952_vm3 = vcmask 261344  }
 0x3f7   : > { %v6145_v9 = vpop.permute.xlu0 %6144  ;;  %12058 = vst.msk [vmem:[%s18040_s29 + $0x28] sm:$0xff] %vm9211_vm14, %v1740_v26 }
 0x3f8   : > { %6181 = vst.msk [vmem:[#allocation4 + $0x58] sm:$0xff] %vm2960_vm10, %v6145_v9 }
 0x3f9   : > { %v6431_v46 = vpop.permute.xlu1 %6430  ;;  %v8274_v41 = vld [vmem:[#allocation4 + $0x40] sm:$0xff] }
 0x3fa   : > { %6468 = vst.msk [vmem:[#allocation4 + $0x50] sm:$0xff] %vm19943_vm15, %v6431_v46  ;;  %13823 = vmatprep.mubr.msk.bf16.mxu1 %vm19944_vm5, %v8274_v41  ;;  %v18094_v15 = vpop.f32.mrb[32].mxu0  ;;  %vm19954_vm15 = vmmov %vm19952_vm3  ;;  %vm19955_vm5 = vcmask 294144  }
 0x3fb   : > { %v6433_v11 = vpop.permute.xlu0 %6432  ;;  %v18096_v3 = vpop.f32.mrb[33].mxu0 }
 0x3fc   : > { %6469 = vst.msk [vmem:[#allocation4 + $0x58] sm:$0xff] %vm19945_vm13, %v6433_v11  ;;  %v18099_v51 = vpop.f32.mrb[34].mxu0  ;;  %v13741_v19 = vpop.f32.mrb[24].mxu1  ;;  %vm19956_vm13 = vmmov %vm19955_vm5 }
 0x3fd   : > { %v6607_v52 = vpop.permute.xlu1 %6606  ;;  %v8275_v32 = vld [vmem:[#allocation4 + $0x48] sm:$0xff]  ;;  %v18103_v2 = vpop.f32.mrb[35].mxu0  ;;  %v1649_v23 = vadd.f32 %v13741_v19, %v18027_v4 }
 0x3fe   : > { %6644 = vst.msk [vmem:[#allocation4 + $0x50] sm:$0xff] %vm3427_vm7, %v6607_v52  ;;  %13824 = vmatmul.mubr.msk.bf16.gmra.mrb[64].mxu1 %vm19946_vm0, %v8275_v32  ;;  %v1640_v47 = vpop.f32.mrb[25].mxu1  ;;  %vm19957_vm0 = vmmov %vm19955_vm5 }
 0x3ff   : > { %v6609_v35 = vpop.permute.xlu0 %6608  ;;  %v1641_v40 = vadd.f32 %v18027_v4, %v1640_v47  ;;  %v13742_v62 = vpop.f32.mrb[26].mxu1  ;;  %v1745_v22 = vmax.f32 %v1649_v23, 0.0 }
 0x400   : > { %6645 = vst.msk [vmem:[#allocation4 + $0x58] sm:$0xff] %vm3427_vm7, %v6609_v35  ;;  %v1652_v29 = vadd.f32 %v13742_v62, %v18027_v4  ;;  %v1643_v49 = vpop.f32.mrb[27].mxu1 }
 0x401   : > { %v7039_v42 = vpop.permute.xlu1 %7038  ;;  %v1743_v30 = vmax.f32 %v1641_v40, 0.0  ;;  %v1644_v31 = vadd.f32 %v18027_v4, %v1643_v49  ;;  %12063 = vst.msk [vmem:[%s18040_s29 + $0x50] sm:$0xff] %vm9211_vm14, %v1745_v22  ;;  %v14431_v40 = vld [vmem:[#allocation3 + $0xb4] sm:$0xff]  }
 0x402   : > { %7076 = vst.msk [vmem:[#allocation4 + $0x50] sm:$0xff] %vm3860_vm11, %v7039_v42  ;;  %v18111_v14 = vpop.f32.mrb[36].mxu0  ;;  %v1746_v13 = vmax.f32 %v1652_v29, 0.0 }
 0x403   : > { %v7041_v53 = vpop.permute.xlu0 %7040  ;;  %v18115_v12 = vpop.f32.mrb[37].mxu0  ;;  %12061 = vst.msk [vmem:[%s18040_s29 + $0x40] sm:$0xff] %vm9211_vm14, %v1743_v30  ;;  %v1744_v20 = vmax.f32 %v1644_v31, 0.0 }
 0x404   : > { %7077 = vst.msk [vmem:[#allocation4 + $0x58] sm:$0xff] %vm3860_vm11, %v7041_v53  ;;  %v18120_v63 = vpop.f32.mrb[38].mxu0 }
 0x405   : > { %v7327_v21 = vpop.permute.xlu1 %7326  ;;  %12064 = vst.msk [vmem:[%s18040_s29 + $0x58] sm:$0xff] %vm9211_vm14, %v1746_v13  ;;  %v18125_v27 = vpop.f32.mrb[39].mxu0  ;;  %12062 = vst.msk [vmem:[%s18040_s29 + $0x48] sm:$0xff] %vm9211_vm14, %v1744_v20 }
 0x406   : > { %7364 = vst.msk [vmem:[#allocation4 + $0x50] sm:$0xff] %vm19947_vm9, %v7327_v21  ;;  %vm19958_vm9 = vcmask 293888  }
 0x407   : > { %v7329_v28 = vpop.permute.xlu0 %7328 }
 0x408   : > { %7365 = vst.msk [vmem:[#allocation4 + $0x58] sm:$0xff] %vm19948_vm1, %v7329_v28  ;;  %vm19959_vm1 = vcmask 97344  }
 0x409   : > { %v7503_v8 = vpop.permute.xlu1 %7502 }
 0x40a   : > { %7540 = vst.msk [vmem:[#allocation4 + $0x50] sm:$0xff] %vm19949_vm6, %v7503_v8  ;;  %v18131_v5 = vpop.f32.mrb[40].mxu0  ;;  %vm19960_vm6 = vmmov %vm19958_vm9 }
 0x40b   : > { %v7505_v37 = vpop.permute.xlu0 %7504  ;;  %v18133_v61 = vpop.f32.mrb[41].mxu0 }
 0x40c   : > { %7541 = vst.msk [vmem:[#allocation4 + $0x58] sm:$0xff] %vm19950_vm2, %v7505_v37  ;;  %v18136_v33 = vpop.f32.mrb[42].mxu0  ;;  %vm19961_vm2 = vmmov %vm19959_vm1 }
 0x40d   : > { %v7935_v39 = vpop.permute.xlu1 %7934  ;;  %19951 = vst [vmem:[#allocation29_spill] sm:$0xff] %v18136_v33  ;;  %v18139_v43 = vpop.f32.mrb[43].mxu0 }
 0x40e   : > { %7972 = vst.msk [vmem:[#allocation4 + $0x50] sm:$0xff] %vm19952_vm3, %v7935_v39  ;;  %19953 = vst [vmem:[#allocation44_spill] sm:$0xff] %v18139_v43  ;;  %v13745_v34 = vpop.f32.mrb[28].mxu1 }
 0x40f   : > { %v7937_v60 = vpop.permute.xlu0 %7936  ;;  %v1665_v1 = vadd.f32 %v13745_v34, %v18027_v4  ;;  %v1656_v56 = vpop.f32.mrb[29].mxu1  ;;  %vm19962_vm3 = vmmov %vm19960_vm6 }
 0x410   : > { %7973 = vst.msk [vmem:[#allocation4 + $0x58] sm:$0xff] %vm19954_vm15, %v7937_v60  ;;  %v1657_v7 = vadd.f32 %v18027_v4, %v1656_v56  ;;  %v13746_v55 = vpop.f32.mrb[30].mxu1 }
 0x411   : > { %v8223_v54 = vpop.permute.xlu1 %8222  ;;  %v1749_v16 = vmax.f32 %v1665_v1, 0.0  ;;  %v1668_v26 = vadd.f32 %v13746_v55, %v18027_v4  ;;  %v1659_v9 = vpop.f32.mrb[31].mxu1 }
 0x412   : > { %8260 = vst.msk [vmem:[#allocation4 + $0x50] sm:$0xff] %vm19955_vm5, %v8223_v54  ;;  %v1747_v46 = vmax.f32 %v1657_v7, 0.0  ;;  %v1660_v41 = vadd.f32 %v18027_v4, %v1659_v9  ;;  %vm19965_vm5 = vcmask 228544  }
 0x413   : > { %v5032_v11 = vpop.permute.xlu0 %5031  ;;  %12067 = vst.msk [vmem:[%s18040_s29 + $0x70] sm:$0xff] %vm9211_vm14, %v1749_v16  ;;  %v1750_v52 = vmax.f32 %v1668_v26, 0.0 }
 0x414   : > { %5065 = vst.msk [vmem:[#allocation4 + $0x78] sm:$0xff] %vm19956_vm13, %v5032_v11  ;;  %v1748_v19 = vmax.f32 %v1660_v41, 0.0  ;;  %vm19966_vm13 = vmmov %vm19965_vm5 }
 0x415   : > { %v6147_v32 = vpop.permute.xlu1 %6146  ;;  %12065 = vst.msk [vmem:[%s18040_s29 + $0x60] sm:$0xff] %vm9211_vm14, %v1747_v46  ;;  %12068 = vst.msk [vmem:[%s18040_s29 + $0x78] sm:$0xff] %vm9211_vm14, %v1750_v52 }
 0x416   : > { %6182 = vst.msk [vmem:[#allocation4 + $0x60] sm:$0xff] %vm2960_vm10, %v6147_v32 }
 0x417   : > { %12066 = vst.msk [vmem:[%s18040_s29 + $0x68] sm:$0xff] %vm9211_vm14, %v1748_v19  ;;  %v8225_v23 = vpop.permute.xlu0 %8224 }
 0x418   : > { %8261 = vst.msk [vmem:[#allocation4 + $0x58] sm:$0xff] %vm19957_vm0, %v8225_v23  ;;  %vm19967_vm0 = vcmask 261344  }
 0x419   : > { %v6149_v47 = vpop.permute.xlu1 %6148  ;;  %v8276_v35 = vld [vmem:[#allocation4 + $0x50] sm:$0xff] }
 0x41a   : > { %6183 = vst.msk [vmem:[#allocation4 + $0x68] sm:$0xff] %vm2960_vm10, %v6149_v47  ;;  %13827 = vmatprep.mubr.msk.bf16.mxu1 %vm19958_vm9, %v8276_v35  ;;  %vm19968_vm9 = vmmov %vm19967_vm0 }
 0x41b   : > { %v6435_v62 = vpop.permute.xlu0 %6434  ;;  %v5081_v42 = vld [vmem:[#allocation4 + $0x78] sm:$0xff] }
 0x41c   : > { %6470 = vst.msk [vmem:[#allocation4 + $0x60] sm:$0xff] %vm19959_vm1, %v6435_v62  ;;  %13798 = vmatmul.mubr.msk.bf16.gmra.mrb[44].mxu0 %vm19960_vm6, %v5081_v42  ;;  %vm19969_vm1 = vcmask 294144  }
 0x41d   : > { %v6437_v22 = vpop.permute.xlu1 %6436  ;;  %5753 = vst.msk [vmem:[#allocation4 + $0x78] sm:$0xff] %vm386_vm4, %v14431_v40  ;;  %vm19963_vm4 = vcmask 195744   ;;  %vm19970_vm6 = vmmov %vm19969_vm1 }
 0x41e   : > { %6471 = vst.msk [vmem:[#allocation4 + $0x68] sm:$0xff] %vm19961_vm2, %v6437_v22  ;;  %v13749_v29 = vpop.f32.mrb[32].mxu1  ;;  %vm19964_vm15 = vmmov %vm19963_vm4 }
 0x41f   : > { %v6611_v49 = vpop.permute.xlu0 %6610  ;;  %v8277_v30 = vld [vmem:[#allocation4 + $0x58] sm:$0xff]  ;;  %v1681_v31 = vadd.f32 %v13749_v29, %v18027_v4  ;;  %v1672_v13 = vpop.f32.mrb[33].mxu1 }
 0x420   : > { %6646 = vst.msk [vmem:[#allocation4 + $0x60] sm:$0xff] %vm3427_vm7, %v6611_v49  ;;  %13828 = vmatmul.mubr.msk.bf16.gmra.mrb[68].mxu1 %vm19962_vm3, %v8277_v30  ;;  %v1673_v20 = vadd.f32 %v18027_v4, %v1672_v13  ;;  %v13750_v21 = vpop.f32.mrb[34].mxu1 }
 0x421   : > { %v6613_v53 = vpop.permute.xlu1 %6612  ;;  %v1753_v28 = vmax.f32 %v1681_v31, 0.0  ;;  %v1684_v8 = vadd.f32 %v13750_v21, %v18027_v4  ;;  %v1675_v37 = vpop.f32.mrb[35].mxu1 }
 0x422   : > { %6647 = vst.msk [vmem:[#allocation4 + $0x68] sm:$0xff] %vm3427_vm7, %v6613_v53  ;;  %v1751_v39 = vmax.f32 %v1673_v20, 0.0  ;;  %v1676_v34 = vadd.f32 %v18027_v4, %v1675_v37 }
 0x423   : > { %v7043_v60 = vpop.permute.xlu0 %7042  ;;  %12071 = vst.msk [vmem:[%s18040_s29 + $0x90] sm:$0xff] %vm9211_vm14, %v1753_v28  ;;  %v1754_v1 = vmax.f32 %v1684_v8, 0.0 }
 0x424   : > { %7078 = vst.msk [vmem:[#allocation4 + $0x60] sm:$0xff] %vm3860_vm11, %v7043_v60  ;;  %v1752_v54 = vmax.f32 %v1676_v34, 0.0 }
 0x425   : > { %v7045_v56 = vpop.permute.xlu1 %7044  ;;  %12069 = vst.msk [vmem:[%s18040_s29 + $0x80] sm:$0xff] %vm9211_vm14, %v1751_v39  ;;  %12072 = vst.msk [vmem:[%s18040_s29 + $0x98] sm:$0xff] %vm9211_vm14, %v1754_v1 }
 0x426   : > { %7079 = vst.msk [vmem:[#allocation4 + $0x68] sm:$0xff] %vm3860_vm11, %v7045_v56 }
 0x427   : > { %12070 = vst.msk [vmem:[%s18040_s29 + $0x88] sm:$0xff] %vm9211_vm14, %v1752_v54  ;;  %v7331_v7 = vpop.permute.xlu0 %7330 }
 0x428   : > { %7366 = vst.msk [vmem:[#allocation4 + $0x60] sm:$0xff] %vm19963_vm4, %v7331_v7  ;;  %vm19971_vm4 = vmmov %vm19961_vm2 }
 0x429   : > { %v7333_v55 = vpop.permute.xlu1 %7332 }
 0x42a   : > { %7367 = vst.msk [vmem:[#allocation4 + $0x68] sm:$0xff] %vm19964_vm15, %v7333_v55 }
 0x42b   : > { %v7507_v16 = vpop.permute.xlu0 %7506 }
 0x42c   : > { %7542 = vst.msk [vmem:[#allocation4 + $0x60] sm:$0xff] %vm19965_vm5, %v7507_v16 }
 0x42d   : > { %v7509_v26 = vpop.permute.xlu1 %7508 }
 0x42e   : > { %7543 = vst.msk [vmem:[#allocation4 + $0x68] sm:$0xff] %vm19966_vm13, %v7509_v26  ;;  %v13753_v9 = vpop.f32.mrb[36].mxu1  ;;  %vm19975_vm13 = vmmov %vm19965_vm5 }
 0x42f   : > { %v7939_v46 = vpop.permute.xlu0 %7938  ;;  %v1697_v41 = vadd.f32 %v13753_v9, %v18027_v4  ;;  %v1688_v11 = vpop.f32.mrb[37].mxu1 }
 0x430   : > { %7974 = vst.msk [vmem:[#allocation4 + $0x60] sm:$0xff] %vm19967_vm0, %v7939_v46  ;;  %v1689_v32 = vadd.f32 %v18027_v4, %v1688_v11  ;;  %v13754_v19 = vpop.f32.mrb[38].mxu1 }
 0x431   : > { %v7941_v52 = vpop.permute.xlu1 %7940  ;;  %v1757_v23 = vmax.f32 %v1697_v41, 0.0  ;;  %v1700_v47 = vadd.f32 %v13754_v19, %v18027_v4  ;;  %v1691_v35 = vpop.f32.mrb[39].mxu1 }
 0x432   : > { %7975 = vst.msk [vmem:[#allocation4 + $0x68] sm:$0xff] %vm19968_vm9, %v7941_v52  ;;  %v1755_v40 = vmax.f32 %v1689_v32, 0.0  ;;  %v1692_v62 = vadd.f32 %v18027_v4, %v1691_v35  ;;  %vm19977_vm9 = vmmov %vm19969_vm1 }
 0x433   : > { %v8227_v42 = vpop.permute.xlu0 %8226  ;;  %12075 = vst.msk [vmem:[%s18040_s29 + $0xb0] sm:$0xff] %vm9211_vm14, %v1757_v23  ;;  %v1758_v22 = vmax.f32 %v1700_v47, 0.0 }
 0x434   : > { %8262 = vst.msk [vmem:[#allocation4 + $0x60] sm:$0xff] %vm19969_vm1, %v8227_v42  ;;  %v1756_v49 = vmax.f32 %v1692_v62, 0.0 }
 0x435   : > { %v6151_v29 = vpop.permute.xlu1 %6150  ;;  %12073 = vst.msk [vmem:[%s18040_s29 + $0xa0] sm:$0xff] %vm9211_vm14, %v1755_v40  ;;  %12076 = vst.msk [vmem:[%s18040_s29 + $0xb8] sm:$0xff] %vm9211_vm14, %v1758_v22 }
 0x436   : > { %6184 = vst.msk [vmem:[#allocation4 + $0x70] sm:$0xff] %vm2960_vm10, %v6151_v29 }
 0x437   : > { %12074 = vst.msk [vmem:[%s18040_s29 + $0xa8] sm:$0xff] %vm9211_vm14, %v1756_v49  ;;  %v8229_v30 = vpop.permute.xlu0 %8228 }
 0x438   : > { %8263 = vst.msk [vmem:[#allocation4 + $0x68] sm:$0xff] %vm19970_vm6, %v8229_v30  ;;  %vm19978_vm6 = vmmov %vm19962_vm3 }
 0x439   : > { %v6153_v31 = vpop.permute.xlu1 %6152 }
 0x43a   : > { %6185 = vst.msk [vmem:[#allocation4 + $0x78] sm:$0xff] %vm2960_vm10, %v6153_v31  ;;  %vm19972_vm10 = vmmov %vm19962_vm3 }
 0x43b   : > { %v6439_v13 = vpop.permute.xlu0 %6438  ;;  %v8278_v53 = vld [vmem:[#allocation4 + $0x60] sm:$0xff] }
 0x43c   : > { %6472 = vst.msk [vmem:[#allocation4 + $0x70] sm:$0xff] %vm19961_vm2, %v6439_v13  ;;  %13831 = vmatprep.mubr.msk.bf16.mxu1 %vm19962_vm3, %v8278_v53  ;;  %vm19979_vm2 = vmmov %vm19962_vm3  ;;  %vm19980_vm3 = vsmask.f32 7938 }
 0x43d   : > { %v6441_v20 = vpop.permute.xlu1 %6440 }
 0x43e   : > { %6473 = vst.msk [vmem:[#allocation4 + $0x78] sm:$0xff] %vm19971_vm4, %v6441_v20  ;;  %v13757_v21 = vpop.f32.mrb[40].mxu1  ;;  %vm19981_vm4 = vcmask 60416  }
 0x43f   : > { %v1713_v28 = vadd.f32 %v13757_v21, %v18027_v4  ;;  %v1704_v8 = vpop.f32.mrb[41].mxu1  ;;  %v6615_v37 = vpop.permute.xlu0 %6614  ;;  %v8279_v39 = vld [vmem:[#allocation4 + $0x68] sm:$0xff]  ;;  %v18240_v21 = vld [vmem:[%s19389_s8] ss:$0 sm:$0xff] }
 0x440   : > { %v1705_v34 = vadd.f32 %v18027_v4, %v1704_v8  ;;  %v13758_v60 = vpop.f32.mrb[42].mxu1  ;;  %6648 = vst.msk [vmem:[#allocation4 + $0x70] sm:$0xff] %vm3427_vm7, %v6615_v37  ;;  %13832 = vmatmul.mubr.msk.bf16.gmra.mrb[72].mxu1 %vm19972_vm10, %v8279_v39  ;;  %vm18256_vm10 = vmand %vm19981_vm4, %vm19980_vm3 }
 0x441   : > { %v6617_v1 = vpop.permute.xlu1 %6616  ;;  %v1761_v56 = vmax.f32 %v1713_v28, 0.0  ;;  %v1716_v54 = vadd.f32 %v13758_v60, %v18027_v4  ;;  %v1707_v7 = vpop.f32.mrb[43].mxu1 }
 0x442   : > { %6649 = vst.msk [vmem:[#allocation4 + $0x78] sm:$0xff] %vm3427_vm7, %v6617_v1  ;;  %v1759_v55 = vmax.f32 %v1705_v34, 0.0  ;;  %v1708_v16 = vadd.f32 %v18027_v4, %v1707_v7  ;;  %vm19973_vm7 = vmmov %vm19964_vm15 }
 0x443   : > { %12079 = vst.msk [vmem:[%s18040_s29 + $0xd0] sm:$0xff] %vm9211_vm14, %v1761_v56  ;;  %v1762_v26 = vmax.f32 %v1716_v54, 0.0  ;;  %v7047_v9 = vpop.permute.xlu0 %7046  ;;  %vm19974_vm15 = vmmov %vm19973_vm7 }
 0x444   : > { %12077 = vst.msk [vmem:[%s18040_s29 + $0xc0] sm:$0xff] %vm9211_vm14, %v1759_v55  ;;  %v1760_v46 = vmax.f32 %v1708_v16, 0.0 }
 0x445   : > { %v7049_v41 = vpop.permute.xlu1 %7048  ;;  %7080 = vst.msk [vmem:[#allocation4 + $0x70] sm:$0xff] %vm3860_vm11, %v7047_v9 }
 0x446   : > { %12080 = vst.msk [vmem:[%s18040_s29 + $0xd8] sm:$0xff] %vm9211_vm14, %v1762_v26  ;;  %12078 = vst.msk [vmem:[%s18040_s29 + $0xc8] sm:$0xff] %vm9211_vm14, %v1760_v46 }
 0x447   : > { %7081 = vst.msk [vmem:[#allocation4 + $0x78] sm:$0xff] %vm3860_vm11, %v7049_v41  ;;  %v7335_v11 = vpop.permute.xlu0 %7334  ;;  %vm19976_vm11 = vmmov %vm19967_vm0 }
 0x448   : > { %7368 = vst.msk [vmem:[#allocation4 + $0x70] sm:$0xff] %vm19973_vm7, %v7335_v11  ;;  %vm9644_vm7 = vcmask 130112  }
 0x449   : > { %v7337_v52 = vpop.permute.xlu1 %7336 }
 0x44a   : > { %7369 = vst.msk [vmem:[#allocation4 + $0x78] sm:$0xff] %vm19974_vm15, %v7337_v52  ;;  %vm9933_vm15 = vcmask 195712  }
 0x44b   : > { %v7511_v32 = vpop.permute.xlu0 %7510 }
 0x44c   : > { %7544 = vst.msk [vmem:[#allocation4 + $0x70] sm:$0xff] %vm19965_vm5, %v7511_v32  ;;  %vm19986_vm5 = vmmov %vm19981_vm4 }
 0x44d   : > { %v7513_v19 = vpop.permute.xlu1 %7512 }
 0x44e   : > { %v13761_v23 = vpop.f32.mrb[44].mxu1  ;;  %7545 = vst.msk [vmem:[#allocation4 + $0x78] sm:$0xff] %vm19975_vm13, %v7513_v19  ;;  %vm19987_vm13 = vmmov %vm19981_vm4 }
 0x44f   : > { %v1729_v47 = vadd.f32 %v13761_v23, %v18027_v4  ;;  %v1720_v35 = vpop.f32.mrb[45].mxu1  ;;  %v7943_v42 = vpop.permute.xlu0 %7942 }
 0x450   : > { %v1721_v40 = vadd.f32 %v18027_v4, %v1720_v35  ;;  %v13762_v62 = vpop.f32.mrb[46].mxu1  ;;  %7976 = vst.msk [vmem:[#allocation4 + $0x70] sm:$0xff] %vm19976_vm11, %v7943_v42  ;;  %vm19988_vm11 = vcmask 1046528  }
 0x451   : > { %v1765_v22 = vmax.f32 %v1729_v47, 0.0  ;;  %v1732_v29 = vadd.f32 %v13762_v62, %v18027_v4  ;;  %v1723_v49 = vpop.f32.mrb[47].mxu1  ;;  %v7945_v30 = vpop.permute.xlu1 %7944 }
 0x452   : > { %v1763_v31 = vmax.f32 %v1721_v40, 0.0  ;;  %v1724_v13 = vadd.f32 %v18027_v4, %v1723_v49  ;;  %7977 = vst.msk [vmem:[#allocation4 + $0x78] sm:$0xff] %vm19967_vm0, %v7945_v30  ;;  %vm19989_vm0 = vmmov %vm19988_vm11 }
 0x453   : > { %12083 = vst.msk [vmem:[%s18040_s29 + $0xf0] sm:$0xff] %vm9211_vm14, %v1765_v22  ;;  %v1766_v53 = vmax.f32 %v1732_v29, 0.0  ;;  %v8231_v28 = vpop.permute.xlu0 %8230  ;;  %vm19994_vm3 = vmmov %vm19989_vm0 }
 0x454   : > { %12081 = vst.msk [vmem:[%s18040_s29 + $0xe0] sm:$0xff] %vm9211_vm14, %v1763_v31  ;;  %v1764_v20 = vmax.f32 %v1724_v13, 0.0 }
 0x455   : > { %12084 = vst.msk [vmem:[%s18040_s29 + $0xf8] sm:$0xff] %vm9211_vm14, %v1766_v53  ;;  %v8233_v8 = vpop.permute.xlu1 %8232 }
 0x456   : > { %8264 = vst.msk [vmem:[#allocation4 + $0x70] sm:$0xff] %vm19977_vm9, %v8231_v28  ;;  %v13809_v4 = vpop.f32.mrb[48].mxu1  ;;  %vm19990_vm9 = vmmov %vm19981_vm4 }
 0x457   : > { %12082 = vst.msk [vmem:[%s18040_s29 + $0xe8] sm:$0xff] %vm9211_vm14, %v1764_v20  ;;  %v8403_v37 = vadd.f32 %v13809_v4, %v18240_v21  ;;  %v8394_v39 = vpop.f32.mrb[49].mxu1  ;;  %v8978_v20 = vld [vmem:[#allocation3 + $0x18] sm:$0xf]  ;;  %v14506_v4 = vld [vmem:[#allocation3] sm:$0xff]  }
 0x458   : > { %8265 = vst.msk [vmem:[#allocation4 + $0x78] sm:$0xff] %vm19969_vm1, %v8233_v8  ;;  %v8395_v34 = vadd.f32 %v18240_v21, %v8394_v39  ;;  %v13810_v60 = vpop.f32.mrb[50].mxu1  ;;  %vm19991_vm1 = vmmov %vm19989_vm0 }
 0x459   : > { %v8523_v1 = vmax.f32 %v8403_v37, 0.0  ;;  %v8406_v56 = vadd.f32 %v13810_v60, %v18240_v21  ;;  %v8397_v54 = vpop.f32.mrb[51].mxu1  ;;  %v9597_v37 = vpop.permute.xlu0 %9596  ;;  %v8971_v60 = vld [vmem:[#allocation3 + $0xc] sm:$0xf]  ;;  %9212 = vst.msk [vmem:[#allocation4] sm:$0xff] %vm9211_vm14, %v14506_v4 }
 0x45a   : > { %v8521_v7 = vmax.f32 %v8395_v34, 0.0  ;;  %v8398_v55 = vadd.f32 %v18240_v21, %v8397_v54  ;;  %9645 = vst.msk [vmem:[#allocation4] sm:$0xff] %vm9644_vm7, %v9597_v37 }
 0x45b   : > { %v13571_v16 = vpack.c.bf16 %v8523_v1, %v8523_v1  ;;  %v8524_v26 = vmax.f32 %v8406_v56, 0.0 }
 0x45c   : > { %v13569_v9 = vpack.c.bf16 %v8521_v7, %v8521_v7  ;;  %v8522_v46 = vmax.f32 %v8398_v55, 0.0  ;;  %v8982_v7 = vld [vmem:[#allocation3 + $0x20] sm:$0x1] }
 0x45d   : > { %v8280_v41 = vld [vmem:[#allocation4 + $0x70] sm:$0xff]  ;;  %v8667_v11 = vshrl.u32 %v13571_v16, 16  ;;  %v13572_v52 = vpack.c.bf16 %v8524_v26, %v8524_v26  ;;  %v8670_v35 = vshll.u32 %v13571_v16, 16 }
 0x45e   : > { %13835 = vmatprep.mubr.msk.bf16.mxu1 %vm19978_vm6, %v8280_v41  ;;  %v8650_v19 = vshrl.u32 %v13569_v9, 16  ;;  %v13570_v23 = vpack.c.bf16 %v8522_v46, %v8522_v46  ;;  %v8653_v22 = vshll.u32 %v13569_v9, 16  ;;  %vm19992_vm6 = vmmov %vm19981_vm4 }
 0x45f   : > { %v8281_v32 = vld [vmem:[#allocation4 + $0x78] sm:$0xff]  ;;  %v8669_v47 = vrot.slane %v8667_v11, 7  ;;  %v8675_v40 = vshrl.u32 %v13572_v52, 16  ;;  %v8678_v31 = vshll.u32 %v13572_v52, 16  ;;  %v13813_v26 = vpop.f32.mrb[52].mxu1 }
 0x460   : > { %13836 = vmatmul.mubr.msk.bf16.gmra.mrb[76].mxu1 %vm19979_vm2, %v8281_v32  ;;  %v8652_v42 = vrot.slane %v8650_v19, 7  ;;  %v8658_v29 = vshrl.u32 %v13570_v23, 16  ;;  %v8661_v13 = vshll.u32 %v13570_v23, 16  ;;  %v8975_v52 = vld [vmem:[#allocation3 + $0x14] sm:$0x1]  ;;  %v8419_v32 = vadd.f32 %v13813_v26, %v18240_v21  ;;  %v8410_v19 = vpop.f32.mrb[53].mxu1 }
 0x461   : > { %v8672_v49 = vor.u32 %v8670_v35, %v8669_v47  ;;  %v8677_v30 = vrot.slane %v8675_v40, 7  ;;  %v8673_v53 = vrot.slane %v8669_v47, 4  ;;  %v8411_v35 = vadd.f32 %v18240_v21, %v8410_v19  ;;  %v13814_v40 = vpop.f32.mrb[54].mxu1  ;;  %v8992_v26 = vld [vmem:[#allocation3 + $0x30] sm:$0xf] }
 0x462   : > { %v8655_v28 = vor.u32 %v8653_v22, %v8652_v42  ;;  %v8660_v8 = vrot.slane %v8658_v29, 7  ;;  %v8656_v34 = vrot.slane %v8652_v42, 4  ;;  %v9886_v42 = vpop.permute.xlu0 %9885  ;;  %v8527_v22 = vmax.f32 %v8419_v32, 0.0 }
 0x463   : > { %v8979_v39 = vsel %vm18256_vm10, %v8672_v49, %v8978_v20  ;;  %v8680_v1 = vor.u32 %v8678_v31, %v8677_v30  ;;  %v8682_v56 = vrot.slane %v8677_v30, 4  ;;  %v8422_v29 = vadd.f32 %v13814_v40, %v18240_v21  ;;  %v8413_v49 = vpop.f32.mrb[55].mxu1  ;;  %9934 = vst.msk [vmem:[#allocation4] sm:$0xff] %vm9933_vm15, %v9886_v42 }
 0x464   : > { %8980 = vst [vmem:[#allocation3 + $0x18] sm:$0xf] %v8979_v39  ;;  %v8972_v54 = vsel %vm18256_vm10, %v8655_v28, %v8971_v60  ;;  %v8663_v55 = vor.u32 %v8661_v13, %v8660_v8  ;;  %v8665_v16 = vrot.slane %v8660_v8, 4  ;;  %v8525_v30 = vmax.f32 %v8411_v35, 0.0 }
 0x465   : > { %8973 = vst [vmem:[#allocation3 + $0xc] sm:$0xf] %v8972_v54  ;;  %v8681_v46 = vsel %vm15107_vm12, %v8673_v53, %v8680_v1  ;;  %v8983_v11 = vsel %vm14982_vm8, %v8682_v56, %v8982_v7  ;;  %v8414_v31 = vadd.f32 %v18240_v21, %v8413_v49  ;;  %v13575_v13 = vpack.c.bf16 %v8527_v22, %v8527_v22 }
 0x466   : > { %8981 = vst.msk [vmem:[#allocation3 + $0x1c] sm:$0xf] %vm19986_vm5, %v8681_v46  ;;  %8984 = vst [vmem:[#allocation3 + $0x20] sm:$0x1] %v8983_v11  ;;  %v8664_v23 = vsel %vm15107_vm12, %v8656_v34, %v8663_v55  ;;  %v8976_v47 = vsel %vm14982_vm8, %v8665_v16, %v8975_v52  ;;  %v8528_v53 = vmax.f32 %v8422_v29, 0.0  ;;  %v13573_v20 = vpack.c.bf16 %v8525_v30, %v8525_v30 }
 0x467   : > { %8974 = vst.msk [vmem:[#allocation3 + $0x10] sm:$0xf] %vm19987_vm13, %v8664_v23  ;;  %8977 = vst [vmem:[#allocation3 + $0x14] sm:$0x1] %v8976_v47  ;;  %v8526_v28 = vmax.f32 %v8414_v31, 0.0  ;;  %v8701_v4 = vshrl.u32 %v13575_v13, 16 }
 0x468   : > { %v13576_v8 = vpack.c.bf16 %v8528_v53, %v8528_v53  ;;  %v8704_v37 = vshll.u32 %v13575_v13, 16  ;;  %v8684_v39 = vshrl.u32 %v13573_v20, 16  ;;  %v8687_v34 = vshll.u32 %v13573_v20, 16  ;;  %v8985_v23 = vld [vmem:[#allocation3 + $0x24] sm:$0xf]  ;;  %vm19996_vm5 = vmmov %vm19989_vm0 }
 0x469   : > { %v8703_v54 = vrot.slane %v8701_v4, 7  ;;  %v13574_v47 = vpack.c.bf16 %v8526_v28, %v8526_v28  ;;  %v8996_v28 = vld [vmem:[#allocation3 + $0x38] sm:$0x1]  ;;  %vm19993_vm2 = vsmask.f32 7424 }
 0x46a   : > { %v8709_v1 = vshrl.u32 %v13576_v8, 16  ;;  %v8686_v52 = vrot.slane %v8684_v39, 7  ;;  %v8712_v31 = vshll.u32 %v13576_v8, 16  ;;  %vm19995_vm4 = vmmov %vm19993_vm2 }
 0x46b   : > { %v8706_v46 = vor.u32 %v8704_v37, %v8703_v54  ;;  %v8707_v11 = vrot.slane %v8703_v54, 4  ;;  %vm19997_vm13 = vmmov %vm19993_vm2 }
 0x46c   : > { %v8689_v40 = vor.u32 %v8687_v34, %v8686_v52  ;;  %v8690_v42 = vrot.slane %v8686_v52, 4  ;;  %v8711_v30 = vrot.slane %v8709_v1, 7 }
 0x46d   : > { %v14436_v60 = vld [vmem:[#allocation3 + $0x18] sm:$0xff]   ;;  %v14439_v55 = vld [vmem:[#allocation3 + $0x20] ss:$0 sps:$4 sm:$0x11]   ;;  %v8993_v35 = vsel %vm18256_vm10, %v8706_v46, %v8992_v26  ;;  %v8989_v46 = vld [vmem:[#allocation3 + $0x2c] sm:$0x1] }
 0x46e   : > { %v14437_v56 = vld [vmem:[#allocation3 + $0x18] sm:$0xff]   ;;  %10961 = vrot.lane.b32.xlu1 %v14436_v60, %s14755_s16  ;;  %v14440_v16 = vld [vmem:[#allocation3 + $0xc] sm:$0xff]   ;;  %v9844_v19 = vrot.slane %v14439_v55, 1  ;;  %v14442_v29 = vld [vmem:[#allocation3 + $0x20] ss:$0 sps:$4 sm:$0x11]   ;;  %v8986_v13 = vsel %vm18256_vm10, %v8689_v40, %v8985_v23  ;;  %v8714_v37 = vor.u32 %v8712_v31, %v8711_v30 }
 0x46f   : > { %v14438_v7 = vld [vmem:[#allocation3 + $0x18] sm:$0xfe]   ;;  %10064 = vrot.lane.b32.xlu0 %v14437_v56, %s19685_s13  ;;  %8994 = vst [vmem:[#allocation3 + $0x30] sm:$0xf] %v8993_v35  ;;  %v10740_v20 = vrot.slane %v14442_v29, 1  ;;  %v8716_v39 = vrot.slane %v8711_v30, 4 }
 0x470   : > { %v9843_v32 = vrot.slane %v14438_v7, 1  ;;  %v14441_v22 = vld [vmem:[#allocation3 + $0x18] sm:$0xfe]   ;;  %8987 = vst [vmem:[#allocation3 + $0x24] sm:$0xf] %v8986_v13  ;;  %v8692_v60 = vshrl.u32 %v13574_v47, 16  ;;  %v8715_v8 = vsel %vm15107_vm12, %v8707_v11, %v8714_v37 }
 0x471   : > { %v10739_v53 = vrot.slane %v14441_v22, 1  ;;  %v14443_v4 = vld [vmem:[#allocation3 + $0x18] sm:$0xfe]   ;;  %v14444_v34 = vld [vmem:[#allocation3 + $0x20] ss:$0 sps:$4 sm:$0x11]   ;;  %v8997_v55 = vsel %vm14982_vm8, %v8716_v39, %v8996_v28 }
 0x472   : > { %v9845_v49 = vsel %vm19988_vm11, %v9843_v32, %v9844_v19  ;;  %10062 = vrot.lane.b32.xlu1 %v14440_v16, %s19685_s13  ;;  %v8695_v56 = vshll.u32 %v13574_v47, 16  ;;  %v11635_v7 = vrot.slane %v14443_v4, 1  ;;  %v14445_v1 = vld [vmem:[#allocation3 + $0x18] sm:$0xff]   ;;  %v11636_v16 = vrot.slane %v14444_v34, 1  ;;  %8995 = vst.msk [vmem:[#allocation3 + $0x34] sm:$0xf] %vm19990_vm9, %v8715_v8  ;;  %vm19998_vm11 = vmmov %vm19993_vm2 }
 0x473   : > { %9889 = vrot.lane.b32.xlu0 %v9845_v49, %s19477_s12  ;;  %v10741_v54 = vsel %vm19989_vm0, %v10739_v53, %v10740_v20  ;;  %v8694_v26 = vrot.slane %v8692_v60, 7  ;;  %8998 = vst [vmem:[#allocation3 + $0x38] sm:$0x1] %v8997_v55  ;;  %v14446_v52 = vld [vmem:[#allocation3 + $0x20] ss:$0 sps:$4 sm:$0x11]   ;;  %vm19999_vm0 = vmmov %vm19993_vm2 }
 0x474   : > { %v9429_v32 = vshrl.u32 %v14445_v1, 16  ;;  %v9431_v19 = vshll.u32 %v14445_v1, 16  ;;  %v14449_v23 = vld [vmem:[#allocation3 + $0x18] sm:$0xff]   ;;  %v11637_v47 = vsel %vm19991_vm1, %v11635_v7, %v11636_v16  ;;  %v9436_v29 = vshll.u32 %v14446_v52, 16  ;;  %v14447_v49 = vld [vmem:[#allocation3 + $0xc] sm:$0xfe]   ;;  %vm20000_vm9 = vmmov %vm19991_vm1 }
 0x475   : > { %v8697_v35 = vor.u32 %v8695_v56, %v8694_v26  ;;  %v8699_v11 = vrot.slane %v8694_v26, 4  ;;  %v14453_v40 = vld [vmem:[#allocation3 + $0x18] sm:$0xff]   ;;  %v14448_v13 = vld [vmem:[#allocation3 + $0x14] ss:$0 sps:$4 sm:$0x11]   ;;  %v10316_v53 = vshrl.u32 %v14449_v23, 16 }
 0x476   : > { %11683 = vrot.lane.b32.xlu1 %v11637_v47, %s19479_s14  ;;  %v9433_v22 = vrot.slane %v9431_v19, 1  ;;  %v9438_v28 = vrot.slane %v9436_v29, 1  ;;  %v9840_v4 = vrot.slane %v14447_v49, 1  ;;  %v10318_v37 = vshll.u32 %v14449_v23, 16  ;;  %v14455_v39 = vld [vmem:[#allocation3 + $0xc] sm:$0xff]  }
 0x477   : > { %10786 = vrot.lane.b32.xlu0 %v10741_v54, %s14756_s25  ;;  %v8698_v30 = vsel %vm15107_vm12, %v8690_v42, %v8697_v35  ;;  %v8990_v31 = vsel %vm14982_vm8, %v8699_v11, %v8989_v46  ;;  %v9841_v34 = vrot.slane %v14448_v13, 1  ;;  %v14450_v60 = vld [vmem:[#allocation3 + $0x20] ss:$0 sps:$4 sm:$0x11]   ;;  %v11203_v7 = vshrl.u32 %v14453_v40, 16  ;;  %v14457_v13 = vld [vmem:[#allocation3 + $0xc] sm:$0xff]  }
 0x478   : > { %8988 = vst.msk [vmem:[#allocation3 + $0x28] sm:$0xf] %vm19992_vm6, %v8698_v30  ;;  %8991 = vst [vmem:[#allocation3 + $0x2c] sm:$0x1] %v8990_v31  ;;  %v9434_v20 = vor.u32 %v9433_v22, %v9429_v32  ;;  %v10320_v54 = vrot.slane %v10318_v37, 1  ;;  %v10323_v1 = vshll.u32 %v14450_v60, 16 }
 0x479   : > { %v9842_v42 = vsel %vm19994_vm3, %v9840_v4, %v9841_v34  ;;  %v14451_v8 = vld [vmem:[#allocation3 + $0xc] sm:$0xfe]   ;;  %v14452_v55 = vld [vmem:[#allocation3 + $0x14] ss:$0 sps:$4 sm:$0x11]   ;;  %v11205_v19 = vshll.u32 %v14453_v40, 16  ;;  %vm20002_vm3 = vmmov %vm19992_vm6 }
 0x47a   : > { %v9439_v56 = vsel %vm19993_vm2, %v9434_v20, %v9438_v28  ;;  %9887 = vrot.lane.b32.xlu1 %v9842_v42, %s19477_s12  ;;  %v10321_v16 = vor.u32 %v10320_v54, %v10316_v53  ;;  %v10325_v26 = vrot.slane %v10323_v1, 1  ;;  %v10736_v46 = vrot.slane %v14451_v8, 1  ;;  %v14454_v32 = vld [vmem:[#allocation3 + $0x20] ss:$0 sps:$4 sm:$0x11]   ;;  %v14459_v53 = vld [vmem:[#allocation3 + $0x30] sm:$0xff]   ;;  %vm20001_vm2 = vmmov %vm19991_vm1 }
 0x47b   : > { %9600 = vrot.lane.b32.xlu0 %v9439_v56, %s19483_s22  ;;  %v10737_v52 = vrot.slane %v14452_v55, 1  ;;  %v9417_v23 = vshrl.u32 %v14455_v39, 16  ;;  %v11210_v11 = vshll.u32 %v14454_v32, 16  ;;  %v14456_v22 = vld [vmem:[#allocation3 + $0x14] ss:$0 sps:$4 sm:$0x11]  }
 0x47c   : > { %v10326_v47 = vsel %vm19995_vm4, %v10321_v16, %v10325_v26  ;;  %v11207_v29 = vrot.slane %v11205_v19, 1  ;;  %v9419_v49 = vshll.u32 %v14455_v39, 16  ;;  %v9424_v31 = vshll.u32 %v14456_v22, 16  ;;  %v14458_v40 = vld [vmem:[#allocation3 + $0x14] ss:$0 sps:$4 sm:$0x11]   ;;  %vm20003_vm4 = vmmov %vm19991_vm1 }
 0x47d   : > { %v10738_v35 = vsel %vm19996_vm5, %v10736_v46, %v10737_v52  ;;  %v11212_v30 = vrot.slane %v11210_v11, 1  ;;  %v10306_v4 = vshll.u32 %v14457_v13, 16  ;;  %v10311_v56 = vshll.u32 %v14458_v40, 16  ;;  %v18316_v55 = vld [vmem:[#allocation3 + $0x30] sm:$0xff]   ;;  %vm20004_vm5 = vmmov %vm19991_vm1 }
 0x47e   : > { %10784 = vrot.lane.b32.xlu1 %v10738_v35, %s14756_s25  ;;  %v11208_v20 = vor.u32 %v11207_v29, %v11203_v7  ;;  %v9421_v28 = vrot.slane %v9419_v49, 1  ;;  %v9426_v60 = vrot.slane %v9424_v31, 1  ;;  %v10304_v54 = vshrl.u32 %v14457_v13, 16  ;;  %v14463_v19 = vld [vmem:[#allocation3 + $0x30] sm:$0xfe]  }
 0x47f   : > { %10497 = vrot.lane.b32.xlu0 %v10326_v47, %s14752_s30  ;;  %v10308_v39 = vrot.slane %v10306_v4, 1  ;;  %v14461_v42 = vld [vmem:[#allocation3 + $0x24] sm:$0xff]   ;;  %v13817_v1 = vpop.f32.mrb[56].mxu1  ;;  %v10313_v46 = vrot.slane %v10311_v56, 1  ;;  %v9849_v22 = vrot.slane %v14463_v19, 1  ;;  %v14460_v29 = vld [vmem:[#allocation3 + $0x30] sm:$0xff]  }
 0x480   : > { %v11213_v37 = vsel %vm19997_vm13, %v11208_v20, %v11212_v30  ;;  %v9422_v34 = vor.u32 %v9421_v28, %v9417_v23  ;;  %v8435_v8 = vadd.f32 %v13817_v1, %v18240_v21  ;;  %v8426_v7 = vpop.f32.mrb[57].mxu1  ;;  %v14464_v35 = vld [vmem:[#allocation3 + $0x38] ss:$0 sps:$4 sm:$0x11]   ;;  %v18323_v13 = vld [vmem:[#allocation3 + $0x30] sm:$0xfe]   ;;  %vm20006_vm13 = vmmov %vm19991_vm1 }
 0x481   : > { %v10309_v26 = vor.u32 %v10308_v39, %v10304_v54  ;;  %v8427_v52 = vadd.f32 %v18240_v21, %v8426_v7  ;;  %v13818_v32 = vpop.f32.mrb[58].mxu1  ;;  %v9850_v31 = vrot.slane %v14464_v35, 1  ;;  %v18327_v4 = vld [vmem:[#allocation3 + $0x38] ss:$0 sps:$4 sm:$0x11]  }
 0x482   : > { %11394 = vrot.lane.b32.xlu1 %v11213_v37, %s19481_s15  ;;  %v9427_v16 = vsel %vm19998_vm11, %v9422_v34, %v9426_v60  ;;  %v8531_v23 = vmax.f32 %v8435_v8, 0.0  ;;  %v8438_v47 = vadd.f32 %v13818_v32, %v18240_v21  ;;  %v9455_v34 = vshll.u32 %v18316_v55, 16  ;;  %v9006_v19 = vld [vmem:[#allocation3 + $0x48] sm:$0xf]  ;;  %vm20007_vm11 = vmmov %vm19999_vm0 }
 0x483   : > { %10068 = vrot.lane.b32.xlu0 %v14459_v53, %s19685_s13  ;;  %v8529_v11 = vmax.f32 %v8427_v52, 0.0  ;;  %v8429_v53 = vpop.f32.mrb[59].mxu1  ;;  %v10314_v28 = vsel %vm19999_vm0, %v10309_v26, %v10313_v46  ;;  %v9851_v39 = vsel %vm20000_vm9, %v9849_v22, %v9850_v31  ;;  %v11641_v8 = vrot.slane %v18323_v13, 1  ;;  %v8999_v31 = vld [vmem:[#allocation3 + $0x3c] sm:$0xf]  ;;  %vm20008_vm9 = vmmov %vm19999_vm0 }
 0x484   : > { %v13579_v49 = vpack.c.bf16 %v8531_v23, %v8531_v23  ;;  %v8532_v30 = vmax.f32 %v8438_v47, 0.0  ;;  %v8430_v37 = vadd.f32 %v18240_v21, %v8429_v53  ;;  %v11642_v7 = vrot.slane %v18327_v4, 1  ;;  %v14468_v47 = vld [vmem:[#allocation3 + $0x38] ss:$0 sps:$4 sm:$0x11]  }
 0x485   : > { %v13577_v40 = vpack.c.bf16 %v8529_v11, %v8529_v11  ;;  %v9457_v11 = vrot.slane %v9455_v34, 1  ;;  %v9010_v4 = vld [vmem:[#allocation3 + $0x50] sm:$0x1]  ;;  %v14470_v20 = vld [vmem:[#allocation3 + $0x2c] ss:$0 sps:$4 sm:$0x11]  }
 0x486   : > { %9598 = vrot.lane.b32.xlu1 %v9427_v16, %s19483_s22  ;;  %v8735_v60 = vshrl.u32 %v13579_v49, 16  ;;  %v8738_v56 = vshll.u32 %v13579_v49, 16  ;;  %v13580_v54 = vpack.c.bf16 %v8532_v30, %v8532_v30  ;;  %v14467_v16 = vld [vmem:[#allocation3 + $0x30] sm:$0xfe]   ;;  %v8530_v32 = vmax.f32 %v8430_v37, 0.0  ;;  %v14462_v37 = vld [vmem:[#allocation3 + $0x24] sm:$0xff]  }
 0x487   : > { %10963 = vrot.lane.b32.xlu0 %v14461_v42, %s14755_s16  ;;  %v8718_v42 = vshrl.u32 %v13577_v40, 16  ;;  %v8721_v1 = vshll.u32 %v13577_v40, 16  ;;  %v10745_v35 = vrot.slane %v14467_v16, 1  ;;  %v18336_v49 = vld [vmem:[#allocation3 + $0x30] sm:$0xff]  }
 0x488   : > { %v8737_v26 = vrot.slane %v8735_v60, 7  ;;  %v8743_v46 = vshrl.u32 %v13580_v54, 16  ;;  %v8746_v52 = vshll.u32 %v13580_v54, 16  ;;  %v13578_v53 = vpack.c.bf16 %v8530_v32, %v8530_v32  ;;  %v14469_v54 = vld [vmem:[#allocation3 + $0x24] sm:$0xfe]  }
 0x489   : > { %v8720_v23 = vrot.slane %v8718_v42, 7  ;;  %v10746_v60 = vrot.slane %v14468_v47, 1  ;;  %v14479_v47 = vld [vmem:[#allocation3 + $0x30] sm:$0xff]  }
 0x48a   : > { %10495 = vrot.lane.b32.xlu1 %v10314_v28, %s14752_s30  ;;  %v8740_v22 = vor.u32 %v8738_v56, %v8737_v26  ;;  %v8741_v30 = vrot.slane %v8737_v26, 4  ;;  %v8745_v13 = vrot.slane %v8743_v46, 7  ;;  %v8726_v16 = vshrl.u32 %v13578_v53, 16 }
 0x48b   : > { %9893 = vrot.lane.b32.xlu0 %v9851_v39, %s19477_s12  ;;  %v8723_v28 = vor.u32 %v8721_v1, %v8720_v23  ;;  %v8724_v40 = vrot.slane %v8720_v23, 4  ;;  %v8729_v56 = vshll.u32 %v13578_v53, 16  ;;  %v10747_v26 = vsel %vm19991_vm1, %v10745_v35, %v10746_v60  ;;  %v14471_v23 = vld [vmem:[#allocation3 + $0x24] sm:$0xfe]   ;;  %v9003_v35 = vld [vmem:[#allocation3 + $0x44] sm:$0x1]  ;;  %vm20009_vm1 = vmmov %vm19999_vm0 }
 0x48c   : > { %v9007_v39 = vsel %vm18256_vm10, %v8740_v22, %v9006_v19  ;;  %v8748_v42 = vor.u32 %v8746_v52, %v8745_v13  ;;  %v8750_v34 = vrot.slane %v8745_v13, 4  ;;  %v9846_v1 = vrot.slane %v14469_v54, 1  ;;  %v14472_v22 = vld [vmem:[#allocation3 + $0x2c] ss:$0 sps:$4 sm:$0x11]  }
 0x48d   : > { %9008 = vst [vmem:[#allocation3 + $0x48] sm:$0xf] %v9007_v39  ;;  %v8728_v32 = vrot.slane %v8726_v16, 7  ;;  %v9847_v19 = vrot.slane %v14470_v20, 1  ;;  %v11643_v60 = vsel %vm20001_vm2, %v11641_v8, %v11642_v7  ;;  %vm20011_vm2 = vmmov %vm19999_vm0 }
 0x48e   : > { %10965 = vrot.lane.b32.xlu1 %v14460_v29, %s14755_s16  ;;  %v9000_v29 = vsel %vm18256_vm10, %v8723_v28, %v8999_v31  ;;  %v8749_v46 = vsel %vm15107_vm12, %v8741_v30, %v8748_v42  ;;  %v9011_v52 = vsel %vm14982_vm8, %v8750_v34, %v9010_v4  ;;  %v11227_v31 = vshrl.u32 %v18336_v49, 16  ;;  %v14473_v30 = vld [vmem:[#allocation3 + $0x24] sm:$0xfe]   ;;  %v14474_v54 = vld [vmem:[#allocation3 + $0x2c] ss:$0 sps:$4 sm:$0x11]  }
 0x48f   : > { %9001 = vst [vmem:[#allocation3 + $0x3c] sm:$0xf] %v9000_v29  ;;  %10790 = vrot.lane.b32.xlu0 %v10747_v26, %s14756_s25  ;;  %9009 = vst.msk [vmem:[#allocation3 + $0x4c] sm:$0xf] %vm19992_vm6, %v8749_v46  ;;  %v8731_v13 = vor.u32 %v8729_v56, %v8728_v32  ;;  %v8733_v53 = vrot.slane %v8728_v32, 4  ;;  %v11638_v28 = vrot.slane %v14471_v23, 1  ;;  %v9848_v56 = vsel %vm20004_vm5, %v9846_v1, %v9847_v19 }
 0x490   : > { %9012 = vst [vmem:[#allocation3 + $0x50] sm:$0x1] %v9011_v52  ;;  %v11639_v4 = vrot.slane %v14472_v22, 1  ;;  %v10742_v39 = vrot.slane %v14473_v30, 1  ;;  %v11229_v42 = vshll.u32 %v18336_v49, 16  ;;  %v10743_v16 = vrot.slane %v14474_v54, 1  ;;  %vm20010_vm6 = vmmov %vm19999_vm0 }
 0x491   : > { %v8732_v20 = vsel %vm15107_vm12, %v8724_v40, %v8731_v13  ;;  %v14476_v8 = vld [vmem:[#allocation3 + $0x38] ss:$0 sps:$4 sm:$0x11]   ;;  %v10340_v29 = vshrl.u32 %v14479_v47, 16  ;;  %v20005_v40 = vshrl.u32 %v18316_v55, 16  ;;  %v10342_v49 = vshll.u32 %v14479_v47, 16  ;;  %vm20014_vm5 = vmmov %vm19999_vm0 }
 0x492   : > { %10066 = vrot.lane.b32.xlu1 %v14462_v37, %s19685_s13  ;;  %v9004_v37 = vsel %vm14982_vm8, %v8733_v53, %v9003_v35  ;;  %9002 = vst.msk [vmem:[#allocation3 + $0x40] sm:$0xf] %vm20002_vm3, %v8732_v20  ;;  %v11640_v34 = vsel %vm20003_vm4, %v11638_v28, %v11639_v4  ;;  %v11231_v7 = vrot.slane %v11229_v42, 1  ;;  %v9460_v46 = vshll.u32 %v14476_v8, 16  ;;  %v14481_v32 = vld [vmem:[#allocation3 + $0x24] sm:$0xff]   ;;  %vm20012_vm3 = vmmov %vm20003_vm4 }
 0x493   : > { %9005 = vst [vmem:[#allocation3 + $0x44] sm:$0x1] %v9004_v37  ;;  %11685 = vrot.lane.b32.xlu0 %v11640_v34, %s19479_s14  ;;  %v9458_v26 = vor.u32 %v9457_v11, %v20005_v40  ;;  %v14478_v52 = vld [vmem:[#allocation3 + $0x38] ss:$0 sps:$4 sm:$0x11]   ;;  %v14483_v13 = vld [vmem:[#allocation3 + $0x24] sm:$0xff]   ;;  %v10744_v53 = vsel %vm20006_vm13, %v10742_v39, %v10743_v16  ;;  %vm20013_vm4 = vmmov %vm20012_vm3 }
 0x494   : > { %v9462_v23 = vrot.slane %v9460_v46, 1  ;;  %v11234_v35 = vshll.u32 %v14478_v52, 16  ;;  %v14480_v22 = vld [vmem:[#allocation3 + $0x38] ss:$0 sps:$4 sm:$0x11]   ;;  %v11232_v28 = vor.u32 %v11231_v7, %v11227_v31  ;;  %v10344_v30 = vrot.slane %v10342_v49, 1  ;;  %vm20015_vm13 = vmmov %vm19999_vm0 }
 0x495   : > { %v10347_v55 = vshll.u32 %v14480_v22, 16  ;;  %v9443_v11 = vshll.u32 %v14481_v32, 16  ;;  %v14482_v4 = vld [vmem:[#allocation3 + $0x2c] ss:$0 sps:$4 sm:$0x11]   ;;  %v14485_v54 = vld [vmem:[#allocation3 + $0x24] sm:$0xff]  }
 0x496   : > { %11687 = vrot.lane.b32.xlu1 %v11643_v60, %s19479_s14  ;;  %v9441_v60 = vshrl.u32 %v14481_v32, 16  ;;  %v9463_v1 = vsel %vm20007_vm11, %v9458_v26, %v9462_v23  ;;  %v11236_v19 = vrot.slane %v11234_v35, 1  ;;  %v10345_v47 = vor.u32 %v10344_v30, %v10340_v29  ;;  %v14484_v34 = vld [vmem:[#allocation3 + $0x2c] ss:$0 sps:$4 sm:$0x11]  }
 0x497   : > { %9604 = vrot.lane.b32.xlu0 %v9463_v1, %s19483_s22  ;;  %v10349_v20 = vrot.slane %v10347_v55, 1  ;;  %v9445_v37 = vrot.slane %v9443_v11, 1  ;;  %v9448_v42 = vshll.u32 %v14482_v4, 16  ;;  %v11215_v39 = vshrl.u32 %v14483_v13, 16 }
 0x498   : > { %v11217_v31 = vshll.u32 %v14483_v13, 16  ;;  %v11237_v16 = vsel %vm19999_vm0, %v11232_v28, %v11236_v19  ;;  %v11222_v40 = vshll.u32 %v14484_v34, 16  ;;  %v14486_v29 = vld [vmem:[#allocation3 + $0x2c] ss:$0 sps:$4 sm:$0x11]   ;;  %v10328_v26 = vshrl.u32 %v14485_v54, 16 }
 0x499   : > { %v10350_v8 = vsel %vm20008_vm9, %v10345_v47, %v10349_v20  ;;  %v9446_v7 = vor.u32 %v9445_v37, %v9441_v60  ;;  %v9450_v46 = vrot.slane %v9448_v42, 1  ;;  %v10330_v52 = vshll.u32 %v14485_v54, 16  ;;  %v14487_v13 = vld [vmem:[#allocation3 + $0x3c] sm:$0xff]   ;;  %vm20018_vm9 = vmmov %vm20009_vm1 }
 0x49a   : > { %9891 = vrot.lane.b32.xlu1 %v9848_v56, %s19477_s12  ;;  %v11219_v56 = vrot.slane %v11217_v31, 1  ;;  %v11224_v32 = vrot.slane %v11222_v40, 1  ;;  %v10335_v23 = vshll.u32 %v14486_v29, 16  ;;  %v14489_v1 = vld [vmem:[#allocation3 + $0x44] ss:$0 sps:$4 sm:$0x11]  }
 0x49b   : > { %10501 = vrot.lane.b32.xlu0 %v10350_v8, %s14752_s30  ;;  %v9451_v35 = vsel %vm20009_vm1, %v9446_v7, %v9450_v46  ;;  %v10332_v22 = vrot.slane %v10330_v52, 1  ;;  %v9853_v4 = vrot.slane %v14489_v1, 1  ;;  %v14490_v54 = vld [vmem:[#allocation3 + $0x3c] sm:$0xfe]   ;;  %vm20016_vm11 = vcmask 60416  }
 0x49c   : > { %v11220_v49 = vor.u32 %v11219_v56, %v11215_v39  ;;  %v10337_v60 = vrot.slane %v10335_v23, 1  ;;  %v14491_v20 = vld [vmem:[#allocation3 + $0x44] ss:$0 sps:$4 sm:$0x11]   ;;  %v11644_v31 = vrot.slane %v14490_v54, 1  ;;  %v14492_v7 = vld [vmem:[#allocation3 + $0x3c] sm:$0xff]   ;;  %vm20017_vm0 = vmmov %vm20016_vm11 }
 0x49d   : > { %v10333_v55 = vor.u32 %v10332_v22, %v10328_v26  ;;  %v14493_v26 = vld [vmem:[#allocation3 + $0x44] ss:$0 sps:$4 sm:$0x11]   ;;  %v9465_v22 = vshrl.u32 %v14492_v7, 16  ;;  %v9020_v54 = vld [vmem:[#allocation3 + $0x60] sm:$0xf] }
 0x49e   : > { %10788 = vrot.lane.b32.xlu1 %v10744_v53, %s14756_s25  ;;  %v14488_v53 = vld [vmem:[#allocation3 + $0x3c] sm:$0xfe]   ;;  %v11225_v30 = vsel %vm20010_vm6, %v11220_v49, %v11224_v32  ;;  %v9467_v32 = vshll.u32 %v14492_v7, 16  ;;  %vm20019_vm6 = vmmov %vm20009_vm1 }
 0x49f   : > { %v13821_v28 = vpop.f32.mrb[60].mxu1  ;;  %11396 = vrot.lane.b32.xlu0 %v11225_v30, %s19481_s15  ;;  %v9852_v11 = vrot.slane %v14488_v53, 1  ;;  %v10338_v42 = vsel %vm20011_vm2, %v10333_v55, %v10337_v60  ;;  %v9472_v53 = vshll.u32 %v14493_v26, 16  ;;  %vm20020_vm2 = vmmov %vm20009_vm1 }
 0x4a0   : > { %v8451_v19 = vadd.f32 %v13821_v28, %v18240_v21  ;;  %v8442_v47 = vpop.f32.mrb[61].mxu1  ;;  %v14494_v28 = vld [vmem:[#allocation3 + $0x48] sm:$0xff]   ;;  %v9469_v60 = vrot.slane %v9467_v32, 1 }
 0x4a1   : > { %v8443_v37 = vadd.f32 %v18240_v21, %v8442_v47  ;;  %v13822_v39 = vpop.f32.mrb[62].mxu1  ;;  %v9854_v56 = vsel %vm20012_vm3, %v9852_v11, %v9853_v4  ;;  %v9474_v4 = vrot.slane %v9472_v53, 1  ;;  %v14496_v32 = vld [vmem:[#allocation3 + $0x48] sm:$0xff]   ;;  %vm20021_vm3 = vmmov %vm20009_vm1 }
 0x4a2   : > { %11398 = vrot.lane.b32.xlu1 %v11237_v16, %s19481_s15  ;;  %v8535_v34 = vmax.f32 %v8451_v19, 0.0  ;;  %v11645_v16 = vrot.slane %v14491_v20, 1  ;;  %v8454_v29 = vadd.f32 %v13822_v39, %v18240_v21  ;;  %v8445_v46 = vpop.f32.mrb[63].mxu1  ;;  %v14495_v19 = vld [vmem:[#allocation3 + $0x50] ss:$0 sps:$4 sm:$0x11]  }
 0x4a3   : > { %v8533_v8 = vmax.f32 %v8443_v37, 0.0  ;;  %10967 = vrot.lane.b32.xlu0 %v14487_v13, %s14755_s16  ;;  %v8446_v1 = vadd.f32 %v18240_v21, %v8445_v46  ;;  %v9470_v37 = vor.u32 %v9469_v60, %v9465_v22  ;;  %v14511_v60 = vld [vmem:[#allocation3 + $0x18] sm:$0xff]  }
 0x4a4   : > { %v13583_v40 = vpack.c.bf16 %v8535_v34, %v8535_v34  ;;  %v11646_v52 = vsel %vm20013_vm4, %v11644_v31, %v11645_v16  ;;  %v9479_v34 = vshll.u32 %v14494_v28, 16  ;;  %v9013_v31 = vld [vmem:[#allocation3 + $0x54] sm:$0xf]  ;;  %9214 = vst.msk [vmem:[#allocation4 + $0x10] sm:$0xff] %vm9211_vm14, %v14511_v60 }
 0x4a5   : > { %v13581_v49 = vpack.c.bf16 %v8533_v8, %v8533_v8  ;;  %v9477_v8 = vshrl.u32 %v14494_v28, 16  ;;  %v9475_v21 = vsel %vm20014_vm5, %v9470_v37, %v9474_v4  ;;  %v9024_v28 = vld [vmem:[#allocation3 + $0x68] sm:$0x1]  ;;  %vm11856_vm5 = vcmask 1043456  }
 0x4a6   : > { %9602 = vrot.lane.b32.xlu1 %v9451_v35, %s19483_s22  ;;  %v8769_v23 = vshrl.u32 %v13583_v40, 16  ;;  %v8536_v35 = vmax.f32 %v8454_v29, 0.0  ;;  %v8772_v30 = vshll.u32 %v13583_v40, 16  ;;  %v14497_v29 = vld [vmem:[#allocation3 + $0x3c] sm:$0xff]  }
 0x4a7   : > { %v8752_v13 = vshrl.u32 %v13581_v49, 16  ;;  %11689 = vrot.lane.b32.xlu0 %v11646_v52, %s19479_s14  ;;  %v8755_v11 = vshll.u32 %v13581_v49, 16  ;;  %v9481_v52 = vrot.slane %v9479_v34, 1  ;;  %v9484_v49 = vshll.u32 %v14495_v19, 16 }
 0x4a8   : > { %v8771_v55 = vrot.slane %v8769_v23, 7  ;;  %v13584_v47 = vpack.c.bf16 %v8536_v35, %v8536_v35  ;;  %v14498_v23 = vld [vmem:[#allocation3 + $0x44] ss:$0 sps:$4 sm:$0x11]   ;;  %v14499_v35 = vld [vmem:[#allocation3 + $0x48] sm:$0xff]   ;;  %v11241_v37 = vshll.u32 %v14497_v29, 16 }
 0x4a9   : > { %v8754_v20 = vrot.slane %v8752_v13, 7  ;;  %v9486_v4 = vrot.slane %v9484_v49, 1  ;;  %v11246_v19 = vshll.u32 %v14498_v23, 16 }
 0x4aa   : > { %10499 = vrot.lane.b32.xlu1 %v10338_v42, %s14752_s30  ;;  %v8534_v42 = vmax.f32 %v8446_v1, 0.0  ;;  %v8774_v39 = vor.u32 %v8772_v30, %v8771_v55  ;;  %v8777_v16 = vshrl.u32 %v13584_v47, 16  ;;  %v8775_v22 = vrot.slane %v8771_v55, 4 }
 0x4ab   : > { %v8757_v7 = vor.u32 %v8755_v11, %v8754_v20  ;;  %v8758_v55 = vrot.slane %v8754_v20, 4  ;;  %v11239_v20 = vshrl.u32 %v14497_v29, 16  ;;  %v10364_v29 = vshrl.u32 %v14499_v35, 16 }
 0x4ac   : > { %v13582_v40 = vpack.c.bf16 %v8534_v42, %v8534_v42  ;;  %v9021_v26 = vsel %vm18256_vm10, %v8774_v39, %v9020_v54  ;;  %v8779_v46 = vrot.slane %v8777_v16, 7  ;;  %v14500_v42 = vld [vmem:[#allocation3 + $0x50] ss:$0 sps:$4 sm:$0x11]  }
 0x4ad   : > { %9022 = vst [vmem:[#allocation3 + $0x60] sm:$0xf] %v9021_v26  ;;  %v9014_v53 = vsel %vm18256_vm10, %v8757_v7, %v9013_v31  ;;  %v9017_v31 = vld [vmem:[#allocation3 + $0x5c] sm:$0x1]  ;;  %v14516_v7 = vld [vmem:[#allocation3 + $0xc] sm:$0xff]  }
 0x4ae   : > { %9895 = vrot.lane.b32.xlu1 %v9854_v56, %s19477_s12  ;;  %v8780_v56 = vshll.u32 %v13584_v47, 16  ;;  %v8760_v30 = vshrl.u32 %v13582_v40, 16  ;;  %v8763_v13 = vshll.u32 %v13582_v40, 16  ;;  %9015 = vst [vmem:[#allocation3 + $0x54] sm:$0xf] %v9014_v53  ;;  %v8784_v11 = vrot.slane %v8779_v46, 4 }
 0x4af   : > { %v9482_v47 = vor.u32 %v9481_v52, %v9477_v8  ;;  %v14507_v8 = vld [vmem:[#allocation3 + $0x3c] sm:$0xff]   ;;  %v11243_v40 = vrot.slane %v11241_v37, 1  ;;  %v14520_v26 = vld [vmem:[%s19390_s9] sm:$0xff]   ;;  %v10371_v52 = vshll.u32 %v14500_v42, 16  ;;  %9213 = vst.msk [vmem:[#allocation4 + $0x8] sm:$0xff] %vm9211_vm14, %v14516_v7  ;;  %s20041_s12 = smov 16  }
 0x4b0   : > { %v8782_v1 = vor.u32 %v8780_v56, %v8779_v46  ;;  %v8762_v54 = vrot.slane %v8760_v30, 7  ;;  %v9025_v39 = vsel %vm14982_vm8, %v8784_v11, %v9024_v28  ;;  %v10366_v46 = vshll.u32 %v14499_v35, 16  ;;  %13839 = vmatprep.subr.bf16.mxu0 %v14520_v26  ;;  %v14508_v11 = vld [vmem:[#allocation3 + $0x44] ss:$0 sps:$4 sm:$0x11]  }
 0x4b1   : > { %v9487_v16 = vsel %vm20015_vm13, %v9482_v47, %v9486_v4  ;;  %9026 = vst [vmem:[#allocation3 + $0x68] sm:$0x1] %v9025_v39  ;;  %v11244_v23 = vor.u32 %v11243_v40, %v11239_v20  ;;  %13840 = vmatpush3.bf16.msra.mxu0 %v14520_v26  ;;  %v10354_v60 = vshll.u32 %v14507_v8, 16  ;;  %v10359_v7 = vshll.u32 %v14508_v11, 16  ;;  %vm20022_vm13 = vmmov %vm20017_vm0 }
 0x4b2   : > { %9606 = vrot.lane.b32.xlu1 %v9475_v21, %s19483_s22  ;;  %v8783_v34 = vsel %vm15107_vm12, %v8775_v22, %v8782_v1  ;;  %v8765_v56 = vor.u32 %v8763_v13, %v8762_v54  ;;  %v8767_v21 = vrot.slane %v8762_v54, 4  ;;  %9608 = vrot.lane.b32.xlu0 %v9487_v16, %s19483_s22  ;;  %v11248_v22 = vrot.slane %v11246_v19, 1  ;;  %v14501_v1 = vld [vmem:[#allocation3 + $0x3c] sm:$0xff]  }
 0x4b3   : > { %9023 = vst.msk [vmem:[#allocation3 + $0x64] sm:$0xf] %vm20016_vm11, %v8783_v34  ;;  %v10368_v53 = vrot.slane %v10366_v46, 1  ;;  %v10373_v13 = vrot.slane %v10371_v52, 1  ;;  %v10356_v19 = vrot.slane %v10354_v60, 1  ;;  %v10352_v16 = vshrl.u32 %v14507_v8, 16  ;;  %vm20023_vm11 = vmmov %vm20017_vm0 }
 0x4b4   : > { %v8766_v49 = vsel %vm15107_vm12, %v8758_v55, %v8765_v56  ;;  %v11249_v28 = vsel %vm20018_vm9, %v11244_v23, %v11248_v22  ;;  %v14510_v56 = vld [vmem:[#allocation3 + $0x50] ss:$0 sps:$4 sm:$0x11]   ;;  %v14509_v52 = vld [vmem:[#allocation3 + $0x48] sm:$0xfe]   ;;  %v14522_v60 = vld [vmem:[%s19390_s9 + $0x8] sm:$0xff]  }
 0x4b5   : > { %9016 = vst.msk [vmem:[#allocation3 + $0x58] sm:$0xf] %vm20017_vm0, %v8766_v49  ;;  %v10369_v30 = vor.u32 %v10368_v53, %v10364_v29  ;;  %v10361_v29 = vrot.slane %v10359_v7, 1  ;;  %v14521_v53 = vld [vmem:[#allocation3 + $0x30] sm:$0xff]   ;;  %13841 = vmatprep.subr.bf16.mxu0 %v14522_v60  ;;  %v14530_v7 = vld [vmem:[%s19390_s9 + $0x18] sm:$0xff]   ;;  %vm10110_vm0 = vcmask 261312   ;;  %vm20024_vm9 = vmmov %vm20009_vm1 }
 0x4b6   : > { %10072 = vrot.lane.b32.xlu1 %v14496_v32, %s19685_s13  ;;  %v9018_v32 = vsel %vm14982_vm8, %v8767_v21, %v9017_v31  ;;  %11400 = vrot.lane.b32.xlu0 %v11249_v28, %s19481_s15  ;;  %9216 = vst.msk [vmem:[#allocation4 + $0x20] sm:$0xff] %vm9211_vm14, %v14521_v53  ;;  %s20032_s15 = smov 56  }
 0x4b7   : > { %9019 = vst [vmem:[#allocation3 + $0x5c] sm:$0x1] %v9018_v32  ;;  %v10374_v47 = vsel %vm20009_vm1, %v10369_v30, %v10373_v13  ;;  %v10357_v32 = vor.u32 %v10356_v19, %v10352_v16  ;;  %v10751_v30 = vrot.slane %v14509_v52, 1  ;;  %v10752_v13 = vrot.slane %v14510_v56, 1  ;;  %v14526_v19 = vld [vmem:[%s19390_s9 + $0x10] sm:$0xff]   ;;  %13842 = vmatpush3.bf16.msra.mxu0 %v14522_v60 }
 0x4b8   : > { %v14503_v54 = vld [vmem:[#allocation3 + $0x68] ss:$0 sps:$4 sm:$0x11]   ;;  %13843 = vmatprep.subr.bf16.mxu0 %v14526_v19  ;;  %v14534_v52 = vld [vmem:[#allocation3 + $0x3c] sm:$0xff]  }
 0x4b9   : > { %v9508_v42 = vshll.u32 %v14503_v54, 16  ;;  %v14523_v54 = vld [vmem:[#allocation3 + $0x24] sm:$0xff]   ;;  %v10753_v16 = vsel %vm20013_vm4, %v10751_v30, %v10752_v13  ;;  %9217 = vst.msk [vmem:[#allocation4 + $0x28] sm:$0xff] %vm9211_vm14, %v14534_v52  ;;  %v9031_v52 = vld [vmem:[#allocation3 + $0x74] sm:$0x1] }
 0x4ba   : > { %v14502_v4 = vld [vmem:[#allocation3 + $0x60] sm:$0xff]   ;;  %10505 = vrot.lane.b32.xlu1 %v10374_v47, %s14752_s30  ;;  %10070 = vrot.lane.b32.xlu0 %v14501_v1, %s19685_s13  ;;  %v18427_v1 = vld [vmem:[%s19389_s8] ss:$0 sm:$0xff]  ;;  %9215 = vst.msk [vmem:[#allocation4 + $0x18] sm:$0xff] %vm9211_vm14, %v14523_v54 }
 0x4bb   : > { %v9501_v35 = vshrl.u32 %v14502_v4, 16  ;;  %v9503_v37 = vshll.u32 %v14502_v4, 16  ;;  %v9510_v20 = vrot.slane %v9508_v42, 1  ;;  %v10362_v4 = vsel %vm20021_vm3, %v10357_v32, %v10361_v29  ;;  %13844 = vmatpush3.bf16.msra.mxu0 %v14526_v19 }
 0x4bc   : > { %v14504_v55 = vld [vmem:[#allocation3 + $0x54] sm:$0xff]   ;;  %13845 = vmatprep.subr.bf16.mxu0 %v14530_v7  ;;  %vm10832_vm3 = vcmask 392512  }
 0x4bd   : > { %v9505_v34 = vrot.slane %v9503_v37, 1  ;;  %v9491_v31 = vshll.u32 %v14504_v55, 16  ;;  %v9489_v26 = vshrl.u32 %v14504_v55, 16 }
 0x4be   : > { %v14505_v39 = vld [vmem:[#allocation3 + $0x5c] ss:$0 sps:$4 sm:$0x11]  }
 0x4bf   : > { %v9506_v21 = vor.u32 %v9505_v34, %v9501_v35  ;;  %v9496_v40 = vshll.u32 %v14505_v39, 16  ;;  %v9493_v46 = vrot.slane %v9491_v31, 1  ;;  %13846 = vmatpush3.bf16.msra.mxu0 %v14530_v7 }
 0x4c1   : > { %v9511_v49 = vsel %vm20019_vm6, %v9506_v21, %v9510_v20  ;;  %v9494_v23 = vor.u32 %v9493_v46, %v9489_v26  ;;  %v9498_v22 = vrot.slane %v9496_v40, 1  ;;  %vm20027_vm6 = vmmov %vm20013_vm4  ;;  %vm11009_vm4 = vcmask 458112  }
 0x4c2   : > { %9612 = vrot.lane.b32.xlu0 %v9511_v49, %s19483_s22 }
 0x4c3   : > { %v9499_v8 = vsel %vm20020_vm2, %v9494_v23, %v9498_v22  ;;  %v14533_v23 = vld [vmem:[%s19390_s9 + $0x20] ss:$0 sps:$4 sm:$0xff]   ;;  %v14535_v22 = vld [vmem:[#allocation3 + $0x48] sm:$0xff]   ;;  %vm10543_vm2 = vcmask 326912  }
 0x4c4   : > { %9610 = vrot.lane.b32.xlu1 %v9499_v8, %s19483_s22  ;;  %9218 = vst.msk [vmem:[#allocation4 + $0x30] sm:$0xff] %vm9211_vm14, %v14535_v22  ;;  %13888 = vmatprep.subr.msk.bf16.mxu0 %vm11856_vm5, %v14533_v23  ;;  %v14549_v22 = vld [vmem:[#allocation3 + $0x54] sm:$0xff]  }
 0x4c5   : > { %9219 = vst.msk [vmem:[#allocation4 + $0x38] sm:$0xff] %vm9211_vm14, %v14549_v22 }
 0x4c6   : > { %10503 = vrot.lane.b32.xlu0 %v10362_v4, %s14752_s30 }
 0x4c8   : > { %10794 = vrot.lane.b32.xlu1 %v10753_v16, %s14756_s25  ;;  %v9038_v16 = vld [vmem:[#allocation3 + $0x80] sm:$0x1] }
 0x4d1   : > { %v13825_v28 = vpop.f32.mrb[64].mxu1 }
 0x4d2   : > { %v8467_v11 = vadd.f32 %v18427_v1, %v13825_v28  ;;  %v8458_v47 = vpop.f32.mrb[65].mxu1 }
 0x4d3   : > { %v8459_v35 = vadd.f32 %v18427_v1, %v8458_v47  ;;  %v13826_v37 = vpop.f32.mrb[66].mxu1 }
 0x4d4   : > { %v8539_v42 = vmax.f32 %v8467_v11, 0.0  ;;  %v8470_v55 = vadd.f32 %v18427_v1, %v13826_v37  ;;  %v8461_v34 = vpop.f32.mrb[67].mxu1 }
 0x4d5   : > { %v8537_v39 = vmax.f32 %v8459_v35, 0.0  ;;  %v8462_v31 = vadd.f32 %v18427_v1, %v8461_v34  ;;  %v9034_v35 = vld [vmem:[#allocation3 + $0x78] sm:$0xf]  ;;  %v9027_v34 = vld [vmem:[#allocation3 + $0x6c] sm:$0xf] }
 0x4d6   : > { %v13587_v56 = vpack.c.bf16 %v8539_v42, %v8539_v42  ;;  %v8540_v21 = vmax.f32 %v8470_v55, 0.0 }
 0x4d7   : > { %v13585_v20 = vpack.c.bf16 %v8537_v39, %v8537_v39  ;;  %v8538_v40 = vmax.f32 %v8462_v31, 0.0 }
 0x4d8   : > { %v8803_v26 = vshrl.u32 %v13587_v56, 16  ;;  %v13588_v46 = vpack.c.bf16 %v8540_v21, %v8540_v21  ;;  %v8806_v53 = vshll.u32 %v13587_v56, 16  ;;  %v11858_v56 = vsel %vm11856_vm5, %v14533_v23, 0 }
 0x4d9   : > { %v8786_v49 = vshrl.u32 %v13585_v20, 16  ;;  %v13586_v32 = vpack.c.bf16 %v8538_v40, %v8538_v40  ;;  %v8789_v30 = vshll.u32 %v13585_v20, 16  ;;  %v14548_v40 = vld [vmem:[#allocation3 + $0x60] sm:$0xff]   ;;  %13848 = vmatpush3.bf16.msra.mxu0 %v11858_v56  ;;  %vm11442_vm5 = vcmask 523712  }
 0x4da   : > { %v8805_v29 = vrot.slane %v8803_v26, 7  ;;  %v8811_v28 = vshrl.u32 %v13588_v46, 16  ;;  %v8814_v47 = vshll.u32 %v13588_v46, 16  ;;  %9220 = vst.msk [vmem:[#allocation4 + $0x40] sm:$0xff] %vm9211_vm14, %v14548_v40 }
 0x4db   : > { %v8788_v8 = vrot.slane %v8786_v49, 7  ;;  %v8794_v13 = vshrl.u32 %v13586_v32, 16  ;;  %v8797_v4 = vshll.u32 %v13586_v32, 16 }
 0x4dc   : > { %v8808_v60 = vor.u32 %v8806_v53, %v8805_v29  ;;  %v8813_v11 = vrot.slane %v8811_v28, 7  ;;  %v8809_v54 = vrot.slane %v8805_v29, 4 }
 0x4dd   : > { %v8791_v37 = vor.u32 %v8789_v30, %v8788_v8  ;;  %v8792_v19 = vrot.slane %v8788_v8, 4  ;;  %v8796_v42 = vrot.slane %v8794_v13, 7 }
 0x4de   : > { %v9035_v55 = vsel %vm18256_vm10, %v8808_v60, %v9034_v35  ;;  %v8816_v39 = vor.u32 %v8814_v47, %v8813_v11  ;;  %v8818_v31 = vrot.slane %v8813_v11, 4  ;;  %v14517_v11 = vld [vmem:[#allocation3 + $0x3c] sm:$0xfe]  }
 0x4df   : > { %9036 = vst [vmem:[#allocation3 + $0x78] sm:$0xf] %v9035_v55  ;;  %v9028_v7 = vsel %vm18256_vm10, %v8791_v37, %v9027_v34  ;;  %v8799_v21 = vor.u32 %v8797_v4, %v8796_v42  ;;  %v8801_v20 = vrot.slane %v8796_v42, 4  ;;  %v14518_v55 = vld [vmem:[#allocation3 + $0x44] ss:$0 sps:$4 sm:$0x11]  }
 0x4e0   : > { %9029 = vst [vmem:[#allocation3 + $0x6c] sm:$0xf] %v9028_v7  ;;  %v8817_v26 = vsel %vm15107_vm12, %v8809_v54, %v8816_v39  ;;  %v9039_v46 = vsel %vm14982_vm8, %v8818_v31, %v9038_v16  ;;  %v18466_v23 = vpop.permute.xlu1 %10961 }
 0x4e1   : > { %9037 = vst.msk [vmem:[#allocation3 + $0x7c] sm:$0xf] %vm20022_vm13, %v8817_v26  ;;  %9040 = vst [vmem:[#allocation3 + $0x80] sm:$0x1] %v9039_v46  ;;  %v8800_v49 = vsel %vm15107_vm12, %v8792_v19, %v8799_v21  ;;  %v9032_v32 = vsel %vm14982_vm8, %v8801_v20, %v9031_v52  ;;  %v18470_v29 = vpop.permute.xlu0 %10064  ;;  %v10748_v20 = vrot.slane %v14517_v11, 1  ;;  %v10749_v46 = vrot.slane %v14518_v55, 1 }
 0x4e2   : > { %9030 = vst.msk [vmem:[#allocation3 + $0x70] sm:$0xf] %vm20023_vm11, %v8800_v49  ;;  %9033 = vst [vmem:[#allocation3 + $0x74] sm:$0x1] %v9032_v32  ;;  %vm11731_vm13 = vcmask 589312  }
 0x4e4   : > { %v10063_v53 = vpop.permute.xlu1 %10062 }
 0x4e5   : > { %v9890_v28 = vpop.permute.xlu0 %9889  ;;  %10111 = vst.msk [vmem:[#allocation4] sm:$0xff] %vm10110_vm0, %v10063_v53 }
 0x4e8   : > { %v14512_v8 = vld [vmem:[#allocation3 + $0x78] sm:$0xff]   ;;  %v14513_v30 = vld [vmem:[#allocation3 + $0x80] ss:$0 sps:$4 sm:$0x11]   ;;  %v18476_v37 = vpop.permute.xlu1 %11683 }
 0x4e9   : > { %v14514_v13 = vld [vmem:[#allocation3 + $0x6c] sm:$0xff]   ;;  %v9527_v60 = vshll.u32 %v14512_v8, 16  ;;  %v18474_v47 = vpop.permute.xlu0 %10786  ;;  %v9532_v4 = vshll.u32 %v14513_v30, 16  ;;  %v14515_v54 = vld [vmem:[#allocation3 + $0x74] ss:$0 sps:$4 sm:$0x11]  }
 0x4ea   : > { %v9515_v35 = vshll.u32 %v14514_v13, 16  ;;  %v9525_v19 = vshrl.u32 %v14512_v8, 16  ;;  %v9513_v34 = vshrl.u32 %v14514_v13, 16  ;;  %v9520_v31 = vshll.u32 %v14515_v54, 16 }
 0x4eb   : > { %v9529_v42 = vrot.slane %v9527_v60, 1  ;;  %v9534_v56 = vrot.slane %v9532_v4, 1  ;;  %v10750_v13 = vsel %vm20027_vm6, %v10748_v20, %v10749_v46  ;;  %v14519_v60 = vld [vmem:[#allocation3 + $0x54] sm:$0xff]   ;;  %vm20029_vm6 = vsmask.f32 7424 }
 0x4ec   : > { %v9517_v39 = vrot.slane %v9515_v35, 1  ;;  %v9522_v21 = vrot.slane %v9520_v31, 1  ;;  %v9888_v22 = vpop.permute.xlu1 %9887 }
 0x4ed   : > { %v9530_v16 = vor.u32 %v9529_v42, %v9525_v19  ;;  %v9601_v52 = vpop.permute.xlu0 %9600 }
 0x4ee   : > { %v9518_v7 = vor.u32 %v9517_v39, %v9513_v34  ;;  %9647 = vst.msk [vmem:[#allocation4 + $0x10] sm:$0xff] %vm9644_vm7, %v9601_v52 }
 0x4ef   : > { %v18478_v40 = vpop.f32.mrb[44].mxu0  ;;  %v9535_v26 = vsel %vm20024_vm9, %v9530_v16, %v9534_v56  ;;  %9936 = vst.msk [vmem:[#allocation4 + $0x10] sm:$0xff] %vm9933_vm15, %v9890_v28  ;;  %vm20028_vm9 = vmmov %vm20023_vm11 }
 0x4f0   : > { %v18481_v49 = vpop.f32.mrb[45].mxu0  ;;  %9616 = vrot.lane.b32.xlu0 %v9535_v26, %s19483_s22  ;;  %v9523_v32 = vsel %vm20009_vm1, %v9518_v7, %v9522_v21  ;;  %v18495_v35 = vpop.permute.xlu1 %10784  ;;  %vm11807_vm1 = vcmask 588800  }
 0x4f1   : > { %v18486_v53 = vpop.f32.mrb[46].mxu0  ;;  %9614 = vrot.lane.b32.xlu1 %v9523_v32, %s19483_s22  ;;  %v10498_v54 = vpop.permute.xlu0 %10497 }
 0x4f2   : > { %20025 = vst [vmem:[#allocation52_spill] sm:$0xff] %v18486_v53  ;;  %v18490_v8 = vpop.f32.mrb[47].mxu0 }
 0x4f3   : > { %20026 = vst [vmem:[#allocation64_spill] sm:$0xff] %v18490_v8  ;;  %v13829_v30 = vpop.f32.mrb[68].mxu1 }
 0x4f4   : > { %v8483_v11 = vadd.f32 %v18427_v1, %v13829_v30  ;;  %v8474_v4 = vpop.f32.mrb[69].mxu1  ;;  %10792 = vrot.lane.b32.xlu0 %v10750_v13, %s14756_s25  ;;  %v11395_v20 = vpop.permute.xlu1 %11394 }
 0x4f5   : > { %v8475_v19 = vadd.f32 %v18427_v1, %v8474_v4  ;;  %10971 = vrot.lane.b32.xlu1 %v14519_v60, %s14755_s16  ;;  %v13830_v28 = vpop.f32.mrb[70].mxu1  ;;  %v18501_v21 = vpop.permute.xlu0 %10068 }
 0x4f6   : > { %v8543_v42 = vmax.f32 %v8483_v11, 0.0  ;;  %v8486_v34 = vadd.f32 %v18427_v1, %v13830_v28  ;;  %v8477_v39 = vpop.f32.mrb[71].mxu1 }
 0x4f7   : > { %v8541_v55 = vmax.f32 %v8475_v19, 0.0  ;;  %v8478_v16 = vadd.f32 %v18427_v1, %v8477_v39  ;;  %v9048_v39 = vld [vmem:[#allocation3 + $0x90] sm:$0xf] }
 0x4f8   : > { %v13591_v31 = vpack.c.bf16 %v8543_v42, %v8543_v42  ;;  %v8544_v7 = vmax.f32 %v8486_v34, 0.0  ;;  %v9599_v42 = vpop.permute.xlu1 %9598  ;;  %v14570_v34 = vld [vmem:[#allocation3 + $0x78] sm:$0xff]  }
 0x4f9   : > { %v13589_v56 = vpack.c.bf16 %v8541_v55, %v8541_v55  ;;  %v8542_v46 = vmax.f32 %v8478_v16, 0.0  ;;  %v10964_v55 = vpop.permute.xlu0 %10963  ;;  %9646 = vst.msk [vmem:[#allocation4 + $0x8] sm:$0xff] %vm9644_vm7, %v9599_v42 }
 0x4fa   : > { %v8837_v26 = vshrl.u32 %v13591_v31, 16  ;;  %v13592_v32 = vpack.c.bf16 %v8544_v7, %v8544_v7  ;;  %v8840_v13 = vshll.u32 %v13591_v31, 16  ;;  %9935 = vst.msk [vmem:[#allocation4 + $0x8] sm:$0xff] %vm9933_vm15, %v9888_v22 }
 0x4fb   : > { %v8820_v52 = vshrl.u32 %v13589_v56, 16  ;;  %v13590_v60 = vpack.c.bf16 %v8542_v46, %v8542_v46  ;;  %v8823_v4 = vshll.u32 %v13589_v56, 16  ;;  %v9041_v56 = vld [vmem:[#allocation3 + $0x84] sm:$0xf]  ;;  %9222 = vst.msk [vmem:[#allocation4 + $0x50] sm:$0xff] %vm9211_vm14, %v14570_v34  ;;  %v14531_v34 = vld [vmem:[#allocation3 + $0x54] sm:$0xff]  }
 0x4fc   : > { %v8839_v30 = vrot.slane %v8837_v26, 7  ;;  %v8845_v19 = vshrl.u32 %v13592_v32, 16  ;;  %v8848_v7 = vshll.u32 %v13592_v32, 16  ;;  %v9052_v26 = vld [vmem:[#allocation3 + $0x98] sm:$0x1]  ;;  %10112 = vst.msk [vmem:[#allocation4 + $0x8] sm:$0xff] %vm10110_vm0, %v18470_v29 }
 0x4fd   : > { %v8822_v11 = vrot.slane %v8820_v52, 7  ;;  %v8828_v53 = vshrl.u32 %v13590_v60, 16  ;;  %v8831_v52 = vshll.u32 %v13590_v60, 16  ;;  %10545 = vst.msk [vmem:[#allocation4 + $0x8] sm:$0xff] %vm10543_vm2, %v10498_v54  ;;  %v9045_v60 = vld [vmem:[#allocation3 + $0x8c] sm:$0x1]  ;;  %v9894_v54 = vpop.permute.xlu0 %9893 }
 0x4fe   : > { %v8842_v28 = vor.u32 %v8840_v13, %v8839_v30  ;;  %v8847_v8 = vrot.slane %v8845_v19, 7  ;;  %v8843_v13 = vrot.slane %v8839_v30, 4  ;;  %10834 = vst.msk [vmem:[#allocation4 + $0x8] sm:$0xff] %vm10832_vm3, %v18474_v47  ;;  %v14573_v47 = vld [vmem:[#allocation3 + $0x6c] sm:$0xff]  }
 0x4ff   : > { %v8825_v16 = vor.u32 %v8823_v4, %v8822_v11  ;;  %v8830_v46 = vrot.slane %v8828_v53, 7  ;;  %v8826_v42 = vrot.slane %v8822_v11, 4  ;;  %11011 = vst.msk [vmem:[#allocation4 + $0x8] sm:$0xff] %vm11009_vm4, %v10964_v55 }
 0x500   : > { %v9049_v31 = vsel %vm18256_vm10, %v8842_v28, %v9048_v39  ;;  %v8850_v32 = vor.u32 %v8848_v7, %v8847_v8  ;;  %v8852_v19 = vrot.slane %v8847_v8, 4  ;;  %v10496_v39 = vpop.permute.xlu1 %10495  ;;  %9221 = vst.msk [vmem:[#allocation4 + $0x48] sm:$0xff] %vm9211_vm14, %v14573_v47  ;;  %v11265_v7 = vshll.u32 %v14531_v34, 16 }
 0x501   : > { %9050 = vst [vmem:[#allocation3 + $0x90] sm:$0xf] %v9049_v31  ;;  %v9042_v4 = vsel %vm18256_vm10, %v8825_v16, %v9041_v56  ;;  %v8833_v28 = vor.u32 %v8831_v52, %v8830_v46  ;;  %v8835_v22 = vrot.slane %v8830_v46, 4  ;;  %10544 = vst.msk [vmem:[#allocation4] sm:$0xff] %vm10543_vm2, %v10496_v39  ;;  %v18537_v55 = vpop.permute.xlu0 %10790 }
 0x502   : > { %9043 = vst [vmem:[#allocation3 + $0x84] sm:$0xf] %v9042_v4  ;;  %v8851_v53 = vsel %vm15107_vm12, %v8843_v13, %v8850_v32  ;;  %v9053_v30 = vsel %vm14982_vm8, %v8852_v19, %v9052_v26  ;;  %10833 = vst.msk [vmem:[#allocation4] sm:$0xff] %vm10832_vm3, %v18495_v35 }
 0x503   : > { %9051 = vst.msk [vmem:[#allocation3 + $0x94] sm:$0xf] %vm20023_vm11, %v8851_v53  ;;  %9054 = vst [vmem:[#allocation3 + $0x98] sm:$0x1] %v9053_v30  ;;  %v8834_v29 = vsel %vm15107_vm12, %v8826_v42, %v8833_v28  ;;  %v9046_v8 = vsel %vm14982_vm8, %v8835_v22, %v9045_v60  ;;  %v11267_v28 = vrot.slane %v11265_v7, 1 }
 0x504   : > { %9044 = vst.msk [vmem:[#allocation3 + $0x88] sm:$0xf] %vm20028_vm9, %v8834_v29  ;;  %9047 = vst [vmem:[#allocation3 + $0x8c] sm:$0x1] %v9046_v8  ;;  %v18532_v11 = vpop.permute.xlu1 %10965  ;;  %v11263_v29 = vshrl.u32 %v14531_v34, 16 }
 0x505   : > { %11010 = vst.msk [vmem:[#allocation4] sm:$0xff] %vm11009_vm4, %v18466_v23  ;;  %v18543_v19 = vpop.permute.xlu0 %11685  ;;  %vm20030_vm11 = vmmov %vm20029_vm6 }
 0x506   : > { %11443 = vst.msk [vmem:[#allocation4] sm:$0xff] %vm11442_vm5, %v11395_v20  ;;  %v14532_v20 = vld [vmem:[#allocation3 + $0x5c] ss:$0 sps:$4 sm:$0x11]   ;;  %vm20031_vm9 = vmmov %vm20029_vm6 }
 0x507   : > { %11732 = vst.msk [vmem:[#allocation4] sm:$0xff] %vm11731_vm13, %v18476_v37  ;;  %v11270_v8 = vshll.u32 %v14532_v20, 16 }
 0x508   : > { %v10067_v35 = vpop.permute.xlu1 %10066 }
 0x509   : > { %10113 = vst.msk [vmem:[#allocation4 + $0x10] sm:$0xff] %vm10110_vm0, %v10067_v35  ;;  %v9605_v34 = vpop.permute.xlu0 %9604 }
 0x50a   : > { %v14524_v16 = vld [vmem:[#allocation3 + $0x90] sm:$0xff]   ;;  %v14525_v23 = vld [vmem:[#allocation3 + $0x98] ss:$0 sps:$4 sm:$0x11]   ;;  %9649 = vst.msk [vmem:[#allocation4 + $0x20] sm:$0xff] %vm9644_vm7, %v9605_v34 }
 0x50b   : > { %v14527_v31 = vld [vmem:[#allocation3 + $0x84] sm:$0xff]   ;;  %v9551_v56 = vshll.u32 %v14524_v16, 16  ;;  %v9549_v52 = vshrl.u32 %v14524_v16, 16  ;;  %v9556_v37 = vshll.u32 %v14525_v23, 16  ;;  %9938 = vst.msk [vmem:[#allocation4 + $0x20] sm:$0xff] %vm9933_vm15, %v9894_v54 }
 0x50c   : > { %v18540_v26 = vpop.permute.xlu1 %11687  ;;  %v14528_v13 = vld [vmem:[#allocation3 + $0x8c] ss:$0 sps:$4 sm:$0x11]   ;;  %v9539_v32 = vshll.u32 %v14527_v31, 16  ;;  %v9537_v53 = vshrl.u32 %v14527_v31, 16  ;;  %v11268_v31 = vor.u32 %v11267_v28, %v11263_v29 }
 0x50d   : > { %v9553_v4 = vrot.slane %v9551_v56, 1  ;;  %v9544_v42 = vshll.u32 %v14528_v13, 16  ;;  %v9558_v39 = vrot.slane %v9556_v37, 1  ;;  %v9062_v34 = vld [vmem:[#allocation3 + $0xa8] sm:$0xf] }
 0x50e   : > { %v11748_v46 = vld [vmem:[#allocation4] sm:$0xff]  ;;  %v9541_v30 = vrot.slane %v9539_v32, 1  ;;  %v14529_v32 = vld [vmem:[#allocation3 + $0x48] sm:$0xff]  }
 0x50f   : > { %13849 = vmatprep.mubr.msk.bf16.mxu0 %vm11807_vm1, %v11748_v46  ;;  %v9554_v22 = vor.u32 %v9553_v4, %v9549_v52  ;;  %v9546_v23 = vrot.slane %v9544_v42, 1 }
 0x510   : > { %v9892_v60 = vpop.permute.xlu1 %9891  ;;  %v9542_v16 = vor.u32 %v9541_v30, %v9537_v53 }
 0x511   : > { %v9559_v35 = vsel %vm20029_vm6, %v9554_v22, %v9558_v39  ;;  %v11272_v39 = vrot.slane %v11270_v8, 1  ;;  %vm20033_vm6 = vcmask 60416  }
 0x512   : > { %9620 = vrot.lane.b32.xlu0 %v9559_v35, %s19483_s22  ;;  %v9547_v52 = vsel %vm20030_vm11, %v9542_v16, %v9546_v23  ;;  %v10502_v23 = vpop.permute.xlu0 %10501  ;;  %vm20034_vm11 = vmmov %vm20033_vm6 }
 0x513   : > { %v13833_v47 = vpop.f32.mrb[72].mxu1  ;;  %9618 = vrot.lane.b32.xlu1 %v9547_v52, %s19483_s22 }
 0x514   : > { %v8499_v46 = vadd.f32 %v18427_v1, %v13833_v47  ;;  %v8490_v56 = vpop.f32.mrb[73].mxu1  ;;  %v18550_v37 = vpop.permute.xlu1 %10788  ;;  %v11273_v47 = vsel %vm20031_vm9, %v11268_v31, %v11272_v39 }
 0x515   : > { %v8491_v13 = vadd.f32 %v18427_v1, %v8490_v56  ;;  %v13834_v7 = vpop.f32.mrb[74].mxu1 }
 0x516   : > { %v8547_v20 = vmax.f32 %v8499_v46, 0.0  ;;  %v8502_v4 = vadd.f32 %v18427_v1, %v13834_v7  ;;  %v8493_v22 = vpop.f32.mrb[75].mxu1  ;;  %10969 = vrot.lane.b32.xlu0 %v14529_v32, %s14755_s16  ;;  %v11397_v43 = vpop.permute.xlu0 %11396 }
 0x517   : > { %v8545_v42 = vmax.f32 %v8491_v13, 0.0  ;;  %v8494_v28 = vadd.f32 %v18427_v1, %v8493_v22  ;;  %11404 = vrot.lane.b32.xlu1 %v11273_v47, %s20032_s15  ;;  %11444 = vst.msk [vmem:[#allocation4 + $0x8] sm:$0xff] %vm11442_vm5, %v11397_v43 }
 0x518   : > { %v13595_v53 = vpack.c.bf16 %v8547_v20, %v8547_v20  ;;  %v8548_v30 = vmax.f32 %v8502_v4, 0.0  ;;  %v11399_v35 = vpop.permute.xlu1 %11398  ;;  %11733 = vst.msk [vmem:[#allocation4 + $0x8] sm:$0xff] %vm11731_vm13, %v18543_v19  ;;  %v9059_v19 = vld [vmem:[#allocation3 + $0xa4] sm:$0x1] }
 0x519   : > { %v13593_v29 = vpack.c.bf16 %v8545_v42, %v8545_v42  ;;  %v8546_v56 = vmax.f32 %v8494_v28, 0.0 }
 0x51a   : > { %v8871_v16 = vshrl.u32 %v13595_v53, 16  ;;  %v13596_v46 = vpack.c.bf16 %v8548_v30, %v8548_v30  ;;  %v8874_v7 = vshll.u32 %v13595_v53, 16  ;;  %v9055_v53 = vld [vmem:[#allocation3 + $0x9c] sm:$0xf] }
 0x51b   : > { %v8854_v13 = vshrl.u32 %v13593_v29, 16  ;;  %v13594_v52 = vpack.c.bf16 %v8546_v56, %v8546_v56  ;;  %v8857_v4 = vshll.u32 %v13593_v29, 16 }
 0x51c   : > { %v8873_v8 = vrot.slane %v8871_v16, 7  ;;  %v8879_v54 = vshrl.u32 %v13596_v46, 16  ;;  %v9603_v32 = vpop.permute.xlu1 %9602  ;;  %v8882_v33 = vshll.u32 %v13596_v46, 16 }
 0x51d   : > { %v8856_v20 = vrot.slane %v8854_v13, 7  ;;  %v8862_v31 = vshrl.u32 %v13594_v52, 16  ;;  %9648 = vst.msk [vmem:[#allocation4 + $0x18] sm:$0xff] %vm9644_vm7, %v9603_v32  ;;  %v8865_v28 = vshll.u32 %v13594_v52, 16 }
 0x51e   : > { %v8876_v22 = vor.u32 %v8874_v7, %v8873_v8  ;;  %v8881_v42 = vrot.slane %v8879_v54, 7  ;;  %v8877_v39 = vrot.slane %v8873_v8, 4  ;;  %9937 = vst.msk [vmem:[#allocation4 + $0x18] sm:$0xff] %vm9933_vm15, %v9892_v60  ;;  %v9066_v8 = vld [vmem:[#allocation3 + $0xb0] sm:$0x1] }
 0x51f   : > { %v8859_v30 = vor.u32 %v8857_v4, %v8856_v20  ;;  %v8864_v29 = vrot.slane %v8862_v31, 7  ;;  %10114 = vst.msk [vmem:[#allocation4 + $0x18] sm:$0xff] %vm10110_vm0, %v18501_v21  ;;  %v8860_v46 = vrot.slane %v8856_v20, 4  ;;  %v14603_v7 = vld [vmem:[#allocation3 + $0x90] sm:$0xff]  }
 0x520   : > { %v9063_v47 = vsel %vm18256_vm10, %v8876_v22, %v9062_v34  ;;  %v8884_v16 = vor.u32 %v8882_v33, %v8881_v42  ;;  %v8886_v56 = vrot.slane %v8881_v42, 4  ;;  %10547 = vst.msk [vmem:[#allocation4 + $0x18] sm:$0xff] %vm10543_vm2, %v10502_v23  ;;  %v10500_v54 = vpop.permute.xlu1 %10499  ;;  %v10968_v23 = vpop.permute.xlu0 %10967  ;;  %v14541_v52 = vld [vmem:[#allocation3 + $0x50] ss:$0 sps:$4 sm:$0x11]   ;;  %v11749_v22 = vld [vmem:[#allocation4 + $0x8] sm:$0xff] }
 0x521   : > { %9064 = vst [vmem:[#allocation3 + $0xa8] sm:$0xf] %v9063_v47  ;;  %v9056_v13 = vsel %vm18256_vm10, %v8859_v30, %v9055_v53  ;;  %v8867_v60 = vor.u32 %v8865_v28, %v8864_v29  ;;  %v8869_v21 = vrot.slane %v8864_v29, 4  ;;  %10836 = vst.msk [vmem:[#allocation4 + $0x18] sm:$0xff] %vm10832_vm3, %v18537_v55  ;;  %v14540_v55 = vld [vmem:[#allocation3 + $0x48] sm:$0xff]   ;;  %v11258_v42 = vshll.u32 %v14541_v52, 16  ;;  %13850 = vmatmul.mubr.msk.bf16.vlgmr.msra.gmra.mrb[48].mxu0 %vm11807_vm1, %v11749_v22 }
 0x522   : > { %9057 = vst [vmem:[#allocation3 + $0x9c] sm:$0xf] %v9056_v13  ;;  %v8885_v33 = vsel %vm15107_vm12, %v8877_v39, %v8884_v16  ;;  %v9067_v43 = vsel %vm14982_vm8, %v8886_v56, %v9066_v8  ;;  %10546 = vst.msk [vmem:[#allocation4 + $0x10] sm:$0xff] %vm10543_vm2, %v10500_v54  ;;  %v11253_v32 = vshll.u32 %v14540_v55, 16  ;;  %v11251_v47 = vshrl.u32 %v14540_v55, 16 }
 0x523   : > { %9065 = vst.msk [vmem:[#allocation3 + $0xac] sm:$0xf] %vm20033_vm6, %v8885_v33  ;;  %9068 = vst [vmem:[#allocation3 + $0xb0] sm:$0x1] %v9067_v43  ;;  %v8868_v34 = vsel %vm15107_vm12, %v8860_v46, %v8867_v60  ;;  %v9060_v20 = vsel %vm14982_vm8, %v8869_v21, %v9059_v19  ;;  %v11260_v46 = vrot.slane %v11258_v42, 1 }
 0x524   : > { %9224 = vst.msk [vmem:[#allocation4 + $0x60] sm:$0xff] %vm9211_vm14, %v14603_v7  ;;  %9061 = vst [vmem:[#allocation3 + $0xa4] sm:$0x1] %v9060_v20  ;;  %v9896_v4 = vpop.permute.xlu1 %9895  ;;  %v18597_v31 = vld [vmem:[#allocation3 + $0x5c] ss:$0 sps:$4 sm:$0x11]   ;;  %v18599_v39 = vpop.permute.xlu0 %11689 }
 0x525   : > { %10835 = vst.msk [vmem:[#allocation4 + $0x10] sm:$0xff] %vm10832_vm3, %v18550_v37  ;;  %v18595_v37 = vld [vmem:[#allocation3 + $0x54] sm:$0xfe]   ;;  %v11255_v53 = vrot.slane %v11253_v32, 1  ;;  %v11651_v19 = vrot.slane %v18597_v31, 1  ;;  %vm20035_vm6 = vmmov %vm20031_vm9 }
 0x526   : > { %11013 = vst.msk [vmem:[#allocation4 + $0x18] sm:$0xff] %vm11009_vm4, %v10968_v23  ;;  %11012 = vst.msk [vmem:[#allocation4 + $0x10] sm:$0xff] %vm11009_vm4, %v18532_v11  ;;  %v14545_v33 = vld [vmem:[#allocation3 + $0x50] ss:$0 sps:$4 sm:$0x11]   ;;  %v11650_v54 = vrot.slane %v18595_v37, 1 }
 0x527   : > { %9058 = vst.msk [vmem:[#allocation3 + $0xa0] sm:$0xf] %vm20034_vm11, %v8868_v34  ;;  %vm20036_vm11 = vmmov %vm20035_vm6 }
 0x528   : > { %11445 = vst.msk [vmem:[#allocation4 + $0x10] sm:$0xff] %vm11442_vm5, %v11399_v35  ;;  %v9607_v28 = vpop.permute.xlu1 %9606  ;;  %v18601_v35 = vld [vmem:[#allocation3 + $0x48] sm:$0xfe]   ;;  %v9609_v23 = vpop.permute.xlu0 %9608 }
 0x529   : > { %11734 = vst.msk [vmem:[#allocation4 + $0x10] sm:$0xff] %vm11731_vm13, %v18540_v26  ;;  %v11647_v42 = vrot.slane %v18601_v35, 1 }
 0x52a   : > { %v14536_v30 = vld [vmem:[#allocation3 + $0xa8] sm:$0xff]   ;;  %v14537_v11 = vld [vmem:[#allocation3 + $0xb0] ss:$0 sps:$4 sm:$0x11]   ;;  %9650 = vst.msk [vmem:[#allocation4 + $0x28] sm:$0xff] %vm9644_vm7, %v9607_v28  ;;  %9651 = vst.msk [vmem:[#allocation4 + $0x30] sm:$0xff] %vm9644_vm7, %v9609_v23  ;;  %v11256_v28 = vor.u32 %v11255_v53, %v11251_v47 }
 0x52b   : > { %v9575_v26 = vshll.u32 %v14536_v30, 16  ;;  %9939 = vst.msk [vmem:[#allocation4 + $0x28] sm:$0xff] %vm9933_vm15, %v9896_v4  ;;  %v9580_v16 = vshll.u32 %v14537_v11, 16  ;;  %v14539_v29 = vld [vmem:[#allocation3 + $0xa4] ss:$0 sps:$4 sm:$0x11]  }
 0x52c   : > { %v9573_v8 = vshrl.u32 %v14536_v30, 16  ;;  %v10073_v43 = vpop.permute.xlu1 %10072  ;;  %v9568_v21 = vshll.u32 %v14539_v29, 16  ;;  %v18614_v11 = vld [vmem:[#allocation3 + $0x48] sm:$0xfe]   ;;  %v11401_v23 = vpop.permute.xlu0 %11400 }
 0x52d   : > { %v9577_v7 = vrot.slane %v9575_v26, 1  ;;  %10116 = vst.msk [vmem:[#allocation4 + $0x28] sm:$0xff] %vm10110_vm0, %v10073_v43  ;;  %v9582_v20 = vrot.slane %v9580_v16, 1  ;;  %v18616_v26 = vld [vmem:[#allocation3 + $0x54] sm:$0xff]  }
 0x52e   : > { %v14538_v56 = vld [vmem:[#allocation3 + $0x9c] sm:$0xff]   ;;  %11446 = vst.msk [vmem:[#allocation4 + $0x18] sm:$0xff] %vm11442_vm5, %v11401_v23  ;;  %v10376_v62 = vshrl.u32 %v18616_v26, 16 }
 0x52f   : > { %v9563_v60 = vshll.u32 %v14538_v56, 16  ;;  %v9578_v34 = vor.u32 %v9577_v7, %v9573_v8  ;;  %v9561_v22 = vshrl.u32 %v14538_v56, 16  ;;  %v9570_v8 = vrot.slane %v9568_v21, 1  ;;  %v14606_v7 = vld [vmem:[#allocation3 + $0x84] sm:$0xff]   ;;  %11735 = vst.msk [vmem:[#allocation4 + $0x18] sm:$0xff] %vm11731_vm13, %v18599_v39 }
 0x530   : > { %v11750_v13 = vld [vmem:[#allocation4 + $0x10] sm:$0xff]  ;;  %9223 = vst.msk [vmem:[#allocation4 + $0x58] sm:$0xff] %vm9211_vm14, %v14606_v7  ;;  %v11261_v21 = vsel %vm20036_vm11, %v11256_v28, %v11260_v46  ;;  %v10071_v46 = vpop.permute.xlu0 %10070 }
 0x531   : > { %13853 = vmatprep.mubr.msk.bf16.mxu0 %vm11807_vm1, %v11750_v13  ;;  %v9565_v32 = vrot.slane %v9563_v60, 1  ;;  %v9583_v31 = vsel %vm20031_vm9, %v9578_v34, %v9582_v20  ;;  %v11648_v60 = vrot.slane %v14545_v33, 1  ;;  %v14547_v34 = vld [vmem:[#allocation3 + $0x50] ss:$0 sps:$4 sm:$0x11]   ;;  %vm20037_vm9 = vcmask 1046528  }
 0x532   : > { %9624 = vrot.lane.b32.xlu0 %v9583_v31, %s19483_s22  ;;  %v9856_v39 = vrot.slane %v14547_v34, 1  ;;  %10115 = vst.msk [vmem:[#allocation4 + $0x20] sm:$0xff] %vm10110_vm0, %v10071_v46  ;;  %v14552_v34 = vld [vmem:[#allocation3 + $0x5c] ss:$0 sps:$4 sm:$0x11]  }
 0x533   : > { %v13837_v52 = vpop.f32.mrb[76].mxu1  ;;  %v9566_v56 = vor.u32 %v9565_v32, %v9561_v22  ;;  %v11652_v22 = vsel %vm20037_vm9, %v11650_v54, %v11651_v19  ;;  %v10506_v32 = vpop.permute.xlu1 %10505 }
 0x534   : > { %v8515_v55 = vadd.f32 %v18427_v1, %v13837_v52  ;;  %v8506_v4 = vpop.f32.mrb[77].mxu1  ;;  %10549 = vst.msk [vmem:[#allocation4 + $0x28] sm:$0xff] %vm10543_vm2, %v10506_v32 }
 0x535   : > { %v8507_v30 = vadd.f32 %v18427_v1, %v8506_v4  ;;  %v13838_v37 = vpop.f32.mrb[78].mxu1  ;;  %v9571_v53 = vsel %vm20035_vm6, %v9566_v56, %v9570_v8  ;;  %v10378_v4 = vshll.u32 %v18616_v26, 16  ;;  %vm20038_vm6 = vmmov %vm20037_vm9  ;;  %v9076_v56 = vld [vmem:[#allocation3 + $0xc0] sm:$0xf] }
 0x536   : > { %v8551_v16 = vmax.f32 %v8515_v55, 0.0  ;;  %v8518_v29 = vadd.f32 %v18427_v1, %v13838_v37  ;;  %v8509_v13 = vpop.f32.mrb[79].mxu1  ;;  %9622 = vrot.lane.b32.xlu1 %v9571_v53, %s19483_s22  ;;  %11402 = vrot.lane.b32.xlu0 %v11261_v21, %s20032_s15  ;;  %v11649_v31 = vsel %vm20038_vm6, %v11647_v42, %v11648_v60  ;;  %v9069_v42 = vld [vmem:[#allocation3 + $0xb4] sm:$0xf]  ;;  %vm20040_vm11 = vmmov %vm20038_vm6 }
 0x537   : > { %v8549_v35 = vmax.f32 %v8507_v30, 0.0  ;;  %v8510_v43 = vadd.f32 %v18427_v1, %v8509_v13  ;;  %v10380_v19 = vrot.slane %v10378_v4, 1 }
 0x538   : > { %v13599_v52 = vpack.c.bf16 %v8551_v16, %v8551_v16  ;;  %v8552_v47 = vmax.f32 %v8518_v29, 0.0  ;;  %v9855_v16 = vrot.slane %v18614_v11, 1 }
 0x539   : > { %v13597_v20 = vpack.c.bf16 %v8549_v35, %v8549_v35  ;;  %v8550_v55 = vmax.f32 %v8510_v43, 0.0  ;;  %v10381_v26 = vor.u32 %v10380_v19, %v10376_v62 }
 0x53a   : > { %v8905_v1 = vshrl.u32 %v13599_v52, 16  ;;  %v13600_v33 = vpack.c.bf16 %v8552_v47, %v8552_v47  ;;  %v8908_v29 = vshll.u32 %v13599_v52, 16  ;;  %11693 = vrot.lane.b32.xlu1 %v11652_v22, %s20039_s24  ;;  %11691 = vrot.lane.b32.xlu0 %v11649_v31, %s20039_s24  ;;  %v9080_v52 = vld [vmem:[#allocation3 + $0xc8] sm:$0x1]  ;;  %v9073_v22 = vld [vmem:[#allocation3 + $0xbc] sm:$0x1]  ;;  %v9857_v31 = vsel %vm20040_vm11, %v9855_v16, %v9856_v39  ;;  %v9613_v39 = vpop.permute.xlu0 %9612 }
 0x53b   : > { %v8888_v30 = vshrl.u32 %v13597_v20, 16  ;;  %v13598_v37 = vpack.c.bf16 %v8550_v55, %v8550_v55  ;;  %v8891_v7 = vshll.u32 %v13597_v20, 16  ;;  %9653 = vst.msk [vmem:[#allocation4 + $0x40] sm:$0xff] %vm9644_vm7, %v9613_v39 }
 0x53c   : > { %v8907_v28 = vrot.slane %v8905_v1, 7  ;;  %v8913_v13 = vshrl.u32 %v13600_v33, 16  ;;  %v8916_v11 = vshll.u32 %v13600_v33, 16  ;;  %v11751_v33 = vld [vmem:[#allocation4 + $0x18] sm:$0xff] }
 0x53d   : > { %v8890_v8 = vrot.slane %v8888_v30, 7  ;;  %v8896_v54 = vshrl.u32 %v13598_v37, 16  ;;  %v8899_v53 = vshll.u32 %v13598_v37, 16  ;;  %13854 = vmatmul.mubr.msk.bf16.gmra.mrb[52].mxu0 %vm11807_vm1, %v11751_v33 }
 0x53e   : > { %v8910_v35 = vor.u32 %v8908_v29, %v8907_v28  ;;  %v8915_v43 = vrot.slane %v8913_v13, 7  ;;  %v8911_v60 = vrot.slane %v8907_v28, 4  ;;  %9897 = vrot.lane.b32.xlu0 %v9857_v31, %s20041_s12  ;;  %v14550_v28 = vld [vmem:[#allocation3 + $0x54] sm:$0xff]   ;;  %v14558_v29 = vld [vmem:[#allocation3 + $0x60] sm:$0xff]   ;;  %v10504_v9 = vpop.permute.xlu0 %10503 }
 0x53f   : > { %v8893_v23 = vor.u32 %v8891_v7, %v8890_v8  ;;  %v8898_v47 = vrot.slane %v8896_v54, 7  ;;  %v8894_v20 = vrot.slane %v8890_v8, 4  ;;  %v14554_v8 = vld [vmem:[#allocation3 + $0x5c] ss:$0 sps:$4 sm:$0x11]   ;;  %10548 = vst.msk [vmem:[#allocation4 + $0x20] sm:$0xff] %vm10543_vm2, %v10504_v9 }
 0x540   : > { %v9077_v55 = vsel %vm18256_vm10, %v8910_v35, %v9076_v56  ;;  %v8918_v21 = vor.u32 %v8916_v11, %v8915_v43  ;;  %v8920_v1 = vrot.slane %v8915_v43, 4  ;;  %v10383_v56 = vshll.u32 %v14552_v34, 16  ;;  %v14559_v7 = vld [vmem:[#allocation3 + $0x68] ss:$0 sps:$4 sm:$0x11]   ;;  %v9611_v35 = vpop.permute.xlu1 %9610 }
 0x541   : > { %9078 = vst [vmem:[#allocation3 + $0xc0] sm:$0xf] %v9077_v55  ;;  %v9070_v4 = vsel %vm18256_vm10, %v8893_v23, %v9069_v42  ;;  %v8901_v32 = vor.u32 %v8899_v53, %v8898_v47  ;;  %v8903_v30 = vrot.slane %v8898_v47, 4  ;;  %vm20042_vm10 = vcmask 60416   ;;  %v14553_v54 = vld [vmem:[#allocation3 + $0x54] sm:$0xfe]  }
 0x542   : > { %9071 = vst [vmem:[#allocation3 + $0xb4] sm:$0xf] %v9070_v4  ;;  %v8919_v37 = vsel %vm15107_vm12, %v8911_v60, %v8918_v21  ;;  %v9081_v46 = vsel %vm14982_vm8, %v8920_v1, %v9080_v52  ;;  %vm20043_vm9 = vmmov %vm20042_vm10  ;;  %10074 = vrot.lane.b32.xlu0 %v14550_v28, %s19685_s13  ;;  %v10385_v42 = vrot.slane %v10383_v56, 1  ;;  %v11277_v41 = vshll.u32 %v14558_v29, 16  ;;  %v14567_v55 = vld [vmem:[#allocation3 + $0x60] sm:$0xff]  }
 0x543   : > { %9079 = vst.msk [vmem:[#allocation3 + $0xc4] sm:$0xf] %vm20042_vm10, %v8919_v37  ;;  %9082 = vst [vmem:[#allocation3 + $0xc8] sm:$0x1] %v9081_v46  ;;  %v8902_v16 = vsel %vm15107_vm12, %v8894_v20, %v8901_v32  ;;  %v9074_v13 = vsel %vm14982_vm8, %v8903_v30, %v9073_v22  ;;  %vm20044_vm8 = vsmask.f32 7424 }
 0x544   : > { %9072 = vst.msk [vmem:[#allocation3 + $0xb8] sm:$0xf] %vm20043_vm9, %v8902_v16  ;;  %9075 = vst [vmem:[#allocation3 + $0xbc] sm:$0x1] %v9074_v13  ;;  %v10386_v43 = vsel %vm20044_vm8, %v10381_v26, %v10385_v42  ;;  %v10754_v11 = vrot.slane %v14553_v54, 1  ;;  %v10755_v60 = vrot.slane %v14554_v8, 1  ;;  %v10795_v23 = vpop.permute.xlu1 %10794 }
 0x545   : > { %9652 = vst.msk [vmem:[#allocation4 + $0x38] sm:$0xff] %vm9644_vm7, %v9611_v35  ;;  %v11282_v52 = vshll.u32 %v14559_v7, 16  ;;  %v11275_v53 = vshrl.u32 %v14558_v29, 16  ;;  %v11279_v34 = vrot.slane %v11277_v41, 1  ;;  %vm20045_vm12 = vmmov %vm20038_vm6  ;;  %v14560_v1 = vld [vmem:[#allocation3 + $0x54] sm:$0xfe]  }
 0x546   : > { %10507 = vrot.lane.b32.xlu0 %v10386_v43, %s14752_s30  ;;  %10838 = vst.msk [vmem:[#allocation4 + $0x28] sm:$0xff] %vm10832_vm3, %v10795_v23  ;;  %v10756_v20 = vsel %vm20045_vm12, %v10754_v11, %v10755_v60  ;;  %v14561_v22 = vld [vmem:[#allocation3 + $0x5c] ss:$0 sps:$4 sm:$0x11]   ;;  %v14555_v4 = vld [vmem:[#allocation3 + $0x60] sm:$0xff]   ;;  %v10388_v62 = vshrl.u32 %v14567_v55, 16  ;;  %vm20046_vm6 = vmmov %vm20044_vm8 }
 0x547   : > { %v11284_v32 = vrot.slane %v11282_v52, 1  ;;  %v14562_v37 = vld [vmem:[#allocation3 + $0x60] sm:$0xfe]   ;;  %v14563_v46 = vld [vmem:[#allocation3 + $0x68] ss:$0 sps:$4 sm:$0x11]   ;;  %v11280_v13 = vor.u32 %v11279_v34, %v11275_v53  ;;  %vm20047_vm11 = vmmov %vm20046_vm6 }
 0x548   : > { %v14568_v28 = vld [vmem:[#allocation3 + $0x68] ss:$0 sps:$4 sm:$0x11]   ;;  %v9858_v39 = vrot.slane %v14560_v1, 1  ;;  %v9859_v56 = vrot.slane %v14561_v22, 1  ;;  %v10390_v8 = vshll.u32 %v14567_v55, 16  ;;  %vm20048_vm10 = vmmov %vm20045_vm12 }
 0x549   : > { %v11653_v26 = vrot.slane %v14562_v37, 1  ;;  %v14565_v54 = vld [vmem:[#allocation3 + $0x60] sm:$0xfe]   ;;  %v14566_v35 = vld [vmem:[#allocation3 + $0x68] ss:$0 sps:$4 sm:$0x11]   ;;  %v11285_v9 = vsel %vm20047_vm11, %v11280_v13, %v11284_v32  ;;  %vm20049_vm9 = vmmov %vm20048_vm10 }
 0x54a   : > { %10796 = vrot.lane.b32.xlu0 %v10756_v20, %s14756_s25  ;;  %v11654_v42 = vrot.slane %v14563_v46, 1  ;;  %v10395_v41 = vshll.u32 %v14568_v28, 16  ;;  %v14574_v43 = vld [vmem:[#allocation3 + $0x6c] sm:$0xff]   ;;  %v14575_v11 = vld [vmem:[#allocation3 + $0x74] ss:$0 sps:$4 sm:$0x11]   ;;  %v9860_v60 = vsel %vm20048_vm10, %v9858_v39, %v9859_v56  ;;  %vm20050_vm8 = vmmov %vm20049_vm9 }
 0x54b   : > { %v14556_v19 = vld [vmem:[#allocation3 + $0xb4] sm:$0xff]   ;;  %v14557_v47 = vld [vmem:[#allocation3 + $0xbc] ss:$0 sps:$4 sm:$0x11]   ;;  %v9861_v23 = vrot.slane %v14565_v54, 1  ;;  %v10392_v52 = vrot.slane %v10390_v8, 1  ;;  %vm20051_vm12 = vmmov %vm20046_vm6 }
 0x54c   : > { %v9587_v21 = vshll.u32 %v14556_v19, 16  ;;  %v9592_v33 = vshll.u32 %v14557_v47, 16  ;;  %v9585_v30 = vshrl.u32 %v14556_v19, 16  ;;  %v14571_v19 = vld [vmem:[#allocation3 + $0x60] sm:$0xfe]   ;;  %v14579_v53 = vld [vmem:[#allocation3 + $0x6c] sm:$0xff]   ;;  %v11655_v34 = vsel %vm20049_vm9, %v11653_v26, %v11654_v42  ;;  %vm20054_vm9 = vmmov %vm20047_vm11 }
 0x54d   : > { %v14572_v47 = vld [vmem:[#allocation3 + $0x68] ss:$0 sps:$4 sm:$0x11]   ;;  %v9862_v55 = vrot.slane %v14566_v35, 1  ;;  %v10402_v20 = vshll.u32 %v14574_v43, 16  ;;  %v10397_v1 = vrot.slane %v10395_v41, 1 }
 0x54e   : > { %v9589_v31 = vrot.slane %v9587_v21, 1  ;;  %v9594_v29 = vrot.slane %v9592_v33, 1  ;;  %10973 = vrot.lane.b32.xlu0 %v14555_v4, %s14755_s16  ;;  %v14564_v21 = vld [vmem:[#allocation3 + $0x60] sm:$0xff]   ;;  %v10400_v22 = vshrl.u32 %v14574_v43, 16  ;;  %v10393_v4 = vor.u32 %v10392_v52, %v10388_v62  ;;  %v14632_v39 = vld [vmem:[#allocation3 + $0xa8] sm:$0xff]   ;;  %v14584_v62 = vld [vmem:[#allocation3 + $0x78] sm:$0xff]  }
 0x54f   : > { %v10407_v33 = vshll.u32 %v14575_v11, 16  ;;  %v14580_v32 = vld [vmem:[#allocation3 + $0x74] ss:$0 sps:$4 sm:$0x11]   ;;  %v9863_v37 = vsel %vm20050_vm8, %v9861_v23, %v9862_v55  ;;  %v10758_v46 = vrot.slane %v14572_v47, 1  ;;  %v10404_v28 = vrot.slane %v10402_v20, 1 }
 0x550   : > { %v9590_v16 = vor.u32 %v9589_v31, %v9585_v30  ;;  %v10757_v30 = vrot.slane %v14571_v19, 1  ;;  %v11289_v31 = vshll.u32 %v14579_v53, 16  ;;  %v14578_v13 = vld [vmem:[#allocation3 + $0x74] ss:$0 sps:$4 sm:$0x11]   ;;  %v10398_v56 = vsel %vm20051_vm12, %v10393_v4, %v10397_v1  ;;  %9226 = vst.msk [vmem:[#allocation4 + $0x70] sm:$0xff] %vm9211_vm14, %v14632_v39  ;;  %vm20056_vm12 = vmmov %vm20054_vm9 }
 0x551   : > { %v10409_v8 = vrot.slane %v10407_v33, 1  ;;  %v11294_v26 = vshll.u32 %v14580_v32, 16  ;;  %v10405_v54 = vor.u32 %v10404_v28, %v10400_v22  ;;  %v14585_v35 = vld [vmem:[#allocation3 + $0x80] ss:$0 sps:$4 sm:$0x11]   ;;  %v10761_v43 = vrot.slane %v14578_v13, 1 }
 0x552   : > { %v9595_v7 = vsel %vm20046_vm6, %v9590_v16, %v9594_v29  ;;  %11406 = vrot.lane.b32.xlu0 %v11285_v9, %s20032_s15  ;;  %v14569_v16 = vld [vmem:[#allocation3 + $0x6c] sm:$0xff]   ;;  %v14635_v9 = vld [vmem:[#allocation3 + $0x9c] sm:$0xff]   ;;  %vm20052_vm6 = vmmov %vm20050_vm8  ;;  %v11301_v55 = vshll.u32 %v14584_v62, 16  ;;  %v11306_v4 = vshll.u32 %v14585_v35, 16 }
 0x553   : > { %9626 = vrot.lane.b32.xlu1 %v9595_v7, %s19483_s22  ;;  %v14577_v29 = vld [vmem:[#allocation3 + $0x6c] sm:$0xfe]   ;;  %v11291_v7 = vrot.slane %v11289_v31, 1  ;;  %v10759_v42 = vsel %vm20052_vm6, %v10757_v30, %v10758_v46  ;;  %9225 = vst.msk [vmem:[#allocation4 + $0x68] sm:$0xff] %vm9211_vm14, %v14635_v9  ;;  %v10410_v47 = vsel %vm20047_vm11, %v10405_v54, %v10409_v8  ;;  %v14593_v20 = vld [vmem:[#allocation3 + $0x78] sm:$0xff]   ;;  %vm20053_vm10 = vmmov %vm20052_vm6 }
 0x554   : > { %v10760_v41 = vrot.slane %v14577_v29, 1  ;;  %v14576_v11 = vld [vmem:[#allocation3 + $0x6c] sm:$0xff]   ;;  %v14583_v52 = vld [vmem:[#allocation3 + $0x74] ss:$0 sps:$4 sm:$0x11]   ;;  %v11303_v30 = vrot.slane %v11301_v55, 1  ;;  %vm20055_vm8 = vmmov %vm20052_vm6 }
 0x555   : > { %v14582_v23 = vld [vmem:[#allocation3 + $0x6c] sm:$0xfe]   ;;  %v14587_v33 = vld [vmem:[#allocation3 + $0x74] ss:$0 sps:$4 sm:$0x11]   ;;  %v14581_v46 = vld [vmem:[#allocation3 + $0x78] sm:$0xff]  }
 0x556   : > { %11695 = vrot.lane.b32.xlu0 %v11655_v34, %s20039_s24  ;;  %v11296_v34 = vrot.slane %v11294_v26, 1  ;;  %v14586_v22 = vld [vmem:[#allocation3 + $0x6c] sm:$0xfe]   ;;  %v10762_v32 = vsel %vm20053_vm10, %v10760_v41, %v10761_v43  ;;  %v11656_v28 = vrot.slane %v14582_v23, 1  ;;  %v11299_v29 = vshrl.u32 %v14584_v62, 16  ;;  %v14598_v9 = vld [vmem:[#allocation3 + $0x84] sm:$0xff]   ;;  %vm20057_vm11 = vmmov %vm20052_vm6 }
 0x557   : > { %9899 = vrot.lane.b32.xlu1 %v9860_v60, %s20041_s12  ;;  %v11287_v60 = vshrl.u32 %v14579_v53, 16  ;;  %v11308_v13 = vrot.slane %v11306_v4, 1  ;;  %v9864_v39 = vrot.slane %v14586_v22, 1  ;;  %v9865_v8 = vrot.slane %v14587_v33, 1  ;;  %v14588_v54 = vld [vmem:[#allocation3 + $0x78] sm:$0xfe]   ;;  %vm20058_vm10 = vmmov %vm20052_vm6 }
 0x558   : > { %v11304_v26 = vor.u32 %v11303_v30, %v11299_v29  ;;  %v14591_v35 = vld [vmem:[#allocation3 + $0x78] sm:$0xfe]   ;;  %v14592_v41 = vld [vmem:[#allocation3 + $0x80] ss:$0 sps:$4 sm:$0x11]   ;;  %v10426_v4 = vshll.u32 %v14598_v9, 16 }
 0x559   : > { %v11292_v1 = vor.u32 %v11291_v7, %v11287_v60  ;;  %v14589_v7 = vld [vmem:[#allocation3 + $0x80] ss:$0 sps:$4 sm:$0x11]   ;;  %v14599_v23 = vld [vmem:[#allocation3 + $0x8c] ss:$0 sps:$4 sm:$0x11]  }
 0x55a   : > { %9901 = vrot.lane.b32.xlu0 %v9863_v37, %s20041_s12  ;;  %v14594_v43 = vld [vmem:[#allocation3 + $0x80] ss:$0 sps:$4 sm:$0x11]   ;;  %v11309_v62 = vsel %vm20056_vm12, %v11304_v26, %v11308_v13  ;;  %v11660_v60 = vrot.slane %v14589_v7, 1  ;;  %v14590_v55 = vld [vmem:[#allocation3 + $0x78] sm:$0xff]   ;;  %v14595_v29 = vld [vmem:[#allocation3 + $0x84] sm:$0xff]  }
 0x55b   : > { %10076 = vrot.lane.b32.xlu1 %v14564_v21, %s19685_s13  ;;  %v11297_v37 = vsel %vm20054_vm9, %v11292_v1, %v11296_v34  ;;  %v9868_v1 = vrot.slane %v14592_v41, 1  ;;  %v10419_v22 = vshll.u32 %v14594_v43, 16  ;;  %v14602_v41 = vld [vmem:[#allocation3 + $0x8c] ss:$0 sps:$4 sm:$0x11]   ;;  %vm20060_vm12 = vmmov %vm20054_vm9 }
 0x55e   : > { %10078 = vrot.lane.b32.xlu0 %v14569_v16, %s19685_s13  ;;  %v11657_v16 = vrot.slane %v14583_v52, 1  ;;  %v14604_v52 = vld [vmem:[#allocation3 + $0x84] sm:$0xff]  }
 0x55f   : > { %10509 = vrot.lane.b32.xlu1 %v10398_v56, %s14752_s30  ;;  %v10414_v56 = vshll.u32 %v14593_v20, 16  ;;  %v11313_v30 = vshll.u32 %v14604_v52, 16 }
 0x561   : > { %v10416_v34 = vrot.slane %v10414_v56, 1  ;;  %v10424_v56 = vshrl.u32 %v14598_v9, 16  ;;  %v14600_v9 = vld [vmem:[#allocation3 + $0x84] sm:$0xff]  }
 0x562   : > { %v9617_v19 = vpop.permute.xlu0 %9616  ;;  %10511 = vrot.lane.b32.xlu0 %v10410_v47, %s14752_s30  ;;  %v10412_v47 = vshrl.u32 %v14593_v20, 16 }
 0x563   : > { %10798 = vrot.lane.b32.xlu1 %v10759_v42, %s14756_s25  ;;  %9655 = vst.msk [vmem:[#allocation4 + $0x50] sm:$0xff] %vm9644_vm7, %v9617_v19  ;;  %v9615_v21 = vpop.permute.xlu1 %9614  ;;  %v11658_v42 = vsel %vm20055_vm8, %v11656_v28, %v11657_v16  ;;  %v9866_v19 = vsel %vm20052_vm6, %v9864_v39, %v9865_v8  ;;  %v10421_v28 = vrot.slane %v10419_v22, 1  ;;  %v10428_v16 = vrot.slane %v10426_v4, 1  ;;  %vm20059_vm8 = vmmov %vm20052_vm6 }
 0x564   : > { %9654 = vst.msk [vmem:[#allocation4 + $0x48] sm:$0xff] %vm9644_vm7, %v9615_v21  ;;  %v9867_v21 = vrot.slane %v14591_v35, 1  ;;  %v11315_v8 = vrot.slane %v11313_v30, 1  ;;  %v14601_v35 = vld [vmem:[#allocation3 + $0x84] sm:$0xfe]  }
 0x566   : > { %v10793_v53 = vpop.permute.xlu0 %10792  ;;  %10800 = vrot.lane.b32.xlu0 %v10762_v32, %s14756_s25  ;;  %v14597_v32 = vld [vmem:[#allocation3 + $0x80] ss:$0 sps:$4 sm:$0x11]   ;;  %v9869_v20 = vsel %vm20058_vm10, %v9867_v21, %v9868_v1  ;;  %v14611_v21 = vld [vmem:[#allocation3 + $0x98] ss:$0 sps:$4 sm:$0x11]   ;;  %vm20063_vm10 = vmmov %vm20054_vm9 }
 0x567   : > { %10975 = vrot.lane.b32.xlu1 %v14576_v11, %s14755_s16  ;;  %10837 = vst.msk [vmem:[#allocation4 + $0x20] sm:$0xff] %vm10832_vm3, %v10793_v53  ;;  %v10972_v31 = vpop.permute.xlu1 %10971  ;;  %v11659_v11 = vrot.slane %v14588_v54, 1  ;;  %v14596_v53 = vld [vmem:[#allocation3 + $0x78] sm:$0xfe]   ;;  %v10764_v39 = vrot.slane %v14597_v32, 1  ;;  %v14610_v54 = vld [vmem:[#allocation3 + $0x90] sm:$0xff]  }
 0x568   : > { %11015 = vst.msk [vmem:[#allocation4 + $0x28] sm:$0xff] %vm11009_vm4, %v10972_v31  ;;  %v10417_v31 = vor.u32 %v10416_v34, %v10412_v47  ;;  %v10763_v13 = vrot.slane %v14596_v53, 1  ;;  %v10766_v47 = vrot.slane %v14601_v35, 1  ;;  %v10767_v34 = vrot.slane %v14602_v41, 1  ;;  %v14662_v1 = vld [vmem:[#allocation3 + $0xb4] sm:$0xff]  }
 0x569   : > { %v11661_v33 = vsel %vm20057_vm11, %v11659_v11, %v11660_v60  ;;  %v14608_v11 = vld [vmem:[#allocation3 + $0x84] sm:$0xfe]   ;;  %v14609_v60 = vld [vmem:[#allocation3 + $0x8c] ss:$0 sps:$4 sm:$0x11]   ;;  %v11323_v4 = vshrl.u32 %v14610_v54, 16  ;;  %vm20061_vm11 = vmmov %vm20054_vm9 }
 0x56a   : > { %10977 = vrot.lane.b32.xlu0 %v14581_v46, %s14755_s16  ;;  %v14605_v46 = vld [vmem:[#allocation3 + $0x8c] ss:$0 sps:$4 sm:$0x11]   ;;  %v10422_v7 = vsel %vm20054_vm9, %v10417_v31, %v10421_v28  ;;  %v11662_v53 = vrot.slane %v14608_v11, 1  ;;  %v11663_v32 = vrot.slane %v14609_v60, 1  ;;  %9227 = vst.msk [vmem:[#allocation4 + $0x78] sm:$0xff] %vm9211_vm14, %v14662_v1  ;;  %v10768_v31 = vsel %vm20052_vm6, %v10766_v47, %v10767_v34  ;;  %vm20062_vm14 = vmmov %vm20052_vm6 }
 0x56b   : > { %11408 = vrot.lane.b32.xlu1 %v11297_v37, %s20032_s15  ;;  %v10431_v37 = vshll.u32 %v14599_v23, 16  ;;  %v11318_v43 = vshll.u32 %v14605_v46, 16  ;;  %v11325_v23 = vshll.u32 %v14610_v54, 16  ;;  %v14613_v46 = vld [vmem:[#allocation3 + $0x8c] ss:$0 sps:$4 sm:$0x11]   ;;  %vm20064_vm9 = vmmov %vm20052_vm6 }
 0x56c   : > { %v11664_v54 = vsel %vm20062_vm14, %v11662_v53, %v11663_v32  ;;  %v9871_v35 = vrot.slane %v14613_v46, 1  ;;  %v14616_v32 = vld [vmem:[#allocation3 + $0x90] sm:$0xff]   ;;  %v14625_v46 = vld [vmem:[#allocation3 + $0xa4] ss:$0 sps:$4 sm:$0x11]  }
 0x56d   : > { %v10433_v26 = vrot.slane %v10431_v37, 1  ;;  %v11327_v30 = vrot.slane %v11325_v23, 1  ;;  %v11330_v37 = vshll.u32 %v14611_v21, 16  ;;  %v14617_v23 = vld [vmem:[#allocation3 + $0x90] sm:$0xfe]  }
 0x56e   : > { %11410 = vrot.lane.b32.xlu0 %v11309_v62, %s20032_s15  ;;  %v10765_v62 = vsel %vm20059_vm8, %v10763_v13, %v10764_v39  ;;  %v14619_v13 = vld [vmem:[#allocation3 + $0x90] sm:$0xff]   ;;  %vm20065_vm8 = vmmov %vm20052_vm6 }
 0x56f   : > { %11697 = vrot.lane.b32.xlu1 %v11658_v42, %s20039_s24  ;;  %v10429_v42 = vor.u32 %v10428_v16, %v10424_v56  ;;  %v14614_v16 = vld [vmem:[#allocation3 + $0x90] sm:$0xfe]   ;;  %v11328_v56 = vor.u32 %v11327_v30, %v11323_v4  ;;  %v10436_v1 = vshrl.u32 %v14619_v13, 16 }
 0x570   : > { %v11665_v41 = vrot.slane %v14614_v16, 1  ;;  %v14622_v30 = vld [vmem:[#allocation3 + $0x90] sm:$0xfe]  }
 0x572   : > { %11699 = vrot.lane.b32.xlu0 %v11661_v33, %s20039_s24  ;;  %v11320_v33 = vrot.slane %v11318_v43, 1 }
 0x573   : > { %9903 = vrot.lane.b32.xlu1 %v9866_v19, %s20041_s12  ;;  %v10434_v19 = vsel %vm20060_vm12, %v10429_v42, %v10433_v26  ;;  %v10438_v42 = vshll.u32 %v14619_v13, 16  ;;  %vm20066_vm12 = vmmov %vm20052_vm6 }
 0x574   : > { %vm20067_vm6 = vmmov %vm20063_vm10 }
 0x575   : > { %vm20069_vm14 = vmmov %vm20067_vm6 }
 0x576   : > { %9905 = vrot.lane.b32.xlu0 %v9869_v20, %s20041_s12  ;;  %v14612_v20 = vld [vmem:[#allocation3 + $0x84] sm:$0xfe]  }
 0x577   : > { %10080 = vrot.lane.b32.xlu1 %v14590_v55, %s19685_s13  ;;  %v11311_v55 = vshrl.u32 %v14604_v52, 16  ;;  %v14607_v52 = vld [vmem:[#allocation3 + $0x90] sm:$0xff]  }
 0x579   : > { %v11316_v22 = vor.u32 %v11315_v8, %v11311_v55  ;;  %v11332_v8 = vrot.slane %v11330_v37, 1  ;;  %v10440_v55 = vrot.slane %v10438_v42, 1 }
 0x57a   : > { %10082 = vrot.lane.b32.xlu0 %v14595_v29, %s19685_s13  ;;  %v14615_v29 = vld [vmem:[#allocation3 + $0x98] ss:$0 sps:$4 sm:$0x11]  }
 0x57b   : > { %10513 = vrot.lane.b32.xlu1 %v10422_v7, %s14752_s30  ;;  %v11321_v28 = vsel %vm20061_vm11, %v11316_v22, %v11320_v33  ;;  %v9870_v7 = vrot.slane %v14612_v20, 1  ;;  %v11666_v43 = vrot.slane %v14615_v29, 1  ;;  %v11333_v60 = vsel %vm20063_vm10, %v11328_v56, %v11332_v8  ;;  %vm20068_vm11 = vmmov %vm20065_vm8 }
 0x57c   : > { %v9873_v22 = vrot.slane %v14617_v23, 1  ;;  %v10441_v37 = vor.u32 %v10440_v55, %v10436_v1  ;;  %v10769_v29 = vrot.slane %v14622_v30, 1  ;;  %v10455_v8 = vshll.u32 %v14625_v46, 16  ;;  %vm20070_vm10 = vmmov %vm20065_vm8 }
 0x57d   : > { %v9872_v34 = vsel %vm20064_vm9, %v9870_v7, %v9871_v35  ;;  %v11667_v21 = vsel %vm20065_vm8, %v11665_v41, %v11666_v43  ;;  %v14628_v35 = vld [vmem:[#allocation3 + $0xa4] ss:$0 sps:$4 sm:$0x11]   ;;  %v14636_v43 = vld [vmem:[#allocation3 + $0xa8] sm:$0xff]   ;;  %vm20071_vm9 = vmmov %vm20067_vm6 }
 0x57e   : > { %10515 = vrot.lane.b32.xlu0 %v10434_v19, %s14752_s30  ;;  %v14624_v19 = vld [vmem:[#allocation3 + $0x9c] sm:$0xff]   ;;  %v14630_v41 = vld [vmem:[#allocation3 + $0xa4] ss:$0 sps:$4 sm:$0x11]   ;;  %v11349_v1 = vshll.u32 %v14636_v43, 16  ;;  %v11347_v46 = vshrl.u32 %v14636_v43, 16 }
 0x57f   : > { %10802 = vrot.lane.b32.xlu1 %v10765_v62, %s14756_s25  ;;  %v14618_v62 = vld [vmem:[#allocation3 + $0x98] ss:$0 sps:$4 sm:$0x11]   ;;  %v10450_v53 = vshll.u32 %v14624_v19, 16  ;;  %v10448_v13 = vshrl.u32 %v14624_v19, 16  ;;  %v11342_v55 = vshll.u32 %v14630_v41, 16 }
 0x580   : > { %v9874_v4 = vrot.slane %v14618_v62, 1  ;;  %v11351_v30 = vrot.slane %v11349_v1, 1 }
 0x581   : > { %v10452_v16 = vrot.slane %v10450_v53, 1 }
 0x582   : > { %10804 = vrot.lane.b32.xlu0 %v10768_v31, %s14756_s25  ;;  %v14623_v31 = vld [vmem:[#allocation3 + $0x98] ss:$0 sps:$4 sm:$0x11]   ;;  %v9875_v20 = vsel %vm20066_vm12, %v9873_v22, %v9874_v4  ;;  %v14634_v22 = vld [vmem:[#allocation3 + $0xa4] ss:$0 sps:$4 sm:$0x11]   ;;  %vm20072_vm12 = vmmov %vm20067_vm6 }
 0x583   : > { %10979 = vrot.lane.b32.xlu1 %v14600_v9, %s14755_s16  ;;  %v14620_v9 = vld [vmem:[#allocation3 + $0x98] ss:$0 sps:$4 sm:$0x11]   ;;  %v10770_v56 = vrot.slane %v14623_v31, 1  ;;  %v10453_v42 = vor.u32 %v10452_v16, %v10448_v13  ;;  %v14631_v13 = vld [vmem:[#allocation3 + $0xa8] sm:$0xff]  }
 0x584   : > { %v9621_v39 = vpop.permute.xlu0 %9620  ;;  %v10443_v33 = vshll.u32 %v14620_v9, 16  ;;  %v14637_v4 = vld [vmem:[#allocation3 + $0xb0] ss:$0 sps:$4 sm:$0x11]  }
 0x585   : > { %9657 = vst.msk [vmem:[#allocation4 + $0x60] sm:$0xff] %vm9644_vm7, %v9621_v39  ;;  %v9619_v26 = vpop.permute.xlu1 %9618  ;;  %v10771_v62 = vsel %vm20068_vm11, %v10769_v29, %v10770_v56  ;;  %v14639_v16 = vld [vmem:[#allocation3 + $0xa4] ss:$0 sps:$4 sm:$0x11]   ;;  %v14645_v29 = vld [vmem:[#allocation3 + $0xa8] sm:$0xff]  }
 0x586   : > { %10981 = vrot.lane.b32.xlu0 %v14607_v52, %s14755_s16  ;;  %9656 = vst.msk [vmem:[#allocation4 + $0x58] sm:$0xff] %vm9644_vm7, %v9619_v26  ;;  %v14629_v52 = vld [vmem:[#allocation3 + $0x9c] sm:$0xff]   ;;  %v14641_v56 = vld [vmem:[#allocation3 + $0xb0] ss:$0 sps:$4 sm:$0x11]  }
 0x587   : > { %11412 = vrot.lane.b32.xlu1 %v11321_v28, %s20032_s15  ;;  %v10445_v28 = vrot.slane %v10443_v33, 1  ;;  %v11337_v7 = vshll.u32 %v14629_v52, 16  ;;  %v14621_v26 = vld [vmem:[#allocation3 + $0x9c] sm:$0xff]   ;;  %v11335_v9 = vshrl.u32 %v14629_v52, 16  ;;  %v11354_v52 = vshll.u32 %v14637_v4, 16 }
 0x588   : > { %v10970_v11 = vpop.permute.xlu0 %10969 }
 0x589   : > { %11014 = vst.msk [vmem:[#allocation4 + $0x20] sm:$0xff] %vm11009_vm4, %v10970_v11  ;;  %v11405_v47 = vpop.permute.xlu1 %11404  ;;  %v10446_v39 = vsel %vm20067_vm6, %v10441_v37, %v10445_v28  ;;  %v10457_v11 = vrot.slane %v10455_v8, 1  ;;  %v11669_v37 = vrot.slane %v14634_v22, 1  ;;  %v14638_v28 = vld [vmem:[#allocation3 + $0x9c] sm:$0xfe]   ;;  %v11352_v8 = vor.u32 %v11351_v30, %v11347_v46  ;;  %vm20073_vm6 = vmmov %vm20065_vm8  ;;  %v14642_v30 = vld [vmem:[#allocation3 + $0xa8] sm:$0xff]  }
 0x58a   : > { %11414 = vrot.lane.b32.xlu0 %v11333_v60, %s20032_s15  ;;  %11448 = vst.msk [vmem:[#allocation4 + $0x28] sm:$0xff] %vm11442_vm5, %v11405_v47  ;;  %v11339_v60 = vrot.slane %v11337_v7, 1  ;;  %v14626_v47 = vld [vmem:[#allocation3 + $0x9c] sm:$0xff]   ;;  %vm20074_vm11 = vmmov %vm20073_vm6  ;;  %v10460_v22 = vshrl.u32 %v14645_v29, 16 }
 0x58b   : > { %11701 = vrot.lane.b32.xlu1 %v11664_v54, %s20039_s24  ;;  %v14627_v54 = vld [vmem:[#allocation3 + $0x9c] sm:$0xfe]   ;;  %v10458_v19 = vsel %vm20069_vm14, %v10453_v42, %v10457_v11  ;;  %v10462_v42 = vshll.u32 %v14645_v29, 16  ;;  %v14644_v11 = vld [vmem:[#allocation3 + $0xb0] ss:$0 sps:$4 sm:$0x11]   ;;  %vm20075_vm14 = vmmov %vm20073_vm6 }
 0x58c   : > { %v10772_v23 = vrot.slane %v14627_v54, 1  ;;  %v11340_v33 = vor.u32 %v11339_v60, %v11335_v9  ;;  %v9876_v54 = vrot.slane %v14638_v28, 1  ;;  %v14646_v9 = vld [vmem:[#allocation3 + $0xb0] ss:$0 sps:$4 sm:$0x11]   ;;  %v14655_v28 = vld [vmem:[#allocation3 + $0xb4] sm:$0xff]  }
 0x58e   : > { %11703 = vrot.lane.b32.xlu0 %v11667_v21, %s20039_s24  ;;  %v14633_v21 = vld [vmem:[#allocation3 + $0x9c] sm:$0xfe]  }
 0x58f   : > { %9907 = vrot.lane.b32.xlu1 %v9872_v34, %s20041_s12  ;;  %v10773_v34 = vrot.slane %v14628_v35, 1  ;;  %v11668_v31 = vrot.slane %v14633_v21, 1  ;;  %v9877_v35 = vrot.slane %v14639_v16, 1 }
 0x591   : > { %v10774_v53 = vsel %vm20070_vm10, %v10772_v23, %v10773_v34  ;;  %v11670_v7 = vsel %vm20065_vm8, %v11668_v31, %v11669_v37  ;;  %v14643_v23 = vld [vmem:[#allocation3 + $0xa8] sm:$0xfe]   ;;  %v9878_v34 = vsel %vm20073_vm6, %v9876_v54, %v9877_v35  ;;  %v14649_v37 = vld [vmem:[#allocation3 + $0xb0] ss:$0 sps:$4 sm:$0x11]   ;;  %vm20076_vm10 = vmmov %vm20071_vm9  ;;  %v11361_v35 = vshll.u32 %v14655_v28, 16 }
 0x592   : > { %9909 = vrot.lane.b32.xlu0 %v9875_v20, %s20041_s12  ;;  %v9879_v4 = vrot.slane %v14643_v23, 1  ;;  %v14648_v31 = vld [vmem:[#allocation3 + $0xa8] sm:$0xfe]   ;;  %v14660_v23 = vld [vmem:[#allocation3 + $0xc0] sm:$0xff]   ;;  %vm20078_vm8 = vmmov %vm20076_vm10 }
 0x593   : > { %10084 = vrot.lane.b32.xlu1 %v14616_v32, %s19685_s13  ;;  %v11344_v32 = vrot.slane %v11342_v55, 1  ;;  %v10464_v55 = vrot.slane %v10462_v42, 1 }
 0x595   : > { %v11345_v20 = vsel %vm20071_vm9, %v11340_v33, %v11344_v32  ;;  %v9880_v33 = vrot.slane %v14644_v11, 1  ;;  %vm20077_vm9 = vmmov %vm20073_vm6 }
 0x596   : > { %10086 = vrot.lane.b32.xlu0 %v14621_v26, %s19685_s13  ;;  %v11356_v26 = vrot.slane %v11354_v52, 1  ;;  %v10465_v52 = vor.u32 %v10464_v55, %v10460_v22  ;;  %v11359_v22 = vshrl.u32 %v14655_v28, 16 }
 0x597   : > { %10517 = vrot.lane.b32.xlu1 %v10446_v39, %s14752_s30  ;;  %v14640_v39 = vld [vmem:[#allocation3 + $0xa8] sm:$0xfe]   ;;  %v9881_v29 = vsel %vm20075_vm14, %v9879_v4, %v9880_v33 }
 0x598   : > { %v11671_v43 = vrot.slane %v14640_v39, 1  ;;  %v11357_v60 = vsel %vm20072_vm12, %v11352_v8, %v11356_v26  ;;  %v10776_v26 = vrot.slane %v14649_v37, 1  ;;  %v14659_v37 = vld [vmem:[#allocation3 + $0xbc] ss:$0 sps:$4 sm:$0x11]   ;;  %vm20079_vm12 = vmmov %vm20073_vm6 }
 0x599   : > { %vm20080_vm6 = vmmov %vm20078_vm8 }
 0x59a   : > { %10519 = vrot.lane.b32.xlu0 %v10458_v19, %s14752_s30  ;;  %v14650_v19 = vld [vmem:[#allocation3 + $0xb4] sm:$0xff]   ;;  %vm20082_vm14 = vmmov %vm20080_vm6 }
 0x59b   : > { %10806 = vrot.lane.b32.xlu1 %v10771_v62, %s14756_s25  ;;  %v11672_v62 = vrot.slane %v14641_v56, 1  ;;  %v10474_v32 = vshll.u32 %v14650_v19, 16  ;;  %v10775_v56 = vrot.slane %v14648_v31, 1  ;;  %v10472_v8 = vshrl.u32 %v14650_v19, 16 }
 0x59c   : > { %v11373_v31 = vshll.u32 %v14660_v23, 16 }
 0x59d   : > { %v11673_v1 = vsel %vm20074_vm11, %v11671_v43, %v11672_v62  ;;  %v10476_v39 = vrot.slane %v10474_v32, 1  ;;  %v14653_v43 = vld [vmem:[#allocation3 + $0xb4] sm:$0xfe]   ;;  %v14654_v62 = vld [vmem:[#allocation3 + $0xbc] ss:$0 sps:$4 sm:$0x11]   ;;  %vm20081_vm11 = vmmov %vm20077_vm9 }
 0x59e   : > { %10808 = vrot.lane.b32.xlu0 %v10774_v53, %s14756_s25  ;;  %v10467_v53 = vshll.u32 %v14646_v9, 16  ;;  %v10777_v9 = vsel %vm20077_vm9, %v10775_v56, %v10776_v26  ;;  %v11371_v56 = vshrl.u32 %v14660_v23, 16  ;;  %v14663_v26 = vld [vmem:[#allocation3 + $0xb4] sm:$0xfe]  }
 0x59f   : > { %10983 = vrot.lane.b32.xlu1 %v14626_v47, %s14755_s16  ;;  %v10477_v11 = vor.u32 %v10476_v39, %v10472_v8  ;;  %v11675_v39 = vrot.slane %v14659_v37, 1 }
 0x5a2   : > { %10985 = vrot.lane.b32.xlu0 %v14631_v13, %s14755_s16  ;;  %v10469_v13 = vrot.slane %v10467_v53, 1  ;;  %v10779_v53 = vrot.slane %v14654_v62, 1  ;;  %v14665_v62 = vld [vmem:[#allocation3 + $0xc0] sm:$0xfe]  }
 0x5a3   : > { %11416 = vrot.lane.b32.xlu1 %v11345_v20, %s20032_s15  ;;  %v14651_v20 = vld [vmem:[#allocation3 + $0xbc] ss:$0 sps:$4 sm:$0x11]  }
 0x5a4   : > { %v9625_v41 = vpop.permute.xlu0 %9624  ;;  %v10479_v54 = vshll.u32 %v14651_v20, 16 }
 0x5a5   : > { %9659 = vst.msk [vmem:[#allocation4 + $0x70] sm:$0xff] %vm9644_vm7, %v9625_v41  ;;  %v14647_v41 = vld [vmem:[#allocation3 + $0xb4] sm:$0xff]  }
 0x5a6   : > { %11418 = vrot.lane.b32.xlu0 %v11357_v60, %s20032_s15  ;;  %v14656_v60 = vld [vmem:[#allocation3 + $0xbc] ss:$0 sps:$4 sm:$0x11]   ;;  %v10481_v19 = vrot.slane %v10479_v54, 1 }
 0x5a7   : > { %11705 = vrot.lane.b32.xlu1 %v11670_v7, %s20039_s24  ;;  %v10470_v7 = vsel %vm20076_vm10, %v10465_v52, %v10469_v13  ;;  %v11366_v32 = vshll.u32 %v14656_v60, 16  ;;  %v14664_v54 = vld [vmem:[#allocation3 + $0xbc] ss:$0 sps:$4 sm:$0x11]   ;;  %vm20083_vm10 = vmmov %vm20077_vm9 }
 0x5a8   : > { %v9623_v47 = vpop.permute.xlu1 %9622  ;;  %v11403_v21 = vpop.permute.xlu0 %11402  ;;  %v10482_v4 = vsel %vm20078_vm8, %v10477_v11, %v10481_v19  ;;  %v14666_v11 = vld [vmem:[#allocation3 + $0xc8] ss:$0 sps:$4 sm:$0x11]   ;;  %v9883_v19 = vrot.slane %v14664_v54, 1  ;;  %vm20087_vm8 = vmmov %vm20077_vm9 }
 0x5a9   : > { %9658 = vst.msk [vmem:[#allocation4 + $0x68] sm:$0xff] %vm9644_vm7, %v9623_v47  ;;  %v11363_v47 = vrot.slane %v11361_v35, 1  ;;  %v14668_v35 = vld [vmem:[#allocation3 + $0xc0] sm:$0xff]  }
 0x5aa   : > { %11447 = vst.msk [vmem:[#allocation4 + $0x20] sm:$0xff] %vm11442_vm5, %v11403_v21  ;;  %11707 = vrot.lane.b32.xlu0 %v11673_v1, %s20039_s24  ;;  %v14652_v21 = vld [vmem:[#allocation3 + $0xb4] sm:$0xff]   ;;  %v10778_v1 = vrot.slane %v14653_v43, 1 }
 0x5ab   : > { %9911 = vrot.lane.b32.xlu1 %v9878_v34, %s20041_s12  ;;  %v11364_v52 = vor.u32 %v11363_v47, %v11359_v22  ;;  %v10486_v47 = vshll.u32 %v14668_v35, 16  ;;  %v14669_v22 = vld [vmem:[#allocation3 + $0xc8] ss:$0 sps:$4 sm:$0x11]  }
 0x5ac   : > { %v11694_v46 = vpop.permute.xlu1 %11693  ;;  %v11692_v16 = vpop.permute.xlu0 %11691  ;;  %v10780_v28 = vsel %vm20079_vm12, %v10778_v1, %v10779_v53  ;;  %v11678_v1 = vrot.slane %v14666_v11, 1  ;;  %v10491_v37 = vshll.u32 %v14669_v22, 16  ;;  %v14676_v22 = vld [vmem:[#allocation3 + $0xd4] ss:$0 sps:$4 sm:$0x11]   ;;  %vm20089_vm12 = vmmov %vm20080_vm6 }
 0x5ad   : > { %11737 = vst.msk [vmem:[#allocation4 + $0x28] sm:$0xff] %vm11731_vm13, %v11694_v46  ;;  %11736 = vst.msk [vmem:[#allocation4 + $0x20] sm:$0xff] %vm11731_vm13, %v11692_v16  ;;  %v14661_v46 = vld [vmem:[#allocation3 + $0xc8] ss:$0 sps:$4 sm:$0x11]   ;;  %v11368_v16 = vrot.slane %v11366_v32, 1 }
 0x5ae   : > { %9913 = vrot.lane.b32.xlu0 %v9881_v29, %s20041_s12  ;;  %v11375_v29 = vrot.slane %v11373_v31, 1  ;;  %v11378_v8 = vshll.u32 %v14661_v46, 16  ;;  %v10488_v53 = vrot.slane %v10486_v47, 1  ;;  %v10484_v31 = vshrl.u32 %v14668_v35, 16  ;;  %v14673_v46 = vld [vmem:[#allocation3 + $0xcc] sm:$0xff]  }
 0x5af   : > { %10088 = vrot.lane.b32.xlu1 %v14642_v30, %s19685_s13  ;;  %v14658_v30 = vld [vmem:[#allocation3 + $0xb4] sm:$0xfe]  }
 0x5b0   : > { %v9898_v42 = vpop.permute.xlu0 %9897  ;;  %v11674_v13 = vrot.slane %v14658_v30, 1  ;;  %v11376_v43 = vor.u32 %v11375_v29, %v11371_v56  ;;  %v11380_v23 = vrot.slane %v11378_v8, 1  ;;  %v14671_v29 = vld [vmem:[#allocation3 + $0xc8] ss:$0 sps:$4 sm:$0x11]   ;;  %v11385_v8 = vshll.u32 %v14673_v46, 16 }
 0x5b1   : > { %9940 = vst.msk [vmem:[#allocation4 + $0x30] sm:$0xff] %vm9933_vm15, %v9898_v42  ;;  %v14674_v56 = vld [vmem:[#allocation3 + $0xd4] ss:$0 sps:$4 sm:$0x11]  }
 0x5b2   : > { %10090 = vrot.lane.b32.xlu0 %v14647_v41, %s19685_s13  ;;  %v14657_v41 = vld [vmem:[#allocation3 + $0xc0] sm:$0xff]   ;;  %v11676_v60 = vsel %vm20081_vm11, %v11674_v13, %v11675_v39  ;;  %v10493_v39 = vrot.slane %v10491_v37, 1  ;;  %v11390_v11 = vshll.u32 %v14674_v56, 16  ;;  %v20090_v37 = vld [vmem:[#allocation19_spill] sm:$0xff]  ;;  %vm12213_vm11 = vcmask 113728  }
 0x5b3   : > { %10521 = vrot.lane.b32.xlu1 %v10470_v7, %s14752_s30  ;;  %v11369_v7 = vsel %vm20080_vm6, %v11364_v52, %v11368_v16  ;;  %v14670_v16 = vld [vmem:[#allocation3 + $0xc0] sm:$0xfe]  }
 0x5b4   : > { %v10075_v34 = vpop.permute.xlu0 %10074  ;;  %v11752_v55 = vld [vmem:[#allocation4 + $0x20] sm:$0xff]  ;;  %v11753_v33 = vld [vmem:[#allocation4 + $0x28] sm:$0xff]  ;;  %v10781_v35 = vrot.slane %v14670_v16, 1 }
 0x5b5   : > { %10117 = vst.msk [vmem:[#allocation4 + $0x30] sm:$0xff] %vm10110_vm0, %v10075_v34  ;;  %13857 = vmatprep.mubr.msk.bf16.mxu0 %vm11807_vm1, %v11752_v55  ;;  %v11381_v55 = vsel %vm20082_vm14, %v11376_v43, %v11380_v23  ;;  %v11383_v43 = vshrl.u32 %v14673_v46, 16 }
 0x5b6   : > { %10523 = vrot.lane.b32.xlu0 %v10482_v4, %s14752_s30  ;;  %13858 = vmatmul.mubr.msk.bf16.gmra.mrb[56].mxu0 %vm11807_vm1, %v11753_v33 }
 0x5b7   : > { %10810 = vrot.lane.b32.xlu1 %v10777_v9, %s14756_s25  ;;  %v9882_v9 = vrot.slane %v14663_v26, 1 }
 0x5b8   : > { %v10508_v20 = vpop.permute.xlu0 %10507 }
 0x5b9   : > { %10550 = vst.msk [vmem:[#allocation4 + $0x30] sm:$0xff] %vm10543_vm2, %v10508_v20  ;;  %v9884_v33 = vsel %vm20083_vm10, %v9882_v9, %v9883_v19  ;;  %v14667_v20 = vld [vmem:[#allocation3 + $0xc0] sm:$0xff]  }
 0x5ba   : > { %10812 = vrot.lane.b32.xlu0 %v10780_v28, %s14756_s25  ;;  %v10489_v28 = vor.u32 %v10488_v53, %v10484_v31  ;;  %v11681_v31 = vrot.slane %v14676_v22, 1  ;;  %v20103_v22 = vld [vmem:[#allocation22_spill] sm:$0xff] }
 0x5bb   : > { %10987 = vrot.lane.b32.xlu1 %v14652_v21, %s14755_s16  ;;  %v11677_v21 = vrot.slane %v14665_v62, 1  ;;  %v11387_v62 = vrot.slane %v11385_v8, 1  ;;  %v20094_v8 = vld [vmem:[#allocation15_spill] sm:$0xff] }
 0x5bc   : > { %v10797_v42 = vpop.permute.xlu0 %10796 }
 0x5bd   : > { %10839 = vst.msk [vmem:[#allocation4 + $0x30] sm:$0xff] %vm10832_vm3, %v10797_v42  ;;  %v11679_v30 = vsel %vm20077_vm9, %v11677_v21, %v11678_v1  ;;  %v10782_v42 = vrot.slane %v14671_v29, 1  ;;  %v11392_v21 = vrot.slane %v11390_v11, 1  ;;  %v14675_v1 = vld [vmem:[#allocation3 + $0xcc] sm:$0xfe]   ;;  %v20098_v11 = vld [vmem:[#allocation24_spill] sm:$0xff] }
 0x5be   : > { %10989 = vrot.lane.b32.xlu0 %v14657_v41, %s14755_s16 }
 0x5bf   : > { %11420 = vrot.lane.b32.xlu1 %v11369_v7, %s20032_s15  ;;  %v20084_v7 = vld [vmem:[#allocation11_spill] sm:$0xff]  ;;  %v10783_v9 = vsel %vm20087_vm8, %v10781_v35, %v10782_v42  ;;  %v20096_v35 = vld [vmem:[#allocation13_spill] sm:$0xff] }
 0x5c0   : > { %v10974_v34 = vpop.permute.xlu0 %10973  ;;  %v20097_v42 = vld [vmem:[#allocation43_spill] sm:$0xff] }
 0x5c1   : > { %11016 = vst.msk [vmem:[#allocation4 + $0x30] sm:$0xff] %vm11009_vm4, %v10974_v34  ;;  %v14672_v34 = vld [vmem:[#allocation3 + $0xcc] sm:$0xff]  }
 0x5c2   : > { %11422 = vrot.lane.b32.xlu0 %v11381_v55, %s20032_s15  ;;  %v11388_v55 = vor.u32 %v11387_v62, %v11383_v43 }
 0x5c3   : > { %11709 = vrot.lane.b32.xlu1 %v11676_v60, %s20039_s24  ;;  %v20086_v60 = vld [vmem:[#allocation9_spill] sm:$0xff] }
 0x5c4   : > { %v11407_v32 = vpop.permute.xlu0 %11406 }
 0x5c5   : > { %v9627_v4 = vpop.permute.xlu1 %9626  ;;  %11449 = vst.msk [vmem:[#allocation4 + $0x30] sm:$0xff] %vm11442_vm5, %v11407_v32  ;;  %v11393_v32 = vsel %vm20089_vm12, %v11388_v55, %v11392_v21 }
 0x5c6   : > { %9660 = vst.msk [vmem:[#allocation4 + $0x78] sm:$0xff] %vm9644_vm7, %v9627_v4  ;;  %11711 = vrot.lane.b32.xlu0 %v11679_v30, %s20039_s24  ;;  %vm20085_vm7 = vmmov %vm20080_vm6  ;;  %v20088_v4 = vld [vmem:[#allocation21_spill] sm:$0xff]  ;;  %v11680_v30 = vrot.slane %v14675_v1, 1 }
 0x5c7   : > { %9915 = vrot.lane.b32.xlu1 %v9884_v33, %s20041_s12  ;;  %v10494_v54 = vsel %vm20085_vm7, %v10489_v28, %v10493_v39  ;;  %vm20091_vm6 = vmmov %vm20087_vm8  ;;  %v20092_v28 = vld [vmem:[#allocation31_spill] sm:$0xff]  ;;  %v20102_v1 = vld [vmem:[#allocation37_spill] sm:$0xff]  ;;  %s12582_s12 = sshll.u32 %s18040_s29, 4  ;;  %s19333_s12 = int_to_ptr.vmem [resolvable:$true] %s12582_s12 }
 0x5c8   : > { %v11696_v13 = vpop.permute.xlu0 %11695  ;;  %s14679_s14 = scalar_lea.vmem %s19333_s12, 4096 }
 0x5c9   : > { %v9900_v52 = vpop.permute.xlu1 %9899  ;;  %11738 = vst.msk [vmem:[#allocation4 + $0x30] sm:$0xff] %vm11731_vm13, %v11696_v13  ;;  %v20093_v13 = vld [vmem:[#allocation28_spill] sm:$0xff]  ;;  %p14680_p11 = scmp.ne.s32.totalorder %s19333_s12, %s14679_s14 }
 0x5ca   : > { %9941 = vst.msk [vmem:[#allocation4 + $0x38] sm:$0xff] %vm9933_vm15, %v9900_v52  ;;  %12117 = vrot.lane.b32.xlu0 %v20084_v7, %s19483_s22  ;;  %v20095_v7 = vld [vmem:[#allocation46_spill] sm:$0xff] }
 0x5cb   : > { %10092 = vrot.lane.b32.xlu1 %v14667_v20, %s19685_s13  ;;  %v11682_v20 = vsel %vm20091_vm6, %v11680_v30, %v11681_v31  ;;  %p14681_p12 = pnand %p14680_p11, %p14861_p5 }
 0x5cc   : > { %v9902_v41 = vpop.permute.xlu0 %9901 }
 0x5cd   : > { %v10077_v26 = vpop.permute.xlu1 %10076  ;;  %9942 = vst.msk [vmem:[#allocation4 + $0x40] sm:$0xff] %vm9933_vm15, %v9902_v41  ;;  %p14682_p13 = pneg %p14681_p12 }
 0x5ce   : > { %10118 = vst.msk [vmem:[#allocation4 + $0x38] sm:$0xff] %vm10110_vm0, %v10077_v26  ;;  %12121 = vrot.lane.b32.xlu0 %v20086_v60, %s19483_s22  ;;  %v20099_v60 = vld [vmem:[#allocation12_spill] sm:$0xff] }
 0x5cf   : > { %10525 = vrot.lane.b32.xlu1 %v10494_v54, %s14752_s30 }
 0x5d0   : > { %v10079_v19 = vpop.permute.xlu0 %10078  ;;  %v11754_v47 = vld [vmem:[#allocation4 + $0x30] sm:$0xff] }
 0x5d1   : > { %v10510_v23 = vpop.permute.xlu1 %10509  ;;  %10119 = vst.msk [vmem:[#allocation4 + $0x40] sm:$0xff] %vm10110_vm0, %v10079_v19  ;;  %13861 = vmatprep.mubr.msk.bf16.mxu0 %vm11807_vm1, %v11754_v47  ;;  %v20100_v19 = vld [vmem:[#allocation23_spill] sm:$0xff] }
 0x5d2   : > { %10551 = vst.msk [vmem:[#allocation4 + $0x38] sm:$0xff] %vm10543_vm2, %v10510_v23  ;;  %12125 = vrot.lane.b32.xlu0 %v20088_v4, %s19483_s22 }
 0x5d3   : > { %10814 = vrot.lane.b32.xlu1 %v10783_v9, %s14756_s25 }
 0x5d4   : > { %v10512_v53 = vpop.permute.xlu0 %10511 }
 0x5d5   : > { %v10799_v33 = vpop.permute.xlu1 %10798  ;;  %10552 = vst.msk [vmem:[#allocation4 + $0x40] sm:$0xff] %vm10543_vm2, %v10512_v53  ;;  %v20104_v53 = vld [vmem:[#allocation35_spill] sm:$0xff] }
 0x5d6   : > { %10840 = vst.msk [vmem:[#allocation4 + $0x38] sm:$0xff] %vm10832_vm3, %v10799_v33  ;;  %12129 = vrot.lane.b32.xlu0 %v20090_v37, %s19483_s22  ;;  %v20106_v37 = vld [vmem:[#allocation51_spill] sm:$0xff] }
 0x5d7   : > { %10991 = vrot.lane.b32.xlu1 %v14672_v34, %s14755_s16  ;;  %v20101_v34 = vld [vmem:[#allocation10_spill] sm:$0xff]  ;;  %s14759_s16 = smov 14  }
 0x5d8   : > { %v10801_v52 = vpop.permute.xlu0 %10800 }
 0x5d9   : > { %v10976_v46 = vpop.permute.xlu1 %10975  ;;  %10841 = vst.msk [vmem:[#allocation4 + $0x40] sm:$0xff] %vm10832_vm3, %v10801_v52 }
 0x5da   : > { %11017 = vst.msk [vmem:[#allocation4 + $0x38] sm:$0xff] %vm11009_vm4, %v10976_v46  ;;  %12133 = vrot.lane.b32.xlu0 %v20092_v28, %s19483_s22  ;;  %v20107_v46 = vld [vmem:[#allocation33_spill] sm:$0xff] }
 0x5db   : > { %11424 = vrot.lane.b32.xlu1 %v11393_v32, %s20032_s15  ;;  %v20105_v32 = vld [vmem:[#allocation20_spill] sm:$0xff]  ;;  %s14760_s15 = smov 22  }
 0x5dc   : > { %v10978_v29 = vpop.permute.xlu0 %10977 }
 0x5dd   : > { %v11409_v16 = vpop.permute.xlu1 %11408  ;;  %11018 = vst.msk [vmem:[#allocation4 + $0x40] sm:$0xff] %vm11009_vm4, %v10978_v29  ;;  %v20108_v29 = vld [vmem:[#allocation49_spill] sm:$0xff] }
 0x5de   : > { %11450 = vst.msk [vmem:[#allocation4 + $0x38] sm:$0xff] %vm11442_vm5, %v11409_v16  ;;  %12137 = vrot.lane.b32.xlu0 %v20093_v13, %s19483_s22 }
 0x5df   : > { %11713 = vrot.lane.b32.xlu1 %v11682_v20, %s20039_s24  ;;  %s13601_s24 = sshll.u32 %s14844_s21, 12  ;;  %s20124_s21 = sand.u32 1, %s14733_s18  }
 0x5e0   : > { %v11411_v56 = vpop.permute.xlu0 %11410  ;;  %s19339_s25 = scalar_lea.sflag [#allocation6], %s20124_s21 }
 0x5e1   : > { %v11698_v39 = vpop.permute.xlu1 %11697  ;;  %11451 = vst.msk [vmem:[#allocation4 + $0x40] sm:$0xff] %vm11442_vm5, %v11411_v56  ;;  %v20109_v56 = vld [vmem:[#allocation32_spill] sm:$0xff] }
 0x5e2   : > { %11739 = vst.msk [vmem:[#allocation4 + $0x38] sm:$0xff] %vm11731_vm13, %v11698_v39  ;;  %12141 = vrot.lane.b32.xlu0 %v20095_v7, %s19483_s22 }
 0x5e3   : > { %12119 = vrot.lane.b32.xlu1 %v20094_v8, %s19483_s22 }
 0x5e4   : > { %v11700_v54 = vpop.permute.xlu0 %11699 }
 0x5e5   : > { %v9904_v26 = vpop.permute.xlu1 %9903  ;;  %11740 = vst.msk [vmem:[#allocation4 + $0x40] sm:$0xff] %vm11731_vm13, %v11700_v54  ;;  %v18893_v54 = vld [vmem:[%s19387_s6] ss:$0 sm:$0xff] }
 0x5e6   : > { %9943 = vst.msk [vmem:[#allocation4 + $0x48] sm:$0xff] %vm9933_vm15, %v9904_v26  ;;  %12145 = vrot.lane.b32.xlu0 %v20097_v42, %s19483_s22  ;;  %v20110_v26 = vld [vmem:[#allocation16_spill] sm:$0xff] }
 0x5e7   : > { %12123 = vrot.lane.b32.xlu1 %v20096_v35, %s19483_s22  ;;  %v20111_v35 = vld [vmem:[#allocation47_spill] sm:$0xff] }
 0x5e8   : > { %v9906_v62 = vpop.permute.xlu0 %9905 }
 0x5e9   : > { %v10081_v41 = vpop.permute.xlu1 %10080  ;;  %v11755_v43 = vld [vmem:[#allocation4 + $0x38] sm:$0xff]  ;;  %9944 = vst.msk [vmem:[#allocation4 + $0x50] sm:$0xff] %vm9933_vm15, %v9906_v62 }
 0x5ea   : > { %10120 = vst.msk [vmem:[#allocation4 + $0x48] sm:$0xff] %vm10110_vm0, %v10081_v41  ;;  %13862 = vmatmul.mubr.msk.bf16.gmra.mrb[60].mxu0 %vm11807_vm1, %v11755_v43  ;;  %12149 = vrot.lane.b32.xlu0 %v20099_v60, %s19483_s22  ;;  %v5196_v43 = vadd.f32 %v18893_v54, %v17829_v36  ;;  %v20113_v60 = vld [vmem:[#allocation45_spill] sm:$0xff] }
 0x5eb   : > { %12127 = vrot.lane.b32.xlu1 %v20098_v11, %s19483_s22  ;;  %v20112_v11 = vld [vmem:[#allocation14_spill] sm:$0xff] }
 0x5ec   : > { %v10083_v9 = vpop.permute.xlu0 %10082  ;;  %v11756_v47 = vld [vmem:[#allocation4 + $0x40] sm:$0xff] }
 0x5ed   : > { %v10514_v23 = vpop.permute.xlu1 %10513  ;;  %10121 = vst.msk [vmem:[#allocation4 + $0x50] sm:$0xff] %vm10110_vm0, %v10083_v9  ;;  %13865 = vmatprep.mubr.msk.bf16.mxu0 %vm11807_vm1, %v11756_v47  ;;  %v5204_v9 = vadd.f32 %v17824_v6, %v18893_v54  ;;  %v5212_v6 = vadd.f32 %v18893_v54, %v17953_v0 }
 0x5ee   : > { %10553 = vst.msk [vmem:[#allocation4 + $0x48] sm:$0xff] %vm10543_vm2, %v10514_v23  ;;  %12153 = vrot.lane.b32.xlu0 %v20101_v34, %s19483_s22  ;;  %v20114_v34 = vld [vmem:[#allocation27_spill] sm:$0xff] }
 0x5ef   : > { %12131 = vrot.lane.b32.xlu1 %v20100_v19, %s19483_s22  ;;  %v5322_v19 = vmax.f32 %v5196_v43, 0.0 }
 0x5f0   : > { %v10516_v21 = vpop.permute.xlu0 %10515 }
 0x5f1   : > { %v10803_v55 = vpop.permute.xlu1 %10802  ;;  %10554 = vst.msk [vmem:[#allocation4 + $0x50] sm:$0xff] %vm10543_vm2, %v10516_v21  ;;  %v5324_v21 = vmax.f32 %v5204_v9, 0.0 }
 0x5f2   : > { %10842 = vst.msk [vmem:[#allocation4 + $0x48] sm:$0xff] %vm10832_vm3, %v10803_v55  ;;  %12157 = vrot.lane.b32.xlu0 %v20103_v22, %s19483_s22  ;;  %v20115_v22 = vld [vmem:[#allocation25_spill] sm:$0xff] }
 0x5f3   : > { %12135 = vrot.lane.b32.xlu1 %v20102_v1, %s19483_s22 }
 0x5f4   : > { %v10805_v33 = vpop.permute.xlu0 %10804  ;;  %v18873_v20 = vpop.f32.mrb[48].mxu0 }
 0x5f5   : > { %v10980_v4 = vpop.permute.xlu1 %10979  ;;  %10843 = vst.msk [vmem:[#allocation4 + $0x50] sm:$0xff] %vm10832_vm3, %v10805_v33  ;;  %v18876_v28 = vpop.f32.mrb[49].mxu0  ;;  %v5220_v33 = vadd.f32 %v17949_v38, %v18893_v54  ;;  %v5228_v38 = vadd.f32 %v18893_v54, %v18056_v25  ;;  %v20118_v25 = vld [vmem:[#allocation56_spill] sm:$0xff] }
 0x5f6   : > { %11019 = vst.msk [vmem:[#allocation4 + $0x48] sm:$0xff] %vm11009_vm4, %v10980_v4  ;;  %12161 = vrot.lane.b32.xlu0 %v20105_v32, %s19483_s22  ;;  %v18880_v13 = vpop.f32.mrb[50].mxu0 }
 0x5f7   : > { %12139 = vrot.lane.b32.xlu1 %v20104_v53, %s19483_s22  ;;  %v18883_v39 = vpop.f32.mrb[51].mxu0  ;;  %v5326_v53 = vmax.f32 %v5212_v6, 0.0 }
 0x5f8   : > { %v10982_v31 = vpop.permute.xlu0 %10981 }
 0x5f9   : > { %v11413_v30 = vpop.permute.xlu1 %11412  ;;  %11020 = vst.msk [vmem:[#allocation4 + $0x50] sm:$0xff] %vm11009_vm4, %v10982_v31 }
 0x5fa   : > { %11452 = vst.msk [vmem:[#allocation4 + $0x48] sm:$0xff] %vm11442_vm5, %v11413_v30  ;;  %12165 = vrot.lane.b32.xlu0 %v20107_v46, %s19483_s22  ;;  %v20116_v30 = vld [vmem:[#allocation41_spill] sm:$0xff] }
 0x5fb   : > { %12143 = vrot.lane.b32.xlu1 %v20106_v37, %s19483_s22 }
 0x5fc   : > { %v11415_v16 = vpop.permute.xlu0 %11414 }
 0x5fd   : > { %v11702_v52 = vpop.permute.xlu1 %11701  ;;  %11453 = vst.msk [vmem:[#allocation4 + $0x50] sm:$0xff] %vm11442_vm5, %v11415_v16 }
 0x5fe   : > { %11741 = vst.msk [vmem:[#allocation4 + $0x48] sm:$0xff] %vm11731_vm13, %v11702_v52  ;;  %12169 = vrot.lane.b32.xlu0 %v20109_v56, %s19483_s22  ;;  %v5328_v52 = vmax.f32 %v5220_v33, 0.0  ;;  %v20117_v56 = vld [vmem:[#allocation38_spill] sm:$0xff] }
 0x5ff   : > { %12147 = vrot.lane.b32.xlu1 %v20108_v29, %s19483_s22 }
 0x600   : > { %v11704_v7 = vpop.permute.xlu0 %11703 }
 0x601   : > { %v9908_v8 = vpop.permute.xlu1 %9907  ;;  %11742 = vst.msk [vmem:[#allocation4 + $0x50] sm:$0xff] %vm11731_vm13, %v11704_v7  ;;  %v5236_v7 = vadd.f32 %v18054_v17, %v18893_v54 }
 0x602   : > { %9945 = vst.msk [vmem:[#allocation4 + $0x58] sm:$0xff] %vm9933_vm15, %v9908_v8  ;;  %12173 = vrot.lane.b32.xlu0 %v20111_v35, %s19483_s22 }
 0x603   : > { %12151 = vrot.lane.b32.xlu1 %v20110_v26, %s19483_s22  ;;  %v5330_v26 = vmax.f32 %v5228_v38, 0.0  ;;  %v5332_v43 = vmax.f32 %v5236_v7, 0.0  ;;  %v5247_v7 = vadd.f32 %v18893_v54, %v18083_v18 }
 0x604   : > { %v9910_v62 = vpop.permute.xlu0 %9909 }
 0x605   : > { %v10085_v42 = vpop.permute.xlu1 %10084  ;;  %v11757_v41 = vld [vmem:[#allocation4 + $0x48] sm:$0xff]  ;;  %9946 = vst.msk [vmem:[#allocation4 + $0x60] sm:$0xff] %vm9933_vm15, %v9910_v62  ;;  %v5244_v62 = vadd.f32 %v18893_v54, %v18073_v58  ;;  %v5252_v58 = vadd.f32 %v18070_v59, %v18893_v54 }
 0x606   : > { %10122 = vst.msk [vmem:[#allocation4 + $0x58] sm:$0xff] %vm10110_vm0, %v10085_v42  ;;  %13866 = vmatmul.mubr.msk.bf16.gmra.mrb[64].mxu0 %vm11807_vm1, %v11757_v41  ;;  %12177 = vrot.lane.b32.xlu0 %v20113_v60, %s19483_s22  ;;  %v5199_v42 = vadd.f32 %v18893_v54, %v17837_v44  ;;  %v5207_v60 = vadd.f32 %v17834_v57, %v18893_v54 }
 0x607   : > { %12155 = vrot.lane.b32.xlu1 %v20112_v11, %s19483_s22  ;;  %v20119_v11 = vld [vmem:[#allocation53_spill] sm:$0xff]  ;;  %v5215_v57 = vadd.f32 %v18893_v54, %v17963_v10  ;;  %v5223_v10 = vadd.f32 %v17960_v50, %v18893_v54 }
 0x608   : > { %v10087_v47 = vpop.permute.xlu0 %10086  ;;  %v11758_v36 = vld [vmem:[#allocation4 + $0x50] sm:$0xff] }
 0x609   : > { %v10518_v23 = vpop.permute.xlu1 %10517  ;;  %10123 = vst.msk [vmem:[#allocation4 + $0x60] sm:$0xff] %vm10110_vm0, %v10087_v47  ;;  %13869 = vmatprep.mubr.msk.bf16.mxu0 %vm11807_vm1, %v11758_v36 }
 0x60a   : > { %10555 = vst.msk [vmem:[#allocation4 + $0x58] sm:$0xff] %vm10543_vm2, %v10518_v23  ;;  %12278 = vrot.lane.b32.xlu0 %v5322_v19, %s14759_s16  ;;  %v5323_v23 = vmax.f32 %v5199_v42, 0.0  ;;  %v5334_v19 = vmax.f32 %v5244_v62, 0.0  ;;  %v5335_v42 = vmax.f32 %v5247_v7, 0.0 }
 0x60b   : > { %12159 = vrot.lane.b32.xlu1 %v20114_v34, %s19483_s22  ;;  %v5325_v34 = vmax.f32 %v5207_v60, 0.0  ;;  %v5308_v60 = vadd.f32 %v18893_v54, %v18481_v49 }
 0x60c   : > { %v10520_v1 = vpop.permute.xlu0 %10519 }
 0x60d   : > { %v10807_v55 = vpop.permute.xlu1 %10806  ;;  %10556 = vst.msk [vmem:[#allocation4 + $0x60] sm:$0xff] %vm10543_vm2, %v10520_v1  ;;  %v5327_v1 = vmax.f32 %v5215_v57, 0.0  ;;  %v5279_v57 = vadd.f32 %v18893_v54, %v18125_v27 }
 0x60e   : > { %10844 = vst.msk [vmem:[#allocation4 + $0x58] sm:$0xff] %vm10832_vm3, %v10807_v55  ;;  %12282 = vrot.lane.b32.xlu0 %v5324_v21, %s14759_s16  ;;  %v5336_v55 = vmax.f32 %v5252_v58, 0.0  ;;  %v5260_v21 = vadd.f32 %v18893_v54, %v18096_v3  ;;  %v5268_v3 = vadd.f32 %v18094_v15, %v18893_v54  ;;  %v5316_v58 = vadd.f32 %v18478_v40, %v18893_v54 }
 0x60f   : > { %12163 = vrot.lane.b32.xlu1 %v20115_v22, %s19483_s22 }
 0x610   : > { %v10809_v32 = vpop.permute.xlu0 %10808  ;;  %v18927_v0 = vpop.f32.mrb[52].mxu0 }
 0x611   : > { %v10984_v4 = vpop.permute.xlu1 %10983  ;;  %10845 = vst.msk [vmem:[#allocation4 + $0x60] sm:$0xff] %vm10832_vm3, %v10809_v32  ;;  %v18930_v31 = vpop.f32.mrb[53].mxu0  ;;  %v5231_v32 = vadd.f32 %v18893_v54, %v18061_v45 }
 0x612   : > { %11021 = vst.msk [vmem:[#allocation4 + $0x58] sm:$0xff] %vm11009_vm4, %v10984_v4  ;;  %12286 = vrot.lane.b32.xlu0 %v5326_v53, %s14759_s16  ;;  %v18933_v46 = vpop.f32.mrb[54].mxu0  ;;  %v5338_v4 = vmax.f32 %v5260_v21, 0.0  ;;  %v5329_v53 = vmax.f32 %v5223_v10, 0.0 }
 0x613   : > { %12167 = vrot.lane.b32.xlu1 %v20116_v30, %s19483_s22  ;;  %v18938_v16 = vpop.f32.mrb[55].mxu0  ;;  %v5340_v30 = vmax.f32 %v5268_v3, 0.0  ;;  %v5331_v38 = vmax.f32 %v5231_v32, 0.0  ;;  %v20120_v3 = vld [vmem:[#allocation44_spill] sm:$0xff]  ;;  %v20121_v32 = vld [vmem:[#allocation29_spill] sm:$0xff] }
 0x614   : > { %v10986_v29 = vpop.permute.xlu0 %10985 }
 0x615   : > { %v11417_v37 = vpop.permute.xlu1 %11416  ;;  %11022 = vst.msk [vmem:[#allocation4 + $0x60] sm:$0xff] %vm11009_vm4, %v10986_v29  ;;  %v5284_v29 = vadd.f32 %v18111_v14, %v18893_v54 }
 0x616   : > { %11454 = vst.msk [vmem:[#allocation4 + $0x58] sm:$0xff] %vm11442_vm5, %v11417_v37  ;;  %12290 = vrot.lane.b32.xlu0 %v5328_v52, %s14759_s16  ;;  %v5276_v37 = vadd.f32 %v18893_v54, %v18115_v12  ;;  %v5239_v52 = vadd.f32 %v18058_v24, %v18893_v54 }
 0x617   : > { %12171 = vrot.lane.b32.xlu1 %v20117_v56, %s19483_s22 }
 0x618   : > { %v11419_v35 = vpop.permute.xlu0 %11418  ;;  %v5342_v56 = vmax.f32 %v5276_v37, 0.0  ;;  %v5333_v12 = vmax.f32 %v5239_v52, 0.0 }
 0x619   : > { %v11706_v8 = vpop.permute.xlu1 %11705  ;;  %11455 = vst.msk [vmem:[#allocation4 + $0x60] sm:$0xff] %vm11442_vm5, %v11419_v35  ;;  %v5292_v35 = vadd.f32 %v18893_v54, %v18133_v61 }
 0x61a   : > { %11743 = vst.msk [vmem:[#allocation4 + $0x58] sm:$0xff] %vm11731_vm13, %v11706_v8  ;;  %12294 = vrot.lane.b32.xlu0 %v5330_v26, %s14759_s16  ;;  %v5344_v26 = vmax.f32 %v5284_v29, 0.0 }
 0x61b   : > { %12175 = vrot.lane.b32.xlu1 %v20118_v25, %s19483_s22  ;;  %v5255_v25 = vadd.f32 %v18078_v48, %v18893_v54  ;;  %v5263_v48 = vadd.f32 %v18893_v54, %v18103_v2  ;;  %v5271_v2 = vadd.f32 %v18099_v51, %v18893_v54 }
 0x61c   : > { %v11708_v17 = vpop.permute.xlu0 %11707 }
 0x61d   : > { %v9912_v41 = vpop.permute.xlu1 %9911  ;;  %11744 = vst.msk [vmem:[#allocation4 + $0x60] sm:$0xff] %vm11731_vm13, %v11708_v17  ;;  %v5337_v62 = vmax.f32 %v5255_v25, 0.0  ;;  %v5341_v51 = vmax.f32 %v5271_v2, 0.0 }
 0x61e   : > { %9947 = vst.msk [vmem:[#allocation4 + $0x68] sm:$0xff] %vm9933_vm15, %v9912_v41  ;;  %12298 = vrot.lane.b32.xlu0 %v5332_v43, %s14759_s16  ;;  %v5300_v41 = vadd.f32 %v18131_v5, %v18893_v54  ;;  %v5346_v43 = vmax.f32 %v5292_v35, 0.0 }
 0x61f   : > { %12179 = vrot.lane.b32.xlu1 %v20119_v11, %s19483_s22 }
 0x620   : > { %v9914_v47 = vpop.permute.xlu0 %9913  ;;  %v5348_v5 = vmax.f32 %v5300_v41, 0.0 }
 0x621   : > { %v10089_v44 = vpop.permute.xlu1 %10088  ;;  %v11759_v9 = vld [vmem:[#allocation4 + $0x58] sm:$0xff]  ;;  %9948 = vst.msk [vmem:[#allocation4 + $0x70] sm:$0xff] %vm9933_vm15, %v9914_v47 }
 0x622   : > { %10124 = vst.msk [vmem:[#allocation4 + $0x68] sm:$0xff] %vm10110_vm0, %v10089_v44  ;;  %13870 = vmatmul.mubr.msk.bf16.gmra.mrb[68].mxu0 %vm11807_vm1, %v11759_v9  ;;  %12302 = vrot.lane.b32.xlu0 %v5334_v19, %s14759_s16  ;;  %v5339_v44 = vmax.f32 %v5263_v48, 0.0  ;;  %v5350_v19 = vmax.f32 %v5308_v60, 0.0 }
 0x623   : > { %12280 = vrot.lane.b32.xlu1 %v5323_v23, %s14759_s16 }
 0x624   : > { %v10091_v59 = vpop.permute.xlu0 %10090  ;;  %v11760_v6 = vld [vmem:[#allocation4 + $0x60] sm:$0xff] }
 0x625   : > { %v10522_v36 = vpop.permute.xlu1 %10521  ;;  %10125 = vst.msk [vmem:[#allocation4 + $0x70] sm:$0xff] %vm10110_vm0, %v10091_v59  ;;  %13873 = vmatprep.mubr.msk.bf16.mxu0 %vm11807_vm1, %v11760_v6  ;;  %v5287_v59 = vadd.f32 %v18120_v63, %v18893_v54  ;;  %v5343_v6 = vmax.f32 %v5279_v57, 0.0  ;;  %v5295_v63 = vadd.f32 %v18893_v54, %v20120_v3 }
 0x626   : > { %10557 = vst.msk [vmem:[#allocation4 + $0x68] sm:$0xff] %vm10543_vm2, %v10522_v36  ;;  %12306 = vrot.lane.b32.xlu0 %v5336_v55, %s14759_s16  ;;  %v5352_v36 = vmax.f32 %v5316_v58, 0.0 }
 0x627   : > { %12284 = vrot.lane.b32.xlu1 %v5325_v34, %s14759_s16  ;;  %v19037_v34 = vld [vmem:[%s19391_s10] ss:$0 sm:$0xff] }
 0x628   : > { %v10524_v33 = vpop.permute.xlu0 %10523  ;;  %v11903_v55 = vadd.f32 %v18873_v20, %v19037_v34  ;;  %v11922_v48 = vadd.f32 %v18933_v46, %v19037_v34 }
 0x629   : > { %v10811_v22 = vpop.permute.xlu1 %10810  ;;  %10558 = vst.msk [vmem:[#allocation4 + $0x70] sm:$0xff] %vm10543_vm2, %v10524_v33 }
 0x62a   : > { %10846 = vst.msk [vmem:[#allocation4 + $0x68] sm:$0xff] %vm10832_vm3, %v10811_v22  ;;  %12310 = vrot.lane.b32.xlu0 %v5338_v4, %s14759_s16  ;;  %v12023_v10 = vmax.f32 %v11903_v55, 0.0  ;;  %v5345_v22 = vmax.f32 %v5287_v59, 0.0 }
 0x62b   : > { %12288 = vrot.lane.b32.xlu1 %v5327_v1, %s14759_s16  ;;  %v11895_v1 = vadd.f32 %v19037_v34, %v18876_v28  ;;  %v11919_v28 = vadd.f32 %v18927_v0, %v19037_v34  ;;  %v11911_v0 = vadd.f32 %v19037_v34, %v18930_v31  ;;  %v20123_v31 = vld [vmem:[#allocation52_spill] sm:$0xff] }
 0x62c   : > { %v10813_v15 = vpop.permute.xlu0 %10812  ;;  %v5319_v7 = vadd.f32 %v20123_v31, %v18893_v54 }
 0x62d   : > { %v10988_v50 = vpop.permute.xlu1 %10987  ;;  %10847 = vst.msk [vmem:[#allocation4 + $0x70] sm:$0xff] %vm10832_vm3, %v10813_v15  ;;  %v12021_v33 = vmax.f32 %v11895_v1, 0.0  ;;  %v12027_v15 = vmax.f32 %v11919_v28, 0.0 }
 0x62e   : > { %11023 = vst.msk [vmem:[#allocation4 + $0x68] sm:$0xff] %vm11009_vm4, %v10988_v50  ;;  %12314 = vrot.lane.b32.xlu0 %v5340_v30, %s14759_s16  ;;  %v5303_v50 = vadd.f32 %v20121_v32, %v18893_v54  ;;  %v5347_v30 = vmax.f32 %v5295_v63, 0.0  ;;  %v5353_v25 = vmax.f32 %v5319_v7, 0.0 }
 0x62f   : > { %12292 = vrot.lane.b32.xlu1 %v5329_v53, %s14759_s16 }
 0x630   : > { %v10990_v8 = vpop.permute.xlu0 %10989 }
 0x631   : > { %v11421_v45 = vpop.permute.xlu1 %11420  ;;  %11024 = vst.msk [vmem:[#allocation4 + $0x70] sm:$0xff] %vm11009_vm4, %v10990_v8  ;;  %v12025_v8 = vmax.f32 %v11911_v0, 0.0 }
 0x632   : > { %11456 = vst.msk [vmem:[#allocation4 + $0x68] sm:$0xff] %vm11442_vm5, %v11421_v45  ;;  %12318 = vrot.lane.b32.xlu0 %v5342_v56, %s14759_s16  ;;  %v20122_v45 = vld [vmem:[#allocation64_spill] sm:$0xff] }
 0x633   : > { %12296 = vrot.lane.b32.xlu1 %v5331_v38, %s14759_s16  ;;  %v5349_v38 = vmax.f32 %v5303_v50, 0.0  ;;  %v5311_v29 = vadd.f32 %v18893_v54, %v20122_v45  ;;  %v11906_v54 = vadd.f32 %v18880_v13, %v19037_v34 }
 0x634   : > { %v11423_v14 = vpop.permute.xlu0 %11422 }
 0x635   : > { %v11710_v24 = vpop.permute.xlu1 %11709  ;;  %11457 = vst.msk [vmem:[#allocation4 + $0x70] sm:$0xff] %vm11442_vm5, %v11423_v14  ;;  %v12024_v41 = vmax.f32 %v11906_v54, 0.0 }
 0x636   : > { %11745 = vst.msk [vmem:[#allocation4 + $0x68] sm:$0xff] %vm11731_vm13, %v11710_v24  ;;  %12322 = vrot.lane.b32.xlu0 %v5344_v26, %s14759_s16  ;;  %v5351_v24 = vmax.f32 %v5311_v29, 0.0 }
 0x637   : > { %12300 = vrot.lane.b32.xlu1 %v5333_v12, %s14759_s16 }
 0x638   : > { %v11712_v61 = vpop.permute.xlu0 %11711 }
 0x639   : > { %v9916_v18 = vpop.permute.xlu1 %9915  ;;  %11746 = vst.msk [vmem:[#allocation4 + $0x70] sm:$0xff] %vm11731_vm13, %v11712_v61 }
 0x63a   : > { %9949 = vst.msk [vmem:[#allocation4 + $0x78] sm:$0xff] %vm9933_vm15, %v9916_v18  ;;  %12326 = vrot.lane.b32.xlu0 %v5346_v43, %s14759_s16  ;;  %v11898_v43 = vadd.f32 %v19037_v34, %v18883_v39  ;;  %vm12374_vm15 = vcmask 179312  }
 0x63b   : > { %12304 = vrot.lane.b32.xlu1 %v5335_v42, %s14759_s16 }
 0x63c   : > { %v12118_v23 = vpop.permute.xlu0 %12117  ;;  %v12022_v13 = vmax.f32 %v11898_v43, 0.0 }
 0x63d   : > { %v10093_v17 = vpop.permute.xlu1 %10092  ;;  %v11761_v11 = vld [vmem:[#allocation4 + $0x68] sm:$0xff]  ;;  %12214 = vst.msk [vmem:[%s18040_s29] sm:$0xff] %vm12213_vm11, %v12118_v23 }
 0x63e   : > { %10126 = vst.msk [vmem:[#allocation4 + $0x78] sm:$0xff] %vm10110_vm0, %v10093_v17  ;;  %13874 = vmatmul.mubr.msk.bf16.gmra.mrb[72].mxu0 %vm11807_vm1, %v11761_v11  ;;  %12330 = vrot.lane.b32.xlu0 %v5348_v5, %s14759_s16  ;;  %v12028_v11 = vmax.f32 %v11922_v48, 0.0  ;;  %v11914_v5 = vadd.f32 %v19037_v34, %v18938_v16  ;;  %vm12535_vm0 = vcmask 244912  }
 0x63f   : > { %12308 = vrot.lane.b32.xlu1 %v5337_v62, %s14759_s16 }
 0x640   : > { %v12122_v49 = vpop.permute.xlu0 %12121  ;;  %v11762_v47 = vld [vmem:[#allocation4 + $0x70] sm:$0xff]  ;;  %v12026_v23 = vmax.f32 %v11914_v5, 0.0 }
 0x641   : > { %v10526_v9 = vpop.permute.xlu1 %10525  ;;  %12216 = vst.msk [vmem:[%s18040_s29 + $0x10] sm:$0xff] %vm12213_vm11, %v12122_v49  ;;  %13877 = vmatprep.mubr.msk.bf16.mxu0 %vm11807_vm1, %v11762_v47 }
 0x642   : > { %10559 = vst.msk [vmem:[#allocation4 + $0x78] sm:$0xff] %vm10543_vm2, %v10526_v9  ;;  %12334 = vrot.lane.b32.xlu0 %v5350_v19, %s14759_s16 }
 0x643   : > { %12312 = vrot.lane.b32.xlu1 %v5339_v44, %s14759_s16 }
 0x644   : > { %v12126_v21 = vpop.permute.xlu0 %12125 }
 0x645   : > { %v10815_v40 = vpop.permute.xlu1 %10814  ;;  %12218 = vst.msk [vmem:[%s18040_s29 + $0x20] sm:$0xff] %vm12213_vm11, %v12126_v21 }
 0x646   : > { %10848 = vst.msk [vmem:[#allocation4 + $0x78] sm:$0xff] %vm10832_vm3, %v10815_v40  ;;  %12338 = vrot.lane.b32.xlu0 %v5352_v36, %s14759_s16 }
 0x647   : > { %12316 = vrot.lane.b32.xlu1 %v5341_v51, %s14759_s16 }
 0x648   : > { %v12130_v20 = vpop.permute.xlu0 %12129 }
 0x649   : > { %v10992_v27 = vpop.permute.xlu1 %10991  ;;  %12220 = vst.msk [vmem:[%s18040_s29 + $0x30] sm:$0xff] %vm12213_vm11, %v12130_v20 }
 0x64a   : > { %11025 = vst.msk [vmem:[#allocation4 + $0x78] sm:$0xff] %vm11009_vm4, %v10992_v27  ;;  %12443 = vrot.lane.b32.xlu0 %v12023_v10, %s14760_s15 }
 0x64b   : > { %12320 = vrot.lane.b32.xlu1 %v5343_v6, %s14759_s16 }
 0x64c   : > { %v12134_v53 = vpop.permute.xlu0 %12133 }
 0x64d   : > { %v11425_v4 = vpop.permute.xlu1 %11424  ;;  %12222 = vst.msk [vmem:[%s18040_s29 + $0x40] sm:$0xff] %vm12213_vm11, %v12134_v53 }
 0x64e   : > { %11458 = vst.msk [vmem:[#allocation4 + $0x78] sm:$0xff] %vm11442_vm5, %v11425_v4  ;;  %12439 = vrot.lane.b32.xlu0 %v12021_v33, %s14760_s15 }
 0x64f   : > { %12324 = vrot.lane.b32.xlu1 %v5345_v22, %s14759_s16 }
 0x650   : > { %v12138_v52 = vpop.permute.xlu0 %12137 }
 0x651   : > { %v11714_v37 = vpop.permute.xlu1 %11713  ;;  %12224 = vst.msk [vmem:[%s18040_s29 + $0x50] sm:$0xff] %vm12213_vm11, %v12138_v52 }
 0x652   : > { %11747 = vst.msk [vmem:[#allocation4 + $0x78] sm:$0xff] %vm11731_vm13, %v11714_v37  ;;  %12451 = vrot.lane.b32.xlu0 %v12027_v15, %s14760_s15 }
 0x653   : > { %12328 = vrot.lane.b32.xlu1 %v5347_v30, %s14759_s16 }
 0x654   : > { %v12142_v12 = vpop.permute.xlu0 %12141 }
 0x655   : > { %v12120_v56 = vpop.permute.xlu1 %12119  ;;  %12226 = vst.msk [vmem:[%s18040_s29 + $0x60] sm:$0xff] %vm12213_vm11, %v12142_v12 }
 0x656   : > { %12215 = vst.msk [vmem:[%s18040_s29 + $0x8] sm:$0xff] %vm12213_vm11, %v12120_v56  ;;  %12447 = vrot.lane.b32.xlu0 %v12025_v8, %s14760_s15 }
 0x657   : > { %12332 = vrot.lane.b32.xlu1 %v5349_v38, %s14759_s16 }
 0x658   : > { %v12146_v14 = vpop.permute.xlu0 %12145 }
 0x659   : > { %v12124_v26 = vpop.permute.xlu1 %12123  ;;  %v11763_v35 = vld [vmem:[#allocation4 + $0x78] sm:$0xff]  ;;  %12228 = vst.msk [vmem:[%s18040_s29 + $0x70] sm:$0xff] %vm12213_vm11, %v12146_v14 }
 0x65a   : > { %12217 = vst.msk [vmem:[%s18040_s29 + $0x18] sm:$0xff] %vm12213_vm11, %v12124_v26  ;;  %13878 = vmatmul.mubr.msk.bf16.gmra.mrb[76].mxu0 %vm11807_vm1, %v11763_v35 }
 0x65b   : > { %12336 = vrot.lane.b32.xlu1 %v5351_v24, %s14759_s16 }
 0x65c   : > { %v12150_v18 = vpop.permute.xlu0 %12149 }
 0x65d   : > { %v12128_v42 = vpop.permute.xlu1 %12127  ;;  %12230 = vst.msk [vmem:[%s18040_s29 + $0x80] sm:$0xff] %vm12213_vm11, %v12150_v18 }
 0x65e   : > { %12219 = vst.msk [vmem:[%s18040_s29 + $0x28] sm:$0xff] %vm12213_vm11, %v12128_v42 }
 0x65f   : > { %12340 = vrot.lane.b32.xlu1 %v5353_v25, %s14759_s16  ;;  %s19329_s16 = scalar_lea.hbm %s19392_s11, %s13601_s24 }
 0x660   : > { %v12154_v62 = vpop.permute.xlu0 %12153 }
 0x661   : > { %v12132_v61 = vpop.permute.xlu1 %12131  ;;  %12232 = vst.msk [vmem:[%s18040_s29 + $0x90] sm:$0xff] %vm12213_vm11, %v12154_v62 }
 0x662   : > { %12221 = vst.msk [vmem:[%s18040_s29 + $0x38] sm:$0xff] %vm12213_vm11, %v12132_v61 }
 0x663   : > { %12445 = vrot.lane.b32.xlu1 %v12024_v41, %s14760_s15 }
 0x664   : > { %v12158_v39 = vpop.permute.xlu0 %12157 }
 0x665   : > { %v12136_v17 = vpop.permute.xlu1 %12135  ;;  %12234 = vst.msk [vmem:[%s18040_s29 + $0xa0] sm:$0xff] %vm12213_vm11, %v12158_v39 }
 0x666   : > { %12223 = vst.msk [vmem:[%s18040_s29 + $0x48] sm:$0xff] %vm12213_vm11, %v12136_v17 }
 0x667   : > { %12441 = vrot.lane.b32.xlu1 %v12022_v13, %s14760_s15 }
 0x668   : > { %v12162_v46 = vpop.permute.xlu0 %12161 }
 0x669   : > { %v12140_v60 = vpop.permute.xlu1 %12139  ;;  %12236 = vst.msk [vmem:[%s18040_s29 + $0xb0] sm:$0xff] %vm12213_vm11, %v12162_v46 }
 0x66a   : > { %12225 = vst.msk [vmem:[%s18040_s29 + $0x58] sm:$0xff] %vm12213_vm11, %v12140_v60 }
 0x66b   : > { %12453 = vrot.lane.b32.xlu1 %v12028_v11, %s14760_s15 }
 0x66c   : > { %v12166_v44 = vpop.permute.xlu0 %12165 }
 0x66d   : > { %v12144_v2 = vpop.permute.xlu1 %12143  ;;  %12238 = vst.msk [vmem:[%s18040_s29 + $0xc0] sm:$0xff] %vm12213_vm11, %v12166_v44 }
 0x66e   : > { %12227 = vst.msk [vmem:[%s18040_s29 + $0x68] sm:$0xff] %vm12213_vm11, %v12144_v2 }
 0x66f   : > { %12449 = vrot.lane.b32.xlu1 %v12026_v23, %s14760_s15 }
 0x670   : > { %v12170_v9 = vpop.permute.xlu0 %12169 }
 0x671   : > { %v12148_v16 = vpop.permute.xlu1 %12147  ;;  %12240 = vst.msk [vmem:[%s18040_s29 + $0xd0] sm:$0xff] %vm12213_vm11, %v12170_v9 }
 0x672   : > { %12229 = vst.msk [vmem:[%s18040_s29 + $0x78] sm:$0xff] %vm12213_vm11, %v12148_v16 }
 0x674   : > { %v12174_v19 = vpop.permute.xlu0 %12173 }
 0x675   : > { %v12152_v58 = vpop.permute.xlu1 %12151  ;;  %12242 = vst.msk [vmem:[%s18040_s29 + $0xe0] sm:$0xff] %vm12213_vm11, %v12174_v19 }
 0x676   : > { %12231 = vst.msk [vmem:[%s18040_s29 + $0x88] sm:$0xff] %vm12213_vm11, %v12152_v58 }
 0x678   : > { %v12178_v47 = vpop.permute.xlu0 %12177 }
 0x679   : > { %v12156_v49 = vpop.permute.xlu1 %12155  ;;  %12244 = vst.msk [vmem:[%s18040_s29 + $0xf0] sm:$0xff] %vm12213_vm11, %v12178_v47 }
 0x67a   : > { %12233 = vst.msk [vmem:[%s18040_s29 + $0x98] sm:$0xff] %vm12213_vm11, %v12156_v49 }
 0x67c   : > { %v12279_v57 = vpop.permute.xlu0 %12278 }
 0x67d   : > { %v12160_v51 = vpop.permute.xlu1 %12159  ;;  %12375 = vst.msk [vmem:[%s18040_s29] sm:$0xff] %vm12374_vm15, %v12279_v57 }
 0x67e   : > { %12235 = vst.msk [vmem:[%s18040_s29 + $0xa8] sm:$0xff] %vm12213_vm11, %v12160_v51 }
 0x680   : > { %v12283_v36 = vpop.permute.xlu0 %12282 }
 0x681   : > { %v12164_v40 = vpop.permute.xlu1 %12163  ;;  %12377 = vst.msk [vmem:[%s18040_s29 + $0x10] sm:$0xff] %vm12374_vm15, %v12283_v36 }
 0x682   : > { %12237 = vst.msk [vmem:[%s18040_s29 + $0xb8] sm:$0xff] %vm12213_vm11, %v12164_v40 }
 0x684   : > { %v12287_v21 = vpop.permute.xlu0 %12286 }
 0x685   : > { %v12168_v55 = vpop.permute.xlu1 %12167  ;;  %12379 = vst.msk [vmem:[%s18040_s29 + $0x20] sm:$0xff] %vm12374_vm15, %v12287_v21 }
 0x686   : > { %12239 = vst.msk [vmem:[%s18040_s29 + $0xc8] sm:$0xff] %vm12213_vm11, %v12168_v55 }
 0x688   : > { %v12291_v6 = vpop.permute.xlu0 %12290 }
 0x689   : > { %v12172_v59 = vpop.permute.xlu1 %12171  ;;  %12381 = vst.msk [vmem:[%s18040_s29 + $0x30] sm:$0xff] %vm12374_vm15, %v12291_v6  ;;  %v13859_v27 = vpop.f32.mrb[56].mxu0 }
 0x68a   : > { %12241 = vst.msk [vmem:[%s18040_s29 + $0xd8] sm:$0xff] %vm12213_vm11, %v12172_v59  ;;  %v11935_v10 = vadd.f32 %v13859_v27, %v19037_v34  ;;  %v11926_v20 = vpop.f32.mrb[57].mxu0 }
 0x68b   : > { %v13860_v22 = vpop.f32.mrb[58].mxu0  ;;  %v11927_v63 = vadd.f32 %v19037_v34, %v11926_v20 }
 0x68c   : > { %v12031_v3 = vmax.f32 %v11935_v10, 0.0  ;;  %v11938_v4 = vadd.f32 %v13860_v22, %v19037_v34  ;;  %v12295_v33 = vpop.permute.xlu0 %12294  ;;  %v11929_v28 = vpop.f32.mrb[59].mxu0 }
 0x68d   : > { %v12176_v1 = vpop.permute.xlu1 %12175  ;;  %12383 = vst.msk [vmem:[%s18040_s29 + $0x40] sm:$0xff] %vm12374_vm15, %v12295_v33  ;;  %v11930_v32 = vadd.f32 %v19037_v34, %v11929_v28  ;;  %v12029_v30 = vmax.f32 %v11927_v63, 0.0 }
 0x68e   : > { %12243 = vst.msk [vmem:[%s18040_s29 + $0xe8] sm:$0xff] %vm12213_vm11, %v12176_v1  ;;  %v12032_v53 = vmax.f32 %v11938_v4, 0.0  ;;  %12459 = vrot.lane.b32.xlu0 %v12031_v3, %s14760_s15 }
 0x68f   : > { %v12030_v15 = vmax.f32 %v11930_v32, 0.0 }
 0x690   : > { %v12299_v37 = vpop.permute.xlu0 %12298  ;;  %12461 = vrot.lane.b32.xlu1 %v12032_v53, %s14760_s15 }
 0x691   : > { %v12180_v50 = vpop.permute.xlu1 %12179  ;;  %12385 = vst.msk [vmem:[%s18040_s29 + $0x50] sm:$0xff] %vm12374_vm15, %v12299_v37 }
 0x692   : > { %12245 = vst.msk [vmem:[%s18040_s29 + $0xf8] sm:$0xff] %vm12213_vm11, %v12180_v50  ;;  %12455 = vrot.lane.b32.xlu0 %v12029_v30, %s14760_s15 }
 0x694   : > { %v12303_v52 = vpop.permute.xlu0 %12302  ;;  %12457 = vrot.lane.b32.xlu1 %v12030_v15, %s14760_s15 }
 0x695   : > { %v12281_v0 = vpop.permute.xlu1 %12280  ;;  %12387 = vst.msk [vmem:[%s18040_s29 + $0x60] sm:$0xff] %vm12374_vm15, %v12303_v52 }
 0x696   : > { %12376 = vst.msk [vmem:[%s18040_s29 + $0x8] sm:$0xff] %vm12374_vm15, %v12281_v0 }
 0x698   : > { %v12307_v45 = vpop.permute.xlu0 %12306 }
 0x699   : > { %v12285_v38 = vpop.permute.xlu1 %12284  ;;  %12389 = vst.msk [vmem:[%s18040_s29 + $0x70] sm:$0xff] %vm12374_vm15, %v12307_v45 }
 0x69a   : > { %12378 = vst.msk [vmem:[%s18040_s29 + $0x18] sm:$0xff] %vm12374_vm15, %v12285_v38 }
 0x69c   : > { %v12311_v56 = vpop.permute.xlu0 %12310 }
 0x69d   : > { %v12289_v29 = vpop.permute.xlu1 %12288  ;;  %12391 = vst.msk [vmem:[%s18040_s29 + $0x80] sm:$0xff] %vm12374_vm15, %v12311_v56 }
 0x69e   : > { %12380 = vst.msk [vmem:[%s18040_s29 + $0x28] sm:$0xff] %vm12374_vm15, %v12289_v29 }
 0x6a0   : > { %v12315_v12 = vpop.permute.xlu0 %12314 }
 0x6a1   : > { %v12293_v8 = vpop.permute.xlu1 %12292  ;;  %12393 = vst.msk [vmem:[%s18040_s29 + $0x90] sm:$0xff] %vm12374_vm15, %v12315_v12 }
 0x6a2   : > { %12382 = vst.msk [vmem:[%s18040_s29 + $0x38] sm:$0xff] %vm12374_vm15, %v12293_v8 }
 0x6a4   : > { %v12319_v7 = vpop.permute.xlu0 %12318 }
 0x6a5   : > { %v12297_v31 = vpop.permute.xlu1 %12296  ;;  %12395 = vst.msk [vmem:[%s18040_s29 + $0xa0] sm:$0xff] %vm12374_vm15, %v12319_v7 }
 0x6a6   : > { %12384 = vst.msk [vmem:[%s18040_s29 + $0x48] sm:$0xff] %vm12374_vm15, %v12297_v31 }
 0x6a8   : > { %v12323_v26 = vpop.permute.xlu0 %12322 }
 0x6a9   : > { %v12301_v24 = vpop.permute.xlu1 %12300  ;;  %12397 = vst.msk [vmem:[%s18040_s29 + $0xb0] sm:$0xff] %vm12374_vm15, %v12323_v26 }
 0x6aa   : > { %12386 = vst.msk [vmem:[%s18040_s29 + $0x58] sm:$0xff] %vm12374_vm15, %v12301_v24 }
 0x6ac   : > { %v12327_v14 = vpop.permute.xlu0 %12326 }
 0x6ad   : > { %v12305_v35 = vpop.permute.xlu1 %12304  ;;  %12399 = vst.msk [vmem:[%s18040_s29 + $0xc0] sm:$0xff] %vm12374_vm15, %v12327_v14 }
 0x6ae   : > { %12388 = vst.msk [vmem:[%s18040_s29 + $0x68] sm:$0xff] %vm12374_vm15, %v12305_v35 }
 0x6b0   : > { %v12331_v54 = vpop.permute.xlu0 %12330 }
 0x6b1   : > { %v12309_v25 = vpop.permute.xlu1 %12308  ;;  %12401 = vst.msk [vmem:[%s18040_s29 + $0xd0] sm:$0xff] %vm12374_vm15, %v12331_v54 }
 0x6b2   : > { %12390 = vst.msk [vmem:[%s18040_s29 + $0x78] sm:$0xff] %vm12374_vm15, %v12309_v25 }
 0x6b4   : > { %v12335_v18 = vpop.permute.xlu0 %12334 }
 0x6b5   : > { %v12313_v42 = vpop.permute.xlu1 %12312  ;;  %12403 = vst.msk [vmem:[%s18040_s29 + $0xe0] sm:$0xff] %vm12374_vm15, %v12335_v18 }
 0x6b6   : > { %12392 = vst.msk [vmem:[%s18040_s29 + $0x88] sm:$0xff] %vm12374_vm15, %v12313_v42 }
 0x6b8   : > { %v12339_v43 = vpop.permute.xlu0 %12338 }
 0x6b9   : > { %v12317_v41 = vpop.permute.xlu1 %12316  ;;  %12405 = vst.msk [vmem:[%s18040_s29 + $0xf0] sm:$0xff] %vm12374_vm15, %v12339_v43 }
 0x6ba   : > { %12394 = vst.msk [vmem:[%s18040_s29 + $0x98] sm:$0xff] %vm12374_vm15, %v12317_v41 }
 0x6bc   : > { %v12444_v17 = vpop.permute.xlu0 %12443 }
 0x6bd   : > { %v12321_v61 = vpop.permute.xlu1 %12320  ;;  %v13863_v62 = vpop.f32.mrb[60].mxu0  ;;  %12538 = vst.msk [vmem:[%s18040_s29 + $0x10] sm:$0xff] %vm12535_vm0, %v12444_v17 }
 0x6be   : > { %12396 = vst.msk [vmem:[%s18040_s29 + $0xa8] sm:$0xff] %vm12374_vm15, %v12321_v61  ;;  %v11951_v13 = vadd.f32 %v13863_v62, %v19037_v34  ;;  %v11942_v48 = vpop.f32.mrb[61].mxu0 }
 0x6bf   : > { %v13864_v39 = vpop.f32.mrb[62].mxu0  ;;  %v11943_v5 = vadd.f32 %v19037_v34, %v11942_v48 }
 0x6c0   : > { %v12035_v11 = vmax.f32 %v11951_v13, 0.0  ;;  %v11954_v60 = vadd.f32 %v13864_v39, %v19037_v34  ;;  %v11945_v46 = vpop.f32.mrb[63].mxu0  ;;  %v12440_v16 = vpop.permute.xlu0 %12439 }
 0x6c1   : > { %v12325_v23 = vpop.permute.xlu1 %12324  ;;  %v11946_v44 = vadd.f32 %v19037_v34, %v11945_v46  ;;  %v12033_v9 = vmax.f32 %v11943_v5, 0.0  ;;  %12536 = vst.msk [vmem:[%s18040_s29] sm:$0xff] %vm12535_vm0, %v12440_v16 }
 0x6c2   : > { %v12036_v2 = vmax.f32 %v11954_v60, 0.0  ;;  %12398 = vst.msk [vmem:[%s18040_s29 + $0xb8] sm:$0xff] %vm12374_vm15, %v12325_v23  ;;  %12467 = vrot.lane.b32.xlu0 %v12035_v11, %s14760_s15 }
 0x6c3   : > { %v12034_v19 = vmax.f32 %v11946_v44, 0.0 }
 0x6c4   : > { %12469 = vrot.lane.b32.xlu1 %v12036_v2, %s14760_s15  ;;  %v12452_v49 = vpop.permute.xlu0 %12451 }
 0x6c5   : > { %v12329_v58 = vpop.permute.xlu1 %12328  ;;  %12542 = vst.msk [vmem:[%s18040_s29 + $0x30] sm:$0xff] %vm12535_vm0, %v12452_v49 }
 0x6c6   : > { %12400 = vst.msk [vmem:[%s18040_s29 + $0xc8] sm:$0xff] %vm12374_vm15, %v12329_v58  ;;  %12463 = vrot.lane.b32.xlu0 %v12033_v9, %s14760_s15 }
 0x6c8   : > { %12465 = vrot.lane.b32.xlu1 %v12034_v19, %s14760_s15  ;;  %v12448_v51 = vpop.permute.xlu0 %12447 }
 0x6c9   : > { %v12333_v47 = vpop.permute.xlu1 %12332  ;;  %12540 = vst.msk [vmem:[%s18040_s29 + $0x20] sm:$0xff] %vm12535_vm0, %v12448_v51 }
 0x6ca   : > { %12402 = vst.msk [vmem:[%s18040_s29 + $0xd8] sm:$0xff] %vm12374_vm15, %v12333_v47 }
 0x6cd   : > { %v12337_v57 = vpop.permute.xlu1 %12336 }
 0x6ce   : > { %12404 = vst.msk [vmem:[%s18040_s29 + $0xe8] sm:$0xff] %vm12374_vm15, %v12337_v57 }
 0x6d1   : > { %v12341_v40 = vpop.permute.xlu1 %12340 }
 0x6d2   : > { %12406 = vst.msk [vmem:[%s18040_s29 + $0xf8] sm:$0xff] %vm12374_vm15, %v12341_v40 }
 0x6d5   : > { %v12446_v36 = vpop.permute.xlu1 %12445 }
 0x6d6   : > { %12539 = vst.msk [vmem:[%s18040_s29 + $0x18] sm:$0xff] %vm12535_vm0, %v12446_v36 }
 0x6d9   : > { %v13867_v55 = vpop.f32.mrb[64].mxu0  ;;  %v12442_v21 = vpop.permute.xlu1 %12441 }
 0x6da   : > { %v11967_v59 = vadd.f32 %v13867_v55, %v19037_v34  ;;  %12537 = vst.msk [vmem:[%s18040_s29 + $0x8] sm:$0xff] %vm12535_vm0, %v12442_v21  ;;  %v11958_v6 = vpop.f32.mrb[65].mxu0 }
 0x6db   : > { %v13868_v27 = vpop.f32.mrb[66].mxu0  ;;  %v11959_v1 = vadd.f32 %v19037_v34, %v11958_v6 }
 0x6dc   : > { %v12039_v10 = vmax.f32 %v11967_v59, 0.0  ;;  %v11970_v20 = vadd.f32 %v13868_v27, %v19037_v34  ;;  %v11961_v22 = vpop.f32.mrb[67].mxu0 }
 0x6dd   : > { %v12454_v3 = vpop.permute.xlu1 %12453  ;;  %v11962_v4 = vadd.f32 %v19037_v34, %v11961_v22  ;;  %v12037_v33 = vmax.f32 %v11959_v1, 0.0 }
 0x6de   : > { %v12040_v63 = vmax.f32 %v11970_v20, 0.0  ;;  %12543 = vst.msk [vmem:[%s18040_s29 + $0x38] sm:$0xff] %vm12535_vm0, %v12454_v3  ;;  %12475 = vrot.lane.b32.xlu0 %v12039_v10, %s14760_s15 }
 0x6df   : > { %v12038_v53 = vmax.f32 %v11962_v4, 0.0 }
 0x6e0   : > { %12477 = vrot.lane.b32.xlu1 %v12040_v63, %s14760_s15 }
 0x6e1   : > { %v12450_v28 = vpop.permute.xlu1 %12449 }
 0x6e2   : > { %12541 = vst.msk [vmem:[%s18040_s29 + $0x28] sm:$0xff] %vm12535_vm0, %v12450_v28  ;;  %12471 = vrot.lane.b32.xlu0 %v12037_v33, %s14760_s15 }
 0x6e4   : > { %12473 = vrot.lane.b32.xlu1 %v12038_v53, %s14760_s15 }
 0x6f5   : > { %v13871_v32 = vpop.f32.mrb[68].mxu0 }
 0x6f6   : > { %v11983_v50 = vadd.f32 %v13871_v32, %v19037_v34  ;;  %v11974_v30 = vpop.f32.mrb[69].mxu0 }
 0x6f7   : > { %v13872_v37 = vpop.f32.mrb[70].mxu0  ;;  %v11975_v0 = vadd.f32 %v19037_v34, %v11974_v30 }
 0x6f8   : > { %v12043_v15 = vmax.f32 %v11983_v50, 0.0  ;;  %v11986_v52 = vadd.f32 %v13872_v37, %v19037_v34  ;;  %v11977_v38 = vpop.f32.mrb[71].mxu0 }
 0x6f9   : > { %v11978_v29 = vadd.f32 %v19037_v34, %v11977_v38  ;;  %v12041_v56 = vmax.f32 %v11975_v0, 0.0 }
 0x6fa   : > { %v12044_v45 = vmax.f32 %v11986_v52, 0.0  ;;  %12483 = vrot.lane.b32.xlu0 %v12043_v15, %s14760_s15 }
 0x6fb   : > { %v12042_v8 = vmax.f32 %v11978_v29, 0.0 }
 0x6fc   : > { %12485 = vrot.lane.b32.xlu1 %v12044_v45, %s14760_s15 }
 0x6fe   : > { %12479 = vrot.lane.b32.xlu0 %v12041_v56, %s14760_s15 }
 0x700   : > { %12481 = vrot.lane.b32.xlu1 %v12042_v8, %s14760_s15  ;;  %v12460_v12 = vpop.permute.xlu0 %12459 }
 0x701   : > { %12546 = vst.msk [vmem:[%s18040_s29 + $0x50] sm:$0xff] %vm12535_vm0, %v12460_v12 }
 0x702   : > { %v12462_v31 = vpop.permute.xlu1 %12461 }
 0x703   : > { %12547 = vst.msk [vmem:[%s18040_s29 + $0x58] sm:$0xff] %vm12535_vm0, %v12462_v31 }
 0x704   : > { %v12456_v7 = vpop.permute.xlu0 %12455 }
 0x705   : > { %12544 = vst.msk [vmem:[%s18040_s29 + $0x40] sm:$0xff] %vm12535_vm0, %v12456_v7 }
 0x706   : > { %v12458_v24 = vpop.permute.xlu1 %12457 }
 0x707   : > { %12545 = vst.msk [vmem:[%s18040_s29 + $0x48] sm:$0xff] %vm12535_vm0, %v12458_v24 }
 0x711   : > { %v13875_v26 = vpop.f32.mrb[72].mxu0 }
 0x712   : > { %v11999_v35 = vadd.f32 %v13875_v26, %v19037_v34  ;;  %v11990_v14 = vpop.f32.mrb[73].mxu0 }
 0x713   : > { %v13876_v25 = vpop.f32.mrb[74].mxu0  ;;  %v11991_v42 = vadd.f32 %v19037_v34, %v11990_v14 }
 0x714   : > { %v12047_v54 = vmax.f32 %v11999_v35, 0.0  ;;  %v12002_v18 = vadd.f32 %v13876_v25, %v19037_v34  ;;  %v11993_v41 = vpop.f32.mrb[75].mxu0 }
 0x715   : > { %v11994_v61 = vadd.f32 %v19037_v34, %v11993_v41  ;;  %v12045_v62 = vmax.f32 %v11991_v42, 0.0 }
 0x716   : > { %v12048_v43 = vmax.f32 %v12002_v18, 0.0  ;;  %12491 = vrot.lane.b32.xlu0 %v12047_v54, %s14760_s15 }
 0x717   : > { %v12046_v13 = vmax.f32 %v11994_v61, 0.0 }
 0x718   : > { %12493 = vrot.lane.b32.xlu1 %v12048_v43, %s14760_s15 }
 0x71a   : > { %12487 = vrot.lane.b32.xlu0 %v12045_v62, %s14760_s15 }
 0x71c   : > { %12489 = vrot.lane.b32.xlu1 %v12046_v13, %s14760_s15 }
 0x72d   : > { %v13879_v48 = vpop.f32.mrb[76].mxu0 }
 0x72e   : > { %v12006_v17 = vpop.f32.mrb[77].mxu0  ;;  %v12015_v60 = vadd.f32 %v13879_v48, %v19037_v34 }
 0x72f   : > { %v12007_v39 = vadd.f32 %v19037_v34, %v12006_v17  ;;  %v13880_v11 = vpop.f32.mrb[78].mxu0 }
 0x730   : > { %v12009_v5 = vpop.f32.mrb[79].mxu0  ;;  %v12018_v2 = vadd.f32 %v13880_v11, %v19037_v34  ;;  %v12051_v9 = vmax.f32 %v12015_v60, 0.0 }
 0x731   : > { %v12049_v46 = vmax.f32 %v12007_v39, 0.0  ;;  %v12010_v23 = vadd.f32 %v19037_v34, %v12009_v5 }
 0x732   : > { %v12052_v19 = vmax.f32 %v12018_v2, 0.0 }
 0x733   : > { %v12050_v44 = vmax.f32 %v12010_v23, 0.0  ;;  %12495 = vrot.lane.b32.xlu0 %v12049_v46, %s14760_s15 }
 0x734   : > { %v12468_v16 = vpop.permute.xlu0 %12467 }
 0x735   : > { %12550 = vst.msk [vmem:[%s18040_s29 + $0x70] sm:$0xff] %vm12535_vm0, %v12468_v16  ;;  %12497 = vrot.lane.b32.xlu1 %v12050_v44, %s14760_s15 }
 0x736   : > { %v12470_v58 = vpop.permute.xlu1 %12469 }
 0x737   : > { %12551 = vst.msk [vmem:[%s18040_s29 + $0x78] sm:$0xff] %vm12535_vm0, %v12470_v58  ;;  %12499 = vrot.lane.b32.xlu0 %v12051_v9, %s14760_s15 }
 0x738   : > { %v12464_v34 = vpop.permute.xlu0 %12463 }
 0x739   : > { %12548 = vst.msk [vmem:[%s18040_s29 + $0x60] sm:$0xff] %vm12535_vm0, %v12464_v34  ;;  %12501 = vrot.lane.b32.xlu1 %v12052_v19, %s14760_s15  ;;  %s14761_s15 = smov [#allocation5]  }
 0x73a   : > { %v12466_v49 = vpop.permute.xlu1 %12465  ;;  %s14683_s24 = sshll.u32 %s14761_s15, 4  ;;  %s14684_s24 = int_to_ptr.vmem [resolvable:$false] %s14683_s24 }
 0x73b   : > { %12549 = vst.msk [vmem:[%s18040_s29 + $0x68] sm:$0xff] %vm12535_vm0, %v12466_v49  ;;  %s14685_s30 = scalar_lea.vmem %s14684_s24, 8192  ;;  %p14686_p0 = scmp.lt.s32.totalorder %s19333_s12, %s14684_s24 }
 0x73c   : > { %p14687_p1 = scmp.lt.s32.totalorder %s14685_s30, %s14679_s14 }
 0x73e   : > { %p14688_p2 = por %p14687_p1, %p14686_p0 }
 0x740   : > { %p14689_p3 = pnand %p14688_p2, %p14682_p13 }
 0x750   : > { %v12476_v47 = vpop.permute.xlu0 %12475 }
 0x751   : > { %12554 = vst.msk [vmem:[%s18040_s29 + $0x90] sm:$0xff] %vm12535_vm0, %v12476_v47 }
 0x752   : > { %v12478_v51 = vpop.permute.xlu1 %12477 }
 0x753   : > { %12555 = vst.msk [vmem:[%s18040_s29 + $0x98] sm:$0xff] %vm12535_vm0, %v12478_v51 }
 0x754   : > { %v12472_v57 = vpop.permute.xlu0 %12471 }
 0x755   : > { %12552 = vst.msk [vmem:[%s18040_s29 + $0x80] sm:$0xff] %vm12535_vm0, %v12472_v57 }
 0x756   : > { %v12474_v40 = vpop.permute.xlu1 %12473 }
 0x757   : > { %12553 = vst.msk [vmem:[%s18040_s29 + $0x88] sm:$0xff] %vm12535_vm0, %v12474_v40 }
 0x76c   : > { %v12484_v36 = vpop.permute.xlu0 %12483 }
 0x76d   : > { %12558 = vst.msk [vmem:[%s18040_s29 + $0xb0] sm:$0xff] %vm12535_vm0, %v12484_v36 }
 0x76e   : > { %v12486_v55 = vpop.permute.xlu1 %12485 }
 0x76f   : > { %12559 = vst.msk [vmem:[%s18040_s29 + $0xb8] sm:$0xff] %vm12535_vm0, %v12486_v55 }
 0x770   : > { %v12480_v21 = vpop.permute.xlu0 %12479 }
 0x771   : > { %12556 = vst.msk [vmem:[%s18040_s29 + $0xa0] sm:$0xff] %vm12535_vm0, %v12480_v21 }
 0x772   : > { %v12482_v59 = vpop.permute.xlu1 %12481 }
 0x773   : > { %12557 = vst.msk [vmem:[%s18040_s29 + $0xa8] sm:$0xff] %vm12535_vm0, %v12482_v59 }
 0x788   : > { %v12492_v6 = vpop.permute.xlu0 %12491 }
 0x789   : > { %12562 = vst.msk [vmem:[%s18040_s29 + $0xd0] sm:$0xff] %vm12535_vm0, %v12492_v6 }
 0x78a   : > { %v12494_v27 = vpop.permute.xlu1 %12493 }
 0x78b   : > { %12563 = vst.msk [vmem:[%s18040_s29 + $0xd8] sm:$0xff] %vm12535_vm0, %v12494_v27 }
 0x78c   : > { %v12488_v10 = vpop.permute.xlu0 %12487 }
 0x78d   : > { %12560 = vst.msk [vmem:[%s18040_s29 + $0xc0] sm:$0xff] %vm12535_vm0, %v12488_v10 }
 0x78e   : > { %v12490_v1 = vpop.permute.xlu1 %12489 }
 0x78f   : > { %12561 = vst.msk [vmem:[%s18040_s29 + $0xc8] sm:$0xff] %vm12535_vm0, %v12490_v1 }
 0x7a5   : > { %v12496_v20 = vpop.permute.xlu0 %12495 }
 0x7a6   : > { %12564 = vst.msk [vmem:[%s18040_s29 + $0xe0] sm:$0xff] %vm12535_vm0, %v12496_v20 }
 0x7a7   : > { %v12498_v22 = vpop.permute.xlu1 %12497 }
 0x7a8   : > { %12565 = vst.msk [vmem:[%s18040_s29 + $0xe8] sm:$0xff] %vm12535_vm0, %v12498_v22 }
 0x7a9   : > { %v12500_v3 = vpop.permute.xlu0 %12499 }
 0x7aa   : > { %12566 = vst.msk [vmem:[%s18040_s29 + $0xf0] sm:$0xff] %vm12535_vm0, %v12500_v3 }
 0x7ab   : > { %v12502_v63 = vpop.permute.xlu1 %12501 }
 0x7ac   : > { %12567 = vst.msk [vmem:[%s18040_s29 + $0xf8] sm:$0xff] %vm12535_vm0, %v12502_v63 }
 0x7ad   : > { %14692 = shalt.err (!%p14689_p3)
}
 0x7ae   : > { %s14693_s29 = scalar_lea.hbm %s19329_s16, 4096  ;;  %s14697_s15 = scalar_lea.hbm %s19392_s11, 8192 }
 0x7af   : > { %p14694_p4 = scmp.ne.s32.totalorder %s19329_s16, %s14693_s29  ;;  %p14698_p9 = scmp.lt.u32.totalorder %s19329_s16, %s19392_s11 }
 0x7b0   : > { %p14699_p10 = scmp.lt.u32.totalorder %s14697_s15, %s14693_s29  ;;  %p14701_p12 = scmp.lt.u32.totalorder %s14693_s29, %s19329_s16 }
 0x7b1   : > { %p14695_p7 = pnand %p14694_p4, %p14861_p5 }
 0x7b2   : > { %p14700_p11 = por %p14699_p10, %p14698_p9 }
 0x7b3   : > { %p14696_p8 = pneg %p14695_p7 }
 0x7b4   : > { %p14702_p13 = por %p14701_p12, %p14700_p11 }
 0x7b6   : > { %p14703_p0 = pnand %p14702_p13, %p14696_p8 }
 0x7b8   : > { %14706 = shalt.err (!%p14703_p0)
}
 0x7b9   : > { %s14762_s14 = smov 128   ;;  %s20125_s30 = smov 8  }
 0x7ba   : > { %13889 = dma.vmem_to_hbm [thread:$0]  (%p14861_p5), %s19333_s12, 4096, %s19329_s16, %s19339_s25, %s14762_s14, %s14762_s14, %s20125_s30  }
 0x7bb PF: > { %p13895_p1 = scmp.ge.s32.totalorder %s14741_s20, 2  ;;  %s12597_s22 = sand.u32 1, %s14729_s17  }
 0x7bc   : > { %s12598_s29 = scalar_lea.sflag [#allocation6], %s12597_s22 }
 0x7bd   : > { %p13892_p2 = pnand %p13895_p1, %p14865_p6 }
 0x7bf   : > { %14724 = dma.done.wait (!%p13892_p2), %s12598_s29, 4096  }
 0x7c0   : > { %14726 = vsyncadd (!%p13892_p2), %s12598_s29, 4294963200  ;;  %p21_p3 = scmp.ge.s32.totalorder %s14848_s23, 4   ;;  %s20126_s17 = smov %s14733_s18 }
 0x7c1   : > { %s20127_s18 = smov %s14737_s19  ;;  %s20128_s19 = smov %s14859_s26 }
 0x7c2   : > { %s20129_s20 = smov %s14848_s23  ;;  %23 = sbr.rel (!%p21_p3) target bundleno = 3 (0x3), region = 105 }
 0x7c9   :  { %12603 = vsyncpa [#allocation6], 1 }
 0x7ca   :  { %12605 = vsyncpa [#allocation6 + $0x1], 1 }

</bundles_post_ra>
